<compile_context>
chip_gen: v5e
topology: v5e:2x2
jax: 0.10.0
libtpu: 0.0.40
codegen_flags: <defaults>
</compile_context>

<pallas_src>
import functools

import jax
import jax.numpy as jnp
from jax import lax
from jax.experimental import pallas as pl
from jax.experimental.pallas import tpu as pltpu

HIDDEN = 512      # fixed by the module's __init__
HALO = 8          # total "valid" shrink: (3-1) + (3-1) + (5-1)
HALO_BLK = 16     # halo fetched as a 16-row block (bf16 sublane packing)


def _round_up(x, m):
    return (x + m - 1) // m * m


def _conv_relu_im2col(h, w_ref, b_ref, k, out_dtype):
    """Valid 1-D conv (+bias+ReLU) over channels-last rows via one MXU matmul.

    h:     (rows_in, Cin)   bf16 activation rows (rows shrink by k-1)
    w_ref: (k * Cin, Cout)  bf16 weights, tap-major rows [tap0 | tap1 | ...]
    b_ref: (1, Cout)        f32 bias
    Returns (rows_in - (k-1), Cout) in out_dtype (bf16 between layers).
    """
    rows = h.shape[0] - (k - 1)
    if k == 1:
        slab = h
    else:
        # im2col: single bf16 (rows, k*Cin) slab -> one deep MXU contraction.
        slab = jnp.concatenate([h[j:j + rows, :] for j in range(k)], axis=1)
    acc = jnp.dot(slab, w_ref[...], preferred_element_type=jnp.float32)
    # bias + ReLU in f32, then immediate narrow cast (bf16 for hidden layers).
    return jnp.maximum(acc + b_ref[...], 0.0).astype(out_dtype)


def _film_kernel(xb_ref, xh_ref,
                 wp_ref, bp_ref, wp2_ref, bp2_ref,
                 w0_ref, b0_ref, w1_ref, b1_ref,
                 out_ref):
    """One (batch, L-tile) grid step: TILE_L output rows of the full network."""
    # (TILE_L + 8, Cpad) bf16 input window = pipelined bulk block + the first
    # 8 rows of the 16-row halo block.
    x_win = jnp.concatenate([xb_ref[...], xh_ref[...][:HALO, :]], axis=0)

    h = _conv_relu_im2col(x_win, wp_ref, bp_ref, 1, jnp.bfloat16)   # (T+8, 512)
    h = _conv_relu_im2col(h, wp2_ref, bp2_ref, 3, jnp.bfloat16)     # (T+6, 512)
    h = _conv_relu_im2col(h, w0_ref, b0_ref, 3, jnp.bfloat16)       # (T+4, 512)
    h = _conv_relu_im2col(h, w1_ref, b1_ref, 5, out_ref.dtype)      # (T,   512)
    out_ref[...] = h


def init_params(key, in_channel):
    """Deterministic synthetic weights (PyTorch default-ish uniform scale).

    Weight layout is (K, Cin, Cout); bias is (1, Cout).
    """
    specs = [
        ("conv_pre", 1, in_channel, HIDDEN),
        ("conv_pre2", 3, HIDDEN, HIDDEN),
        ("conv0", 3, HIDDEN, HIDDEN),
        ("conv1", 5, HIDDEN, HIDDEN),
    ]
    params = {}
    for name, k, cin, cout in specs:
        key, kw, kb = jax.random.split(key, 3)
        bound = 1.0 / jnp.sqrt(cin * k)
        params[name] = {
            "w": jax.random.uniform(kw, (k, cin, cout), jnp.float32,
                                    -bound, bound),
            "b": jax.random.uniform(kb, (1, cout), jnp.float32,
                                    -bound, bound),
        }
    return params


def _pack_params(params, cin, c_pad):
    """(K, Cin, Cout) f32 -> tap-major (K*Cin_pad, Cout) bf16 + (1, Cout) f32."""
    packed = []
    for name in ("conv_pre", "conv_pre2", "conv0", "conv1"):
        w = params[name]["w"]                                   # (K, Cin, Cout)
        if name == "conv_pre":
            w = jnp.pad(w, ((0, 0), (0, c_pad - cin), (0, 0)))
        k, ci, co = w.shape
        packed.append(w.reshape(k * ci, co).astype(jnp.bfloat16))
        packed.append(params[name]["b"].astype(jnp.float32))    # (1, Cout)
    return packed


@functools.partial(jax.jit, static_argnames=("tile_l", "out_dtype"))
def ian_film_generator2(x_ncl, params, *, tile_l=512, out_dtype=jnp.float32):
    """x_ncl: (B, Cin, L) exactly like the PyTorch Conv1d input."""
    B, cin, L = x_ncl.shape
    l_out = L - HALO
    assert l_out >= 1, "input length must be > 8"
    # Lane-pad tiny Cin so conv_pre is a real MXU matmul; supports cin > 128.
    c_pad = max(128, _round_up(cin, 128))

    # L-tile: multiple of 16 (bf16 sublane packing), no larger than the
    # (16-aligned) output length.
    t = max(16, min(_round_up(tile_l, 16), _round_up(l_out, 16)))
    assert t % HALO_BLK == 0, (t, HALO_BLK)
    n_tiles = pl.cdiv(l_out, t)
    l_out_pad = n_tiles * t
    l_in_pad = l_out_pad + HALO_BLK     # last tile's 16-row halo stays in bounds

    # Glue: NCL -> NLC (channels-last) in bf16; zero-pad channels to the lane
    # width and the length so every bulk tile plus its halo block is in bounds.
    x_nlc = jnp.transpose(x_ncl, (0, 2, 1)).astype(jnp.bfloat16)
    x_p = jnp.pad(x_nlc, ((0, 0), (0, l_in_pad - L), (0, c_pad - cin)))

    weight_args = _pack_params(params, cin, c_pad)
    # Weights/biases: full-shape blocks, constant index map -> DMA'd once,
    # VMEM-resident for the whole grid.
    weight_specs = [pl.BlockSpec(a.shape, lambda b, i: (0, 0))
                    for a in weight_args]

    y = pl.pallas_call(
        _film_kernel,
        out_shape=jax.ShapeDtypeStruct((B, l_out_pad, HIDDEN), out_dtype),
        grid=(B, n_tiles),
        in_specs=[
            # bulk rows [i*t, i*t + t)
            pl.BlockSpec((None, t, c_pad), lambda b, i: (b, i, 0)),
            # 16-row halo block starting at (i+1)*t (only first 8 rows used)
            pl.BlockSpec((None, HALO_BLK, c_pad),
                         lambda b, i: (b, (i + 1) * (t // HALO_BLK), 0)),
            *weight_specs,
        ],
        out_specs=pl.BlockSpec((None, t, HIDDEN), lambda b, i: (b, i, 0)),
        compiler_params=pltpu.CompilerParams(
            dimension_semantics=("parallel", "parallel"),
            vmem_limit_bytes=48 << 20,   # < v7x 64 MiB physical VMEM
        ),
    )(x_p, x_p, *weight_args)

    # Drop length padding; kernel output (B, L-8, 512) already equals y2.
    return [y[:, :l_out, :]]


def _reference(x_ncl, params):
    """Independent pure-JAX reference (lax.conv, NCL layout); bf16 matmul
    inputs with f32 accumulation to mirror the kernel's MXU numerics."""
    h = x_ncl.astype(jnp.float32)
    for name in ("conv_pre", "conv_pre2", "conv0", "conv1"):
        w = jnp.transpose(params[name]["w"], (2, 1, 0))   # (Cout, Cin, K)
        b = params[name]["b"][0]
        h = lax.conv_general_dilated(
            h.astype(jnp.bfloat16), w.astype(jnp.bfloat16),
            window_strides=(1,), padding="VALID",
            dimension_numbers=("NCH", "OIH", "NCH"),
            preferred_element_type=jnp.float32)
        h = jnp.maximum(h + b[None, :, None], 0.0)
    return jnp.transpose(h, (0, 2, 1))                    # y2 = x.transpose(1,2)


if __name__ == "__main__":
    key = jax.random.PRNGKey(0)
    k_x, k_p = jax.random.split(key)

    # Small shapes; L=40 -> L_out=32, tile_l=16 -> grid=(2, 2) exercises the
    # multi-tile + halo path.
    B, in_channel, L = 2, 4, 40
    x = jax.random.normal(k_x, (B, in_channel, L), jnp.float32)
    params = init_params(k_p, in_channel)

    (y2,) = ian_film_generator2(x, params, tile_l=16)
    y2 = jax.block_until_ready(y2)
    assert y2.shape == (B, L - 8, HIDDEN), y2.shape

    y2_ref = jax.block_until_ready(_reference(x, params))
    max_err = float(jnp.max(jnp.abs(y2 - y2_ref)))
    assert jnp.allclose(y2, y2_ref, rtol=1e-2, atol=1e-2), max_err

    print("KERNEL_OK")
</pallas_src>

<mosaic_0001>
module attributes {stable_mosaic.version = 11 : i64} {
  func.func @_film_kernel(%arg0: i32, %arg1: i32, %arg2: memref<1x16x128xbf16, #tpu.memory_space<vmem>>, %arg3: memref<1x16x128xbf16, #tpu.memory_space<vmem>>, %arg4: memref<128x512xbf16, #tpu.memory_space<vmem>>, %arg5: memref<1x512xf32, #tpu.memory_space<vmem>>, %arg6: memref<1536x512xbf16, #tpu.memory_space<vmem>>, %arg7: memref<1x512xf32, #tpu.memory_space<vmem>>, %arg8: memref<1536x512xbf16, #tpu.memory_space<vmem>>, %arg9: memref<1x512xf32, #tpu.memory_space<vmem>>, %arg10: memref<2560x512xbf16, #tpu.memory_space<vmem>>, %arg11: memref<1x512xf32, #tpu.memory_space<vmem>>, %arg12: memref<1x16x512xf32, #tpu.memory_space<vmem>>) attributes {dimension_semantics = [#tpu.dimension_semantics<parallel>, #tpu.dimension_semantics<parallel>], iteration_bounds = array<i64: 2, 2>, scalar_prefetch = 0 : i64, scratch_operands = 0 : i64, tpu.core_type = #tpu.core_type<tc>, window_params = [{transform_indices = @transform_0, window_bounds = array<i64: 1, 16, 128>}, {transform_indices = @transform_1, window_bounds = array<i64: 1, 16, 128>}, {pipeline_mode = #tpu.pipeline_mode<synchronous>, transform_indices = @transform_2, window_bounds = array<i64: 128, 512>}, {pipeline_mode = #tpu.pipeline_mode<synchronous>, transform_indices = @transform_3, window_bounds = array<i64: 1, 512>}, {pipeline_mode = #tpu.pipeline_mode<synchronous>, transform_indices = @transform_4, window_bounds = array<i64: 1536, 512>}, {pipeline_mode = #tpu.pipeline_mode<synchronous>, transform_indices = @transform_5, window_bounds = array<i64: 1, 512>}, {pipeline_mode = #tpu.pipeline_mode<synchronous>, transform_indices = @transform_6, window_bounds = array<i64: 1536, 512>}, {pipeline_mode = #tpu.pipeline_mode<synchronous>, transform_indices = @transform_7, window_bounds = array<i64: 1, 512>}, {pipeline_mode = #tpu.pipeline_mode<synchronous>, transform_indices = @transform_8, window_bounds = array<i64: 2560, 512>}, {pipeline_mode = #tpu.pipeline_mode<synchronous>, transform_indices = @transform_9, window_bounds = array<i64: 1, 512>}, {transform_indices = @transform_10, window_bounds = array<i64: 1, 16, 512>}]} {
    %c0 = arith.constant 0 : index
    %c0_0 = arith.constant 0 : index
    %c0_1 = arith.constant 0 : index
    %0 = vector.load %arg2[%c0, %c0_0, %c0_1] : memref<1x16x128xbf16, #tpu.memory_space<vmem>>, vector<1x16x128xbf16>
    %1 = vector.shape_cast %0 : vector<1x16x128xbf16> to vector<16x128xbf16>
    %c0_2 = arith.constant 0 : index
    %c0_3 = arith.constant 0 : index
    %c0_4 = arith.constant 0 : index
    %2 = vector.load %arg3[%c0_2, %c0_3, %c0_4] : memref<1x16x128xbf16, #tpu.memory_space<vmem>>, vector<1x16x128xbf16>
    %3 = vector.shape_cast %2 : vector<1x16x128xbf16> to vector<16x128xbf16>
    %4 = vector.extract_strided_slice %3 {offsets = [0, 0], sizes = [8, 128], strides = [1, 1]} : vector<16x128xbf16> to vector<8x128xbf16>
    %5 = tpu.concatenate %1, %4 in 0 : vector<16x128xbf16>, vector<8x128xbf16> -> vector<24x128xbf16>
    %c0_5 = arith.constant 0 : index
    %c0_6 = arith.constant 0 : index
    %6 = vector.load %arg4[%c0_5, %c0_6] : memref<128x512xbf16, #tpu.memory_space<vmem>>, vector<128x512xbf16>
    %cst = arith.constant dense<0.000000e+00> : vector<24x512xf32>
    %7 = tpu.matmul %5, %6, %cst {dimension_numbers = #tpu.dot_dimension_numbers<[1], [0], [0], [1], [0, 0, 1, 1], [], []>} : vector<24x128xbf16>, vector<128x512xbf16>, vector<24x512xf32> -> vector<24x512xf32>
    %c0_7 = arith.constant 0 : index
    %c0_8 = arith.constant 0 : index
    %8 = vector.load %arg5[%c0_7, %c0_8] : memref<1x512xf32, #tpu.memory_space<vmem>>, vector<1x512xf32>
    %9 = vector.broadcast %8 : vector<1x512xf32> to vector<24x512xf32>
    %10 = arith.addf %7, %9 : vector<24x512xf32>
    %cst_9 = arith.constant 0.000000e+00 : f32
    %11 = vector.broadcast %cst_9 : f32 to vector<24x512xf32>
    %12 = arith.maximumf %10, %11 : vector<24x512xf32>
    %13 = arith.truncf %12 : vector<24x512xf32> to vector<24x512xbf16>
    %14 = vector.extract_strided_slice %13 {offsets = [0, 0], sizes = [22, 512], strides = [1, 1]} : vector<24x512xbf16> to vector<22x512xbf16>
    %15 = vector.extract_strided_slice %13 {offsets = [1, 0], sizes = [22, 512], strides = [1, 1]} : vector<24x512xbf16> to vector<22x512xbf16>
    %16 = vector.extract_strided_slice %13 {offsets = [2, 0], sizes = [22, 512], strides = [1, 1]} : vector<24x512xbf16> to vector<22x512xbf16>
    %17 = tpu.concatenate %14, %15, %16 in 1 : vector<22x512xbf16>, vector<22x512xbf16>, vector<22x512xbf16> -> vector<22x1536xbf16>
    %c0_10 = arith.constant 0 : index
    %c0_11 = arith.constant 0 : index
    %18 = vector.load %arg6[%c0_10, %c0_11] : memref<1536x512xbf16, #tpu.memory_space<vmem>>, vector<1536x512xbf16>
    %cst_12 = arith.constant dense<0.000000e+00> : vector<22x512xf32>
    %19 = tpu.matmul %17, %18, %cst_12 {dimension_numbers = #tpu.dot_dimension_numbers<[1], [0], [0], [1], [0, 0, 1, 1], [], []>} : vector<22x1536xbf16>, vector<1536x512xbf16>, vector<22x512xf32> -> vector<22x512xf32>
    %c0_13 = arith.constant 0 : index
    %c0_14 = arith.constant 0 : index
    %20 = vector.load %arg7[%c0_13, %c0_14] : memref<1x512xf32, #tpu.memory_space<vmem>>, vector<1x512xf32>
    %21 = vector.broadcast %20 : vector<1x512xf32> to vector<22x512xf32>
    %22 = arith.addf %19, %21 : vector<22x512xf32>
    %cst_15 = arith.constant 0.000000e+00 : f32
    %23 = vector.broadcast %cst_15 : f32 to vector<22x512xf32>
    %24 = arith.maximumf %22, %23 : vector<22x512xf32>
    %25 = arith.truncf %24 : vector<22x512xf32> to vector<22x512xbf16>
    %26 = vector.extract_strided_slice %25 {offsets = [0, 0], sizes = [20, 512], strides = [1, 1]} : vector<22x512xbf16> to vector<20x512xbf16>
    %27 = vector.extract_strided_slice %25 {offsets = [1, 0], sizes = [20, 512], strides = [1, 1]} : vector<22x512xbf16> to vector<20x512xbf16>
    %28 = vector.extract_strided_slice %25 {offsets = [2, 0], sizes = [20, 512], strides = [1, 1]} : vector<22x512xbf16> to vector<20x512xbf16>
    %29 = tpu.concatenate %26, %27, %28 in 1 : vector<20x512xbf16>, vector<20x512xbf16>, vector<20x512xbf16> -> vector<20x1536xbf16>
    %c0_16 = arith.constant 0 : index
    %c0_17 = arith.constant 0 : index
    %30 = vector.load %arg8[%c0_16, %c0_17] : memref<1536x512xbf16, #tpu.memory_space<vmem>>, vector<1536x512xbf16>
    %cst_18 = arith.constant dense<0.000000e+00> : vector<20x512xf32>
    %31 = tpu.matmul %29, %30, %cst_18 {dimension_numbers = #tpu.dot_dimension_numbers<[1], [0], [0], [1], [0, 0, 1, 1], [], []>} : vector<20x1536xbf16>, vector<1536x512xbf16>, vector<20x512xf32> -> vector<20x512xf32>
    %c0_19 = arith.constant 0 : index
    %c0_20 = arith.constant 0 : index
    %32 = vector.load %arg9[%c0_19, %c0_20] : memref<1x512xf32, #tpu.memory_space<vmem>>, vector<1x512xf32>
    %33 = vector.broadcast %32 : vector<1x512xf32> to vector<20x512xf32>
    %34 = arith.addf %31, %33 : vector<20x512xf32>
    %cst_21 = arith.constant 0.000000e+00 : f32
    %35 = vector.broadcast %cst_21 : f32 to vector<20x512xf32>
    %36 = arith.maximumf %34, %35 : vector<20x512xf32>
    %37 = arith.truncf %36 : vector<20x512xf32> to vector<20x512xbf16>
    %38 = vector.extract_strided_slice %37 {offsets = [0, 0], sizes = [16, 512], strides = [1, 1]} : vector<20x512xbf16> to vector<16x512xbf16>
    %39 = vector.extract_strided_slice %37 {offsets = [1, 0], sizes = [16, 512], strides = [1, 1]} : vector<20x512xbf16> to vector<16x512xbf16>
    %40 = vector.extract_strided_slice %37 {offsets = [2, 0], sizes = [16, 512], strides = [1, 1]} : vector<20x512xbf16> to vector<16x512xbf16>
    %41 = vector.extract_strided_slice %37 {offsets = [3, 0], sizes = [16, 512], strides = [1, 1]} : vector<20x512xbf16> to vector<16x512xbf16>
    %42 = vector.extract_strided_slice %37 {offsets = [4, 0], sizes = [16, 512], strides = [1, 1]} : vector<20x512xbf16> to vector<16x512xbf16>
    %43 = tpu.concatenate %38, %39, %40, %41, %42 in 1 : vector<16x512xbf16>, vector<16x512xbf16>, vector<16x512xbf16>, vector<16x512xbf16>, vector<16x512xbf16> -> vector<16x2560xbf16>
    %c0_22 = arith.constant 0 : index
    %c0_23 = arith.constant 0 : index
    %44 = vector.load %arg10[%c0_22, %c0_23] : memref<2560x512xbf16, #tpu.memory_space<vmem>>, vector<2560x512xbf16>
    %cst_24 = arith.constant dense<0.000000e+00> : vector<16x512xf32>
    %45 = tpu.matmul %43, %44, %cst_24 {dimension_numbers = #tpu.dot_dimension_numbers<[1], [0], [0], [1], [0, 0, 1, 1], [], []>} : vector<16x2560xbf16>, vector<2560x512xbf16>, vector<16x512xf32> -> vector<16x512xf32>
    %c0_25 = arith.constant 0 : index
    %c0_26 = arith.constant 0 : index
    %46 = vector.load %arg11[%c0_25, %c0_26] : memref<1x512xf32, #tpu.memory_space<vmem>>, vector<1x512xf32>
    %47 = vector.broadcast %46 : vector<1x512xf32> to vector<16x512xf32>
    %48 = arith.addf %45, %47 : vector<16x512xf32>
    %cst_27 = arith.constant 0.000000e+00 : f32
    %49 = vector.broadcast %cst_27 : f32 to vector<16x512xf32>
    %50 = arith.maximumf %48, %49 : vector<16x512xf32>
    %c0_28 = arith.constant 0 : index
    %c0_29 = arith.constant 0 : index
    %c0_30 = arith.constant 0 : index
    %51 = vector.load %arg12[%c0_28, %c0_29, %c0_30] : memref<1x16x512xf32, #tpu.memory_space<vmem>>, vector<1x16x512xf32>
    %52 = vector.shape_cast %51 : vector<1x16x512xf32> to vector<16x512xf32>
    %53 = vector.shape_cast %50 : vector<16x512xf32> to vector<1x16x512xf32>
    tpu.vector_store %arg12[%c0_28, %c0_29, %c0_30], %53 {strides = array<i32>} : memref<1x16x512xf32, #tpu.memory_space<vmem>>, vector<1x16x512xf32>,
    return
  }
  func.func @transform_0(%arg0: i32, %arg1: i32) -> (i32, i32, i32) {
    %c0_i32 = arith.constant 0 : i32
    %c0_i32_0 = arith.constant 0 : i32
    return %arg0, %arg1, %c0_i32 : i32, i32, i32
  }
  func.func @transform_1(%arg0: i32, %arg1: i32) -> (i32, i32, i32) {
    %c1_i32 = arith.constant 1 : i32
    %0 = arith.addi %arg1, %c1_i32 : i32
    %c1_i32_0 = arith.constant 1 : i32
    %1 = arith.muli %0, %c1_i32_0 : i32
    %c0_i32 = arith.constant 0 : i32
    %c0_i32_1 = arith.constant 0 : i32
    return %arg0, %1, %c0_i32 : i32, i32, i32
  }
  func.func @transform_2(%arg0: i32, %arg1: i32) -> (i32, i32) {
    %c0_i32 = arith.constant 0 : i32
    %c0_i32_0 = arith.constant 0 : i32
    %c0_i32_1 = arith.constant 0 : i32
    return %c0_i32, %c0_i32_0 : i32, i32
  }
  func.func @transform_3(%arg0: i32, %arg1: i32) -> (i32, i32) {
    %c0_i32 = arith.constant 0 : i32
    %c0_i32_0 = arith.constant 0 : i32
    %c0_i32_1 = arith.constant 0 : i32
    return %c0_i32, %c0_i32_0 : i32, i32
  }
  func.func @transform_4(%arg0: i32, %arg1: i32) -> (i32, i32) {
    %c0_i32 = arith.constant 0 : i32
    %c0_i32_0 = arith.constant 0 : i32
    %c0_i32_1 = arith.constant 0 : i32
    return %c0_i32, %c0_i32_0 : i32, i32
  }
  func.func @transform_5(%arg0: i32, %arg1: i32) -> (i32, i32) {
    %c0_i32 = arith.constant 0 : i32
    %c0_i32_0 = arith.constant 0 : i32
    %c0_i32_1 = arith.constant 0 : i32
    return %c0_i32, %c0_i32_0 : i32, i32
  }
  func.func @transform_6(%arg0: i32, %arg1: i32) -> (i32, i32) {
    %c0_i32 = arith.constant 0 : i32
    %c0_i32_0 = arith.constant 0 : i32
    %c0_i32_1 = arith.constant 0 : i32
    return %c0_i32, %c0_i32_0 : i32, i32
  }
  func.func @transform_7(%arg0: i32, %arg1: i32) -> (i32, i32) {
    %c0_i32 = arith.constant 0 : i32
    %c0_i32_0 = arith.constant 0 : i32
    %c0_i32_1 = arith.constant 0 : i32
    return %c0_i32, %c0_i32_0 : i32, i32
  }
  func.func @transform_8(%arg0: i32, %arg1: i32) -> (i32, i32) {
    %c0_i32 = arith.constant 0 : i32
    %c0_i32_0 = arith.constant 0 : i32
    %c0_i32_1 = arith.constant 0 : i32
    return %c0_i32, %c0_i32_0 : i32, i32
  }
  func.func @transform_9(%arg0: i32, %arg1: i32) -> (i32, i32) {
    %c0_i32 = arith.constant 0 : i32
    %c0_i32_0 = arith.constant 0 : i32
    %c0_i32_1 = arith.constant 0 : i32
    return %c0_i32, %c0_i32_0 : i32, i32
  }
  func.func @transform_10(%arg0: i32, %arg1: i32) -> (i32, i32, i32) {
    %c0_i32 = arith.constant 0 : i32
    %c0_i32_0 = arith.constant 0 : i32
    return %arg0, %arg1, %c0_i32 : i32, i32, i32
  }
}

</mosaic_0001>

<bundles_post_ra>
// kernel: ian_film_generator2.1
= control target key start
LH: loop header
LB: loop body
LE: loop exit
PB: predicated region body
PF: predicated region fallthrough
CT: control target
= control target key end

     0   :  { %15 = vsyncpa [#allocation3], 0  ;;  %s30238_s0 = inlined_call_operand.vmem [shape: bf16[2,48,128], index: 0, kind: input, shape index: {}, may-alias: {0,1}]   ;;  %s30239_s1 = inlined_call_operand.vmem [shape: bf16[2,48,128], index: 1, kind: input, shape index: {}, may-alias: {0,1}]   ;;  %s30240_s2 = inlined_call_operand.vmem [shape: bf16[128,512], index: 2, kind: input, shape index: {}]   ;;  %s30241_s3 = inlined_call_operand.vmem [shape: f32[1,512], index: 3, kind: input, shape index: {}]   ;;  %s30242_s4 = inlined_call_operand.vmem [shape: bf16[1536,512], index: 4, kind: input, shape index: {}]   ;;  %s30243_s5 = inlined_call_operand.vmem [shape: f32[1,512], index: 5, kind: input, shape index: {}]   ;;  %s30244_s6 = inlined_call_operand.vmem [shape: bf16[1536,512], index: 6, kind: input, shape index: {}]   ;;  %s30245_s7 = inlined_call_operand.vmem [shape: f32[1,512], index: 7, kind: input, shape index: {}]   ;;  %s30246_s8 = inlined_call_operand.vmem [shape: bf16[2560,512], index: 8, kind: input, shape index: {}]   ;;  %s30247_s9 = inlined_call_operand.vmem [shape: f32[1,512], index: 9, kind: input, shape index: {}]   ;;  %s30248_s10 = inlined_call_operand.hbm [shape: f32[2,32,512], index: 10, kind: output, shape index: {}]  }
   0x1   :  { %17 = vsyncpa [#allocation3 + $0x1], 0  ;;  %s20088_s13 = smov 0   ;;  %s20090_s14 = smov 0  }
   0x2   :  { %s20092_s15 = smov 0   ;;  %s20094_s16 = smov 0  }
   0x3   :  { %s20096_s17 = smov 0   ;;  %s20098_s18 = smov 0  }
   0x4   :  { %s20100_s19 = smov 0   ;;  %s20102_s20 = smov 0  }
   0x5 LB: > { %30272 = sst [smem:[#allocation5_spill]] %s20001_s13  ;;  %s12632_s21 = sadd.s32 4294967295, %s20029_s20   ;;  %s20029_s20 = sphi %s20102_s20, %s23_s20   ;;  %s20025_s19 = sphi %s20100_s19, %s30335_s19   ;;  %s20021_s18 = sphi %s20098_s18, %s30334_s18   ;;  %s20017_s17 = sphi %s20096_s17, %s30338_s17   ;;  %s20013_s16 = sphi %s20094_s16, %s30332_s16   ;;  %s20009_s15 = sphi %s20092_s15, %s30331_s15   ;;  %s20005_s14 = sphi %s20090_s14, %s30337_s14   ;;  %s20001_s13 = sphi %s20088_s13, %s30336_s13  }
   0x6   : > { %30273 = sst [smem:[#allocation6_spill]] %s20009_s15  ;;  %s12633_s22 = sadd.s32 4294967294, %s20029_s20  }
   0x7   : > { %30274 = sst [smem:[#allocation7_spill]] %s20021_s18  ;;  %s32_s23 = sadd.s32 1, %s20021_s18 }
   0x8   : > { %30275 = sst [smem:[#allocation8_spill]] %s20025_s19  ;;  %p33_p0 = scmp.ge.s32.totalorder %s32_s23, 2 }
   0x9   : > { %s35_s24 = sadd.s32 1, %s20025_s19  ;;  %p280_p1 = scmp.ne.s32.totalorder %s20009_s15, %s20005_s14 }
   0xa   : > { %p281_p2 = scmp.eq.s32.totalorder %s12632_s21, 3  ;;  %s30340_s23 = smov (%p33_p0, %s32_s23), 0 }
   0xb   : > { %30276 = sst [smem:[#allocation9_spill]] %s30340_s23  ;;  %s30342_s24 = smov (!%p33_p0, %s35_s24), %s20025_s19 }
   0xc   : > { %s266_s25 = ssub.s32 %s20021_s18, %s30340_s23  ;;  %p20139_p3 = por %p281_p2, %p280_p1 }
   0xd   : > { %p37_p4 = scmp.ge.s32.totalorder %s30342_s24, 2  ;;  %p286_p5 = scmp.ne.s32.totalorder %s20005_s14, %s20001_s13 }
   0xe   : > { %p287_p6 = scmp.eq.s32.totalorder %s12633_s22, 3  ;;  %p12636_p7 = scmp.ge.s32.totalorder %s20029_s20, 1 }
   0xf   : > { %s30344_s24 = smov (%p37_p4, %s30342_s24), 0  ;;  %p357_p9 = scmp.lt.s32.totalorder %s20029_s20, 5 }
  0x10   : > { %30278 = sst [smem:[#allocation10_spill]] %s30344_s24  ;;  %p20148_p8 = por %p287_p6, %p286_p5 }
  0x11   : > { %s265_s28 = ssub.s32 %s20025_s19, %s30344_s24  ;;  %s270_s29 = sadd.s32 1, %s20009_s15 }
  0x12   : > { %s30279_s27 = scalar_select %p20148_p8, 1, 0 }
  0x13   : > { %s267_s30 = sor.u32 %s266_s25, %s265_s28  ;;  %p358_p10 = pnand %p12636_p7, %p357_p9 }
  0x14   : > { %30280 = sst [smem:[#allocation11_spill]] %s30279_s27  ;;  %p268_p11 = scmp.eq.s32.totalorder %s267_s30, 0 }
  0x15   : > { %361 = sbr.rel (%p358_p10) target bundleno = 1962 (0x7aa), region = 60 }
  0x16   : > { %s20157_s11 = scalar_select %p268_p11, %s20009_s15, %s270_s29  }
  0x18   : > { %30281 = sst [smem:[#allocation12_spill]] %s20157_s11 }
  0x1a   : > { %v12760_v0 = vld [vmem:[%s30240_s2 + $0xe0] sm:$0xf]  ;;  %v18446_v1 = vld [vmem:[%s30240_s2 + $0xec] sm:$0xf0]  ;;  %v18444_v2 = vld [vmem:[%s30240_s2 + $0xe4] sm:$0xf] }
  0x1b   : > { %v12761_v3 = vor.u32 %v18446_v1, %v12760_v0  ;;  %v12762_v4 = vld [vmem:[%s30240_s2 + $0xf0] sm:$0xf0]  ;;  %v12768_v5 = vld [vmem:[%s30240_s2 + $0xe8] sm:$0xf]  ;;  %v18447_v6 = vld [vmem:[%s30240_s2 + $0xf4] sm:$0xf0] }
  0x1c   : > { %v12765_v7 = vor.u32 %v18444_v2, %v12762_v4  ;;  %v12769_v8 = vor.u32 %v18447_v6, %v12768_v5  ;;  %v18445_v9 = vld [vmem:[%s30240_s2 + $0xec] sm:$0xf]  ;;  %v12770_v10 = vld [vmem:[%s30240_s2 + $0xf8] sm:$0xf0]  ;;  %v12744_v11 = vld [vmem:[%s30240_s2 + $0xc0] sm:$0xf] }
  0x1d   : > { %643 = vmatpush.bf16.msra.mxu0 %v12761_v3  ;;  %v12773_v12 = vor.u32 %v18445_v9, %v12770_v10  ;;  %v18442_v13 = vld [vmem:[%s30240_s2 + $0xcc] sm:$0xf0]  ;;  %v18440_v14 = vld [vmem:[%s30240_s2 + $0xc4] sm:$0xf]  ;;  %v12746_v15 = vld [vmem:[%s30240_s2 + $0xd0] sm:$0xf0] }
  0x1e   : > { %661 = vmatpush.bf16.msra.mxu1 %v12765_v7  ;;  %679 = vmatpush.bf16.msra.mxu2 %v12769_v8  ;;  %v12745_v16 = vor.u32 %v18442_v13, %v12744_v11  ;;  %v12749_v17 = vor.u32 %v18440_v14, %v12746_v15  ;;  %v12752_v18 = vld [vmem:[%s30240_s2 + $0xc8] sm:$0xf]  ;;  %v18443_v19 = vld [vmem:[%s30240_s2 + $0xd4] sm:$0xf0]  ;;  %v18441_v20 = vld [vmem:[%s30240_s2 + $0xcc] sm:$0xf] }
  0x1f   : > { %697 = vmatpush.bf16.msra.mxu3 %v12773_v12  ;;  %v12753_v21 = vor.u32 %v18443_v19, %v12752_v18  ;;  %v12754_v22 = vld [vmem:[%s30240_s2 + $0xd8] sm:$0xf0]  ;;  %v12728_v23 = vld [vmem:[%s30240_s2 + $0xa0] sm:$0xf]  ;;  %v18438_v24 = vld [vmem:[%s30240_s2 + $0xac] sm:$0xf0] }
  0x20   : > { %v12757_v25 = vor.u32 %v18441_v20, %v12754_v22  ;;  %v18436_v26 = vld [vmem:[%s30240_s2 + $0xa4] sm:$0xf]  ;;  %v12730_v27 = vld [vmem:[%s30240_s2 + $0xb0] sm:$0xf0]  ;;  %v12736_v28 = vld [vmem:[%s30240_s2 + $0xa8] sm:$0xf]  ;;  %v12729_v29 = vor.u32 %v18438_v24, %v12728_v23 }
  0x21   : > { %644 = vmatpush.bf16.msra.mxu0 %v12745_v16  ;;  %v18439_v30 = vld [vmem:[%s30240_s2 + $0xb4] sm:$0xf0]  ;;  %v18437_v31 = vld [vmem:[%s30240_s2 + $0xac] sm:$0xf]  ;;  %v12738_v32 = vld [vmem:[%s30240_s2 + $0xb8] sm:$0xf0]  ;;  %v12733_v33 = vor.u32 %v18436_v26, %v12730_v27 }
  0x22   : > { %662 = vmatpush.bf16.msra.mxu1 %v12749_v17  ;;  %680 = vmatpush.bf16.msra.mxu2 %v12753_v21  ;;  %v12737_v34 = vor.u32 %v18439_v30, %v12736_v28  ;;  %v12712_v35 = vld [vmem:[%s30240_s2 + $0x80] sm:$0xf]  ;;  %v18434_v36 = vld [vmem:[%s30240_s2 + $0x8c] sm:$0xf0]  ;;  %v18432_v37 = vld [vmem:[%s30240_s2 + $0x84] sm:$0xf]  ;;  %v12741_v38 = vor.u32 %v18437_v31, %v12738_v32 }
  0x23   : > { %698 = vmatpush.bf16.msra.mxu3 %v12757_v25  ;;  %v12714_v39 = vld [vmem:[%s30240_s2 + $0x90] sm:$0xf0]  ;;  %v12720_v40 = vld [vmem:[%s30240_s2 + $0x88] sm:$0xf]  ;;  %v18435_v41 = vld [vmem:[%s30240_s2 + $0x94] sm:$0xf0]  ;;  %v12713_v44 = vor.u32 %v18434_v36, %v12712_v35 }
  0x24   : > { %v18433_v42 = vld [vmem:[%s30240_s2 + $0x8c] sm:$0xf]  ;;  %v12722_v43 = vld [vmem:[%s30240_s2 + $0x98] sm:$0xf0]  ;;  %v12717_v45 = vor.u32 %v18432_v37, %v12714_v39  ;;  %v12721_v46 = vor.u32 %v18435_v41, %v12720_v40  ;;  %v12696_v47 = vld [vmem:[%s30240_s2 + $0x60] sm:$0xf] }
  0x25   : > { %645 = vmatpush.bf16.msra.mxu0 %v12729_v29  ;;  %v18430_v48 = vld [vmem:[%s30240_s2 + $0x6c] sm:$0xf0]  ;;  %v18428_v49 = vld [vmem:[%s30240_s2 + $0x64] sm:$0xf]  ;;  %v12725_v50 = vor.u32 %v18433_v42, %v12722_v43  ;;  %v12698_v51 = vld [vmem:[%s30240_s2 + $0x70] sm:$0xf0] }
  0x26   : > { %663 = vmatpush.bf16.msra.mxu1 %v12733_v33  ;;  %681 = vmatpush.bf16.msra.mxu2 %v12737_v34  ;;  %v12704_v52 = vld [vmem:[%s30240_s2 + $0x68] sm:$0xf]  ;;  %v18431_v53 = vld [vmem:[%s30240_s2 + $0x74] sm:$0xf0]  ;;  %v18429_v54 = vld [vmem:[%s30240_s2 + $0x6c] sm:$0xf]  ;;  %v12697_v56 = vor.u32 %v18430_v48, %v12696_v47  ;;  %v12701_v57 = vor.u32 %v18428_v49, %v12698_v51 }
  0x27   : > { %699 = vmatpush.bf16.msra.mxu3 %v12741_v38  ;;  %v12706_v55 = vld [vmem:[%s30240_s2 + $0x78] sm:$0xf0]  ;;  %v12705_v58 = vor.u32 %v18431_v53, %v12704_v52  ;;  %v12680_v59 = vld [vmem:[%s30240_s2 + $0x40] sm:$0xf]  ;;  %v18426_v60 = vld [vmem:[%s30240_s2 + $0x4c] sm:$0xf0] }
  0x28   : > { %v18424_v61 = vld [vmem:[%s30240_s2 + $0x44] sm:$0xf]  ;;  %v12709_v62 = vor.u32 %v18429_v54, %v12706_v55  ;;  %v12682_v63 = vld [vmem:[%s30240_s2 + $0x50] sm:$0xf0]  ;;  %v12688_v0 = vld [vmem:[%s30240_s2 + $0x48] sm:$0xf]  ;;  %v12681_v4 = vor.u32 %v18426_v60, %v12680_v59 }
  0x29   : > { %646 = vmatpush.bf16.msra.mxu0 %v12713_v44  ;;  %v18427_v1 = vld [vmem:[%s30240_s2 + $0x54] sm:$0xf0]  ;;  %v18425_v2 = vld [vmem:[%s30240_s2 + $0x4c] sm:$0xf]  ;;  %v12690_v3 = vld [vmem:[%s30240_s2 + $0x58] sm:$0xf0]  ;;  %v12685_v7 = vor.u32 %v18424_v61, %v12682_v63 }
  0x2a   : > { %664 = vmatpush.bf16.msra.mxu1 %v12717_v45  ;;  %682 = vmatpush.bf16.msra.mxu2 %v12721_v46  ;;  %v12664_v5 = vld [vmem:[%s30240_s2 + $0x20] sm:$0xf]  ;;  %v18422_v6 = vld [vmem:[%s30240_s2 + $0x2c] sm:$0xf0]  ;;  %v12689_v8 = vor.u32 %v18427_v1, %v12688_v0  ;;  %v18420_v9 = vld [vmem:[%s30240_s2 + $0x24] sm:$0xf]  ;;  %v12693_v12 = vor.u32 %v18425_v2, %v12690_v3 }
  0x2b   : > { %700 = vmatpush.bf16.msra.mxu3 %v12725_v50  ;;  %v12666_v10 = vld [vmem:[%s30240_s2 + $0x30] sm:$0xf0]  ;;  %v12672_v11 = vld [vmem:[%s30240_s2 + $0x28] sm:$0xf]  ;;  %v18423_v13 = vld [vmem:[%s30240_s2 + $0x34] sm:$0xf0]  ;;  %v12665_v17 = vor.u32 %v18422_v6, %v12664_v5 }
  0x2c   : > { %v18421_v14 = vld [vmem:[%s30240_s2 + $0x2c] sm:$0xf]  ;;  %s20325_s12 = sshll.u32 %s20013_s16, 1  ;;  %p410_p12 = scmp.lt.s32.totalorder %s20017_s17, 1  ;;  %v12674_v15 = vld [vmem:[%s30240_s2 + $0x38] sm:$0xf0]  ;;  %v12669_v20 = vor.u32 %v18420_v9, %v12666_v10  ;;  %v12673_v21 = vor.u32 %v18423_v13, %v12672_v11 }
  0x2d   : > { %647 = vmatpush.bf16.msra.mxu0 %v12697_v56  ;;  %v12648_v16 = vld [vmem:[%s30240_s2] sm:$0xf]  ;;  %p412_p13 = scmp.lt.s32.totalorder %s20325_s12, 5  ;;  %v18418_v18 = vld [vmem:[%s30240_s2 + $0xc] sm:$0xf0]  ;;  %v12677_v24 = vor.u32 %v18421_v14, %v12674_v15  ;;  %s18414_s22 = sadd.s32 2, %s20325_s12 }
  0x2e   : > { %665 = vmatpush.bf16.msra.mxu1 %v12701_v57  ;;  %683 = vmatpush.bf16.msra.mxu2 %v12705_v58  ;;  %v18416_v19 = vld [vmem:[%s30240_s2 + $0x4] sm:$0xf]  ;;  %s20342_s29 = scalar_select %p410_p12, %s20017_s17, 1  ;;  %v12650_v22 = vld [vmem:[%s30240_s2 + $0x10] sm:$0xf0]  ;;  %v12649_v30 = vor.u32 %v18418_v18, %v12648_v16  ;;  %vm836_vm1 = vcmask 1046528  }
  0x2f   : > { %701 = vmatpush.bf16.msra.mxu3 %v12709_v62  ;;  %v12656_v23 = vld [vmem:[%s30240_s2 + $0x8] sm:$0xf]  ;;  %s413_s18 = scalar_select %p412_p13, %s20325_s12, 5  ;;  %v18419_v25 = vld [vmem:[%s30240_s2 + $0x14] sm:$0xf0]  ;;  %v12653_v33 = vor.u32 %v18416_v19, %v12650_v22  ;;  %vm7510_vm3 = vcmask 1045504  }
  0x30   : > { %v18417_v26 = vld [vmem:[%s30240_s2 + $0xc] sm:$0xf]  ;;  %s30256_s19 = smul.u32 6, %s20342_s29  ;;  %v12658_v27 = vld [vmem:[%s30240_s2 + $0x18] sm:$0xf0]  ;;  %v12657_v34 = vor.u32 %v18419_v25, %v12656_v23  ;;  %p20393_p0 = scmp.lt.s32.totalorder %s18414_s22, 5 }
  0x31   : > { %648 = vmatpush.bf16.msra.mxu0 %v12681_v4  ;;  %v12888_v28 = vld [vmem:[%s30242_s4 + $0xe0] sm:$0xf]  ;;  %v18478_v29 = vld [vmem:[%s30242_s4 + $0xec] sm:$0xf0]  ;;  %v12661_v36 = vor.u32 %v18417_v26, %v12658_v27  ;;  %vm767_vm0 = vsmask.f32 7424 }
  0x32   : > { %666 = vmatpush.bf16.msra.mxu1 %v12685_v7  ;;  %684 = vmatpush.bf16.msra.mxu2 %v12689_v8  ;;  %s415_s24 = sadd.s32 %s30256_s19, %s413_s18  ;;  %v13016_v31 = vld [vmem:[%s30242_s4 + $0x1e0] sm:$0xf]  ;;  %v18510_v32 = vld [vmem:[%s30242_s4 + $0x1ec] sm:$0xf0]  ;;  %v12889_v37 = vor.u32 %v18478_v29, %v12888_v28  ;;  %s30346_s22 = smov (!%p20393_p0, %s18414_s22), 5 }
  0x33   : > { %702 = vmatpush.bf16.msra.mxu3 %v12693_v12  ;;  %s12639_s11 = sshll.u32 %s415_s24, 2  ;;  %v12872_v35 = vld [vmem:[%s30242_s4 + $0xc0] sm:$0xf]  ;;  %v18474_v38 = vld [vmem:[%s30242_s4 + $0xcc] sm:$0xf0]  ;;  %v13017_v42 = vor.u32 %v18510_v32, %v13016_v31  ;;  %s406_s15 = sand.u32 1, %s20005_s14  }
  0x34   : > { %s417_s13 = scalar_lea.vmem %s30238_s0, %s12639_s11  ;;  %v13144_v39 = vld [vmem:[%s30242_s4 + $0x2e0] sm:$0xf]  ;;  %v18542_v40 = vld [vmem:[%s30242_s4 + $0x2ec] sm:$0xf0]  ;;  %v12873_v49 = vor.u32 %v18474_v38, %v12872_v35  ;;  %s30283_s11 = smul.u32 6, %s20342_s29 }
  0x35   : > { %649 = vmatpush.bf16.msra.mxu0 %v12665_v17  ;;  %v18415_v41 = vld [vmem:[%s417_s13] sm:$0xff]  ;;  %v18574_v44 = vld [vmem:[%s30242_s4 + $0x3ec] sm:$0xf0]  ;;  %v13145_v47 = vor.u32 %v18542_v40, %v13144_v39  ;;  %vm7469_vm2 = vsmask.f32 6400  ;;  %s28765_s30 = sshll.u32 %s406_s15, 6 }
  0x36   : > { %667 = vmatpush.bf16.msra.mxu1 %v12669_v20  ;;  %685 = vmatpush.bf16.msra.mxu2 %v12673_v21  ;;  %v13272_v43 = vld [vmem:[%s30242_s4 + $0x3e0] sm:$0xf]  ;;  %v18506_v46 = vld [vmem:[%s30242_s4 + $0x1cc] sm:$0xf0]  ;;  %s426_s23 = sadd.s32 %s30283_s11, %s30346_s22  ;;  %s28840_s22 = scalar_lea.vmem [#allocation2], %s28765_s30 }
  0x37   : > { %703 = vmatpush.bf16.msra.mxu3 %v12677_v24  ;;  %v13000_v45 = vld [vmem:[%s30242_s4 + $0x1c0] sm:$0xf]  ;;  %v13273_v50 = vor.u32 %v18574_v44, %v13272_v43  ;;  %v18470_v51 = vld [vmem:[%s30242_s4 + $0xac] sm:$0xf0]  ;;  %s12641_s18 = sshll.u32 %s426_s23, 2  ;;  %s19856_s29 = sshll.u32 %s20013_s16, 3 }
  0x38   : > { %v12856_v48 = vld [vmem:[%s30242_s4 + $0xa0] sm:$0xf]  ;;  %v18538_v53 = vld [vmem:[%s30242_s4 + $0x2cc] sm:$0xf0]  ;;  %v13001_v54 = vor.u32 %v18506_v46, %v13000_v45  ;;  %s428_s25 = scalar_lea.vmem %s30239_s1, %s12641_s18  ;;  %s18409_s28 = sshll.u32 %s20017_s17, 4 }
  0x39   : > { %650 = vmatpush.bf16.msra.mxu0 %v12649_v30  ;;  %v13128_v52 = vld [vmem:[%s30242_s4 + $0x2c0] sm:$0xf]  ;;  %v18570_v56 = vld [vmem:[%s30242_s4 + $0x3cc] sm:$0xf0]  ;;  %v12857_v60 = vor.u32 %v18470_v51, %v12856_v48  ;;  %s12526_s24 = sadd.s32 %s19856_s29, %s18409_s28  ;;  %s12529_s30 = sshll.u32 %s28840_s22, 4  ;;  %s12530_s30 = int_to_ptr.vmem [resolvable:$true] %s12529_s30 }
  0x3a   : > { %668 = vmatpush.bf16.msra.mxu1 %v12653_v33  ;;  %686 = vmatpush.bf16.msra.mxu2 %v12657_v34  ;;  %v13256_v55 = vld [vmem:[%s30242_s4 + $0x3c0] sm:$0xf]  ;;  %v18502_v58 = vld [vmem:[%s30242_s4 + $0x1ac] sm:$0xf0]  ;;  %v13129_v59 = vor.u32 %v18538_v53, %v13128_v52  ;;  %s18410_s12 = sshll.u32 %s12526_s24, 3  ;;  %s12514_s18 = scalar_lea.sflag [#allocation3], %s406_s15 }
  0x3b   : > { %704 = vmatpush.bf16.msra.mxu3 %v12661_v36  ;;  %v12984_v57 = vld [vmem:[%s30242_s4 + $0x1a0] sm:$0xf]  ;;  %v13257_v61 = vor.u32 %v18570_v56, %v13256_v55  ;;  %v18466_v1 = vld [vmem:[%s30242_s4 + $0x8c] sm:$0xf0]  ;;  %s12528_s17 = scalar_lea.hbm %s30248_s10, %s18410_s12  ;;  %s19955_s27 = scalar_lea.hbm %s30248_s10, 256 }
  0x3c   : > { %651 = vmatmul.bf16.vlgmr.msra.gmra.mxu0 %v18415_v41  ;;  %v12985_v62 = vor.u32 %v18502_v58, %v12984_v57  ;;  %v434_v63 = vld [vmem:[%s428_s25] sm:$0xf]  ;;  %v18498_v4 = vld [vmem:[%s30242_s4 + $0x18c] sm:$0xf0]  ;;  %s12531_s23 = sshll.u32 %s12528_s17, 4  ;;  %s12532_s23 = int_to_ptr.hbm [resolvable:$true] %s12531_s23 }
  0x3d   : > { %3171 = vmatpush.bf16.msrb.mxu0 %v12889_v37  ;;  %669 = vmatmul.bf16.vlgmr.msra.gmra.mxu1 %v18415_v41  ;;  %v12840_v0 = vld [vmem:[%s30242_s4 + $0x80] sm:$0xf]  ;;  %v18534_v7 = vld [vmem:[%s30242_s4 + $0x2ac] sm:$0xf0]  ;;  %s19949_s21 = sshra.s32 %s12532_s23, 4  ;;  %s19950_s21 = int_to_ptr.hbm [resolvable:$true] %s19949_s21 }
  0x3e   : > { %3189 = vmatpush.bf16.msrb.mxu1 %v13017_v42  ;;  %687 = vmatmul.bf16.vlgmr.msra.gmra.mxu2 %v18415_v41  ;;  %v12968_v2 = vld [vmem:[%s30242_s4 + $0x180] sm:$0xf]  ;;  %v12841_v3 = vor.u32 %v18466_v1, %v12840_v0  ;;  %v18566_v10 = vld [vmem:[%s30242_s4 + $0x3ac] sm:$0xf0]  ;;  %s19951_s19 = scalar_lea.hbm %s19950_s21, 64  ;;  %p19956_p5 = scmp.lt.s32.totalorder %s19950_s21, %s30248_s10 }
  0x3f   : > { %705 = vmatmul.bf16.vlgmr.msra.gmra.mxu3 %v18415_v41  ;;  %3207 = vmatpush.bf16.msrb.mxu2 %v13145_v47  ;;  %v12969_v5 = vor.u32 %v18498_v4, %v12968_v2  ;;  %v13112_v6 = vld [vmem:[%s30242_s4 + $0x2a0] sm:$0xf]  ;;  %v18462_v13 = vld [vmem:[%s30242_s4 + $0x6c] sm:$0xf0]  ;;  %p19952_p1 = scmp.ne.s32.totalorder %s19950_s21, %s19951_s19  ;;  %p19957_p6 = scmp.lt.s32.totalorder %s19955_s27, %s19951_s19 }
  0x40   : > { %3225 = vmatpush.bf16.msrb.mxu3 %v13273_v50  ;;  %v13240_v8 = vld [vmem:[%s30242_s4 + $0x3a0] sm:$0xf]  ;;  %v13113_v9 = vor.u32 %v18534_v7, %v13112_v6  ;;  %v18494_v16 = vld [vmem:[%s30242_s4 + $0x16c] sm:$0xf0] }
  0x41   : > { %3172 = vmatpush.bf16.msrb.mxu0 %v12873_v49  ;;  %v13241_v11 = vor.u32 %v18566_v10, %v13240_v8  ;;  %v12824_v12 = vld [vmem:[%s30242_s4 + $0x60] sm:$0xf]  ;;  %v18530_v19 = vld [vmem:[%s30242_s4 + $0x28c] sm:$0xf0]  ;;  %p19953_p2 = pnand %p19952_p1, %p20139_p3  ;;  %p19958_p7 = por %p19957_p6, %p19956_p5 }
  0x42   : > { %3190 = vmatpush.bf16.msrb.mxu1 %v13001_v54  ;;  %v12825_v14 = vor.u32 %v18462_v13, %v12824_v12  ;;  %v12952_v15 = vld [vmem:[%s30242_s4 + $0x160] sm:$0xf]  ;;  %v18562_v22 = vld [vmem:[%s30242_s4 + $0x38c] sm:$0xf0] }
  0x43   : > { %3208 = vmatpush.bf16.msrb.mxu2 %v13129_v59  ;;  %v12953_v17 = vor.u32 %v18494_v16, %v12952_v15  ;;  %v13096_v18 = vld [vmem:[%s30242_s4 + $0x280] sm:$0xf]  ;;  %v18458_v25 = vld [vmem:[%s30242_s4 + $0x4c] sm:$0xf0]  ;;  %p19954_p4 = pneg %p19953_p2 }
  0x44   : > { %3226 = vmatpush.bf16.msrb.mxu3 %v13257_v61  ;;  %v13224_v20 = vld [vmem:[%s30242_s4 + $0x380] sm:$0xf]  ;;  %v13097_v21 = vor.u32 %v18530_v19, %v13096_v18  ;;  %v18490_v28 = vld [vmem:[%s30242_s4 + $0x14c] sm:$0xf0] }
  0x45   : > { %3173 = vmatpush.bf16.msrb.mxu0 %v12857_v60  ;;  %v13225_v23 = vor.u32 %v18562_v22, %v13224_v20  ;;  %v12808_v24 = vld [vmem:[%s30242_s4 + $0x40] sm:$0xf]  ;;  %v18526_v31 = vld [vmem:[%s30242_s4 + $0x26c] sm:$0xf0]  ;;  %p19959_p9 = pnand %p19958_p7, %p19954_p4 }
  0x46   : > { %3191 = vmatpush.bf16.msrb.mxu1 %v12985_v62  ;;  %v12809_v26 = vor.u32 %v18458_v25, %v12808_v24  ;;  %v12936_v27 = vld [vmem:[%s30242_s4 + $0x140] sm:$0xf]  ;;  %v18558_v34 = vld [vmem:[%s30242_s4 + $0x36c] sm:$0xf0] }
  0x47   : > { %3209 = vmatpush.bf16.msrb.mxu2 %v13113_v9  ;;  %v12937_v29 = vor.u32 %v18490_v28, %v12936_v27  ;;  %v13080_v30 = vld [vmem:[%s30242_s4 + $0x260] sm:$0xf]  ;;  %v18454_v37 = vld [vmem:[%s30242_s4 + $0x2c] sm:$0xf0] }
  0x48   : > { %3227 = vmatpush.bf16.msrb.mxu3 %v13241_v11  ;;  %v13208_v32 = vld [vmem:[%s30242_s4 + $0x360] sm:$0xf]  ;;  %v13081_v33 = vor.u32 %v18526_v31, %v13080_v30  ;;  %v18486_v40 = vld [vmem:[%s30242_s4 + $0x12c] sm:$0xf0] }
  0x49   : > { %3174 = vmatpush.bf16.msrb.mxu0 %v12841_v3  ;;  %v13209_v35 = vor.u32 %v18558_v34, %v13208_v32  ;;  %v12792_v36 = vld [vmem:[%s30242_s4 + $0x20] sm:$0xf]  ;;  %v18522_v43 = vld [vmem:[%s30242_s4 + $0x24c] sm:$0xf0] }
  0x4a   : > { %3192 = vmatpush.bf16.msrb.mxu1 %v12969_v5  ;;  %v12920_v38 = vld [vmem:[%s30242_s4 + $0x120] sm:$0xf]  ;;  %v12793_v39 = vor.u32 %v18454_v37, %v12792_v36  ;;  %v18554_v46 = vld [vmem:[%s30242_s4 + $0x34c] sm:$0xf0] }
  0x4b   : > { %3210 = vmatpush.bf16.msrb.mxu2 %v13097_v21  ;;  %v12921_v41 = vor.u32 %v18486_v40, %v12920_v38  ;;  %v13064_v42 = vld [vmem:[%s30242_s4 + $0x240] sm:$0xf]  ;;  %v18450_v49 = vld [vmem:[%s30242_s4 + $0xc] sm:$0xf0] }
  0x4c   : > { %656 = vmatmul.bf16.gmra.mxu0 %v434_v63  ;;  %3228 = vmatpush.bf16.msrb.mxu3 %v13225_v23  ;;  %v13192_v44 = vld [vmem:[%s30242_s4 + $0x340] sm:$0xf]  ;;  %v13065_v45 = vor.u32 %v18522_v43, %v13064_v42  ;;  %v18482_v52 = vld [vmem:[%s30242_s4 + $0x10c] sm:$0xf0] }
  0x4d   : > { %674 = vmatmul.bf16.gmra.mxu1 %v434_v63  ;;  %3175 = vmatpush.bf16.msrb.mxu0 %v12825_v14  ;;  %v13193_v47 = vor.u32 %v18554_v46, %v13192_v44  ;;  %v12776_v48 = vld [vmem:[%s30242_s4] sm:$0xf]  ;;  %v18518_v55 = vld [vmem:[%s30242_s4 + $0x22c] sm:$0xf0] }
  0x4e   : > { %692 = vmatmul.bf16.gmra.mxu2 %v434_v63  ;;  %3193 = vmatpush.bf16.msrb.mxu1 %v12953_v17  ;;  %v12904_v50 = vld [vmem:[%s30242_s4 + $0x100] sm:$0xf]  ;;  %v12777_v51 = vor.u32 %v18450_v49, %v12776_v48  ;;  %v18550_v58 = vld [vmem:[%s30242_s4 + $0x32c] sm:$0xf0] }
  0x4f   : > { %710 = vmatmul.bf16.gmra.mxu3 %v434_v63  ;;  %3211 = vmatpush.bf16.msrb.mxu2 %v13081_v33  ;;  %v12905_v53 = vor.u32 %v18482_v52, %v12904_v50  ;;  %v13048_v54 = vld [vmem:[%s30242_s4 + $0x220] sm:$0xf]  ;;  %v18606_v61 = vld [vmem:[%s30242_s4 + $0x4ec] sm:$0xf0] }
  0x50   : > { %3229 = vmatpush.bf16.msrb.mxu3 %v13209_v35  ;;  %v13176_v56 = vld [vmem:[%s30242_s4 + $0x320] sm:$0xf]  ;;  %v13049_v57 = vor.u32 %v18518_v55, %v13048_v54  ;;  %v18638_v0 = vld [vmem:[%s30242_s4 + $0x5ec] sm:$0xf0] }
  0x51   : > { %3176 = vmatpush.bf16.msrb.mxu0 %v12809_v26  ;;  %v13177_v59 = vor.u32 %v18550_v58, %v13176_v56  ;;  %v13400_v60 = vld [vmem:[%s30242_s4 + $0x4e0] sm:$0xf]  ;;  %v18514_v3 = vld [vmem:[%s30242_s4 + $0x20c] sm:$0xf0] }
  0x52   : > { %3194 = vmatpush.bf16.msrb.mxu1 %v12937_v29  ;;  %v13528_v62 = vld [vmem:[%s30242_s4 + $0x5e0] sm:$0xf]  ;;  %v13401_v63 = vor.u32 %v18606_v61, %v13400_v60  ;;  %v18546_v6 = vld [vmem:[%s30242_s4 + $0x30c] sm:$0xf0] }
  0x53   : > { %3212 = vmatpush.bf16.msrb.mxu2 %v13065_v45  ;;  %v13529_v1 = vor.u32 %v18638_v0, %v13528_v62  ;;  %v13032_v2 = vld [vmem:[%s30242_s4 + $0x200] sm:$0xf]  ;;  %v18602_v9 = vld [vmem:[%s30242_s4 + $0x4cc] sm:$0xf0] }
  0x54   : > { %3230 = vmatpush.bf16.msrb.mxu3 %v13193_v47  ;;  %v13160_v4 = vld [vmem:[%s30242_s4 + $0x300] sm:$0xf]  ;;  %v13033_v5 = vor.u32 %v18514_v3, %v13032_v2  ;;  %v18634_v12 = vld [vmem:[%s30242_s4 + $0x5cc] sm:$0xf0] }
  0x55   : > { %3177 = vmatpush.bf16.msrb.mxu0 %v12793_v39  ;;  %v13161_v7 = vor.u32 %v18546_v6, %v13160_v4  ;;  %v13384_v8 = vld [vmem:[%s30242_s4 + $0x4c0] sm:$0xf]  ;;  %v18670_v15 = vld [vmem:[%s30242_s4 + $0x6ec] sm:$0xf0] }
  0x56   : > { %3195 = vmatpush.bf16.msrb.mxu1 %v12921_v41  ;;  %v13512_v10 = vld [vmem:[%s30242_s4 + $0x5c0] sm:$0xf]  ;;  %v13385_v11 = vor.u32 %v18602_v9, %v13384_v8  ;;  %v18702_v19 = vld [vmem:[%s30242_s4 + $0x7ec] sm:$0xf0] }
  0x57   : > { %3213 = vmatpush.bf16.msrb.mxu2 %v13049_v57  ;;  %v13513_v13 = vor.u32 %v18634_v12, %v13512_v10  ;;  %v13656_v14 = vld [vmem:[%s30242_s4 + $0x6e0] sm:$0xf]  ;;  %v18598_v22 = vld [vmem:[%s30242_s4 + $0x4ac] sm:$0xf0] }
  0x58   : > { %3231 = vmatpush.bf16.msrb.mxu3 %v13177_v59  ;;  %v13784_v16 = vld [vmem:[%s30242_s4 + $0x7e0] sm:$0xf]  ;;  %v13657_v18 = vor.u32 %v18670_v15, %v13656_v14  ;;  %v18630_v26 = vld [vmem:[%s30242_s4 + $0x5ac] sm:$0xf0] }
  0x59   : > { %3178 = vmatpush.bf16.msrb.mxu0 %v12777_v51  ;;  %v473_v17 = vld [vmem:[%s30241_s3] sm:$0xf]  ;;  %v13785_v20 = vor.u32 %v18702_v19, %v13784_v16  ;;  %v18666_v29 = vld [vmem:[%s30242_s4 + $0x6cc] sm:$0xf0] }
  0x5a   : > { %3196 = vmatpush.bf16.msrb.mxu1 %v12905_v53  ;;  %v13368_v21 = vld [vmem:[%s30242_s4 + $0x4a0] sm:$0xf]  ;;  %v20622_v24 = vperm.slane %v473_v17, 0  ;;  %v20636_v31 = vperm.slane %v473_v17, 1  ;;  %v18698_v33 = vld [vmem:[%s30242_s4 + $0x7cc] sm:$0xf0] }
  0x5b   : > { %3214 = vmatpush.bf16.msrb.mxu2 %v13033_v5  ;;  %v13496_v23 = vld [vmem:[%s30242_s4 + $0x5a0] sm:$0xf]  ;;  %v13369_v25 = vor.u32 %v18598_v22, %v13368_v21  ;;  %v18594_v36 = vld [vmem:[%s30242_s4 + $0x48c] sm:$0xf0]  ;;  %v20667_v50 = vperm.slane %v473_v17, 2  ;;  %v20669_v51 = vperm.slane %v473_v17, 3 }
  0x5c   : > { %3232 = vmatpush.bf16.msrb.mxu3 %v13161_v7  ;;  %v13497_v27 = vor.u32 %v18630_v26, %v13496_v23  ;;  %v13640_v28 = vld [vmem:[%s30242_s4 + $0x6c0] sm:$0xf]  ;;  %v18626_v40 = vld [vmem:[%s30242_s4 + $0x58c] sm:$0xf0] }
  0x5d   : > { %3243 = vmatpush.bf16.msra.mxu0 %v13401_v63  ;;  %v13768_v30 = vld [vmem:[%s30242_s4 + $0x7c0] sm:$0xf]  ;;  %v13641_v32 = vor.u32 %v18666_v29, %v13640_v28  ;;  %v18662_v45 = vld [vmem:[%s30242_s4 + $0x6ac] sm:$0xf0] }
  0x5e   : > { %3261 = vmatpush.bf16.msra.mxu1 %v13529_v1  ;;  %v13769_v34 = vor.u32 %v18698_v33, %v13768_v30  ;;  %v13352_v35 = vld [vmem:[%s30242_s4 + $0x480] sm:$0xf]  ;;  %v18694_v49 = vld [vmem:[%s30242_s4 + $0x7ac] sm:$0xf0] }
  0x5f   : > { %3279 = vmatpush.bf16.msra.mxu2 %v13657_v18  ;;  %v13480_v37 = vld [vmem:[%s30242_s4 + $0x580] sm:$0xf]  ;;  %v13353_v39 = vor.u32 %v18594_v36, %v13352_v35  ;;  %v18590_v54 = vld [vmem:[%s30242_s4 + $0x46c] sm:$0xf0] }
  0x60   : > { %3297 = vmatpush.bf16.msra.mxu3 %v13785_v20  ;;  %v13481_v43 = vor.u32 %v18626_v40, %v13480_v37  ;;  %v13624_v44 = vld [vmem:[%s30242_s4 + $0x6a0] sm:$0xf]  ;;  %v18622_v59 = vld [vmem:[%s30242_s4 + $0x56c] sm:$0xf0] }
  0x61   : > { %3244 = vmatpush.bf16.msra.mxu0 %v13385_v11  ;;  %v13752_v46 = vld [vmem:[%s30242_s4 + $0x7a0] sm:$0xf]  ;;  %v13625_v48 = vor.u32 %v18662_v45, %v13624_v44  ;;  %v18658_v62 = vld [vmem:[%s30242_s4 + $0x68c] sm:$0xf0] }
  0x62   : > { %3262 = vmatpush.bf16.msra.mxu1 %v13513_v13  ;;  %v13753_v52 = vor.u32 %v18694_v49, %v13752_v46  ;;  %v13336_v53 = vld [vmem:[%s30242_s4 + $0x460] sm:$0xf]  ;;  %v18690_v1 = vld [vmem:[%s30242_s4 + $0x78c] sm:$0xf0] }
  0x63   : > { %3280 = vmatpush.bf16.msra.mxu2 %v13641_v32  ;;  %v13337_v57 = vor.u32 %v18590_v54, %v13336_v53  ;;  %v13464_v58 = vld [vmem:[%s30242_s4 + $0x560] sm:$0xf]  ;;  %v18586_v3 = vld [vmem:[%s30242_s4 + $0x44c] sm:$0xf0] }
  0x64   : > { %3298 = vmatpush.bf16.msra.mxu3 %v13769_v34  ;;  %v13465_v60 = vor.u32 %v18622_v59, %v13464_v58  ;;  %v13608_v61 = vld [vmem:[%s30242_s4 + $0x680] sm:$0xf]  ;;  %v18618_v8 = vld [vmem:[%s30242_s4 + $0x54c] sm:$0xf0] }
  0x65   : > { %3245 = vmatpush.bf16.msra.mxu0 %v13369_v25  ;;  %v13736_v63 = vld [vmem:[%s30242_s4 + $0x780] sm:$0xf]  ;;  %v13609_v0 = vor.u32 %v18658_v62, %v13608_v61  ;;  %v18654_v17 = vld [vmem:[%s30242_s4 + $0x66c] sm:$0xf0] }
  0x66   : > { %3263 = vmatpush.bf16.msra.mxu1 %v13497_v27  ;;  %v13320_v2 = vld [vmem:[%s30242_s4 + $0x440] sm:$0xf]  ;;  %v13737_v5 = vor.u32 %v18690_v1, %v13736_v63  ;;  %v18686_v23 = vld [vmem:[%s30242_s4 + $0x76c] sm:$0xf0] }
  0x67   : > { %3281 = vmatpush.bf16.msra.mxu2 %v13625_v48  ;;  %v13321_v6 = vor.u32 %v18586_v3, %v13320_v2  ;;  %v13448_v7 = vld [vmem:[%s30242_s4 + $0x540] sm:$0xf]  ;;  %v18582_v29 = vld [vmem:[%s30242_s4 + $0x42c] sm:$0xf0] }
  0x68   : > { %3299 = vmatpush.bf16.msra.mxu3 %v13753_v52  ;;  %v13449_v12 = vor.u32 %v18618_v8, %v13448_v7  ;;  %v13592_v16 = vld [vmem:[%s30242_s4 + $0x660] sm:$0xf]  ;;  %v18614_v34 = vld [vmem:[%s30242_s4 + $0x52c] sm:$0xf0] }
  0x69   : > { %3246 = vmatpush.bf16.msra.mxu0 %v13353_v39  ;;  %v13720_v18 = vld [vmem:[%s30242_s4 + $0x760] sm:$0xf]  ;;  %v13593_v22 = vor.u32 %v18654_v17, %v13592_v16  ;;  %v18650_v37 = vld [vmem:[%s30242_s4 + $0x64c] sm:$0xf0] }
  0x6a   : > { %3264 = vmatpush.bf16.msra.mxu1 %v13481_v43  ;;  %v13721_v27 = vor.u32 %v18686_v23, %v13720_v18  ;;  %v13304_v28 = vld [vmem:[%s30242_s4 + $0x420] sm:$0xf]  ;;  %v18682_v43 = vld [vmem:[%s30242_s4 + $0x74c] sm:$0xf0] }
  0x6b   : > { %3282 = vmatpush.bf16.msra.mxu2 %v13609_v0  ;;  %v13305_v32 = vor.u32 %v18582_v29, %v13304_v28  ;;  %v13432_v33 = vld [vmem:[%s30242_s4 + $0x520] sm:$0xf]  ;;  %v18578_v45 = vld [vmem:[%s30242_s4 + $0x40c] sm:$0xf0] }
  0x6c   : > { %3300 = vmatpush.bf16.msra.mxu3 %v13737_v5  ;;  %v13433_v35 = vor.u32 %v18614_v34, %v13432_v33  ;;  %v13576_v36 = vld [vmem:[%s30242_s4 + $0x640] sm:$0xf]  ;;  %v18610_v53 = vld [vmem:[%s30242_s4 + $0x50c] sm:$0xf0] }
  0x6d   : > { %3247 = vmatpush.bf16.msra.mxu0 %v13337_v57  ;;  %v13288_v44 = vld [vmem:[%s30242_s4 + $0x400] sm:$0xf]  ;;  %v18646_v61 = vld [vmem:[%s30242_s4 + $0x62c] sm:$0xf0] }
  0x6e   : > { %3265 = vmatpush.bf16.msra.mxu1 %v13465_v60  ;;  %v13289_v49 = vor.u32 %v18578_v45, %v13288_v44  ;;  %v13416_v52 = vld [vmem:[%s30242_s4 + $0x500] sm:$0xf]  ;;  %v18678_v63 = vld [vmem:[%s30242_s4 + $0x72c] sm:$0xf0] }
  0x6f   : > { %3283 = vmatpush.bf16.msra.mxu2 %v13593_v22  ;;  %v13560_v54 = vld [vmem:[%s30242_s4 + $0x620] sm:$0xf]  ;;  %v13417_v60 = vor.u32 %v18610_v53, %v13416_v52  ;;  %v18730_v34 = vld [vmem:[%s30242_s4 + $0x8cc] sm:$0xf0] }
  0x70   : > { %3301 = vmatpush.bf16.msra.mxu3 %v13721_v27  ;;  %v13688_v62 = vld [vmem:[%s30242_s4 + $0x720] sm:$0xf]  ;;  %v13561_v3 = vor.u32 %v18646_v61, %v13560_v54  ;;  %v18674_v27 = vld [vmem:[%s30242_s4 + $0x70c] sm:$0xf0] }
  0x71   : > { %3248 = vmatpush.bf16.msra.mxu0 %v13321_v6  ;;  %v13544_v16 = vld [vmem:[%s30242_s4 + $0x600] sm:$0xf]  ;;  %v18830_v52 = vld [vmem:[%s30242_s4 + $0xbec] sm:$0xf0] }
  0x72   : > { %3266 = vmatpush.bf16.msra.mxu1 %v13449_v12  ;;  %v13896_v28 = vld [vmem:[%s30242_s4 + $0x8c0] sm:$0xf] }
  0x73   : > { %v14168_v45 = vld [vmem:[%s30242_s4 + $0xae0] sm:$0xf] }
  0x74   : > { %v13880_v53 = vld [vmem:[%s30242_s4 + $0x8a0] sm:$0xf] }
  0x75   : > { %3249 = vmatpush.bf16.msra.mxu0 %v13305_v32 }
  0x76   : > { %3267 = vmatpush.bf16.msra.mxu1 %v13433_v35  ;;  %v14024_v35 = vld [vmem:[%s30242_s4 + $0x9c0] sm:$0xf] }
  0x79   : > { %3250 = vmatpush.bf16.msra.mxu0 %v13289_v49 }
  0x7a   : > { %3268 = vmatpush.bf16.msra.mxu1 %v13417_v60 }
  0xb9   : > { %v652_v38 = vpop.f32.mrf.mxu0 }
  0xba   : > { %v653_v41 = vadd.f32 %v652_v38, %v20622_v24  ;;  %v670_v42 = vpop.f32.mrf.mxu1  ;;  %v13704_v38 = vld [vmem:[%s30242_s4 + $0x740] sm:$0xf] }
  0xbb   : > { %v671_v47 = vadd.f32 %v670_v42, %v20636_v31  ;;  %v13577_v42 = vor.u32 %v18650_v37, %v13576_v36  ;;  %v13705_v48 = vor.u32 %v18682_v43, %v13704_v38  ;;  %v18762_v36 = vld [vmem:[%s30242_s4 + $0x9cc] sm:$0xf0]  ;;  %v13897_v43 = vor.u32 %v18730_v34, %v13896_v28  ;;  %v13848_v28 = vld [vmem:[%s30242_s4 + $0x860] sm:$0xf] }
  0xbc   : > { %v715_v55 = vmax.f32 %v653_v41, 0.0  ;;  %v14025_v44 = vor.u32 %v18762_v36, %v14024_v35  ;;  %v13976_v34 = vld [vmem:[%s30242_s4 + $0x960] sm:$0xf] }
  0xbd   : > { %v716_v56 = vmax.f32 %v671_v47, 0.0  ;;  %3284 = vmatpush.bf16.msra.mxu2 %v13577_v42  ;;  %3302 = vmatpush.bf16.msra.mxu3 %v13705_v48 }
  0xbf   : > { %v727_v19 = vpack.c.bf16 %v716_v56, %v715_v55 }
  0xc1   : > { %v688_v4 = vpop.f32.mrf.mxu2  ;;  %v654_v11 = vpop.f32.mrf.mxu0  ;;  %v739_v39 = vunpack.c.l.b16 %v727_v19  ;;  %v740_v40 = vunpack.c.h.b16 %v727_v19  ;;  %3285 = vmatpush.bf16.msra.mxu2 %v13561_v3  ;;  %v18642_v19 = vld [vmem:[%s30242_s4 + $0x60c] sm:$0xf0]  ;;  %v14152_v3 = vld [vmem:[%s30242_s4 + $0xac0] sm:$0xf] }
  0xc2   : > { %v689_v9 = vadd.f32 %v688_v4, %v20667_v50  ;;  %v706_v10 = vpop.f32.mrf.mxu3  ;;  %v655_v14 = vadd.f32 %v654_v11, %v20622_v24  ;;  %v672_v15 = vpop.f32.mrf.mxu1  ;;  %v13689_v4 = vor.u32 %v18678_v63, %v13688_v62  ;;  %v14008_v62 = vld [vmem:[%s30242_s4 + $0x9a0] sm:$0xf]  ;;  %v18758_v63 = vld [vmem:[%s30242_s4 + $0x9ac] sm:$0xf0] }
  0xc3   : > { %v707_v13 = vadd.f32 %v706_v10, %v20669_v51  ;;  %v673_v21 = vadd.f32 %v672_v15, %v20636_v31  ;;  %v13912_v10 = vld [vmem:[%s30242_s4 + $0x8e0] sm:$0xf]  ;;  %v18766_v15 = vld [vmem:[%s30242_s4 + $0x9ec] sm:$0xf0] }
  0xc4   : > { %v717_v20 = vmax.f32 %v689_v9, 0.0  ;;  %v719_v26 = vmax.f32 %v655_v14, 0.0  ;;  %3303 = vmatpush.bf16.msra.mxu3 %v13689_v4  ;;  %v18794_v4 = vld [vmem:[%s30242_s4 + $0xacc] sm:$0xf0] }
  0xc5   : > { %v718_v25 = vmax.f32 %v707_v13, 0.0  ;;  %v720_v30 = vmax.f32 %v673_v21, 0.0 }
  0xc7   : > { %v729_v41 = vpack.c.bf16 %v720_v30, %v719_v26  ;;  %v20753_v46 = vpack.c.bf16 %v718_v25, %v717_v20  ;;  %v13545_v25 = vor.u32 %v18642_v19, %v13544_v16  ;;  %v13672_v26 = vld [vmem:[%s30242_s4 + $0x700] sm:$0xf]  ;;  %v18754_v16 = vld [vmem:[%s30242_s4 + $0x98c] sm:$0xf0] }
  0xc9   : > { %v690_v47 = vpop.f32.mrf.mxu2  ;;  %v743_v55 = vunpack.c.l.b16 %v729_v41  ;;  %v744_v56 = vunpack.c.h.b16 %v729_v41  ;;  %v657_v59 = vpop.f32.mrf.mxu0  ;;  %v741_v17 = vunpack.c.l.b16 %v20753_v46  ;;  %v742_v20 = vunpack.c.h.b16 %v20753_v46  ;;  %3286 = vmatpush.bf16.msra.mxu2 %v13545_v25  ;;  %v18798_v46 = vld [vmem:[%s30242_s4 + $0xaec] sm:$0xf0] }
  0xca   : > { %v691_v57 = vadd.f32 %v690_v47, %v20667_v50  ;;  %v708_v58 = vpop.f32.mrf.mxu3  ;;  %v658_v1 = vadd.f32 %v657_v59, %v20622_v24  ;;  %v675_v2 = vpop.f32.mrf.mxu1  ;;  %v18734_v24 = vld [vmem:[%s30242_s4 + $0x8ec] sm:$0xf0]  ;;  %v13673_v41 = vor.u32 %v18674_v27, %v13672_v26  ;;  %v14296_v47 = vld [vmem:[%s30242_s4 + $0xbe0] sm:$0xf]  ;;  %v14169_v49 = vor.u32 %v18798_v46, %v14168_v45 }
  0xcb   : > { %v709_v0 = vadd.f32 %v708_v58, %v20669_v51  ;;  %v20776_v5 = vpack.c.b16 %v743_v55, %v739_v39  ;;  %v20778_v6 = vpack.c.b16 %v744_v56, %v740_v40  ;;  %v676_v8 = vadd.f32 %v675_v2, %v20636_v31  ;;  %v14040_v31 = vld [vmem:[%s30242_s4 + $0x9e0] sm:$0xf]  ;;  %v18822_v27 = vld [vmem:[%s30242_s4 + $0xbac] sm:$0xf0] }
  0xcc   : > { %v721_v7 = vmax.f32 %v691_v57, 0.0  ;;  %v723_v11 = vmax.f32 %v658_v1, 0.0  ;;  %v13913_v14 = vor.u32 %v18734_v24, %v13912_v10  ;;  %v14041_v18 = vor.u32 %v18766_v15, %v14040_v31  ;;  %3304 = vmatpush.bf16.msra.mxu3 %v13673_v41  ;;  %v18726_v57 = vld [vmem:[%s30242_s4 + $0x8ac] sm:$0xf0]  ;;  %v13864_v24 = vld [vmem:[%s30242_s4 + $0x880] sm:$0xf] }
  0xcd   : > { %v722_v9 = vmax.f32 %v709_v0, 0.0  ;;  %v724_v12 = vmax.f32 %v676_v8, 0.0  ;;  %3179 = vmatmul.bf16.vlgmr.msrb.gmra.mxu0 %v20776_v5  ;;  %3197 = vmatmul.bf16.vlgmr.msrb.gmra.mxu1 %v20778_v6  ;;  %v769_v55 = vshrl.u32 %v20776_v5, 16  ;;  %v14297_v56 = vor.u32 %v18830_v52, %v14296_v47  ;;  %v18826_v10 = vld [vmem:[%s30242_s4 + $0xbcc] sm:$0xf0] }
  0xce   : > { %3315 = vmatpush.bf16.msrb.mxu0 %v13913_v14  ;;  %3333 = vmatpush.bf16.msrb.mxu1 %v14041_v18  ;;  %v771_v59 = vshll.u32 %v20776_v5, 16  ;;  %v783_v60 = vshll.u32 %v20778_v6, 16  ;;  %v13881_v61 = vor.u32 %v18726_v57, %v13880_v53  ;;  %v14009_v2 = vor.u32 %v18758_v63, %v14008_v62  ;;  %v13992_v15 = vld [vmem:[%s30242_s4 + $0x980] sm:$0xf]  ;;  %v18786_v41 = vld [vmem:[%s30242_s4 + $0xa8c] sm:$0xf0] }
  0xcf   : > { %v730_v13 = vpack.c.bf16 %v722_v9, %v721_v7  ;;  %v731_v29 = vpack.c.bf16 %v724_v12, %v723_v11  ;;  %v14280_v7 = vld [vmem:[%s30242_s4 + $0xbc0] sm:$0xf]  ;;  %v14153_v9 = vor.u32 %v18794_v4, %v14152_v3  ;;  %v18722_v11 = vld [vmem:[%s30242_s4 + $0x88c] sm:$0xf0]  ;;  %v781_v19 = vshrl.u32 %v20778_v6, 16 }
  0xd0   : > { %v13865_v14 = vor.u32 %v18722_v11, %v13864_v24  ;;  %v20887_v18 = vrot.slane %v771_v59, 1  ;;  %v20899_v25 = vrot.slane %v783_v60, 1  ;;  %v13832_v45 = vld [vmem:[%s30242_s4 + $0x840] sm:$0xf]  ;;  %v18710_v3 = vld [vmem:[%s30242_s4 + $0x82c] sm:$0xf0] }
  0xd1   : > { %v745_v21 = vunpack.c.l.b16 %v730_v13  ;;  %v746_v22 = vunpack.c.h.b16 %v730_v13  ;;  %v693_v23 = vpop.f32.mrf.mxu2  ;;  %v659_v33 = vpop.f32.mrf.mxu0  ;;  %v748_v48 = vunpack.c.h.b16 %v731_v29  ;;  %v14281_v13 = vor.u32 %v18826_v10, %v14280_v7  ;;  %v13960_v47 = vld [vmem:[%s30242_s4 + $0x940] sm:$0xf]  ;;  %v18742_v10 = vld [vmem:[%s30242_s4 + $0x92c] sm:$0xf0] }
  0xd2   : > { %v694_v30 = vadd.f32 %v693_v23, %v20667_v50  ;;  %v711_v32 = vpop.f32.mrf.mxu3  ;;  %v677_v39 = vpop.f32.mrf.mxu1  ;;  %3316 = vmatpush.bf16.msrb.mxu0 %v13897_v43  ;;  %3334 = vmatpush.bf16.msrb.mxu1 %v14025_v44  ;;  %v18718_v33 = vld [vmem:[%s30242_s4 + $0x86c] sm:$0xf0]  ;;  %v14248_v43 = vld [vmem:[%s30242_s4 + $0xb80] sm:$0xf] }
  0xd3   : > { %v20822_v37 = vpack.c.b16 %v745_v21, %v741_v17  ;;  %v20824_v38 = vpack.c.b16 %v746_v22, %v742_v20  ;;  %v712_v50 = vadd.f32 %v711_v32, %v20669_v51  ;;  %v747_v51 = vunpack.c.l.b16 %v731_v29  ;;  %v14136_v17 = vld [vmem:[%s30242_s4 + $0xaa0] sm:$0xf]  ;;  %v18790_v21 = vld [vmem:[%s30242_s4 + $0xaac] sm:$0xf0] }
  0xd4   : > { %v725_v40 = vmax.f32 %v694_v30, 0.0  ;;  %v20867_v8 = vpack.c.b16 %v748_v48, %v748_v48  ;;  %v13993_v20 = vor.u32 %v18754_v16, %v13992_v15  ;;  %v14264_v22 = vld [vmem:[%s30242_s4 + $0xba0] sm:$0xf]  ;;  %v14137_v26 = vor.u32 %v18790_v21, %v14136_v17  ;;  %v18750_v39 = vld [vmem:[%s30242_s4 + $0x96c] sm:$0xf0] }
  0xd5   : > { %v726_v42 = vmax.f32 %v712_v50, 0.0  ;;  %3215 = vmatmul.bf16.vlgmr.msrb.gmra.mxu2 %v20822_v37  ;;  %3233 = vmatmul.bf16.vlgmr.msrb.gmra.mxu3 %v20824_v38  ;;  %v20856_v0 = vpack.c.b16 %v747_v51, %v747_v51  ;;  %v795_v30 = vshll.u32 %v20822_v37, 16  ;;  %v14265_v32 = vor.u32 %v18822_v27, %v14264_v22  ;;  %v18818_v44 = vld [vmem:[%s30242_s4 + $0xb8c] sm:$0xf0]  ;;  %v14104_v60 = vld [vmem:[%s30242_s4 + $0xa60] sm:$0xf] }
  0xd6   : > { %3351 = vmatpush.bf16.msrb.mxu2 %v14169_v49  ;;  %3369 = vmatpush.bf16.msrb.mxu3 %v14297_v56  ;;  %v788_v29 = vshll.u32 %v20867_v8, 16  ;;  %v13849_v50 = vor.u32 %v18718_v33, %v13848_v28  ;;  %v18714_v51 = vld [vmem:[%s30242_s4 + $0x84c] sm:$0xf0]  ;;  %v807_v52 = vshll.u32 %v20824_v38, 16  ;;  %v14249_v53 = vor.u32 %v18818_v44, %v14248_v43  ;;  %v14232_v62 = vld [vmem:[%s30242_s4 + $0xb60] sm:$0xf] }
  0xd7   : > { %v732_v54 = vpack.c.bf16 %v726_v42, %v725_v40  ;;  %3317 = vmatpush.bf16.msrb.mxu0 %v13881_v61  ;;  %3335 = vmatpush.bf16.msrb.mxu1 %v14009_v2  ;;  %v776_v23 = vshll.u32 %v20856_v0, 16  ;;  %v14120_v40 = vld [vmem:[%s30242_s4 + $0xa80] sm:$0xf]  ;;  %v13977_v42 = vor.u32 %v18750_v39, %v13976_v34  ;;  %v18746_v48 = vld [vmem:[%s30242_s4 + $0x94c] sm:$0xf0]  ;;  %v774_v17 = vor.u32 %v20887_v18, %v769_v55 }
  0xd8   : > { %v14121_v46 = vor.u32 %v18786_v41, %v14120_v40  ;;  %v20949_v56 = vrot.slane %v788_v29, 1  ;;  %v13961_v59 = vor.u32 %v18746_v48, %v13960_v47  ;;  %v18782_v61 = vld [vmem:[%s30242_s4 + $0xa6c] sm:$0xf0]  ;;  %v13816_v2 = vld [vmem:[%s30242_s4 + $0x820] sm:$0xf]  ;;  %v793_v21 = vshrl.u32 %v20822_v37, 16 }
  0xd9   : > { %v695_v58 = vpop.f32.mrf.mxu2  ;;  %v749_v12 = vunpack.c.l.b16 %v732_v54  ;;  %v750_v31 = vunpack.c.h.b16 %v732_v54  ;;  %v20946_v49 = vrot.slane %v776_v23, 1  ;;  %v13833_v54 = vor.u32 %v18714_v51, %v13832_v45  ;;  %v14088_v24 = vld [vmem:[%s30242_s4 + $0xa40] sm:$0xf]  ;;  %v18706_v15 = vld [vmem:[%s30242_s4 + $0x80c] sm:$0xf0] }
  0xda   : > { %v713_v1 = vpop.f32.mrf.mxu3  ;;  %3352 = vmatpush.bf16.msrb.mxu2 %v14153_v9  ;;  %3370 = vmatpush.bf16.msrb.mxu3 %v14281_v13  ;;  %v14105_v63 = vor.u32 %v18782_v61, %v14104_v60  ;;  %v13817_v7 = vor.u32 %v18710_v3, %v13816_v2  ;;  %v13944_v9 = vld [vmem:[%s30242_s4 + $0x920] sm:$0xf]  ;;  %v18810_v13 = vld [vmem:[%s30242_s4 + $0xb4c] sm:$0xf0]  ;;  %v805_v22 = vshrl.u32 %v20824_v38, 16  ;;  %v809_v27 = vrot.slane %v807_v52, 1 }
  0xdb   : > { %3318 = vmatpush.bf16.msrb.mxu0 %v13865_v14  ;;  %v20915_v35 = vpack.c.b16 %v749_v12, %v749_v12  ;;  %v20917_v36 = vpack.c.b16 %v750_v31, %v750_v31  ;;  %3336 = vmatpush.bf16.msrb.mxu1 %v13993_v20  ;;  %v18814_v1 = vld [vmem:[%s30242_s4 + $0xb6c] sm:$0xf0]  ;;  %v13945_v11 = vor.u32 %v18742_v10, %v13944_v9  ;;  %v14216_v31 = vld [vmem:[%s30242_s4 + $0xb40] sm:$0xf]  ;;  %v18476_v40 = vld [vmem:[%s30242_s4 + $0xe4] sm:$0xf] }
  0xdc   : > { %v14233_v4 = vor.u32 %v18814_v1, %v14232_v62  ;;  %v18778_v12 = vld [vmem:[%s30242_s4 + $0xa4c] sm:$0xf0]  ;;  %v13800_v14 = vld [vmem:[%s30242_s4 + $0x800] sm:$0xf]  ;;  %v786_v20 = vor.u32 %v20899_v25, %v781_v19  ;;  %v14217_v18 = vor.u32 %v18810_v13, %v14216_v31  ;;  %v21027_v33 = vsel %vm767_vm0, %v774_v17, %v20946_v49  ;;  %v12890_v41 = vld [vmem:[%s30242_s4 + $0xf0] sm:$0xf0] }
  0xdd   : > { %3184 = vmatmul.bf16.gmra.mxu0 %v20856_v0  ;;  %3202 = vmatmul.bf16.gmra.mxu1 %v20867_v8  ;;  %v800_v57 = vshll.u32 %v20915_v35, 16  ;;  %v812_v58 = vshll.u32 %v20917_v36, 16  ;;  %v13928_v16 = vld [vmem:[%s30242_s4 + $0x900] sm:$0xf]  ;;  %v18738_v23 = vld [vmem:[%s30242_s4 + $0x90c] sm:$0xf0]  ;;  %v14089_v55 = vor.u32 %v18778_v12, %v14088_v24  ;;  %v13801_v25 = vor.u32 %v18706_v15, %v13800_v14 }
  0xde   : > { %3353 = vmatpush.bf16.msrb.mxu2 %v14137_v26  ;;  %3371 = vmatpush.bf16.msrb.mxu3 %v14265_v32  ;;  %v797_v26 = vrot.slane %v795_v30, 1  ;;  %v14072_v19 = vld [vmem:[%s30242_s4 + $0xa20] sm:$0xf]  ;;  %v13929_v28 = vor.u32 %v18738_v23, %v13928_v16  ;;  %v18774_v29 = vld [vmem:[%s30242_s4 + $0xa2c] sm:$0xf0]  ;;  %v21031_v34 = vsel %vm767_vm0, %v786_v20, %v20949_v56  ;;  %v12893_v45 = vor.u32 %v18476_v40, %v12890_v41 }
  0xdf   : > { %3319 = vmatpush.bf16.msrb.mxu0 %v13849_v50  ;;  %3337 = vmatpush.bf16.msrb.mxu1 %v13977_v42  ;;  %v14200_v30 = vld [vmem:[%s30242_s4 + $0xb20] sm:$0xf]  ;;  %v18806_v32 = vld [vmem:[%s30242_s4 + $0xb2c] sm:$0xf0]  ;;  %v21033_v50 = vrot.slane %v800_v57, 1  ;;  %v21035_v39 = vrot.slane %v812_v58, 1  ;;  %v14073_v43 = vor.u32 %v18774_v29, %v14072_v19  ;;  %v810_v61 = vor.u32 %v809_v27, %v805_v22 }
  0xe0   : > { %v18508_v42 = vld [vmem:[%s30242_s4 + $0x1e4] sm:$0xf]  ;;  %v14201_v44 = vor.u32 %v18806_v32, %v14200_v30  ;;  %v14056_v51 = vld [vmem:[%s30242_s4 + $0xa00] sm:$0xf]  ;;  %v18770_v47 = vld [vmem:[%s30242_s4 + $0xa0c] sm:$0xf0]  ;;  %v798_v60 = vor.u32 %v797_v26, %v793_v21 }
  0xe1   : > { %v14184_v52 = vld [vmem:[%s30242_s4 + $0xb00] sm:$0xf]  ;;  %v12874_v57 = vld [vmem:[%s30242_s4 + $0xd0] sm:$0xf0]  ;;  %v18504_v58 = vld [vmem:[%s30242_s4 + $0x1c4] sm:$0xf]  ;;  %v14057_v1 = vor.u32 %v18770_v47, %v14056_v51 }
  0xe2   : > { %3354 = vmatpush.bf16.msrb.mxu2 %v14121_v46  ;;  %3372 = vmatpush.bf16.msrb.mxu3 %v14249_v53  ;;  %v13018_v46 = vld [vmem:[%s30242_s4 + $0x1f0] sm:$0xf0]  ;;  %v18802_v53 = vld [vmem:[%s30242_s4 + $0xb0c] sm:$0xf0]  ;;  %v21077_v3 = vsel %vm767_vm0, %v798_v60, %v21033_v50  ;;  %v819_v9 = vshrl.u32 %v20867_v8, 16  ;;  %v822_v51 = vshrl.u32 %v20915_v35, 16 }
  0xe3   : > { %3320 = vmatpush.bf16.msrb.mxu0 %v13833_v54  ;;  %3338 = vmatpush.bf16.msrb.mxu1 %v13961_v59  ;;  %v13021_v48 = vor.u32 %v18508_v42, %v13018_v46  ;;  %v18472_v54 = vld [vmem:[%s30242_s4 + $0xc4] sm:$0xf]  ;;  %v13002_v59 = vld [vmem:[%s30242_s4 + $0x1d0] sm:$0xf0]  ;;  %v14185_v2 = vor.u32 %v18802_v53, %v14184_v52  ;;  %v825_v47 = vshrl.u32 %v20917_v36, 16 }
  0xe4   : > { %v12877_v62 = vor.u32 %v18472_v54, %v12874_v57  ;;  %v18540_v10 = vld [vmem:[%s30242_s4 + $0x2e4] sm:$0xf]  ;;  %v13146_v24 = vld [vmem:[%s30242_s4 + $0x2f0] sm:$0xf0] }
  0xe5   : > { %3220 = vmatmul.bf16.gmra.mxu2 %v20915_v35  ;;  %3238 = vmatmul.bf16.gmra.mxu3 %v20917_v36  ;;  %v13149_v12 = vor.u32 %v18540_v10, %v13146_v24  ;;  %v13274_v31 = vld [vmem:[%s30242_s4 + $0x3f0] sm:$0xf0]  ;;  %v18468_v13 = vld [vmem:[%s30242_s4 + $0xa4] sm:$0xf]  ;;  %v21197_v24 = vor.u32 %v825_v47, %v21035_v39 }
  0xe6   : > { %3355 = vmatpush.bf16.msrb.mxu2 %v14105_v63  ;;  %3373 = vmatpush.bf16.msrb.mxu3 %v14233_v4  ;;  %v13005_v63 = vor.u32 %v18504_v58, %v13002_v59  ;;  %v21081_v4 = vsel %vm767_vm0, %v810_v61, %v21035_v39  ;;  %v12858_v14 = vld [vmem:[%s30242_s4 + $0xb0] sm:$0xf0]  ;;  %v18500_v17 = vld [vmem:[%s30242_s4 + $0x1a4] sm:$0xf] }
  0xe7   : > { %3321 = vmatpush.bf16.msrb.mxu0 %v13817_v7  ;;  %3339 = vmatpush.bf16.msrb.mxu1 %v13945_v11  ;;  %v816_v7 = vshrl.u32 %v20856_v0, 16  ;;  %v18572_v11 = vld [vmem:[%s30242_s4 + $0x3e4] sm:$0xf]  ;;  %v12861_v16 = vor.u32 %v18468_v13, %v12858_v14  ;;  %v12986_v20 = vld [vmem:[%s30242_s4 + $0x1b0] sm:$0xf0]  ;;  %v21203_v13 = vrot.slane %v20867_v8, 1 }
  0xe8   : > { %v13277_v15 = vor.u32 %v18572_v11, %v13274_v31  ;;  %v18536_v21 = vld [vmem:[%s30242_s4 + $0x2c4] sm:$0xf]  ;;  %v12989_v22 = vor.u32 %v18500_v17, %v12986_v20  ;;  %v13130_v23 = vld [vmem:[%s30242_s4 + $0x2d0] sm:$0xf0]  ;;  %v21200_v31 = vrot.slane %v20856_v0, 1 }
  0xe9   : > { %v18568_v26 = vld [vmem:[%s30242_s4 + $0x3c4] sm:$0xf]  ;;  %v13258_v27 = vld [vmem:[%s30242_s4 + $0x3d0] sm:$0xf0] }
  0xea   : > { %3356 = vmatpush.bf16.msrb.mxu2 %v14089_v55  ;;  %3374 = vmatpush.bf16.msrb.mxu3 %v14217_v18  ;;  %v13133_v55 = vor.u32 %v18536_v21, %v13130_v23  ;;  %v13261_v18 = vor.u32 %v18568_v26, %v13258_v27  ;;  %v18464_v19 = vld [vmem:[%s30242_s4 + $0x84] sm:$0xf]  ;;  %v12970_v29 = vld [vmem:[%s30242_s4 + $0x190] sm:$0xf0] }
  0xeb   : > { %3322 = vmatpush.bf16.msrb.mxu0 %v13801_v25  ;;  %3340 = vmatpush.bf16.msrb.mxu1 %v13929_v28  ;;  %v12842_v25 = vld [vmem:[%s30242_s4 + $0x90] sm:$0xf0]  ;;  %v18496_v28 = vld [vmem:[%s30242_s4 + $0x184] sm:$0xf] }
  0xec   : > { %v18532_v30 = vld [vmem:[%s30242_s4 + $0x2a4] sm:$0xf]  ;;  %v13114_v32 = vld [vmem:[%s30242_s4 + $0x2b0] sm:$0xf0]  ;;  %v12845_v40 = vor.u32 %v18464_v19, %v12842_v25  ;;  %v12973_v41 = vor.u32 %v18496_v28, %v12970_v29 }
  0xed   : > { %3251 = vmatmul.bf16.vlgmr.msra.gmra.mxu0 %v21027_v33  ;;  %3269 = vmatmul.bf16.vlgmr.msra.gmra.mxu1 %v21031_v34  ;;  %v18564_v42 = vld [vmem:[%s30242_s4 + $0x3a4] sm:$0xf]  ;;  %v13117_v46 = vor.u32 %v18532_v30, %v13114_v32  ;;  %v12954_v54 = vld [vmem:[%s30242_s4 + $0x170] sm:$0xf0] }
  0xee   : > { %3357 = vmatpush.bf16.msrb.mxu2 %v14073_v43  ;;  %3375 = vmatpush.bf16.msrb.mxu3 %v14201_v44  ;;  %v13242_v43 = vld [vmem:[%s30242_s4 + $0x3b0] sm:$0xf0]  ;;  %v21148_v44 = vor.u32 %v816_v7, %v20946_v49  ;;  %v18460_v49 = vld [vmem:[%s30242_s4 + $0x64] sm:$0xf] }
  0xef   : > { %3387 = vmatpush.bf16.msra.mxu0 %v12893_v45  ;;  %3405 = vmatpush.bf16.msra.mxu1 %v13021_v48  ;;  %v21151_v45 = vor.u32 %v819_v9, %v20949_v56  ;;  %v13245_v48 = vor.u32 %v18564_v42, %v13242_v43  ;;  %v12826_v56 = vld [vmem:[%s30242_s4 + $0x70] sm:$0xf0]  ;;  %v18492_v52 = vld [vmem:[%s30242_s4 + $0x164] sm:$0xf]  ;;  %v21194_v9 = vor.u32 %v822_v51, %v21033_v50  ;;  %v837_v43 = vrot.slane %v20776_v5, 1 }
  0xf0   : > { %v12829_v53 = vor.u32 %v18460_v49, %v12826_v56  ;;  %v18528_v57 = vld [vmem:[%s30242_s4 + $0x284] sm:$0xf]  ;;  %v13098_v58 = vld [vmem:[%s30242_s4 + $0x290] sm:$0xf0]  ;;  %v12957_v59 = vor.u32 %v18492_v52, %v12954_v54 }
  0xf1   : > { %v13101_v60 = vor.u32 %v18528_v57, %v13098_v58  ;;  %v18560_v61 = vld [vmem:[%s30242_s4 + $0x384] sm:$0xf]  ;;  %v12938_v7 = vld [vmem:[%s30242_s4 + $0x150] sm:$0xf0]  ;;  %v21278_v57 = vrot.slane %v20915_v35, 1  ;;  %v21281_v58 = vrot.slane %v20917_v36, 1 }
  0xf2   : > { %3358 = vmatpush.bf16.msrb.mxu2 %v14057_v1  ;;  %3376 = vmatpush.bf16.msrb.mxu3 %v14185_v2  ;;  %v12810_v1 = vld [vmem:[%s30242_s4 + $0x50] sm:$0xf0]  ;;  %v18488_v2 = vld [vmem:[%s30242_s4 + $0x144] sm:$0xf] }
  0xf3   : > { %3388 = vmatpush.bf16.msra.mxu0 %v12877_v62  ;;  %3406 = vmatpush.bf16.msra.mxu1 %v13005_v63  ;;  %v13226_v62 = vld [vmem:[%s30242_s4 + $0x390] sm:$0xf0]  ;;  %v18456_v63 = vld [vmem:[%s30242_s4 + $0x44] sm:$0xf] }
  0xf4   : > { %v13229_v10 = vor.u32 %v18560_v61, %v13226_v62  ;;  %v12813_v11 = vor.u32 %v18456_v63, %v12810_v1  ;;  %v18524_v50 = vld [vmem:[%s30242_s4 + $0x264] sm:$0xf]  ;;  %v13082_v39 = vld [vmem:[%s30242_s4 + $0x270] sm:$0xf0] }
  0xf5   : > { %3287 = vmatmul.bf16.vlgmr.msra.gmra.mxu2 %v21077_v3  ;;  %3305 = vmatmul.bf16.vlgmr.msra.gmra.mxu3 %v21081_v4  ;;  %v18556_v14 = vld [vmem:[%s30242_s4 + $0x364] sm:$0xf]  ;;  %v12794_v20 = vld [vmem:[%s30242_s4 + $0x30] sm:$0xf0] }
  0xf6   : > { %3423 = vmatpush.bf16.msra.mxu2 %v13149_v12  ;;  %3441 = vmatpush.bf16.msra.mxu3 %v13277_v15  ;;  %v12941_v12 = vor.u32 %v18488_v2, %v12938_v7  ;;  %v13085_v15 = vor.u32 %v18524_v50, %v13082_v39  ;;  %v18452_v17 = vld [vmem:[%s30242_s4 + $0x24] sm:$0xf]  ;;  %v12922_v26 = vld [vmem:[%s30242_s4 + $0x130] sm:$0xf0] }
  0xf7   : > { %3389 = vmatpush.bf16.msra.mxu0 %v12861_v16  ;;  %3407 = vmatpush.bf16.msra.mxu1 %v12989_v22  ;;  %v13210_v16 = vld [vmem:[%s30242_s4 + $0x370] sm:$0xf0]  ;;  %v12797_v22 = vor.u32 %v18452_v17, %v12794_v20  ;;  %v18484_v23 = vld [vmem:[%s30242_s4 + $0x124] sm:$0xf]  ;;  %v843_v17 = vrot.slane %v20822_v37, 1  ;;  %v846_v20 = vrot.slane %v20824_v38, 1 }
  0xf8   : > { %v13213_v21 = vor.u32 %v18556_v14, %v13210_v16  ;;  %v18520_v27 = vld [vmem:[%s30242_s4 + $0x244] sm:$0xf]  ;;  %v13194_v25 = vld [vmem:[%s30242_s4 + $0x350] sm:$0xf0] }
  0xf9   : > { %v18552_v19 = vld [vmem:[%s30242_s4 + $0x344] sm:$0xf]  ;;  %v12778_v30 = vld [vmem:[%s30242_s4 + $0x10] sm:$0xf0] }
  0xfa   : > { %3424 = vmatpush.bf16.msra.mxu2 %v13133_v55  ;;  %3442 = vmatpush.bf16.msra.mxu3 %v13261_v18  ;;  %v12925_v55 = vor.u32 %v18484_v23, %v12922_v26  ;;  %v13066_v18 = vld [vmem:[%s30242_s4 + $0x250] sm:$0xf0]  ;;  %v18448_v29 = vld [vmem:[%s30242_s4 + $0x4] sm:$0xf]  ;;  %v13197_v51 = vor.u32 %v18552_v19, %v13194_v25  ;;  %v21325_v26 = vsel %vm836_vm1, %v843_v17, %v21278_v57 }
  0xfb   : > { %3390 = vmatpush.bf16.msra.mxu0 %v12845_v40  ;;  %3408 = vmatpush.bf16.msra.mxu1 %v12973_v41  ;;  %v13069_v28 = vor.u32 %v18520_v27, %v13066_v18  ;;  %v18480_v32 = vld [vmem:[%s30242_s4 + $0x104] sm:$0xf]  ;;  %v12906_v40 = vld [vmem:[%s30242_s4 + $0x110] sm:$0xf0]  ;;  %v12781_v47 = vor.u32 %v18448_v29, %v12778_v30  ;;  %v21329_v27 = vsel %vm836_vm1, %v846_v20, %v21281_v58 }
  0xfc   : > { %v18516_v41 = vld [vmem:[%s30242_s4 + $0x224] sm:$0xf]  ;;  %v13050_v42 = vld [vmem:[%s30242_s4 + $0x230] sm:$0xf0] }
  0xfd   : > { %3256 = vmatmul.bf16.gmra.mxu0 %v21148_v44  ;;  %3274 = vmatmul.bf16.gmra.mxu1 %v21151_v45  ;;  %v13053_v49 = vor.u32 %v18516_v41, %v13050_v42  ;;  %v18548_v56 = vld [vmem:[%s30242_s4 + $0x324] sm:$0xf]  ;;  %v13178_v52 = vld [vmem:[%s30242_s4 + $0x330] sm:$0xf0] }
  0xfe   : > { %3425 = vmatpush.bf16.msra.mxu2 %v13117_v46  ;;  %3443 = vmatpush.bf16.msra.mxu3 %v13245_v48  ;;  %v840_v46 = vrot.slane %v20778_v6, 1  ;;  %v12909_v48 = vor.u32 %v18480_v32, %v12906_v40  ;;  %v18636_v61 = vld [vmem:[%s30242_s4 + $0x5e4] sm:$0xf]  ;;  %v13181_v62 = vor.u32 %v18548_v56, %v13178_v52  ;;  %v13530_v1 = vld [vmem:[%s30242_s4 + $0x5f0] sm:$0xf0] }
  0xff   : > { %3391 = vmatpush.bf16.msra.mxu0 %v12829_v53  ;;  %3409 = vmatpush.bf16.msra.mxu1 %v12957_v59  ;;  %v21271_v53 = vsel %vm836_vm1, %v837_v43, %v21200_v31  ;;  %v18604_v59 = vld [vmem:[%s30242_s4 + $0x4e4] sm:$0xf]  ;;  %v13034_v7 = vld [vmem:[%s30242_s4 + $0x210] sm:$0xf0] }
 0x100   : > { %v21275_v54 = vsel %vm836_vm1, %v840_v46, %v21203_v13  ;;  %v18512_v2 = vld [vmem:[%s30242_s4 + $0x204] sm:$0xf]  ;;  %v13162_v50 = vld [vmem:[%s30242_s4 + $0x310] sm:$0xf0] }
 0x101   : > { %v18600_v39 = vld [vmem:[%s30242_s4 + $0x4c4] sm:$0xf]  ;;  %v13386_v14 = vld [vmem:[%s30242_s4 + $0x4d0] sm:$0xf0] }
 0x102   : > { %3426 = vmatpush.bf16.msra.mxu2 %v13101_v60  ;;  %3444 = vmatpush.bf16.msra.mxu3 %v13229_v10  ;;  %v13402_v60 = vld [vmem:[%s30242_s4 + $0x4f0] sm:$0xf0]  ;;  %v13533_v10 = vor.u32 %v18636_v61, %v13530_v1  ;;  %v18700_v19 = vld [vmem:[%s30242_s4 + $0x7e4] sm:$0xf] }
 0x103   : > { %3392 = vmatpush.bf16.msra.mxu0 %v12813_v11  ;;  %3410 = vmatpush.bf16.msra.mxu1 %v12941_v12  ;;  %v13405_v63 = vor.u32 %v18604_v59, %v13402_v60  ;;  %v13037_v11 = vor.u32 %v18512_v2, %v13034_v7  ;;  %v18544_v12 = vld [vmem:[%s30242_s4 + $0x304] sm:$0xf]  ;;  %v13514_v16 = vld [vmem:[%s30242_s4 + $0x5d0] sm:$0xf0] }
 0x104   : > { %v13165_v23 = vor.u32 %v18544_v12, %v13162_v50  ;;  %v13658_v18 = vld [vmem:[%s30242_s4 + $0x6f0] sm:$0xf0]  ;;  %v18596_v29 = vld [vmem:[%s30242_s4 + $0x4a4] sm:$0xf] }
 0x105   : > { %3292 = vmatmul.bf16.gmra.mxu2 %v21194_v9  ;;  %3310 = vmatmul.bf16.gmra.mxu3 %v21197_v24  ;;  %v13370_v30 = vld [vmem:[%s30242_s4 + $0x4b0] sm:$0xf0]  ;;  %v18628_v41 = vld [vmem:[%s30242_s4 + $0x5a4] sm:$0xf] }
 0x106   : > { %3427 = vmatpush.bf16.msra.mxu2 %v13085_v15  ;;  %3445 = vmatpush.bf16.msra.mxu3 %v13213_v21  ;;  %v18632_v15 = vld [vmem:[%s30242_s4 + $0x5c4] sm:$0xf]  ;;  %v13389_v21 = vor.u32 %v18600_v39, %v13386_v14  ;;  %v13373_v40 = vor.u32 %v18596_v29, %v13370_v30  ;;  %v13498_v42 = vld [vmem:[%s30242_s4 + $0x5b0] sm:$0xf0] }
 0x107   : > { %3393 = vmatpush.bf16.msra.mxu0 %v12797_v22  ;;  %3411 = vmatpush.bf16.msra.mxu1 %v12925_v55  ;;  %v13517_v22 = vor.u32 %v18632_v15, %v13514_v16  ;;  %v18668_v55 = vld [vmem:[%s30242_s4 + $0x6e4] sm:$0xf]  ;;  %v13501_v46 = vor.u32 %v18628_v41, %v13498_v42  ;;  %v13354_v59 = vld [vmem:[%s30242_s4 + $0x490] sm:$0xf0] }
 0x108   : > { %v13661_v25 = vor.u32 %v18668_v55, %v13658_v18  ;;  %v18664_v43 = vld [vmem:[%s30242_s4 + $0x6c4] sm:$0xf]  ;;  %v13482_v61 = vld [vmem:[%s30242_s4 + $0x590] sm:$0xf0] }
 0x109   : > { %v18592_v52 = vld [vmem:[%s30242_s4 + $0x484] sm:$0xf]  ;;  %v13338_v39 = vld [vmem:[%s30242_s4 + $0x470] sm:$0xf0] }
 0x10a   : > { %3428 = vmatpush.bf16.msra.mxu2 %v13069_v28  ;;  %3446 = vmatpush.bf16.msra.mxu3 %v13197_v51  ;;  %v13786_v28 = vld [vmem:[%s30242_s4 + $0x7f0] sm:$0xf0]  ;;  %v18624_v60 = vld [vmem:[%s30242_s4 + $0x584] sm:$0xf]  ;;  %v13357_v1 = vor.u32 %v18592_v52, %v13354_v59 }
 0x10b   : > { %3394 = vmatpush.bf16.msra.mxu0 %v12781_v47  ;;  %3412 = vmatpush.bf16.msra.mxu1 %v12909_v48  ;;  %v13789_v32 = vor.u32 %v18700_v19, %v13786_v28  ;;  %v13642_v51 = vld [vmem:[%s30242_s4 + $0x6d0] sm:$0xf0]  ;;  %v18696_v47 = vld [vmem:[%s30242_s4 + $0x7c4] sm:$0xf]  ;;  %v13485_v2 = vor.u32 %v18624_v60, %v13482_v61 }
 0x10c   : > { %v13770_v48 = vld [vmem:[%s30242_s4 + $0x7d0] sm:$0xf0]  ;;  %v18692_v7 = vld [vmem:[%s30242_s4 + $0x7a4] sm:$0xf] }
 0x10d   : > { %3323 = vmatmul.bf16.vlgmr.msrb.gmra.mxu0 %v21271_v53  ;;  %3341 = vmatmul.bf16.vlgmr.msrb.gmra.mxu1 %v21275_v54  ;;  %v13773_v56 = vor.u32 %v18696_v47, %v13770_v48  ;;  %v18588_v50 = vld [vmem:[%s30242_s4 + $0x464] sm:$0xf]  ;;  %v13466_v16 = vld [vmem:[%s30242_s4 + $0x570] sm:$0xf0] }
 0x10e   : > { %3429 = vmatpush.bf16.msra.mxu2 %v13053_v49  ;;  %3447 = vmatpush.bf16.msra.mxu3 %v13181_v62  ;;  %v13645_v49 = vor.u32 %v18664_v43, %v13642_v51  ;;  %v18660_v62 = vld [vmem:[%s30242_s4 + $0x6a4] sm:$0xf]  ;;  %v13341_v15 = vor.u32 %v18588_v50, %v13338_v39  ;;  %v13610_v20 = vld [vmem:[%s30242_s4 + $0x690] sm:$0xf0] }
 0x10f   : > { %3459 = vmatpush.bf16.msrb.mxu0 %v13405_v63  ;;  %3477 = vmatpush.bf16.msrb.mxu1 %v13533_v10  ;;  %v13626_v63 = vld [vmem:[%s30242_s4 + $0x6b0] sm:$0xf0]  ;;  %v18620_v14 = vld [vmem:[%s30242_s4 + $0x564] sm:$0xf] }
 0x110   : > { %v13754_v10 = vld [vmem:[%s30242_s4 + $0x7b0] sm:$0xf0]  ;;  %v18656_v17 = vld [vmem:[%s30242_s4 + $0x684] sm:$0xf] }
 0x111   : > { %v13757_v12 = vor.u32 %v18692_v7, %v13754_v10  ;;  %v13738_v55 = vld [vmem:[%s30242_s4 + $0x790] sm:$0xf0]  ;;  %v18584_v18 = vld [vmem:[%s30242_s4 + $0x444] sm:$0xf] }
 0x112   : > { %3430 = vmatpush.bf16.msra.mxu2 %v13037_v11  ;;  %3448 = vmatpush.bf16.msra.mxu3 %v13165_v23  ;;  %v13629_v11 = vor.u32 %v18660_v62, %v13626_v63  ;;  %v18688_v23 = vld [vmem:[%s30242_s4 + $0x784] sm:$0xf]  ;;  %v13322_v19 = vld [vmem:[%s30242_s4 + $0x450] sm:$0xf0] }
 0x113   : > { %3460 = vmatpush.bf16.msrb.mxu0 %v13389_v21  ;;  %3478 = vmatpush.bf16.msrb.mxu1 %v13517_v22  ;;  %v13469_v21 = vor.u32 %v18620_v14, %v13466_v16  ;;  %v13613_v22 = vor.u32 %v18656_v17, %v13610_v20  ;;  %v13450_v28 = vld [vmem:[%s30242_s4 + $0x550] sm:$0xf0]  ;;  %v13741_v29 = vor.u32 %v18688_v23, %v13738_v55  ;;  %v18684_v42 = vld [vmem:[%s30242_s4 + $0x764] sm:$0xf] }
 0x114   : > { %v13325_v30 = vor.u32 %v18584_v18, %v13322_v19  ;;  %v13594_v41 = vld [vmem:[%s30242_s4 + $0x670] sm:$0xf0]  ;;  %v18580_v51 = vld [vmem:[%s30242_s4 + $0x424] sm:$0xf] }
 0x115   : > { %3359 = vmatmul.bf16.vlgmr.msrb.gmra.mxu2 %v21325_v26  ;;  %3377 = vmatmul.bf16.vlgmr.msrb.gmra.mxu3 %v21329_v27  ;;  %v13306_v47 = vld [vmem:[%s30242_s4 + $0x430] sm:$0xf0]  ;;  %v18648_v59 = vld [vmem:[%s30242_s4 + $0x644] sm:$0xf] }
 0x116   : > { %3495 = vmatpush.bf16.msrb.mxu2 %v13661_v25  ;;  %3513 = vmatpush.bf16.msrb.mxu3 %v13789_v32  ;;  %v18616_v25 = vld [vmem:[%s30242_s4 + $0x544] sm:$0xf]  ;;  %v13434_v52 = vld [vmem:[%s30242_s4 + $0x530] sm:$0xf0] }
 0x117   : > { %3461 = vmatpush.bf16.msrb.mxu0 %v13373_v40  ;;  %3479 = vmatpush.bf16.msrb.mxu1 %v13501_v46  ;;  %v13453_v32 = vor.u32 %v18616_v25, %v13450_v28  ;;  %v18652_v40 = vld [vmem:[%s30242_s4 + $0x664] sm:$0xf]  ;;  %v13722_v46 = vld [vmem:[%s30242_s4 + $0x770] sm:$0xf0] }
 0x118   : > { %v13597_v43 = vor.u32 %v18652_v40, %v13594_v41  ;;  %v13725_v48 = vor.u32 %v18684_v42, %v13722_v46  ;;  %v13578_v61 = vld [vmem:[%s30242_s4 + $0x650] sm:$0xf0]  ;;  %v18680_v62 = vld [vmem:[%s30242_s4 + $0x744] sm:$0xf] }
 0x119   : > { %v13706_v63 = vld [vmem:[%s30242_s4 + $0x750] sm:$0xf0]  ;;  %v18576_v7 = vld [vmem:[%s30242_s4 + $0x404] sm:$0xf] }
 0x11a   : > { %3496 = vmatpush.bf16.msrb.mxu2 %v13645_v49  ;;  %3514 = vmatpush.bf16.msrb.mxu3 %v13773_v56  ;;  %v13309_v49 = vor.u32 %v18580_v51, %v13306_v47  ;;  %v18612_v56 = vld [vmem:[%s30242_s4 + $0x524] sm:$0xf]  ;;  %v13290_v10 = vld [vmem:[%s30242_s4 + $0x410] sm:$0xf0] }
 0x11b   : > { %3462 = vmatpush.bf16.msrb.mxu0 %v13357_v1  ;;  %3480 = vmatpush.bf16.msrb.mxu1 %v13485_v2  ;;  %v13437_v60 = vor.u32 %v18612_v56, %v13434_v52  ;;  %v13581_v1 = vor.u32 %v18648_v59, %v13578_v61  ;;  %v13709_v2 = vor.u32 %v18680_v62, %v13706_v63  ;;  %v13418_v50 = vld [vmem:[%s30242_s4 + $0x510] sm:$0xf0]  ;;  %v18644_v39 = vld [vmem:[%s30242_s4 + $0x624] sm:$0xf] }
 0x11c   : > { %v13562_v14 = vld [vmem:[%s30242_s4 + $0x630] sm:$0xf0]  ;;  %v18676_v17 = vld [vmem:[%s30242_s4 + $0x724] sm:$0xf] }
 0x11d   : > { %3328 = vmatmul.bf16.gmra.mxu0 %v21200_v31  ;;  %3346 = vmatmul.bf16.gmra.mxu1 %v21203_v13  ;;  %v13565_v16 = vor.u32 %v18644_v39, %v13562_v14  ;;  %v13690_v20 = vld [vmem:[%s30242_s4 + $0x730] sm:$0xf0]  ;;  %v18764_v55 = vld [vmem:[%s30242_s4 + $0x9e4] sm:$0xf] }
 0x11e   : > { %3497 = vmatpush.bf16.msrb.mxu2 %v13629_v11  ;;  %3515 = vmatpush.bf16.msrb.mxu3 %v13757_v12  ;;  %v18608_v11 = vld [vmem:[%s30242_s4 + $0x504] sm:$0xf]  ;;  %v13293_v12 = vor.u32 %v18576_v7, %v13290_v10  ;;  %v13914_v23 = vld [vmem:[%s30242_s4 + $0x8f0] sm:$0xf0] }
 0x11f   : > { %3463 = vmatpush.bf16.msrb.mxu0 %v13341_v15  ;;  %3481 = vmatpush.bf16.msrb.mxu1 %v13469_v21  ;;  %v13421_v15 = vor.u32 %v18608_v11, %v13418_v50  ;;  %v18732_v21 = vld [vmem:[%s30242_s4 + $0x8e4] sm:$0xf]  ;;  %v14042_v18 = vld [vmem:[%s30242_s4 + $0x9f0] sm:$0xf0] }
 0x120   : > { %v13917_v19 = vor.u32 %v18732_v21, %v13914_v23  ;;  %v14045_v25 = vor.u32 %v18764_v55, %v14042_v18  ;;  %v18640_v28 = vld [vmem:[%s30242_s4 + $0x604] sm:$0xf]  ;;  %v13674_v40 = vld [vmem:[%s30242_s4 + $0x710] sm:$0xf0] }
 0x121   : > { %v18728_v42 = vld [vmem:[%s30242_s4 + $0x8c4] sm:$0xf]  ;;  %v14026_v47 = vld [vmem:[%s30242_s4 + $0x9d0] sm:$0xf0] }
 0x122   : > { %3498 = vmatpush.bf16.msrb.mxu2 %v13613_v22  ;;  %3516 = vmatpush.bf16.msrb.mxu3 %v13741_v29  ;;  %v13693_v22 = vor.u32 %v18676_v17, %v13690_v20  ;;  %v13546_v29 = vld [vmem:[%s30242_s4 + $0x610] sm:$0xf0]  ;;  %v18760_v46 = vld [vmem:[%s30242_s4 + $0x9c4] sm:$0xf] }
 0x123   : > { %3464 = vmatpush.bf16.msrb.mxu0 %v13325_v30  ;;  %3482 = vmatpush.bf16.msrb.mxu1 %v13453_v32  ;;  %v18672_v30 = vld [vmem:[%s30242_s4 + $0x704] sm:$0xf]  ;;  %v13549_v32 = vor.u32 %v18640_v28, %v13546_v29  ;;  %v14029_v56 = vor.u32 %v18760_v46, %v14026_v47  ;;  %v13882_v63 = vld [vmem:[%s30242_s4 + $0x8b0] sm:$0xf0] }
 0x124   : > { %v13677_v41 = vor.u32 %v18672_v30, %v13674_v40  ;;  %v18828_v59 = vld [vmem:[%s30242_s4 + $0xbe4] sm:$0xf]  ;;  %v14010_v7 = vld [vmem:[%s30242_s4 + $0x9b0] sm:$0xf0]  ;;  %v21598_v30 = vld [vmem:[%s30243_s5] sm:$0xf] }
 0x125   : > { %3364 = vmatmul.bf16.gmra.mxu2 %v21278_v57  ;;  %3382 = vmatmul.bf16.gmra.mxu3 %v21281_v58  ;;  %v18724_v62 = vld [vmem:[%s30242_s4 + $0x8a4] sm:$0xf]  ;;  %v14154_v11 = vld [vmem:[%s30242_s4 + $0xad0] sm:$0xf0] }
 0x126   : > { %3499 = vmatpush.bf16.msrb.mxu2 %v13597_v43  ;;  %3517 = vmatpush.bf16.msrb.mxu3 %v13725_v48  ;;  %v13898_v43 = vld [vmem:[%s30242_s4 + $0x8d0] sm:$0xf0]  ;;  %v18796_v48 = vld [vmem:[%s30242_s4 + $0xae4] sm:$0xf] }
 0x127   : > { %3465 = vmatpush.bf16.msrb.mxu0 %v13309_v49  ;;  %3483 = vmatpush.bf16.msrb.mxu1 %v13437_v60  ;;  %v13901_v51 = vor.u32 %v18728_v42, %v13898_v43  ;;  %v14170_v49 = vld [vmem:[%s30242_s4 + $0xaf0] sm:$0xf0]  ;;  %v18792_v10 = vld [vmem:[%s30242_s4 + $0xac4] sm:$0xf] }
 0x128   : > { %v14173_v52 = vor.u32 %v18796_v48, %v14170_v49  ;;  %v14298_v60 = vld [vmem:[%s30242_s4 + $0xbf0] sm:$0xf0]  ;;  %v14157_v50 = vor.u32 %v18792_v10, %v14154_v11  ;;  %v18824_v39 = vld [vmem:[%s30242_s4 + $0xbc4] sm:$0xf]  ;;  %v21648_v11 = vperm.slane %v21598_v30, 0 }
 0x129   : > { %v14301_v61 = vor.u32 %v18828_v59, %v14298_v60  ;;  %v14282_v14 = vld [vmem:[%s30242_s4 + $0xbd0] sm:$0xf0]  ;;  %v18752_v20 = vld [vmem:[%s30242_s4 + $0x984] sm:$0xf] }
 0x12a   : > { %3500 = vmatpush.bf16.msrb.mxu2 %v13581_v1  ;;  %3518 = vmatpush.bf16.msrb.mxu3 %v13709_v2  ;;  %v18756_v1 = vld [vmem:[%s30242_s4 + $0x9a4] sm:$0xf]  ;;  %v13885_v2 = vor.u32 %v18724_v62, %v13882_v63  ;;  %v13866_v17 = vld [vmem:[%s30242_s4 + $0x890] sm:$0xf0] }
 0x12b   : > { %3466 = vmatpush.bf16.msrb.mxu0 %v13293_v12  ;;  %3484 = vmatpush.bf16.msrb.mxu1 %v13421_v15  ;;  %v14013_v12 = vor.u32 %v18756_v1, %v14010_v7  ;;  %v14285_v15 = vor.u32 %v18824_v39, %v14282_v14  ;;  %v18788_v23 = vld [vmem:[%s30242_s4 + $0xaa4] sm:$0xf]  ;;  %v14138_v55 = vld [vmem:[%s30242_s4 + $0xab0] sm:$0xf0] }
 0x12c   : > { %v14266_v28 = vld [vmem:[%s30242_s4 + $0xbb0] sm:$0xf0]  ;;  %v18784_v46 = vld [vmem:[%s30242_s4 + $0xa84] sm:$0xf] }
 0x12d   : > { %3395 = vmatmul.bf16.vlgmr.msra.gmra.mxu0 %v20776_v5  ;;  %3413 = vmatmul.bf16.vlgmr.msra.gmra.mxu1 %v20778_v6  ;;  %v13850_v40 = vld [vmem:[%s30242_s4 + $0x870] sm:$0xf0]  ;;  %v18816_v49 = vld [vmem:[%s30242_s4 + $0xb84] sm:$0xf] }
 0x12e   : > { %3501 = vmatpush.bf16.msrb.mxu2 %v13565_v16  ;;  %3519 = vmatpush.bf16.msrb.mxu3 %v13693_v22  ;;  %v18720_v16 = vld [vmem:[%s30242_s4 + $0x884] sm:$0xf]  ;;  %v13994_v22 = vld [vmem:[%s30242_s4 + $0x990] sm:$0xf0] }
 0x12f   : > { %3531 = vmatpush.bf16.msra.mxu0 %v13917_v19  ;;  %3549 = vmatpush.bf16.msra.mxu1 %v14045_v25  ;;  %v13869_v21 = vor.u32 %v18720_v16, %v13866_v17  ;;  %v13997_v18 = vor.u32 %v18752_v20, %v13994_v22  ;;  %v14141_v19 = vor.u32 %v18788_v23, %v14138_v55  ;;  %v18820_v25 = vld [vmem:[%s30242_s4 + $0xba4] sm:$0xf]  ;;  %v13978_v43 = vld [vmem:[%s30242_s4 + $0x970] sm:$0xf0] }
 0x130   : > { %v14269_v29 = vor.u32 %v18820_v25, %v14266_v28  ;;  %v13834_v60 = vld [vmem:[%s30242_s4 + $0x850] sm:$0xf0]  ;;  %v18812_v10 = vld [vmem:[%s30242_s4 + $0xb64] sm:$0xf] }
 0x131   : > { %v13962_v62 = vld [vmem:[%s30242_s4 + $0x950] sm:$0xf0]  ;;  %v18708_v16 = vld [vmem:[%s30242_s4 + $0x824] sm:$0xf] }
 0x132   : > { %3502 = vmatpush.bf16.msrb.mxu2 %v13549_v32  ;;  %3520 = vmatpush.bf16.msrb.mxu3 %v13677_v41  ;;  %v18716_v32 = vld [vmem:[%s30242_s4 + $0x864] sm:$0xf]  ;;  %v14106_v7 = vld [vmem:[%s30242_s4 + $0xa70] sm:$0xf0] }
 0x133   : > { %3532 = vmatpush.bf16.msra.mxu0 %v13901_v51  ;;  %3550 = vmatpush.bf16.msra.mxu1 %v14029_v56  ;;  %v18748_v41 = vld [vmem:[%s30242_s4 + $0x964] sm:$0xf]  ;;  %v13853_v42 = vor.u32 %v18716_v32, %v13850_v40  ;;  %v14122_v51 = vld [vmem:[%s30242_s4 + $0xa90] sm:$0xf0] }
 0x134   : > { %v13981_v47 = vor.u32 %v18748_v41, %v13978_v43  ;;  %v14125_v48 = vor.u32 %v18784_v46, %v14122_v51  ;;  %v14250_v56 = vld [vmem:[%s30242_s4 + $0xb90] sm:$0xf0]  ;;  %v18740_v20 = vld [vmem:[%s30242_s4 + $0x924] sm:$0xf] }
 0x135   : > { %3431 = vmatmul.bf16.vlgmr.msra.gmra.mxu2 %v20822_v37  ;;  %3449 = vmatmul.bf16.vlgmr.msra.gmra.mxu3 %v20824_v38  ;;  %v14253_v59 = vor.u32 %v18816_v49, %v14250_v56  ;;  %v13818_v17 = vld [vmem:[%s30242_s4 + $0x830] sm:$0xf0]  ;;  %v18776_v55 = vld [vmem:[%s30242_s4 + $0xa44] sm:$0xf] }
 0x136   : > { %3567 = vmatpush.bf16.msra.mxu2 %v14173_v52  ;;  %3585 = vmatpush.bf16.msra.mxu3 %v14301_v61  ;;  %v18712_v52 = vld [vmem:[%s30242_s4 + $0x844] sm:$0xf]  ;;  %v13821_v22 = vor.u32 %v18708_v16, %v13818_v17  ;;  %v13946_v23 = vld [vmem:[%s30242_s4 + $0x930] sm:$0xf0] }
 0x137   : > { %3533 = vmatpush.bf16.msra.mxu0 %v13885_v2  ;;  %3551 = vmatpush.bf16.msra.mxu1 %v14013_v12  ;;  %v18744_v61 = vld [vmem:[%s30242_s4 + $0x944] sm:$0xf]  ;;  %v13837_v63 = vor.u32 %v18712_v52, %v13834_v60  ;;  %v13930_v51 = vld [vmem:[%s30242_s4 + $0x910] sm:$0xf0]  ;;  %v12896_v60 = vld [vmem:[%s30242_s4 + $0xe8] sm:$0xf] }
 0x138   : > { %v13965_v1 = vor.u32 %v18744_v61, %v13962_v62  ;;  %v18780_v2 = vld [vmem:[%s30242_s4 + $0xa64] sm:$0xf]  ;;  %v18479_v62 = vld [vmem:[%s30242_s4 + $0xf4] sm:$0xf0] }
 0x139   : > { %v14109_v12 = vor.u32 %v18780_v2, %v14106_v7  ;;  %v18808_v28 = vld [vmem:[%s30242_s4 + $0xb44] sm:$0xf]  ;;  %v12897_v2 = vor.u32 %v18479_v62, %v12896_v60  ;;  %v18503_v62 = vld [vmem:[%s30242_s4 + $0x1b4] sm:$0xf0] }
 0x13a   : > { %3568 = vmatpush.bf16.msra.mxu2 %v14157_v50  ;;  %3586 = vmatpush.bf16.msra.mxu3 %v14285_v15  ;;  %v14234_v50 = vld [vmem:[%s30242_s4 + $0xb70] sm:$0xf0]  ;;  %v18704_v41 = vld [vmem:[%s30242_s4 + $0x804] sm:$0xf] }
 0x13b   : > { %3534 = vmatpush.bf16.msra.mxu0 %v13869_v21  ;;  %3552 = vmatpush.bf16.msra.mxu1 %v13997_v18  ;;  %v14237_v39 = vor.u32 %v18812_v10, %v14234_v50  ;;  %v14090_v18 = vld [vmem:[%s30242_s4 + $0xa50] sm:$0xf0]  ;;  %v18736_v43 = vld [vmem:[%s30242_s4 + $0x904] sm:$0xf] }
 0x13c   : > { %v14093_v25 = vor.u32 %v18776_v55, %v14090_v18  ;;  %v13933_v49 = vor.u32 %v18736_v43, %v13930_v51  ;;  %v18804_v52 = vld [vmem:[%s30242_s4 + $0xb24] sm:$0xf]  ;;  %v13008_v55 = vld [vmem:[%s30242_s4 + $0x1c8] sm:$0xf] }
 0x13d   : > { %3400 = vmatmul.bf16.gmra.mxu0 %v20856_v0  ;;  %3418 = vmatmul.bf16.gmra.mxu1 %v20867_v8  ;;  %v18768_v10 = vld [vmem:[%s30242_s4 + $0xa04] sm:$0xf]  ;;  %v13280_v43 = vld [vmem:[%s30242_s4 + $0x3e8] sm:$0xf] }
 0x13e   : > { %3569 = vmatpush.bf16.msra.mxu2 %v14141_v19  ;;  %3587 = vmatpush.bf16.msra.mxu3 %v14269_v29  ;;  %v13949_v19 = vor.u32 %v18740_v20, %v13946_v23  ;;  %v14218_v29 = vld [vmem:[%s30242_s4 + $0xb50] sm:$0xf0]  ;;  %v18800_v50 = vld [vmem:[%s30242_s4 + $0xb04] sm:$0xf]  ;;  %v18475_v23 = vld [vmem:[%s30242_s4 + $0xd4] sm:$0xf0] }
 0x13f   : > { %3535 = vmatpush.bf16.msra.mxu0 %v13853_v42  ;;  %3553 = vmatpush.bf16.msra.mxu1 %v13981_v47  ;;  %v14221_v40 = vor.u32 %v18808_v28, %v14218_v29  ;;  %v13802_v42 = vld [vmem:[%s30242_s4 + $0x810] sm:$0xf0]  ;;  %v18772_v47 = vld [vmem:[%s30242_s4 + $0xa24] sm:$0xf]  ;;  %v18543_v28 = vld [vmem:[%s30242_s4 + $0x2f4] sm:$0xf0] }
 0x140   : > { %v13805_v46 = vor.u32 %v18704_v41, %v13802_v42 }
 0x142   : > { %3570 = vmatpush.bf16.msra.mxu2 %v14125_v48  ;;  %3588 = vmatpush.bf16.msra.mxu3 %v14253_v59  ;;  %v14074_v48 = vld [vmem:[%s30242_s4 + $0xa30] sm:$0xf0] }
 0x143   : > { %3536 = vmatpush.bf16.msra.mxu0 %v13837_v63  ;;  %3554 = vmatpush.bf16.msra.mxu1 %v13965_v1  ;;  %v14077_v56 = vor.u32 %v18772_v47, %v14074_v48  ;;  %v14202_v59 = vld [vmem:[%s30242_s4 + $0xb30] sm:$0xf0]  ;;  %v13024_v63 = vld [vmem:[%s30242_s4 + $0x1e8] sm:$0xf]  ;;  %v18511_v1 = vld [vmem:[%s30242_s4 + $0x1f4] sm:$0xf0] }
 0x144   : > { %v14205_v61 = vor.u32 %v18804_v52, %v14202_v59  ;;  %v13025_v7 = vor.u32 %v18511_v1, %v13024_v63  ;;  %v12864_v52 = vld [vmem:[%s30242_s4 + $0xa8] sm:$0xf]  ;;  %v18471_v59 = vld [vmem:[%s30242_s4 + $0xb4] sm:$0xf0] }
 0x145   : > { %3436 = vmatmul.bf16.gmra.mxu2 %v20915_v35  ;;  %3454 = vmatmul.bf16.gmra.mxu3 %v20917_v36  ;;  %v13136_v63 = vld [vmem:[%s30242_s4 + $0x2c8] sm:$0xf]  ;;  %v18539_v1 = vld [vmem:[%s30242_s4 + $0x2d4] sm:$0xf0] }
 0x146   : > { %3571 = vmatpush.bf16.msra.mxu2 %v14109_v12  ;;  %3589 = vmatpush.bf16.msra.mxu3 %v14237_v39  ;;  %v14058_v12 = vld [vmem:[%s30242_s4 + $0xa10] sm:$0xf0] }
 0x147   : > { %3537 = vmatpush.bf16.msra.mxu0 %v13821_v22  ;;  %3555 = vmatpush.bf16.msra.mxu1 %v13949_v19  ;;  %v14061_v17 = vor.u32 %v18768_v10, %v14058_v12  ;;  %v12880_v22 = vld [vmem:[%s30242_s4 + $0xc8] sm:$0xf]  ;;  %v18507_v19 = vld [vmem:[%s30242_s4 + $0x1d4] sm:$0xf0] }
 0x148   : > { %v12881_v18 = vor.u32 %v18475_v23, %v12880_v22  ;;  %v13009_v41 = vor.u32 %v18507_v19, %v13008_v55  ;;  %v13264_v10 = vld [vmem:[%s30242_s4 + $0x3c8] sm:$0xf]  ;;  %v18535_v22 = vld [vmem:[%s30242_s4 + $0x2b4] sm:$0xf0] }
 0x14a   : > { %v3180_v14 = vpop.f32.mrf.mxu0  ;;  %v3198_v15 = vpop.f32.mrf.mxu1  ;;  %3572 = vmatpush.bf16.msra.mxu2 %v14093_v25  ;;  %3590 = vmatpush.bf16.msra.mxu3 %v14221_v40  ;;  %v13152_v25 = vld [vmem:[%s30242_s4 + $0x2e8] sm:$0xf] }
 0x14b   : > { %v3181_v21 = vadd.f32 %v3180_v14, %v21648_v11  ;;  %3538 = vmatpush.bf16.msra.mxu0 %v13805_v46  ;;  %3556 = vmatpush.bf16.msra.mxu1 %v13933_v49  ;;  %v13153_v42 = vor.u32 %v18543_v28, %v13152_v25  ;;  %v18575_v46 = vld [vmem:[%s30242_s4 + $0x3f4] sm:$0xf0]  ;;  %v13248_v25 = vld [vmem:[%s30242_s4 + $0x3a8] sm:$0xf] }
 0x14c   : > { %v13281_v47 = vor.u32 %v18575_v46, %v13280_v43  ;;  %v18567_v28 = vld [vmem:[%s30242_s4 + $0x3b4] sm:$0xf0]  ;;  %v12832_v46 = vld [vmem:[%s30242_s4 + $0x68] sm:$0xf] }
 0x14d   : > { %v3199_v32 = vadd.f32 %v3198_v15, %v3181_v21  ;;  %3467 = vmatmul.bf16.vlgmr.msrb.gmra.mxu0 %v21027_v33  ;;  %3485 = vmatmul.bf16.vlgmr.msrb.gmra.mxu1 %v21031_v34  ;;  %v14186_v15 = vld [vmem:[%s30242_s4 + $0xb10] sm:$0xf0] }
 0x14e   : > { %3573 = vmatpush.bf16.msra.mxu2 %v14077_v56  ;;  %3591 = vmatpush.bf16.msra.mxu3 %v14205_v61  ;;  %v14189_v20 = vor.u32 %v18800_v50, %v14186_v15  ;;  %v12865_v61 = vor.u32 %v18471_v59, %v12864_v52  ;;  %v12976_v15 = vld [vmem:[%s30242_s4 + $0x188] sm:$0xf]  ;;  %v18531_v52 = vld [vmem:[%s30242_s4 + $0x294] sm:$0xf0] }
 0x14f   : > { %3603 = vmatpush.bf16.msrb.mxu0 %v12897_v2  ;;  %3621 = vmatpush.bf16.msrb.mxu1 %v13025_v7  ;;  %v13137_v7 = vor.u32 %v18539_v1, %v13136_v63  ;;  %v18459_v1 = vld [vmem:[%s30242_s4 + $0x54] sm:$0xf0] }
 0x152   : > { %v3182_v39 = vpop.f32.mrf.mxu0  ;;  %v3200_v14 = vpop.f32.mrf.mxu1  ;;  %3574 = vmatpush.bf16.msra.mxu2 %v14061_v17  ;;  %3592 = vmatpush.bf16.msra.mxu3 %v14189_v20  ;;  %v18499_v17 = vld [vmem:[%s30242_s4 + $0x194] sm:$0xf0]  ;;  %v13120_v20 = vld [vmem:[%s30242_s4 + $0x2a8] sm:$0xf] }
 0x153   : > { %v3183_v16 = vadd.f32 %v3182_v39, %v21648_v11  ;;  %3604 = vmatpush.bf16.msrb.mxu0 %v12881_v18  ;;  %3622 = vmatpush.bf16.msrb.mxu1 %v13009_v41  ;;  %v12848_v39 = vld [vmem:[%s30242_s4 + $0x88] sm:$0xf]  ;;  %v12977_v18 = vor.u32 %v18499_v17, %v12976_v15  ;;  %v13121_v19 = vor.u32 %v18535_v22, %v13120_v20  ;;  %v18559_v20 = vld [vmem:[%s30242_s4 + $0x374] sm:$0xf0] }
 0x155   : > { %3503 = vmatmul.bf16.vlgmr.msrb.gmra.mxu2 %v21077_v3  ;;  %3521 = vmatmul.bf16.vlgmr.msrb.gmra.mxu3 %v21081_v4  ;;  %v3201_v21 = vadd.f32 %v3200_v14, %v3183_v16  ;;  %v18467_v14 = vld [vmem:[%s30242_s4 + $0x94] sm:$0xf0] }
 0x156   : > { %3639 = vmatpush.bf16.msrb.mxu2 %v13153_v42  ;;  %3657 = vmatpush.bf16.msrb.mxu3 %v13281_v47  ;;  %v12849_v16 = vor.u32 %v18467_v14, %v12848_v39  ;;  %v12960_v47 = vld [vmem:[%s30242_s4 + $0x168] sm:$0xf]  ;;  %v18527_v39 = vld [vmem:[%s30242_s4 + $0x274] sm:$0xf0] }
 0x157   : > { %3605 = vmatpush.bf16.msrb.mxu0 %v12865_v61  ;;  %v18563_v61 = vld [vmem:[%s30242_s4 + $0x394] sm:$0xf0]  ;;  %v13216_v14 = vld [vmem:[%s30242_s4 + $0x368] sm:$0xf] }
 0x158   : > { %v3216_v29 = vpop.f32.mrf.mxu2  ;;  %v3234_v40 = vpop.f32.mrf.mxu3 }
 0x159   : > { %v3217_v51 = vadd.f32 %v3216_v29, %v3199_v32  ;;  %v12992_v32 = vld [vmem:[%s30242_s4 + $0x1a8] sm:$0xf] }
 0x15a   : > { %v3185_v49 = vpop.f32.mrf.mxu0  ;;  %v3203_v56 = vpop.f32.mrf.mxu1  ;;  %v12993_v2 = vor.u32 %v18503_v62, %v12992_v32  ;;  %3640 = vmatpush.bf16.msrb.mxu2 %v13137_v7  ;;  %v12816_v62 = vld [vmem:[%s30242_s4 + $0x48] sm:$0xf]  ;;  %v18491_v7 = vld [vmem:[%s30242_s4 + $0x154] sm:$0xf0] }
 0x15b   : > { %v21755_v48 = vadd.f32 %v3234_v40, %v3217_v51  ;;  %v3186_v60 = vadd.f32 %v3185_v49, %v21648_v11  ;;  %v18571_v11 = vld [vmem:[%s30242_s4 + $0x3d4] sm:$0xf0]  ;;  %v13249_v40 = vor.u32 %v18567_v28, %v13248_v25  ;;  %3606 = vmatpush.bf16.msrb.mxu0 %v12849_v16  ;;  %v12800_v25 = vld [vmem:[%s30242_s4 + $0x28] sm:$0xf] }
 0x15c   : > { %v13265_v50 = vor.u32 %v18571_v11, %v13264_v10  ;;  %3623 = vmatpush.bf16.msrb.mxu1 %v12993_v2  ;;  %v18463_v51 = vld [vmem:[%s30242_s4 + $0x74] sm:$0xf0]  ;;  %v12944_v2 = vld [vmem:[%s30242_s4 + $0x148] sm:$0xf]  ;;  %v12817_v10 = vor.u32 %v18459_v1, %v12816_v62 }
 0x15d   : > { %v3204_v12 = vadd.f32 %v3203_v56, %v3186_v60  ;;  %3472 = vmatmul.bf16.gmra.mxu0 %v21148_v44  ;;  %3490 = vmatmul.bf16.gmra.mxu1 %v21151_v45  ;;  %v18495_v49 = vld [vmem:[%s30242_s4 + $0x174] sm:$0xf0]  ;;  %v13104_v56 = vld [vmem:[%s30242_s4 + $0x288] sm:$0xf]  ;;  %v12945_v11 = vor.u32 %v18491_v7, %v12944_v2 }
 0x15e   : > { %3658 = vmatpush.bf16.msrb.mxu3 %v13265_v50  ;;  %3641 = vmatpush.bf16.msrb.mxu2 %v13121_v19  ;;  %v12961_v59 = vor.u32 %v18495_v49, %v12960_v47  ;;  %v13105_v32 = vor.u32 %v18531_v52, %v13104_v56  ;;  %v13232_v60 = vld [vmem:[%s30242_s4 + $0x388] sm:$0xf]  ;;  %v18455_v28 = vld [vmem:[%s30242_s4 + $0x34] sm:$0xf0] }
 0x15f   : > { %v13233_v63 = vor.u32 %v18563_v61, %v13232_v60  ;;  %v13088_v50 = vld [vmem:[%s30242_s4 + $0x268] sm:$0xf]  ;;  %v18483_v61 = vld [vmem:[%s30242_s4 + $0x114] sm:$0xf0] }
 0x160   : > { %v3218_v23 = vpop.f32.mrf.mxu2  ;;  %v3236_v55 = vpop.f32.mrf.mxu3  ;;  %3624 = vmatpush.bf16.msrb.mxu1 %v12977_v18  ;;  %v13089_v17 = vor.u32 %v18527_v39, %v13088_v50  ;;  %v12784_v52 = vld [vmem:[%s30242_s4 + $0x8] sm:$0xf]  ;;  %v18551_v50 = vld [vmem:[%s30242_s4 + $0x334] sm:$0xf0] }
 0x161   : > { %v3219_v29 = vadd.f32 %v3218_v23, %v3201_v21  ;;  %v12833_v21 = vor.u32 %v18463_v51, %v12832_v46  ;;  %v13217_v23 = vor.u32 %v18559_v20, %v13216_v14  ;;  %v18523_v46 = vld [vmem:[%s30242_s4 + $0x254] sm:$0xf0]  ;;  %v13056_v62 = vld [vmem:[%s30242_s4 + $0x228] sm:$0xf] }
 0x162   : > { %v3187_v42 = vpop.f32.mrf.mxu0  ;;  %v3205_v43 = vpop.f32.mrf.mxu1  ;;  %3659 = vmatpush.bf16.msrb.mxu3 %v13249_v40  ;;  %3642 = vmatpush.bf16.msrb.mxu2 %v13105_v32  ;;  %v12801_v40 = vor.u32 %v18455_v28, %v12800_v25  ;;  %v12912_v32 = vld [vmem:[%s30242_s4 + $0x108] sm:$0xf] }
 0x163   : > { %v21808_v41 = vadd.f32 %v3236_v55, %v3219_v29  ;;  %3607 = vmatpush.bf16.msrb.mxu0 %v12833_v21  ;;  %v12928_v29 = vld [vmem:[%s30242_s4 + $0x128] sm:$0xf]  ;;  %v18487_v42 = vld [vmem:[%s30242_s4 + $0x134] sm:$0xf0]  ;;  %v12913_v7 = vor.u32 %v18483_v61, %v12912_v32 }
 0x164   : > { %3625 = vmatpush.bf16.msrb.mxu1 %v12961_v59  ;;  %v13072_v43 = vld [vmem:[%s30242_s4 + $0x248] sm:$0xf]  ;;  %v12929_v51 = vor.u32 %v18487_v42, %v12928_v29  ;;  %v18555_v21 = vld [vmem:[%s30242_s4 + $0x354] sm:$0xf0] }
 0x165   : > { %3508 = vmatmul.bf16.gmra.mxu2 %v21194_v9  ;;  %3526 = vmatmul.bf16.gmra.mxu3 %v21197_v24  ;;  %v13073_v47 = vor.u32 %v18523_v46, %v13072_v43  ;;  %v18451_v59 = vld [vmem:[%s30242_s4 + $0x14] sm:$0xf0]  ;;  %v13408_v39 = vld [vmem:[%s30242_s4 + $0x4e8] sm:$0xf] }
 0x166   : > { %3660 = vmatpush.bf16.msrb.mxu3 %v13233_v63  ;;  %3643 = vmatpush.bf16.msrb.mxu2 %v13089_v17  ;;  %v12785_v60 = vor.u32 %v18451_v59, %v12784_v52  ;;  %v18519_v63 = vld [vmem:[%s30242_s4 + $0x234] sm:$0xf0]  ;;  %v13392_v46 = vld [vmem:[%s30242_s4 + $0x4c8] sm:$0xf] }
 0x167   : > { %3608 = vmatpush.bf16.msrb.mxu0 %v12817_v10  ;;  %v13057_v10 = vor.u32 %v18519_v63, %v13056_v62  ;;  %v18639_v17 = vld [vmem:[%s30242_s4 + $0x5f4] sm:$0xf0]  ;;  %v13792_v61 = vld [vmem:[%s30242_s4 + $0x7e8] sm:$0xf] }
 0x168   : > { %v3221_v15 = vpop.f32.mrf.mxu2  ;;  %v3239_v16 = vpop.f32.mrf.mxu3  ;;  %3626 = vmatpush.bf16.msrb.mxu1 %v12945_v11  ;;  %v13184_v11 = vld [vmem:[%s30242_s4 + $0x328] sm:$0xf]  ;;  %v18547_v29 = vld [vmem:[%s30242_s4 + $0x314] sm:$0xf0] }
 0x169   : > { %v3222_v22 = vadd.f32 %v3221_v15, %v3204_v12  ;;  %v13185_v14 = vor.u32 %v18551_v50, %v13184_v11  ;;  %v18607_v15 = vld [vmem:[%s30242_s4 + $0x4f4] sm:$0xf0]  ;;  %v13376_v50 = vld [vmem:[%s30242_s4 + $0x4a8] sm:$0xf] }
 0x16a   : > { %v3252_v18 = vpop.f32.mrf.mxu0  ;;  %v3270_v19 = vpop.f32.mrf.mxu1  ;;  %3661 = vmatpush.bf16.msrb.mxu3 %v13217_v23  ;;  %3644 = vmatpush.bf16.msrb.mxu2 %v13073_v47  ;;  %v13409_v20 = vor.u32 %v18607_v15, %v13408_v39  ;;  %v13040_v23 = vld [vmem:[%s30242_s4 + $0x208] sm:$0xf]  ;;  %v18703_v62 = vld [vmem:[%s30242_s4 + $0x7f4] sm:$0xf0] }
 0x16b   : > { %v21860_v55 = vadd.f32 %v3239_v16, %v3222_v22  ;;  %v3253_v12 = vadd.f32 %v3252_v18, %v21755_v48  ;;  %v13200_v48 = vld [vmem:[%s30242_s4 + $0x348] sm:$0xf]  ;;  %3609 = vmatpush.bf16.msrb.mxu0 %v12801_v40  ;;  %v18515_v18 = vld [vmem:[%s30242_s4 + $0x214] sm:$0xf0] }
 0x16c   : > { %v13201_v56 = vor.u32 %v18555_v21, %v13200_v48  ;;  %3627 = vmatpush.bf16.msrb.mxu1 %v12929_v51  ;;  %v13536_v16 = vld [vmem:[%s30242_s4 + $0x5e8] sm:$0xf]  ;;  %v13041_v40 = vor.u32 %v18515_v18, %v13040_v23  ;;  %v18603_v51 = vld [vmem:[%s30242_s4 + $0x4d4] sm:$0xf0] }
 0x16d   : > { %v3271_v49 = vadd.f32 %v3270_v19, %v3253_v12  ;;  %3539 = vmatmul.bf16.vlgmr.msra.gmra.mxu0 %v21271_v53  ;;  %3557 = vmatmul.bf16.vlgmr.msra.gmra.mxu1 %v21275_v54  ;;  %v13537_v22 = vor.u32 %v18639_v17, %v13536_v16  ;;  %v13168_v19 = vld [vmem:[%s30242_s4 + $0x308] sm:$0xf]  ;;  %v13393_v47 = vor.u32 %v18603_v51, %v13392_v46  ;;  %v18635_v48 = vld [vmem:[%s30242_s4 + $0x5d4] sm:$0xf0] }
 0x16e   : > { %3662 = vmatpush.bf16.msrb.mxu3 %v13201_v56  ;;  %3645 = vmatpush.bf16.msrb.mxu2 %v13057_v10  ;;  %v13169_v42 = vor.u32 %v18547_v29, %v13168_v19  ;;  %v13664_v21 = vld [vmem:[%s30242_s4 + $0x6e8] sm:$0xf]  ;;  %v18671_v56 = vld [vmem:[%s30242_s4 + $0x6f4] sm:$0xf0] }
 0x16f   : > { %3610 = vmatpush.bf16.msrb.mxu0 %v12785_v60  ;;  %v13665_v60 = vor.u32 %v18671_v56, %v13664_v21  ;;  %v18599_v39 = vld [vmem:[%s30242_s4 + $0x4b4] sm:$0xf0]  ;;  %v13648_v16 = vld [vmem:[%s30242_s4 + $0x6c8] sm:$0xf] }
 0x170   : > { %v3223_v1 = vpop.f32.mrf.mxu2  ;;  %v3241_v2 = vpop.f32.mrf.mxu3  ;;  %3628 = vmatpush.bf16.msrb.mxu1 %v12913_v7  ;;  %v13377_v15 = vor.u32 %v18599_v39, %v13376_v50  ;;  %v18667_v17 = vld [vmem:[%s30242_s4 + $0x6d4] sm:$0xf0]  ;;  %v13776_v23 = vld [vmem:[%s30242_s4 + $0x7c8] sm:$0xf] }
 0x171   : > { %v13793_v1 = vor.u32 %v18703_v62, %v13792_v61  ;;  %v18699_v18 = vld [vmem:[%s30242_s4 + $0x7d4] sm:$0xf0]  ;;  %v13360_v19 = vld [vmem:[%s30242_s4 + $0x488] sm:$0xf] }
 0x172   : > { %v3254_v25 = vpop.f32.mrf.mxu0  ;;  %v3272_v28 = vpop.f32.mrf.mxu1  ;;  %3663 = vmatpush.bf16.msrb.mxu3 %v13185_v14  ;;  %3646 = vmatpush.bf16.msrb.mxu2 %v13041_v40  ;;  %v13777_v29 = vor.u32 %v18699_v18, %v13776_v23  ;;  %v13488_v40 = vld [vmem:[%s30242_s4 + $0x588] sm:$0xf]  ;;  %v18591_v62 = vld [vmem:[%s30242_s4 + $0x474] sm:$0xf0] }
 0x173   : > { %v3255_v12 = vadd.f32 %v3254_v25, %v21808_v41  ;;  %3675 = vmatpush.bf16.msra.mxu0 %v13409_v20  ;;  %v13520_v41 = vld [vmem:[%s30242_s4 + $0x5c8] sm:$0xf]  ;;  %v18619_v18 = vld [vmem:[%s30242_s4 + $0x554] sm:$0xf0] }
 0x174   : > { %3693 = vmatpush.bf16.msra.mxu1 %v13537_v22  ;;  %v13521_v32 = vor.u32 %v18635_v48, %v13520_v41  ;;  %v13649_v22 = vor.u32 %v18667_v17, %v13648_v16  ;;  %v13632_v41 = vld [vmem:[%s30242_s4 + $0x6a8] sm:$0xf] }
 0x175   : > { %3575 = vmatmul.bf16.vlgmr.msra.gmra.mxu2 %v21325_v26  ;;  %3593 = vmatmul.bf16.vlgmr.msra.gmra.mxu3 %v21329_v27  ;;  %v3273_v43 = vadd.f32 %v3272_v28, %v3255_v12  ;;  %v18595_v12 = vld [vmem:[%s30242_s4 + $0x494] sm:$0xf0]  ;;  %v13760_v48 = vld [vmem:[%s30242_s4 + $0x7a8] sm:$0xf] }
 0x176   : > { %3664 = vmatpush.bf16.msrb.mxu3 %v13169_v42  ;;  %3711 = vmatpush.bf16.msra.mxu2 %v13665_v60  ;;  %v18627_v42 = vld [vmem:[%s30242_s4 + $0x594] sm:$0xf0]  ;;  %v13361_v51 = vor.u32 %v18595_v12, %v13360_v19  ;;  %v13344_v61 = vld [vmem:[%s30242_s4 + $0x468] sm:$0xf] }
 0x177   : > { %3676 = vmatpush.bf16.msra.mxu0 %v13393_v47  ;;  %v18663_v47 = vld [vmem:[%s30242_s4 + $0x6b4] sm:$0xf0]  ;;  %v13489_v21 = vor.u32 %v18627_v42, %v13488_v40  ;;  %v13456_v23 = vld [vmem:[%s30242_s4 + $0x548] sm:$0xf] }
 0x178   : > { %v3288_v52 = vpop.f32.mrf.mxu2  ;;  %v3306_v59 = vpop.f32.mrf.mxu3  ;;  %3694 = vmatpush.bf16.msra.mxu1 %v13521_v32  ;;  %v13633_v56 = vor.u32 %v18663_v47, %v13632_v41  ;;  %v13728_v12 = vld [vmem:[%s30242_s4 + $0x768] sm:$0xf]  ;;  %v18687_v40 = vld [vmem:[%s30242_s4 + $0x774] sm:$0xf0] }
 0x179   : > { %v3289_v63 = vadd.f32 %v3288_v52, %v3271_v49  ;;  %v13504_v49 = vld [vmem:[%s30242_s4 + $0x5a8] sm:$0xf] }
 0x17a   : > { %v3257_v7 = vpop.f32.mrf.mxu0  ;;  %v3275_v10 = vpop.f32.mrf.mxu1  ;;  %3729 = vmatpush.bf16.msra.mxu3 %v13793_v1  ;;  %3712 = vmatpush.bf16.msra.mxu2 %v13649_v22  ;;  %v13345_v1 = vor.u32 %v18591_v62, %v13344_v61  ;;  %v18587_v22 = vld [vmem:[%s30242_s4 + $0x454] sm:$0xf0] }
 0x17b   : > { %v21964_v2 = vadd.f32 %v3306_v59, %v3289_v63  ;;  %v3258_v11 = vadd.f32 %v3257_v7, %v21860_v55  ;;  %v18631_v55 = vld [vmem:[%s30242_s4 + $0x5b4] sm:$0xf0]  ;;  %3677 = vmatpush.bf16.msra.mxu0 %v13377_v15  ;;  %v13472_v63 = vld [vmem:[%s30242_s4 + $0x568] sm:$0xf] }
 0x17c   : > { %v13505_v20 = vor.u32 %v18631_v55, %v13504_v49  ;;  %v18623_v7 = vld [vmem:[%s30242_s4 + $0x574] sm:$0xf0]  ;;  %v13744_v49 = vld [vmem:[%s30242_s4 + $0x788] sm:$0xf] }
 0x17d   : > { %v3276_v14 = vadd.f32 %v3275_v10, %v3258_v11  ;;  %3544 = vmatmul.bf16.gmra.mxu0 %v21200_v31  ;;  %3562 = vmatmul.bf16.gmra.mxu1 %v21203_v13  ;;  %v13616_v10 = vld [vmem:[%s30242_s4 + $0x688] sm:$0xf]  ;;  %v18659_v11 = vld [vmem:[%s30242_s4 + $0x694] sm:$0xf0]  ;;  %v13473_v50 = vor.u32 %v18623_v7, %v13472_v63 }
 0x17e   : > { %3695 = vmatpush.bf16.msra.mxu1 %v13505_v20  ;;  %3730 = vmatpush.bf16.msra.mxu3 %v13777_v29  ;;  %v13617_v39 = vor.u32 %v18659_v11, %v13616_v10  ;;  %v18691_v15 = vld [vmem:[%s30242_s4 + $0x794] sm:$0xf0]  ;;  %v13328_v55 = vld [vmem:[%s30242_s4 + $0x448] sm:$0xf] }
 0x17f   : > { %3678 = vmatpush.bf16.msra.mxu0 %v13361_v51  ;;  %3713 = vmatpush.bf16.msra.mxu2 %v13633_v56  ;;  %v13745_v20 = vor.u32 %v18691_v15, %v13744_v49  ;;  %v18655_v29 = vld [vmem:[%s30242_s4 + $0x674] sm:$0xf0]  ;;  %v13457_v51 = vor.u32 %v18619_v18, %v13456_v23  ;;  %v13424_v15 = vld [vmem:[%s30242_s4 + $0x508] sm:$0xf] }
 0x180   : > { %v3290_v25 = vpop.f32.mrf.mxu2  ;;  %v3308_v28 = vpop.f32.mrf.mxu3  ;;  %v18583_v56 = vld [vmem:[%s30242_s4 + $0x434] sm:$0xf0]  ;;  %v13920_v18 = vld [vmem:[%s30242_s4 + $0x8e8] sm:$0xf] }
 0x181   : > { %v3291_v46 = vadd.f32 %v3290_v25, %v3273_v43  ;;  %v18695_v43 = vld [vmem:[%s30242_s4 + $0x7b4] sm:$0xf0]  ;;  %v13329_v25 = vor.u32 %v18587_v22, %v13328_v55  ;;  %v13696_v22 = vld [vmem:[%s30242_s4 + $0x728] sm:$0xf] }
 0x182   : > { %v3259_v59 = vpop.f32.mrf.mxu0  ;;  %v3277_v32 = vpop.f32.mrf.mxu1  ;;  %v13761_v60 = vor.u32 %v18695_v43, %v13760_v48  ;;  %3696 = vmatpush.bf16.msra.mxu1 %v13489_v21  ;;  %v13729_v48 = vor.u32 %v18687_v40, %v13728_v12  ;;  %v13312_v21 = vld [vmem:[%s30242_s4 + $0x428] sm:$0xf]  ;;  %v18651_v61 = vld [vmem:[%s30242_s4 + $0x654] sm:$0xf0] }
 0x183   : > { %v22017_v52 = vadd.f32 %v3308_v28, %v3291_v46  ;;  %3679 = vmatpush.bf16.msra.mxu0 %v13345_v1  ;;  %v13600_v28 = vld [vmem:[%s30242_s4 + $0x668] sm:$0xf]  ;;  %3714 = vmatpush.bf16.msra.mxu2 %v13617_v39  ;;  %v18615_v32 = vld [vmem:[%s30242_s4 + $0x534] sm:$0xf0] }
 0x184   : > { %3731 = vmatpush.bf16.msra.mxu3 %v13761_v60  ;;  %v13601_v41 = vor.u32 %v18655_v29, %v13600_v28  ;;  %v13440_v43 = vld [vmem:[%s30242_s4 + $0x528] sm:$0xf]  ;;  %v18683_v7 = vld [vmem:[%s30242_s4 + $0x754] sm:$0xf0] }
 0x185   : > { %3580 = vmatmul.bf16.gmra.mxu2 %v21278_v57  ;;  %3598 = vmatmul.bf16.gmra.mxu3 %v21281_v58  ;;  %v13584_v60 = vld [vmem:[%s30242_s4 + $0x648] sm:$0xf]  ;;  %v13441_v62 = vor.u32 %v18615_v32, %v13440_v43  ;;  %v18579_v49 = vld [vmem:[%s30242_s4 + $0x414] sm:$0xf0] }
 0x186   : > { %3697 = vmatpush.bf16.msra.mxu1 %v13473_v50  ;;  %v13585_v63 = vor.u32 %v18651_v61, %v13584_v60  ;;  %v13712_v1 = vld [vmem:[%s30242_s4 + $0x748] sm:$0xf]  ;;  %v18679_v23 = vld [vmem:[%s30242_s4 + $0x734] sm:$0xf0] }
 0x187   : > { %3680 = vmatpush.bf16.msra.mxu0 %v13329_v25  ;;  %3715 = vmatpush.bf16.msra.mxu2 %v13601_v41  ;;  %v13713_v50 = vor.u32 %v18683_v7, %v13712_v1  ;;  %v13296_v39 = vld [vmem:[%s30242_s4 + $0x408] sm:$0xf]  ;;  %v13697_v12 = vor.u32 %v18679_v23, %v13696_v22  ;;  %v18735_v40 = vld [vmem:[%s30242_s4 + $0x8f4] sm:$0xf0] }
 0x188   : > { %v3293_v16 = vpop.f32.mrf.mxu2  ;;  %v3311_v17 = vpop.f32.mrf.mxu3  ;;  %3732 = vmatpush.bf16.msra.mxu3 %v13745_v20  ;;  %v13297_v55 = vor.u32 %v18579_v49, %v13296_v39  ;;  %v18647_v20 = vld [vmem:[%s30242_s4 + $0x634] sm:$0xf0]  ;;  %v13921_v41 = vor.u32 %v18735_v40, %v13920_v18  ;;  %v14032_v60 = vld [vmem:[%s30242_s4 + $0x9c8] sm:$0xf] }
 0x189   : > { %v3294_v19 = vadd.f32 %v3293_v16, %v3276_v14  ;;  %v18611_v16 = vld [vmem:[%s30242_s4 + $0x514] sm:$0xf0]  ;;  %v14176_v1 = vld [vmem:[%s30242_s4 + $0xae8] sm:$0xf] }
 0x18a   : > { %v3324_v42 = vpop.f32.mrf.mxu0  ;;  %v3342_v46 = vpop.f32.mrf.mxu1  ;;  %3698 = vmatpush.bf16.msra.mxu1 %v13457_v51  ;;  %v13425_v28 = vor.u32 %v18611_v16, %v13424_v15  ;;  %v18731_v32 = vld [vmem:[%s30242_s4 + $0x8d4] sm:$0xf0]  ;;  %v14304_v49 = vld [vmem:[%s30242_s4 + $0xbe8] sm:$0xf] }
 0x18b   : > { %v22069_v14 = vadd.f32 %v3311_v17, %v3294_v19  ;;  %v3325_v47 = vadd.f32 %v3324_v42, %v21964_v2  ;;  %v13313_v2 = vor.u32 %v18583_v56, %v13312_v21  ;;  %v13568_v17 = vld [vmem:[%s30242_s4 + $0x628] sm:$0xf]  ;;  %3716 = vmatpush.bf16.msra.mxu2 %v13585_v63  ;;  %v18643_v21 = vld [vmem:[%s30242_s4 + $0x614] sm:$0xf0] }
 0x18c   : > { %3733 = vmatpush.bf16.msra.mxu3 %v13729_v48  ;;  %v13569_v29 = vor.u32 %v18647_v20, %v13568_v17  ;;  %v14048_v42 = vld [vmem:[%s30242_s4 + $0x9e8] sm:$0xf]  ;;  %v18675_v56 = vld [vmem:[%s30242_s4 + $0x714] sm:$0xf0] }
 0x18d   : > { %v22081_v59 = vadd.f32 %v3342_v46, %v3325_v47  ;;  %3611 = vmatmul.bf16.vlgmr.msrb.gmra.mxu0 %v20776_v5  ;;  %3629 = vmatmul.bf16.vlgmr.msrb.gmra.mxu1 %v20778_v6  ;;  %v18767_v46 = vld [vmem:[%s30242_s4 + $0x9f4] sm:$0xf0]  ;;  %v13552_v48 = vld [vmem:[%s30242_s4 + $0x608] sm:$0xf] }
 0x18e   : > { %3681 = vmatpush.bf16.msra.mxu0 %v13313_v2  ;;  %3699 = vmatpush.bf16.msra.mxu1 %v13441_v62  ;;  %v14049_v47 = vor.u32 %v18767_v46, %v14048_v42  ;;  %v13904_v2 = vld [vmem:[%s30242_s4 + $0x8c8] sm:$0xf]  ;;  %v13553_v61 = vor.u32 %v18643_v21, %v13552_v48  ;;  %v18763_v63 = vld [vmem:[%s30242_s4 + $0x9d4] sm:$0xf0] }
 0x18f   : > { %3717 = vmatpush.bf16.msra.mxu2 %v13569_v29  ;;  %v13905_v62 = vor.u32 %v18731_v32, %v13904_v2  ;;  %v18799_v7 = vld [vmem:[%s30242_s4 + $0xaf4] sm:$0xf0]  ;;  %v14033_v39 = vor.u32 %v18763_v63, %v14032_v60  ;;  %v13888_v18 = vld [vmem:[%s30242_s4 + $0x8a8] sm:$0xf] }
 0x190   : > { %v3295_v10 = vpop.f32.mrf.mxu2  ;;  %v3313_v11 = vpop.f32.mrf.mxu3  ;;  %3734 = vmatpush.bf16.msra.mxu3 %v13713_v50  ;;  %v18831_v15 = vld [vmem:[%s30242_s4 + $0xbf4] sm:$0xf0]  ;;  %v14177_v16 = vor.u32 %v18799_v7, %v14176_v1  ;;  %v13872_v48 = vld [vmem:[%s30242_s4 + $0x888] sm:$0xf] }
 0x191   : > { %v14305_v17 = vor.u32 %v18831_v15, %v14304_v49  ;;  %v18759_v29 = vld [vmem:[%s30242_s4 + $0x9b4] sm:$0xf0]  ;;  %v14144_v32 = vld [vmem:[%s30242_s4 + $0xaa8] sm:$0xf] }
 0x192   : > { %v3326_v19 = vpop.f32.mrf.mxu0  ;;  %v3344_v25 = vpop.f32.mrf.mxu1  ;;  %3682 = vmatpush.bf16.msra.mxu0 %v13297_v55  ;;  %3700 = vmatpush.bf16.msra.mxu1 %v13425_v28  ;;  %v18795_v40 = vld [vmem:[%s30242_s4 + $0xad4] sm:$0xf0]  ;;  %v14272_v1 = vld [vmem:[%s30242_s4 + $0xba8] sm:$0xf] }
 0x193   : > { %v3327_v51 = vadd.f32 %v3326_v19, %v22017_v52  ;;  %v13680_v52 = vld [vmem:[%s30242_s4 + $0x708] sm:$0xf]  ;;  %3718 = vmatpush.bf16.msra.mxu2 %v13553_v61  ;;  %v18727_v19 = vld [vmem:[%s30242_s4 + $0x8b4] sm:$0xf0] }
 0x194   : > { %3735 = vmatpush.bf16.msra.mxu3 %v13697_v12  ;;  %v13681_v50 = vor.u32 %v18675_v56, %v13680_v52  ;;  %v13889_v28 = vor.u32 %v18727_v19, %v13888_v18  ;;  %v14160_v12 = vld [vmem:[%s30242_s4 + $0xac8] sm:$0xf]  ;;  %v18723_v21 = vld [vmem:[%s30242_s4 + $0x894] sm:$0xf0] }
 0x195   : > { %3647 = vmatmul.bf16.vlgmr.msrb.gmra.mxu2 %v20822_v37  ;;  %3665 = vmatmul.bf16.vlgmr.msrb.gmra.mxu3 %v20824_v38  ;;  %v3345_v43 = vadd.f32 %v3344_v25, %v3327_v51  ;;  %v14161_v46 = vor.u32 %v18795_v40, %v14160_v12  ;;  %v18827_v51 = vld [vmem:[%s30242_s4 + $0xbd4] sm:$0xf0]  ;;  %v14000_v52 = vld [vmem:[%s30242_s4 + $0x988] sm:$0xf]  ;;  %v13873_v56 = vor.u32 %v18723_v21, %v13872_v48 }
 0x196   : > { %3747 = vmatpush.bf16.msrb.mxu0 %v13921_v41  ;;  %3765 = vmatpush.bf16.msrb.mxu1 %v14049_v47  ;;  %v18755_v2 = vld [vmem:[%s30242_s4 + $0x994] sm:$0xf0]  ;;  %v13840_v12 = vld [vmem:[%s30242_s4 + $0x848] sm:$0xf] }
 0x197   : > { %3783 = vmatpush.bf16.msrb.mxu2 %v14177_v16  ;;  %v18791_v60 = vld [vmem:[%s30242_s4 + $0xab4] sm:$0xf0]  ;;  %v14001_v63 = vor.u32 %v18755_v2, %v14000_v52 }
 0x198   : > { %v3360_v10 = vpop.f32.mrf.mxu2  ;;  %v3378_v11 = vpop.f32.mrf.mxu3  ;;  %3736 = vmatpush.bf16.msra.mxu3 %v13681_v50  ;;  %v18823_v7 = vld [vmem:[%s30242_s4 + $0xbb4] sm:$0xf0] }
 0x199   : > { %v3361_v55 = vadd.f32 %v3360_v10, %v22081_v59  ;;  %v14016_v59 = vld [vmem:[%s30242_s4 + $0x9a8] sm:$0xf]  ;;  %v14273_v50 = vor.u32 %v18823_v7, %v14272_v1  ;;  %v18719_v16 = vld [vmem:[%s30242_s4 + $0x874] sm:$0xf0] }
 0x19a   : > { %3748 = vmatpush.bf16.msrb.mxu0 %v13905_v62  ;;  %v3329_v22 = vpop.f32.mrf.mxu0  ;;  %v3347_v23 = vpop.f32.mrf.mxu1  ;;  %3766 = vmatpush.bf16.msrb.mxu1 %v14033_v39  ;;  %v14017_v42 = vor.u32 %v18759_v29, %v14016_v59  ;;  %v18787_v18 = vld [vmem:[%s30242_s4 + $0xa94] sm:$0xf0]  ;;  %v14256_v59 = vld [vmem:[%s30242_s4 + $0xb88] sm:$0xf] }
 0x19b   : > { %v22176_v20 = vadd.f32 %v3378_v11, %v3361_v55  ;;  %v3330_v25 = vadd.f32 %v3329_v22, %v22069_v14  ;;  %v14288_v14 = vld [vmem:[%s30242_s4 + $0xbc8] sm:$0xf]  ;;  %3784 = vmatpush.bf16.msrb.mxu2 %v14161_v46  ;;  %v14145_v11 = vor.u32 %v18791_v60, %v14144_v32  ;;  %v18751_v22 = vld [vmem:[%s30242_s4 + $0x974] sm:$0xf0]  ;;  %v22267_v46 = vperm.slane %v21598_v30, 1 }
 0x19c   : > { %3801 = vmatpush.bf16.msrb.mxu3 %v14305_v17  ;;  %v14289_v47 = vor.u32 %v18827_v51, %v14288_v14  ;;  %v13856_v55 = vld [vmem:[%s30242_s4 + $0x868] sm:$0xf]  ;;  %v18715_v40 = vld [vmem:[%s30242_s4 + $0x854] sm:$0xf0] }
 0x19d   : > { %v3348_v41 = vadd.f32 %v3347_v23, %v3330_v25  ;;  %3616 = vmatmul.bf16.gmra.mxu0 %v20856_v0  ;;  %3634 = vmatmul.bf16.gmra.mxu1 %v20867_v8  ;;  %v13857_v17 = vor.u32 %v18719_v16, %v13856_v55  ;;  %v14128_v23 = vld [vmem:[%s30242_s4 + $0xa88] sm:$0xf]  ;;  %v18819_v25 = vld [vmem:[%s30242_s4 + $0xb94] sm:$0xf0]  ;;  %v13841_v14 = vor.u32 %v18715_v40, %v13840_v12 }
 0x19e   : > { %3749 = vmatpush.bf16.msrb.mxu0 %v13889_v28  ;;  %3767 = vmatpush.bf16.msrb.mxu1 %v14017_v42  ;;  %v14129_v28 = vor.u32 %v18787_v18, %v14128_v23  ;;  %v14257_v29 = vor.u32 %v18819_v25, %v14256_v59  ;;  %v13968_v42 = vld [vmem:[%s30242_s4 + $0x948] sm:$0xf]  ;;  %v18747_v51 = vld [vmem:[%s30242_s4 + $0x954] sm:$0xf0] }
 0x19f   : > { %3785 = vmatpush.bf16.msrb.mxu2 %v14145_v11  ;;  %v13969_v52 = vor.u32 %v18747_v51, %v13968_v42  ;;  %v14240_v30 = vld [vmem:[%s30242_s4 + $0xb68] sm:$0xf]  ;;  %v18815_v2 = vld [vmem:[%s30242_s4 + $0xb74] sm:$0xf0] }
 0x1a0   : > { %v3362_v61 = vpop.f32.mrf.mxu2  ;;  %v3380_v62 = vpop.f32.mrf.mxu3  ;;  %3802 = vmatpush.bf16.msrb.mxu3 %v14289_v47  ;;  %v14112_v47 = vld [vmem:[%s30242_s4 + $0xa68] sm:$0xf]  ;;  %v14241_v1 = vor.u32 %v18815_v2, %v14240_v30  ;;  %v18779_v55 = vld [vmem:[%s30242_s4 + $0xa54] sm:$0xf0]  ;;  %v13026_v30 = vld [vmem:[%s30242_s4 + $0x1f8] sm:$0xf0] }
 0x1a1   : > { %v3363_v10 = vadd.f32 %v3362_v61, %v3345_v43  ;;  %v13984_v43 = vld [vmem:[%s30242_s4 + $0x968] sm:$0xf]  ;;  %v18707_v18 = vld [vmem:[%s30242_s4 + $0x814] sm:$0xf0] }
 0x1a2   : > { %v3331_v49 = vpop.f32.mrf.mxu0  ;;  %v3349_v15 = vpop.f32.mrf.mxu1  ;;  %3750 = vmatpush.bf16.msrb.mxu0 %v13873_v56  ;;  %3768 = vmatpush.bf16.msrb.mxu1 %v14001_v63  ;;  %v13985_v19 = vor.u32 %v18751_v22, %v13984_v43  ;;  %v18783_v56 = vld [vmem:[%s30242_s4 + $0xa74] sm:$0xf0]  ;;  %v13824_v7 = vld [vmem:[%s30242_s4 + $0x828] sm:$0xf] }
 0x1a3   : > { %v22229_v39 = vadd.f32 %v3380_v62, %v3363_v10  ;;  %3786 = vmatpush.bf16.msrb.mxu2 %v14129_v28  ;;  %v14113_v63 = vor.u32 %v18783_v56, %v14112_v47  ;;  %v18711_v10 = vld [vmem:[%s30242_s4 + $0x834] sm:$0xf0]  ;;  %v14096_v15 = vld [vmem:[%s30242_s4 + $0xa48] sm:$0xf]  ;;  %v18509_v56 = vld [vmem:[%s30242_s4 + $0x1ec] sm:$0xf] }
 0x1a4   : > { %3803 = vmatpush.bf16.msrb.mxu3 %v14273_v50  ;;  %v13825_v50 = vor.u32 %v18711_v10, %v13824_v7  ;;  %v18743_v49 = vld [vmem:[%s30242_s4 + $0x934] sm:$0xf0]  ;;  %v14224_v43 = vld [vmem:[%s30242_s4 + $0xb48] sm:$0xf]  ;;  %v14097_v59 = vor.u32 %v18779_v55, %v14096_v15  ;;  %v18473_v15 = vld [vmem:[%s30242_s4 + $0xcc] sm:$0xf] }
 0x1a5   : > { %3652 = vmatmul.bf16.gmra.mxu2 %v20915_v35  ;;  %3670 = vmatmul.bf16.gmra.mxu3 %v20917_v36  ;;  %v13808_v23 = vld [vmem:[%s30242_s4 + $0x808] sm:$0xf]  ;;  %v18739_v28 = vld [vmem:[%s30242_s4 + $0x914] sm:$0xf0]  ;;  %v12882_v55 = vld [vmem:[%s30242_s4 + $0xd8] sm:$0xf0] }
 0x1a6   : > { %3751 = vmatpush.bf16.msrb.mxu0 %v13857_v17  ;;  %3769 = vmatpush.bf16.msrb.mxu1 %v13985_v19  ;;  %v18811_v17 = vld [vmem:[%s30242_s4 + $0xb54] sm:$0xf0]  ;;  %v13936_v19 = vld [vmem:[%s30242_s4 + $0x908] sm:$0xf] }
 0x1a7   : > { %3787 = vmatpush.bf16.msrb.mxu2 %v14113_v63  ;;  %v14225_v25 = vor.u32 %v18811_v17, %v14224_v43  ;;  %v18775_v12 = vld [vmem:[%s30242_s4 + $0xa34] sm:$0xf0]  ;;  %v13937_v51 = vor.u32 %v18739_v28, %v13936_v19  ;;  %v14208_v47 = vld [vmem:[%s30242_s4 + $0xb28] sm:$0xf]  ;;  %v18541_v19 = vld [vmem:[%s30242_s4 + $0x2ec] sm:$0xf] }
 0x1a8   : > { %v3365_v48 = vpop.f32.mrf.mxu2  ;;  %v3383_v21 = vpop.f32.mrf.mxu3  ;;  %3804 = vmatpush.bf16.msrb.mxu3 %v14257_v29  ;;  %v14080_v29 = vld [vmem:[%s30242_s4 + $0xa28] sm:$0xf] }
 0x1a9   : > { %v3366_v32 = vadd.f32 %v3365_v48, %v3348_v41  ;;  %v13952_v41 = vld [vmem:[%s30242_s4 + $0x928] sm:$0xf]  ;;  %v18807_v48 = vld [vmem:[%s30242_s4 + $0xb34] sm:$0xf0]  ;;  %v14081_v63 = vor.u32 %v18775_v12, %v14080_v29 }
 0x1aa   : > { %v3396_v61 = vpop.f32.mrf.mxu0  ;;  %v3414_v62 = vpop.f32.mrf.mxu1  ;;  %3752 = vmatpush.bf16.msrb.mxu0 %v13841_v14  ;;  %3770 = vmatpush.bf16.msrb.mxu1 %v13969_v52  ;;  %v13953_v16 = vor.u32 %v18743_v49, %v13952_v41  ;;  %v13809_v14 = vor.u32 %v18707_v18, %v13808_v23  ;;  %v12898_v52 = vld [vmem:[%s30242_s4 + $0xf8] sm:$0xf0]  ;;  %v14064_v7 = vld [vmem:[%s30242_s4 + $0xa08] sm:$0xf]  ;;  %v18771_v41 = vld [vmem:[%s30242_s4 + $0xa14] sm:$0xf0]  ;;  %v12885_v23 = vor.u32 %v18473_v15, %v12882_v55 }
 0x1ab   : > { %v22284_v60 = vadd.f32 %v3383_v21, %v3366_v32  ;;  %v3397_v11 = vadd.f32 %v3396_v61, %v22267_v46  ;;  %v18477_v21 = vld [vmem:[%s30242_s4 + $0xec] sm:$0xf]  ;;  %v13029_v32 = vor.u32 %v18509_v56, %v13026_v30  ;;  %3788 = vmatpush.bf16.msrb.mxu2 %v14097_v59  ;;  %v14065_v43 = vor.u32 %v18771_v41, %v14064_v7  ;;  %v13010_v18 = vld [vmem:[%s30242_s4 + $0x1d8] sm:$0xf0] }
 0x1ac   : > { %3805 = vmatpush.bf16.msrb.mxu3 %v14241_v1  ;;  %v12901_v2 = vor.u32 %v18477_v21, %v12898_v52  ;;  %v14209_v1 = vor.u32 %v18807_v48, %v14208_v47  ;;  %v13154_v59 = vld [vmem:[%s30242_s4 + $0x2f8] sm:$0xf0]  ;;  %v18469_v52 = vld [vmem:[%s30242_s4 + $0xac] sm:$0xf] }
 0x1ad   : > { %v3415_v22 = vadd.f32 %v3414_v62, %v3397_v11  ;;  %3683 = vmatmul.bf16.vlgmr.msra.gmra.mxu0 %v21027_v33  ;;  %3701 = vmatmul.bf16.vlgmr.msra.gmra.mxu1 %v21031_v34  ;;  %v14192_v11 = vld [vmem:[%s30242_s4 + $0xb08] sm:$0xf]  ;;  %v13157_v12 = vor.u32 %v18541_v19, %v13154_v59  ;;  %v12866_v56 = vld [vmem:[%s30242_s4 + $0xb8] sm:$0xf0]  ;;  %v18497_v15 = vld [vmem:[%s30242_s4 + $0x18c] sm:$0xf] }
 0x1ae   : > { %3753 = vmatpush.bf16.msrb.mxu0 %v13825_v50  ;;  %3771 = vmatpush.bf16.msrb.mxu1 %v13953_v16  ;;  %v18803_v50 = vld [vmem:[%s30242_s4 + $0xb14] sm:$0xf0]  ;;  %v18505_v16 = vld [vmem:[%s30242_s4 + $0x1cc] sm:$0xf]  ;;  %v13266_v7 = vld [vmem:[%s30242_s4 + $0x3d8] sm:$0xf0] }
 0x1af   : > { %3789 = vmatpush.bf16.msrb.mxu2 %v14081_v63  ;;  %v14193_v17 = vor.u32 %v18803_v50, %v14192_v11  ;;  %v13013_v29 = vor.u32 %v18505_v16, %v13010_v18  ;;  %v18465_v11 = vld [vmem:[%s30242_s4 + $0x8c] sm:$0xf]  ;;  %v12850_v50 = vld [vmem:[%s30242_s4 + $0x98] sm:$0xf0] }
 0x1b0   : > { %v3367_v40 = vpop.f32.mrf.mxu2  ;;  %v3385_v42 = vpop.f32.mrf.mxu3  ;;  %3806 = vmatpush.bf16.msrb.mxu3 %v14225_v25  ;;  %v12853_v55 = vor.u32 %v18465_v11, %v12850_v50  ;;  %v12978_v16 = vld [vmem:[%s30242_s4 + $0x198] sm:$0xf0]  ;;  %v18525_v50 = vld [vmem:[%s30242_s4 + $0x26c] sm:$0xf] }
 0x1b1   : > { %v18573_v40 = vld [vmem:[%s30242_s4 + $0x3ec] sm:$0xf]  ;;  %v13282_v42 = vld [vmem:[%s30242_s4 + $0x3f8] sm:$0xf0]  ;;  %v12981_v19 = vor.u32 %v18497_v15, %v12978_v16 }
 0x1b2   : > { %v3398_v61 = vpop.f32.mrf.mxu0  ;;  %v3416_v62 = vpop.f32.mrf.mxu1  ;;  %3754 = vmatpush.bf16.msrb.mxu0 %v13809_v14  ;;  %3772 = vmatpush.bf16.msrb.mxu1 %v13937_v51  ;;  %v13285_v51 = vor.u32 %v18573_v40, %v13282_v42  ;;  %v13090_v15 = vld [vmem:[%s30242_s4 + $0x278] sm:$0xf0] }
 0x1b3   : > { %v3399_v10 = vadd.f32 %v3398_v61, %v22267_v46  ;;  %3790 = vmatpush.bf16.msrb.mxu2 %v14065_v43  ;;  %v18537_v61 = vld [vmem:[%s30242_s4 + $0x2cc] sm:$0xf] }
 0x1b4   : > { %3807 = vmatpush.bf16.msrb.mxu3 %v14209_v1  ;;  %v18533_v43 = vld [vmem:[%s30242_s4 + $0x2ac] sm:$0xf] }
 0x1b5   : > { %3719 = vmatmul.bf16.vlgmr.msra.gmra.mxu2 %v21077_v3  ;;  %3737 = vmatmul.bf16.vlgmr.msra.gmra.mxu3 %v21081_v4  ;;  %v22364_v49 = vadd.f32 %v3416_v62, %v3399_v10  ;;  %v13138_v62 = vld [vmem:[%s30242_s4 + $0x2d8] sm:$0xf0] }
 0x1b6   : > { %3819 = vmatpush.bf16.msra.mxu0 %v12901_v2  ;;  %3837 = vmatpush.bf16.msra.mxu1 %v13029_v32  ;;  %v12869_v2 = vor.u32 %v18469_v52, %v12866_v56  ;;  %v12994_v32 = vld [vmem:[%s30242_s4 + $0x1b8] sm:$0xf0]  ;;  %v13141_v1 = vor.u32 %v18537_v61, %v13138_v62  ;;  %v18529_v56 = vld [vmem:[%s30242_s4 + $0x28c] sm:$0xf] }
 0x1b7   : > { %3855 = vmatpush.bf16.msra.mxu2 %v13157_v12  ;;  %v12962_v52 = vld [vmem:[%s30242_s4 + $0x178] sm:$0xf0]  ;;  %v18457_v62 = vld [vmem:[%s30242_s4 + $0x4c] sm:$0xf] }
 0x1b8   : > { %v3432_v25 = vpop.f32.mrf.mxu2  ;;  %v3450_v28 = vpop.f32.mrf.mxu3  ;;  %3808 = vmatpush.bf16.msrb.mxu3 %v14193_v17  ;;  %v13122_v17 = vld [vmem:[%s30242_s4 + $0x2b8] sm:$0xf0] }
 0x1b9   : > { %v3433_v14 = vadd.f32 %v3432_v25, %v3415_v22  ;;  %v18501_v22 = vld [vmem:[%s30242_s4 + $0x1ac] sm:$0xf]  ;;  %v13125_v59 = vor.u32 %v18533_v43, %v13122_v17  ;;  %v13234_v61 = vld [vmem:[%s30242_s4 + $0x398] sm:$0xf0]  ;;  %v13093_v17 = vor.u32 %v18525_v50, %v13090_v15 }
 0x1ba   : > { %3820 = vmatpush.bf16.msra.mxu0 %v12885_v23  ;;  %3838 = vmatpush.bf16.msra.mxu1 %v13013_v29  ;;  %v3401_v48 = vpop.f32.mrf.mxu0  ;;  %v3419_v21 = vpop.f32.mrf.mxu1  ;;  %v12997_v63 = vor.u32 %v18501_v22, %v12994_v32  ;;  %v18565_v25 = vld [vmem:[%s30242_s4 + $0x3ac] sm:$0xf]  ;;  %v13106_v22 = vld [vmem:[%s30242_s4 + $0x298] sm:$0xf0] }
 0x1bb   : > { %v22390_v47 = vadd.f32 %v3450_v28, %v3433_v14  ;;  %v3402_v30 = vadd.f32 %v3401_v48, %v22267_v46  ;;  %v18569_v46 = vld [vmem:[%s30242_s4 + $0x3cc] sm:$0xf]  ;;  %3856 = vmatpush.bf16.msra.mxu2 %v13141_v1  ;;  %v13250_v28 = vld [vmem:[%s30242_s4 + $0x3b8] sm:$0xf0] }
 0x1bc   : > { %3873 = vmatpush.bf16.msra.mxu3 %v13285_v51  ;;  %v13269_v41 = vor.u32 %v18569_v46, %v13266_v7  ;;  %v13253_v12 = vor.u32 %v18565_v25, %v13250_v28  ;;  %v18461_v51 = vld [vmem:[%s30242_s4 + $0x6c] sm:$0xf]  ;;  %v12834_v48 = vld [vmem:[%s30242_s4 + $0x78] sm:$0xf0] }
 0x1bd   : > { %v3420_v10 = vadd.f32 %v3419_v21, %v3402_v30  ;;  %3688 = vmatmul.bf16.gmra.mxu0 %v21148_v44  ;;  %3706 = vmatmul.bf16.gmra.mxu1 %v21151_v45  ;;  %v18493_v21 = vld [vmem:[%s30242_s4 + $0x16c] sm:$0xf]  ;;  %v12818_v1 = vld [vmem:[%s30242_s4 + $0x58] sm:$0xf0] }
 0x1be   : > { %3821 = vmatpush.bf16.msra.mxu0 %v12869_v2  ;;  %3839 = vmatpush.bf16.msra.mxu1 %v12997_v63  ;;  %v12965_v30 = vor.u32 %v18493_v21, %v12962_v52  ;;  %v13109_v2 = vor.u32 %v18529_v56, %v13106_v22  ;;  %v18561_v32 = vld [vmem:[%s30242_s4 + $0x38c] sm:$0xf]  ;;  %v12946_v7 = vld [vmem:[%s30242_s4 + $0x158] sm:$0xf0] }
 0x1bf   : > { %3857 = vmatpush.bf16.msra.mxu2 %v13125_v59  ;;  %v13237_v63 = vor.u32 %v18561_v32, %v13234_v61  ;;  %v18489_v46 = vld [vmem:[%s30242_s4 + $0x14c] sm:$0xf]  ;;  %v13074_v21 = vld [vmem:[%s30242_s4 + $0x258] sm:$0xf0] }
 0x1c0   : > { %v3434_v23 = vpop.f32.mrf.mxu2  ;;  %v3452_v18 = vpop.f32.mrf.mxu3  ;;  %3874 = vmatpush.bf16.msra.mxu3 %v13269_v41  ;;  %v12821_v41 = vor.u32 %v18457_v62, %v12818_v1  ;;  %v12949_v11 = vor.u32 %v18489_v46, %v12946_v7  ;;  %v13202_v56 = vld [vmem:[%s30242_s4 + $0x358] sm:$0xf0]  ;;  %v18481_v61 = vld [vmem:[%s30242_s4 + $0x10c] sm:$0xf] }
 0x1c1   : > { %v3435_v29 = vadd.f32 %v3434_v23, %v22364_v49  ;;  %v12837_v49 = vor.u32 %v18461_v51, %v12834_v48  ;;  %v13218_v23 = vld [vmem:[%s30242_s4 + $0x378] sm:$0xf0]  ;;  %v18521_v48 = vld [vmem:[%s30242_s4 + $0x24c] sm:$0xf] }
 0x1c2   : > { %v3403_v42 = vpop.f32.mrf.mxu0  ;;  %v3421_v14 = vpop.f32.mrf.mxu1  ;;  %3822 = vmatpush.bf16.msra.mxu0 %v12853_v55  ;;  %3840 = vmatpush.bf16.msra.mxu1 %v12981_v19  ;;  %v18557_v55 = vld [vmem:[%s30242_s4 + $0x36c] sm:$0xf]  ;;  %v12930_v51 = vld [vmem:[%s30242_s4 + $0x138] sm:$0xf0]  ;;  %v13077_v52 = vor.u32 %v18521_v48, %v13074_v21 }
 0x1c3   : > { %v22444_v40 = vadd.f32 %v3452_v18, %v3435_v29  ;;  %3858 = vmatpush.bf16.msra.mxu2 %v13109_v2  ;;  %v13221_v19 = vor.u32 %v18557_v55, %v13218_v23  ;;  %v18453_v29 = vld [vmem:[%s30242_s4 + $0x2c] sm:$0xf]  ;;  %v12786_v32 = vld [vmem:[%s30242_s4 + $0x18] sm:$0xf0] }
 0x1c4   : > { %3875 = vmatpush.bf16.msra.mxu3 %v13253_v12  ;;  %v12802_v12 = vld [vmem:[%s30242_s4 + $0x38] sm:$0xf0]  ;;  %v18485_v42 = vld [vmem:[%s30242_s4 + $0x12c] sm:$0xf] }
 0x1c5   : > { %3724 = vmatmul.bf16.gmra.mxu2 %v21194_v9  ;;  %3742 = vmatmul.bf16.gmra.mxu3 %v21197_v24  ;;  %v12805_v14 = vor.u32 %v18453_v29, %v12802_v12  ;;  %v18449_v2 = vld [vmem:[%s30242_s4 + $0xc] sm:$0xf]  ;;  %v13058_v46 = vld [vmem:[%s30242_s4 + $0x238] sm:$0xf0] }
 0x1c6   : > { %3823 = vmatpush.bf16.msra.mxu0 %v12837_v49  ;;  %3841 = vmatpush.bf16.msra.mxu1 %v12965_v30  ;;  %v12933_v49 = vor.u32 %v18485_v42, %v12930_v51  ;;  %v12789_v62 = vor.u32 %v18449_v2, %v12786_v32  ;;  %v18517_v1 = vld [vmem:[%s30242_s4 + $0x22c] sm:$0xf]  ;;  %v13186_v55 = vld [vmem:[%s30242_s4 + $0x338] sm:$0xf0] }
 0x1c7   : > { %3859 = vmatpush.bf16.msra.mxu2 %v13093_v17  ;;  %v13061_v50 = vor.u32 %v18517_v1, %v13058_v46  ;;  %v18549_v15 = vld [vmem:[%s30242_s4 + $0x32c] sm:$0xf]  ;;  %v13410_v17 = vld [vmem:[%s30242_s4 + $0x4f8] sm:$0xf0] }
 0x1c8   : > { %v3437_v16 = vpop.f32.mrf.mxu2  ;;  %v3455_v43 = vpop.f32.mrf.mxu3  ;;  %3876 = vmatpush.bf16.msra.mxu3 %v13237_v63  ;;  %v12914_v63 = vld [vmem:[%s30242_s4 + $0x118] sm:$0xf0]  ;;  %v18637_v23 = vld [vmem:[%s30242_s4 + $0x5ec] sm:$0xf] }
 0x1c9   : > { %v3438_v18 = vadd.f32 %v3437_v16, %v3420_v10  ;;  %v18605_v16 = vld [vmem:[%s30242_s4 + $0x4ec] sm:$0xf]  ;;  %v13042_v29 = vld [vmem:[%s30242_s4 + $0x218] sm:$0xf0] }
 0x1ca   : > { %v3468_v25 = vpop.f32.mrf.mxu0  ;;  %v3486_v28 = vpop.f32.mrf.mxu1  ;;  %3824 = vmatpush.bf16.msra.mxu0 %v12821_v41  ;;  %3842 = vmatpush.bf16.msra.mxu1 %v12949_v11  ;;  %v12917_v11 = vor.u32 %v18481_v61, %v12914_v63  ;;  %v18545_v12 = vld [vmem:[%s30242_s4 + $0x30c] sm:$0xf]  ;;  %v13666_v32 = vld [vmem:[%s30242_s4 + $0x6f8] sm:$0xf0] }
 0x1cb   : > { %v22496_v59 = vadd.f32 %v3455_v43, %v3438_v18  ;;  %v3469_v10 = vadd.f32 %v3468_v25, %v22390_v47  ;;  %v18553_v47 = vld [vmem:[%s30242_s4 + $0x34c] sm:$0xf]  ;;  %3860 = vmatpush.bf16.msra.mxu2 %v13077_v52  ;;  %v13189_v43 = vor.u32 %v18549_v15, %v13186_v55  ;;  %v13538_v18 = vld [vmem:[%s30242_s4 + $0x5f8] sm:$0xf0] }
 0x1cc   : > { %3877 = vmatpush.bf16.msra.mxu3 %v13221_v19  ;;  %v13205_v30 = vor.u32 %v18553_v47, %v13202_v56  ;;  %v13413_v19 = vor.u32 %v18605_v16, %v13410_v17  ;;  %v13541_v25 = vor.u32 %v18637_v23, %v13538_v18  ;;  %v18601_v52 = vld [vmem:[%s30242_s4 + $0x4cc] sm:$0xf]  ;;  %v13394_v47 = vld [vmem:[%s30242_s4 + $0x4d8] sm:$0xf0] }
 0x1cd   : > { %v3487_v22 = vadd.f32 %v3486_v28, %v3469_v10  ;;  %3755 = vmatmul.bf16.vlgmr.msrb.gmra.mxu0 %v21271_v53  ;;  %3773 = vmatmul.bf16.vlgmr.msrb.gmra.mxu1 %v21275_v54  ;;  %v18513_v28 = vld [vmem:[%s30242_s4 + $0x20c] sm:$0xf]  ;;  %v13397_v56 = vor.u32 %v18601_v52, %v13394_v47 }
 0x1ce   : > { %3825 = vmatpush.bf16.msra.mxu0 %v12805_v14  ;;  %3843 = vmatpush.bf16.msra.mxu1 %v12933_v49  ;;  %v13170_v14 = vld [vmem:[%s30242_s4 + $0x318] sm:$0xf0]  ;;  %v13045_v48 = vor.u32 %v18513_v28, %v13042_v29  ;;  %v18669_v2 = vld [vmem:[%s30242_s4 + $0x6ec] sm:$0xf] }
 0x1cf   : > { %3861 = vmatpush.bf16.msra.mxu2 %v13061_v50  ;;  %v13173_v21 = vor.u32 %v18545_v12, %v13170_v14  ;;  %v13669_v1 = vor.u32 %v18669_v2, %v13666_v32  ;;  %v18701_v46 = vld [vmem:[%s30242_s4 + $0x7ec] sm:$0xf]  ;;  %v13506_v28 = vld [vmem:[%s30242_s4 + $0x5b8] sm:$0xf0] }
 0x1d0   : > { %v3439_v7 = vpop.f32.mrf.mxu2  ;;  %v3457_v41 = vpop.f32.mrf.mxu3  ;;  %3878 = vmatpush.bf16.msra.mxu3 %v13205_v30  ;;  %v13522_v30 = vld [vmem:[%s30242_s4 + $0x5d8] sm:$0xf0]  ;;  %v18665_v29 = vld [vmem:[%s30242_s4 + $0x6cc] sm:$0xf] }
 0x1d1   : > { %v13794_v7 = vld [vmem:[%s30242_s4 + $0x7f8] sm:$0xf0]  ;;  %v18593_v52 = vld [vmem:[%s30242_s4 + $0x48c] sm:$0xf] }
 0x1d2   : > { %v3470_v42 = vpop.f32.mrf.mxu0  ;;  %v3488_v10 = vpop.f32.mrf.mxu1  ;;  %3826 = vmatpush.bf16.msra.mxu0 %v12789_v62  ;;  %3844 = vmatpush.bf16.msra.mxu1 %v12917_v11  ;;  %v13797_v11 = vor.u32 %v18701_v46, %v13794_v7  ;;  %v13650_v12 = vld [vmem:[%s30242_s4 + $0x6d8] sm:$0xf0]  ;;  %v18661_v32 = vld [vmem:[%s30242_s4 + $0x6ac] sm:$0xf] }
 0x1d3   : > { %v3471_v51 = vadd.f32 %v3470_v42, %v22444_v40  ;;  %v18633_v40 = vld [vmem:[%s30242_s4 + $0x5cc] sm:$0xf]  ;;  %3862 = vmatpush.bf16.msra.mxu2 %v13045_v48  ;;  %v13653_v48 = vor.u32 %v18665_v29, %v13650_v12  ;;  %v13762_v46 = vld [vmem:[%s30242_s4 + $0x7b8] sm:$0xf0] }
 0x1d4   : > { %3879 = vmatpush.bf16.msra.mxu3 %v13189_v43  ;;  %v13525_v63 = vor.u32 %v18633_v40, %v13522_v30  ;;  %v13362_v40 = vld [vmem:[%s30242_s4 + $0x498] sm:$0xf0] }
 0x1d5   : > { %3791 = vmatmul.bf16.vlgmr.msrb.gmra.mxu2 %v21325_v26  ;;  %3809 = vmatmul.bf16.vlgmr.msrb.gmra.mxu3 %v21329_v27  ;;  %v3489_v49 = vadd.f32 %v3488_v10, %v3471_v51  ;;  %v13490_v30 = vld [vmem:[%s30242_s4 + $0x598] sm:$0xf0]  ;;  %v13365_v2 = vor.u32 %v18593_v52, %v13362_v40 }
 0x1d6   : > { %3891 = vmatpush.bf16.msrb.mxu0 %v13413_v19  ;;  %3909 = vmatpush.bf16.msrb.mxu1 %v13541_v25  ;;  %v13378_v19 = vld [vmem:[%s30242_s4 + $0x4b8] sm:$0xf0] }
 0x1d7   : > { %3927 = vmatpush.bf16.msrb.mxu2 %v13669_v1  ;;  %v13458_v52 = vld [vmem:[%s30242_s4 + $0x558] sm:$0xf0] }
 0x1d8   : > { %v3504_v61 = vpop.f32.mrf.mxu2  ;;  %v3522_v62 = vpop.f32.mrf.mxu3  ;;  %3880 = vmatpush.bf16.msra.mxu3 %v13173_v21  ;;  %v18697_v21 = vld [vmem:[%s30242_s4 + $0x7cc] sm:$0xf] }
 0x1d9   : > { %v3505_v41 = vadd.f32 %v3504_v61, %v3487_v22  ;;  %v18597_v22 = vld [vmem:[%s30242_s4 + $0x4ac] sm:$0xf]  ;;  %v13634_v61 = vld [vmem:[%s30242_s4 + $0x6b8] sm:$0xf0] }
 0x1da   : > { %3892 = vmatpush.bf16.msrb.mxu0 %v13397_v56  ;;  %3910 = vmatpush.bf16.msrb.mxu1 %v13525_v63  ;;  %v3473_v15 = vpop.f32.mrf.mxu0  ;;  %v3491_v55 = vpop.f32.mrf.mxu1  ;;  %v13381_v25 = vor.u32 %v18597_v22, %v13378_v19  ;;  %v18625_v56 = vld [vmem:[%s30242_s4 + $0x58c] sm:$0xf]  ;;  %v13637_v1 = vor.u32 %v18661_v32, %v13634_v61  ;;  %v13730_v61 = vld [vmem:[%s30242_s4 + $0x778] sm:$0xf0] }
 0x1db   : > { %v3523_v50 = vadd.f32 %v3522_v62, %v3505_v41  ;;  %v3474_v16 = vadd.f32 %v3473_v15, %v22496_v59  ;;  %v18629_v59 = vld [vmem:[%s30242_s4 + $0x5ac] sm:$0xf]  ;;  %3928 = vmatpush.bf16.msrb.mxu2 %v13653_v48  ;;  %v13493_v63 = vor.u32 %v18625_v56, %v13490_v30 }
 0x1dc   : > { %3945 = vmatpush.bf16.msrb.mxu3 %v13797_v11  ;;  %v13509_v51 = vor.u32 %v18629_v59, %v13506_v28  ;;  %v18693_v62 = vld [vmem:[%s30242_s4 + $0x7ac] sm:$0xf]  ;;  %v13474_v59 = vld [vmem:[%s30242_s4 + $0x578] sm:$0xf0] }
 0x1dd   : > { %v3492_v43 = vadd.f32 %v3491_v55, %v3474_v16  ;;  %3760 = vmatmul.bf16.gmra.mxu0 %v21200_v31  ;;  %3778 = vmatmul.bf16.gmra.mxu1 %v21203_v13  ;;  %v13765_v7 = vor.u32 %v18693_v62, %v13762_v46  ;;  %v18621_v22 = vld [vmem:[%s30242_s4 + $0x56c] sm:$0xf]  ;;  %v13618_v28 = vld [vmem:[%s30242_s4 + $0x698] sm:$0xf0] }
 0x1de   : > { %3893 = vmatpush.bf16.msrb.mxu0 %v13381_v25  ;;  %3911 = vmatpush.bf16.msrb.mxu1 %v13509_v51  ;;  %v18657_v25 = vld [vmem:[%s30242_s4 + $0x68c] sm:$0xf]  ;;  %v13477_v29 = vor.u32 %v18621_v22, %v13474_v59 }
 0x1df   : > { %3929 = vmatpush.bf16.msrb.mxu2 %v13637_v1  ;;  %v13621_v12 = vor.u32 %v18657_v25, %v13618_v28  ;;  %v18685_v56 = vld [vmem:[%s30242_s4 + $0x76c] sm:$0xf] }
 0x1e0   : > { %v3506_v17 = vpop.f32.mrf.mxu2  ;;  %v3524_v23 = vpop.f32.mrf.mxu3  ;;  %v13733_v62 = vor.u32 %v18685_v56, %v13730_v61  ;;  %v18581_v46 = vld [vmem:[%s30242_s4 + $0x42c] sm:$0xf] }
 0x1e1   : > { %v3507_v18 = vadd.f32 %v3506_v17, %v3489_v49  ;;  %v13778_v49 = vld [vmem:[%s30242_s4 + $0x7d8] sm:$0xf0]  ;;  %v18681_v22 = vld [vmem:[%s30242_s4 + $0x74c] sm:$0xf] }
 0x1e2   : > { %v3475_v10 = vpop.f32.mrf.mxu0  ;;  %v3493_v14 = vpop.f32.mrf.mxu1  ;;  %v13781_v47 = vor.u32 %v18697_v21, %v13778_v49  ;;  %3894 = vmatpush.bf16.msrb.mxu0 %v13365_v2  ;;  %3912 = vmatpush.bf16.msrb.mxu1 %v13493_v63  ;;  %v13330_v21 = vld [vmem:[%s30242_s4 + $0x458] sm:$0xf0]  ;;  %v18617_v49 = vld [vmem:[%s30242_s4 + $0x54c] sm:$0xf] }
 0x1e3   : > { %v22621_v42 = vadd.f32 %v3524_v23, %v3507_v18  ;;  %v18589_v23 = vld [vmem:[%s30242_s4 + $0x46c] sm:$0xf]  ;;  %v13346_v18 = vld [vmem:[%s30242_s4 + $0x478] sm:$0xf0]  ;;  %v13461_v40 = vor.u32 %v18617_v49, %v13458_v52  ;;  %3930 = vmatpush.bf16.msrb.mxu2 %v13621_v12 }
 0x1e4   : > { %3946 = vmatpush.bf16.msrb.mxu3 %v13781_v47  ;;  %v13349_v19 = vor.u32 %v18589_v23, %v13346_v18  ;;  %v18689_v10 = vld [vmem:[%s30242_s4 + $0x78c] sm:$0xf]  ;;  %v13586_v23 = vld [vmem:[%s30242_s4 + $0x658] sm:$0xf0] }
 0x1e5   : > { %3796 = vmatmul.bf16.gmra.mxu2 %v21278_v57  ;;  %3814 = vmatmul.bf16.gmra.mxu3 %v21281_v58  ;;  %v18585_v14 = vld [vmem:[%s30242_s4 + $0x44c] sm:$0xf]  ;;  %v13698_v52 = vld [vmem:[%s30242_s4 + $0x738] sm:$0xf0] }
 0x1e6   : > { %3895 = vmatpush.bf16.msrb.mxu0 %v13349_v19  ;;  %3913 = vmatpush.bf16.msrb.mxu1 %v13477_v29  ;;  %v13333_v47 = vor.u32 %v18585_v14, %v13330_v21  ;;  %v18577_v25 = vld [vmem:[%s30242_s4 + $0x40c] sm:$0xf]  ;;  %v13426_v29 = vld [vmem:[%s30242_s4 + $0x518] sm:$0xf0] }
 0x1e7   : > { %v18645_v12 = vld [vmem:[%s30242_s4 + $0x62c] sm:$0xf] }
 0x1e8   : > { %v3509_v41 = vpop.f32.mrf.mxu2  ;;  %v3527_v11 = vpop.f32.mrf.mxu3  ;;  %3947 = vmatpush.bf16.msrb.mxu3 %v13765_v7  ;;  %v13314_v7 = vld [vmem:[%s30242_s4 + $0x438] sm:$0xf0]  ;;  %v18677_v49 = vld [vmem:[%s30242_s4 + $0x72c] sm:$0xf] }
 0x1e9   : > { %v3510_v15 = vadd.f32 %v3509_v41, %v3492_v43  ;;  %v18613_v41 = vld [vmem:[%s30242_s4 + $0x52c] sm:$0xf] }
 0x1ea   : > { %v3540_v16 = vpop.f32.mrf.mxu0  ;;  %v3558_v17 = vpop.f32.mrf.mxu1  ;;  %3896 = vmatpush.bf16.msrb.mxu0 %v13333_v47  ;;  %3914 = vmatpush.bf16.msrb.mxu1 %v13461_v40  ;;  %v18733_v47 = vld [vmem:[%s30242_s4 + $0x8ec] sm:$0xf] }
 0x1eb   : > { %v22655_v55 = vadd.f32 %v3527_v11, %v3510_v15  ;;  %v3541_v43 = vadd.f32 %v3540_v16, %v3523_v50  ;;  %v13746_v50 = vld [vmem:[%s30242_s4 + $0x798] sm:$0xf0]  ;;  %v13317_v15 = vor.u32 %v18581_v46, %v13314_v7  ;;  %v18765_v56 = vld [vmem:[%s30242_s4 + $0x9ec] sm:$0xf] }
 0x1ec   : > { %v13749_v48 = vor.u32 %v18689_v10, %v13746_v50  ;;  %v13442_v16 = vld [vmem:[%s30242_s4 + $0x538] sm:$0xf0]  ;;  %v18641_v61 = vld [vmem:[%s30242_s4 + $0x60c] sm:$0xf] }
 0x1ed   : > { %v3559_v51 = vadd.f32 %v3558_v17, %v3541_v43  ;;  %3827 = vmatmul.bf16.vlgmr.msra.gmra.mxu0 %v20776_v5  ;;  %3845 = vmatmul.bf16.vlgmr.msra.gmra.mxu1 %v20778_v6  ;;  %v18653_v5 = vld [vmem:[%s30242_s4 + $0x66c] sm:$0xf]  ;;  %v13602_v6 = vld [vmem:[%s30242_s4 + $0x678] sm:$0xf0] }
 0x1ee   : > { %3948 = vmatpush.bf16.msrb.mxu3 %v13749_v48  ;;  %v13605_v32 = vor.u32 %v18653_v5, %v13602_v6  ;;  %v18649_v17 = vld [vmem:[%s30242_s4 + $0x64c] sm:$0xf]  ;;  %v13714_v43 = vld [vmem:[%s30242_s4 + $0x758] sm:$0xf0]  ;;  %3897 = vmatpush.bf16.msrb.mxu0 %v13317_v15  ;;  %v13701_v5 = vor.u32 %v18677_v49, %v13698_v52 }
 0x1ef   : > { %v13589_v18 = vor.u32 %v18649_v17, %v13586_v23  ;;  %v13717_v59 = vor.u32 %v18681_v22, %v13714_v43  ;;  %v13570_v10 = vld [vmem:[%s30242_s4 + $0x638] sm:$0xf0]  ;;  %v18761_v23 = vld [vmem:[%s30242_s4 + $0x9cc] sm:$0xf]  ;;  %v4035_v22 = vmax.f32 %v22176_v20, 0.0 }
 0x1f0   : > { %v3511_v30 = vpop.f32.mrf.mxu2  ;;  %v3529_v2 = vpop.f32.mrf.mxu3  ;;  %3931 = vmatpush.bf16.msrb.mxu2 %v13605_v32  ;;  %v13573_v21 = vor.u32 %v18645_v12, %v13570_v10  ;;  %v13922_v6 = vld [vmem:[%s30242_s4 + $0x8f8] sm:$0xf0]  ;;  %v18825_v52 = vld [vmem:[%s30242_s4 + $0xbcc] sm:$0xf] }
 0x1f1   : > { %v14050_v30 = vld [vmem:[%s30242_s4 + $0x9f8] sm:$0xf0]  ;;  %v13925_v2 = vor.u32 %v18733_v47, %v13922_v6 }
 0x1f2   : > { %v3542_v63 = vpop.f32.mrf.mxu0  ;;  %v3560_v1 = vpop.f32.mrf.mxu1  ;;  %3949 = vmatpush.bf16.msrb.mxu3 %v13733_v62  ;;  %v14053_v32 = vor.u32 %v18765_v56, %v14050_v30  ;;  %v18673_v62 = vld [vmem:[%s30242_s4 + $0x70c] sm:$0xf]  ;;  %v13682_v7 = vld [vmem:[%s30242_s4 + $0x718] sm:$0xf0] }
 0x1f3   : > { %v3543_v11 = vadd.f32 %v3542_v63, %v22621_v42  ;;  %v13445_v42 = vor.u32 %v18613_v41, %v13442_v16  ;;  %v18729_v41 = vld [vmem:[%s30242_s4 + $0x8cc] sm:$0xf]  ;;  %v13685_v17 = vor.u32 %v18673_v62, %v13682_v7  ;;  %v13890_v12 = vld [vmem:[%s30242_s4 + $0x8b8] sm:$0xf0] }
 0x1f4   : > { %3932 = vmatpush.bf16.msrb.mxu2 %v13589_v18  ;;  %v18797_v18 = vld [vmem:[%s30242_s4 + $0xaec] sm:$0xf]  ;;  %v14162_v49 = vld [vmem:[%s30242_s4 + $0xad8] sm:$0xf0] }
 0x1f5   : > { %3863 = vmatmul.bf16.vlgmr.msra.gmra.mxu2 %v20822_v37  ;;  %3881 = vmatmul.bf16.vlgmr.msra.gmra.mxu3 %v20824_v38  ;;  %v22734_v19 = vadd.f32 %v3560_v1, %v3543_v11  ;;  %v13298_v37 = vld [vmem:[%s30242_s4 + $0x418] sm:$0xf0]  ;;  %v18609_v38 = vld [vmem:[%s30242_s4 + $0x50c] sm:$0xf] }
 0x1f6   : > { %3915 = vmatpush.bf16.msrb.mxu1 %v13445_v42  ;;  %v13301_v28 = vor.u32 %v18577_v25, %v13298_v37  ;;  %3950 = vmatpush.bf16.msrb.mxu3 %v13717_v59  ;;  %v13429_v48 = vor.u32 %v18609_v38, %v13426_v29  ;;  %v13906_v11 = vld [vmem:[%s30242_s4 + $0x8d8] sm:$0xf0]  ;;  %v18829_v37 = vld [vmem:[%s30242_s4 + $0xbec] sm:$0xf] }
 0x1f7   : > { %v14034_v42 = vld [vmem:[%s30242_s4 + $0x9d8] sm:$0xf0]  ;;  %v18725_v29 = vld [vmem:[%s30242_s4 + $0x8ac] sm:$0xf] }
 0x1f8   : > { %v3576_v50 = vpop.f32.mrf.mxu2  ;;  %v3594_v14 = vpop.f32.mrf.mxu3  ;;  %3898 = vmatpush.bf16.msrb.mxu0 %v13301_v28  ;;  %3933 = vmatpush.bf16.msrb.mxu2 %v13573_v21  ;;  %v14037_v59 = vor.u32 %v18761_v23, %v14034_v42  ;;  %v14178_v25 = vld [vmem:[%s30242_s4 + $0xaf8] sm:$0xf0]  ;;  %v18721_v56 = vld [vmem:[%s30242_s4 + $0x88c] sm:$0xf] }
 0x1f9   : > { %v3577_v40 = vadd.f32 %v3576_v50, %v3559_v51  ;;  %v13554_v51 = vld [vmem:[%s30242_s4 + $0x618] sm:$0xf0]  ;;  %v14181_v20 = vor.u32 %v18797_v18, %v14178_v25  ;;  %v18821_v7 = vld [vmem:[%s30242_s4 + $0xbac] sm:$0xf]  ;;  %v22884_v25 = vld [vmem:[%s30243_s5] sm:$0xf] }
 0x1fa   : > { %v3545_v1 = vpop.f32.mrf.mxu0  ;;  %v3563_v46 = vpop.f32.mrf.mxu1  ;;  %3916 = vmatpush.bf16.msrb.mxu1 %v13429_v48  ;;  %3951 = vmatpush.bf16.msrb.mxu3 %v13701_v5  ;;  %v13557_v16 = vor.u32 %v18641_v61, %v13554_v51  ;;  %v14306_v28 = vld [vmem:[%s30242_s4 + $0xbf8] sm:$0xf0]  ;;  %v13893_v5 = vor.u32 %v18725_v29, %v13890_v12  ;;  %v18717_v23 = vld [vmem:[%s30242_s4 + $0x86c] sm:$0xf] }
 0x1fb   : > { %v3595_v63 = vadd.f32 %v3594_v14, %v3577_v40  ;;  %v3546_v15 = vadd.f32 %v3545_v1, %v22655_v55  ;;  %v13909_v55 = vor.u32 %v18729_v41, %v13906_v11  ;;  %v14309_v50 = vor.u32 %v18829_v37, %v14306_v28  ;;  %v18793_v14 = vld [vmem:[%s30242_s4 + $0xacc] sm:$0xf]  ;;  %v14290_v47 = vld [vmem:[%s30242_s4 + $0xbd8] sm:$0xf0] }
 0x1fc   : > { %3963 = vmatpush.bf16.msra.mxu0 %v13925_v2  ;;  %3934 = vmatpush.bf16.msrb.mxu2 %v13557_v16  ;;  %v13874_v30 = vld [vmem:[%s30242_s4 + $0x898] sm:$0xf0]  ;;  %v14165_v51 = vor.u32 %v18793_v14, %v14162_v49  ;;  %v14293_v62 = vor.u32 %v18825_v52, %v14290_v47  ;;  %v18789_v1 = vld [vmem:[%s30242_s4 + $0xaac] sm:$0xf]  ;;  %v4039_v11 = vmax.f32 %v22229_v39, 0.0  ;;  %v22887_v37 = vperm.slane %v22884_v25, 2 }
 0x1fd   : > { %v4036_v43 = vmax.f32 %v3595_v63, 0.0  ;;  %v22807_v38 = vadd.f32 %v3563_v46, %v3546_v15  ;;  %3832 = vmatmul.bf16.gmra.mxu0 %v20856_v0  ;;  %3850 = vmatmul.bf16.gmra.mxu1 %v20867_v8  ;;  %v18757_v0 = vld [vmem:[%s30242_s4 + $0x9ac] sm:$0xf]  ;;  %v14018_v8 = vld [vmem:[%s30242_s4 + $0x9b8] sm:$0xf0]  ;;  %v13877_v16 = vor.u32 %v18721_v56, %v13874_v30 }
 0x1fe   : > { %3981 = vmatpush.bf16.msra.mxu1 %v14053_v32  ;;  %3952 = vmatpush.bf16.msrb.mxu3 %v13685_v17  ;;  %v14021_v6 = vor.u32 %v18757_v0, %v14018_v8  ;;  %v14002_v63 = vld [vmem:[%s30242_s4 + $0x998] sm:$0xf0]  ;;  %v18817_v8 = vld [vmem:[%s30242_s4 + $0xb8c] sm:$0xf] }
 0x1ff   : > { %v22820_v10 = vpack.c.bf16 %v4036_v43, %v4035_v22  ;;  %v14146_v46 = vld [vmem:[%s30242_s4 + $0xab8] sm:$0xf0] }
 0x200   : > { %v3578_v48 = vpop.f32.mrf.mxu2  ;;  %v3596_v21 = vpop.f32.mrf.mxu3  ;;  %3964 = vmatpush.bf16.msra.mxu0 %v13909_v55  ;;  %3999 = vmatpush.bf16.msra.mxu2 %v14181_v20  ;;  %v14274_v41 = vld [vmem:[%s30242_s4 + $0xbb8] sm:$0xf0]  ;;  %v14149_v18 = vor.u32 %v18789_v1, %v14146_v46  ;;  %v18785_v20 = vld [vmem:[%s30242_s4 + $0xa8c] sm:$0xf] }
 0x201   : > { %v3579_v40 = vadd.f32 %v3578_v48, %v22734_v19  ;;  %v18753_v19 = vld [vmem:[%s30242_s4 + $0x98c] sm:$0xf]  ;;  %v14277_v22 = vor.u32 %v18821_v7, %v14274_v41  ;;  %v13858_v39 = vld [vmem:[%s30242_s4 + $0x878] sm:$0xf0]  ;;  %v4059_v43 = vunpack.c.l.b16 %v22820_v10  ;;  %v4060_v28 = vunpack.c.h.b16 %v22820_v10 }
 0x202   : > { %3982 = vmatpush.bf16.msra.mxu1 %v14037_v59  ;;  %4017 = vmatpush.bf16.msra.mxu3 %v14309_v50  ;;  %v3547_v32 = vpop.f32.mrf.mxu0  ;;  %v3565_v61 = vpop.f32.mrf.mxu1  ;;  %v14005_v17 = vor.u32 %v18753_v19, %v14002_v63  ;;  %v14130_v0 = vld [vmem:[%s30242_s4 + $0xa98] sm:$0xf0]  ;;  %v13861_v48 = vor.u32 %v18717_v23, %v13858_v39  ;;  %v18813_v63 = vld [vmem:[%s30242_s4 + $0xb6c] sm:$0xf] }
 0x203   : > { %v3597_v2 = vadd.f32 %v3596_v21, %v3579_v40  ;;  %v14258_v14 = vld [vmem:[%s30242_s4 + $0xb98] sm:$0xf0]  ;;  %v18713_v40 = vld [vmem:[%s30242_s4 + $0x84c] sm:$0xf]  ;;  %v14133_v30 = vor.u32 %v18785_v20, %v14130_v0 }
 0x204   : > { %3965 = vmatpush.bf16.msra.mxu0 %v13893_v5  ;;  %4000 = vmatpush.bf16.msra.mxu2 %v14165_v51  ;;  %v13842_v5 = vld [vmem:[%s30242_s4 + $0x858] sm:$0xf0]  ;;  %v18781_v61 = vld [vmem:[%s30242_s4 + $0xa6c] sm:$0xf] }
 0x205   : > { %v4040_v15 = vmax.f32 %v3597_v2, 0.0  ;;  %3868 = vmatmul.bf16.gmra.mxu2 %v20915_v35  ;;  %3886 = vmatmul.bf16.gmra.mxu3 %v20917_v36  ;;  %v18749_v35 = vld [vmem:[%s30242_s4 + $0x96c] sm:$0xf]  ;;  %v13986_v36 = vld [vmem:[%s30242_s4 + $0x978] sm:$0xf0]  ;;  %v14261_v2 = vor.u32 %v18817_v8, %v14258_v14  ;;  %v13845_v41 = vor.u32 %v18713_v40, %v13842_v5 }
 0x206   : > { %3983 = vmatpush.bf16.msra.mxu1 %v14021_v6  ;;  %4018 = vmatpush.bf16.msra.mxu3 %v14293_v62  ;;  %v13989_v10 = vor.u32 %v18749_v35, %v13986_v36  ;;  %v18745_v6 = vld [vmem:[%s30242_s4 + $0x94c] sm:$0xf]  ;;  %v13970_v32 = vld [vmem:[%s30242_s4 + $0x958] sm:$0xf0]  ;;  %v4043_v62 = vmax.f32 %v22284_v60, 0.0 }
 0x207   : > { %v4049_v42 = vpack.c.bf16 %v4040_v15, %v4039_v11  ;;  %v14114_v51 = vld [vmem:[%s30242_s4 + $0xa78] sm:$0xf0]  ;;  %v13973_v60 = vor.u32 %v18745_v6, %v13970_v32  ;;  %v18709_v11 = vld [vmem:[%s30242_s4 + $0x82c] sm:$0xf]  ;;  %v18894_v40 = vld [vmem:[%s30244_s6 + $0x1ec] sm:$0xf0] }
 0x208   : > { %v3581_v55 = vpop.f32.mrf.mxu2  ;;  %v3599_v59 = vpop.f32.mrf.mxu3  ;;  %3966 = vmatpush.bf16.msra.mxu0 %v13877_v16  ;;  %4001 = vmatpush.bf16.msra.mxu2 %v14149_v18  ;;  %v14242_v1 = vld [vmem:[%s30242_s4 + $0xb78] sm:$0xf0]  ;;  %v18741_v23 = vld [vmem:[%s30242_s4 + $0x92c] sm:$0xf] }
 0x209   : > { %v4063_v29 = vunpack.c.l.b16 %v4049_v42  ;;  %v4064_v12 = vunpack.c.h.b16 %v4049_v42  ;;  %v3582_v50 = vadd.f32 %v3581_v55, %v22807_v38  ;;  %v13826_v15 = vld [vmem:[%s30242_s4 + $0x838] sm:$0xf0]  ;;  %v18777_v18 = vld [vmem:[%s30242_s4 + $0xa4c] sm:$0xf] }
 0x20a   : > { %3984 = vmatpush.bf16.msra.mxu1 %v14005_v17  ;;  %v3612_v52 = vpop.f32.mrf.mxu0  ;;  %v3630_v47 = vpop.f32.mrf.mxu1  ;;  %4019 = vmatpush.bf16.msra.mxu3 %v14277_v22  ;;  %v13954_v42 = vld [vmem:[%s30242_s4 + $0x938] sm:$0xf0]  ;;  %v18809_v39 = vld [vmem:[%s30242_s4 + $0xb4c] sm:$0xf]  ;;  %v13829_v55 = vor.u32 %v18709_v11, %v13826_v15  ;;  %v18858_v11 = vld [vmem:[%s30244_s6 + $0xcc] sm:$0xf0] }
 0x20b   : > { %v22903_v21 = vpack.c.b16 %v4063_v29, %v4059_v43  ;;  %v22905_v49 = vpack.c.b16 %v4064_v12, %v4060_v28  ;;  %v3600_v38 = vadd.f32 %v3599_v59, %v3582_v50  ;;  %v3613_v56 = vadd.f32 %v3612_v52, %v22887_v37  ;;  %v14098_v22 = vld [vmem:[%s30242_s4 + $0xa58] sm:$0xf0]  ;;  %v18705_v20 = vld [vmem:[%s30242_s4 + $0x80c] sm:$0xf]  ;;  %v14424_v52 = vld [vmem:[%s30244_s6 + $0xe0] sm:$0xf] }
 0x20c   : > { %3967 = vmatpush.bf16.msra.mxu0 %v13861_v48  ;;  %4002 = vmatpush.bf16.msra.mxu2 %v14133_v30  ;;  %v14226_v35 = vld [vmem:[%s30242_s4 + $0xb58] sm:$0xf0]  ;;  %v13957_v59 = vor.u32 %v18741_v23, %v13954_v42  ;;  %v18737_v29 = vld [vmem:[%s30242_s4 + $0x90c] sm:$0xf]  ;;  %v14101_v50 = vor.u32 %v18777_v18, %v14098_v22  ;;  %v18890_v15 = vld [vmem:[%s30244_s6 + $0x1cc] sm:$0xf0] }
 0x20d   : > { %v4044_v19 = vmax.f32 %v3600_v38, 0.0  ;;  %v3631_v46 = vadd.f32 %v3630_v47, %v3613_v56  ;;  %3899 = vmatmul.bf16.vlgmr.msrb.gmra.mxu0 %v21027_v33  ;;  %3917 = vmatmul.bf16.vlgmr.msrb.gmra.mxu1 %v21031_v34  ;;  %v14117_v33 = vor.u32 %v18781_v61, %v14114_v51  ;;  %v14245_v34 = vor.u32 %v18813_v63, %v14242_v1  ;;  %v13810_v28 = vld [vmem:[%s30242_s4 + $0x818] sm:$0xf0]  ;;  %v18773_v14 = vld [vmem:[%s30242_s4 + $0xa2c] sm:$0xf] }
 0x20e   : > { %3985 = vmatpush.bf16.msra.mxu1 %v13989_v10  ;;  %4020 = vmatpush.bf16.msra.mxu3 %v14261_v2  ;;  %v14229_v0 = vor.u32 %v18809_v39, %v14226_v35  ;;  %v13938_v8 = vld [vmem:[%s30242_s4 + $0x918] sm:$0xf0]  ;;  %v18805_v10 = vld [vmem:[%s30242_s4 + $0xb2c] sm:$0xf]  ;;  %v13813_v5 = vor.u32 %v18705_v20, %v13810_v28  ;;  %v14392_v35 = vld [vmem:[%s30244_s6 + $0xa0] sm:$0xf] }
 0x20f   : > { %v22935_v7 = vpack.c.bf16 %v4044_v19, %v4043_v62  ;;  %v14082_v48 = vld [vmem:[%s30242_s4 + $0xa38] sm:$0xf0]  ;;  %v13941_v6 = vor.u32 %v18737_v29, %v13938_v8  ;;  %v18769_v61 = vld [vmem:[%s30242_s4 + $0xa0c] sm:$0xf]  ;;  %v14376_v20 = vld [vmem:[%s30244_s6 + $0x80] sm:$0xf] }
 0x210   : > { %v3583_v16 = vpop.f32.mrf.mxu2  ;;  %v3601_v17 = vpop.f32.mrf.mxu3  ;;  %3968 = vmatpush.bf16.msra.mxu0 %v13845_v41  ;;  %4003 = vmatpush.bf16.msra.mxu2 %v14117_v33  ;;  %v14210_v38 = vld [vmem:[%s30242_s4 + $0xb38] sm:$0xf0]  ;;  %v14085_v2 = vor.u32 %v18773_v14, %v14082_v48  ;;  %v18801_v1 = vld [vmem:[%s30242_s4 + $0xb0c] sm:$0xf]  ;;  %v14360_v48 = vld [vmem:[%s30244_s6 + $0x60] sm:$0xf] }
 0x211   : > { %v14213_v32 = vor.u32 %v18805_v10, %v14210_v38  ;;  %v14066_v51 = vld [vmem:[%s30242_s4 + $0xa18] sm:$0xf0] }
 0x212   : > { %v3614_v36 = vpop.f32.mrf.mxu0  ;;  %v3632_v43 = vpop.f32.mrf.mxu1  ;;  %3986 = vmatpush.bf16.msra.mxu1 %v13973_v60  ;;  %4021 = vmatpush.bf16.msra.mxu3 %v14245_v34  ;;  %v14194_v41 = vld [vmem:[%s30242_s4 + $0xb18] sm:$0xf0]  ;;  %v14408_v60 = vld [vmem:[%s30244_s6 + $0xc0] sm:$0xf]  ;;  %v14069_v23 = vor.u32 %v18769_v61, %v14066_v51  ;;  %v18874_v51 = vld [vmem:[%s30244_s6 + $0x14c] sm:$0xf0] }
 0x213   : > { %v3615_v12 = vadd.f32 %v3614_v36, %v22887_v37  ;;  %v14197_v42 = vor.u32 %v18801_v1, %v14194_v41  ;;  %v14409_v18 = vor.u32 %v18858_v11, %v14408_v60  ;;  %v14520_v36 = vld [vmem:[%s30244_s6 + $0x1a0] sm:$0xf] }
 0x214   : > { %3969 = vmatpush.bf16.msra.mxu0 %v13829_v55  ;;  %4004 = vmatpush.bf16.msra.mxu2 %v14101_v50  ;;  %v14504_v50 = vld [vmem:[%s30244_s6 + $0x180] sm:$0xf] }
 0x215   : > { %3935 = vmatmul.bf16.vlgmr.msrb.gmra.mxu2 %v21077_v3  ;;  %3953 = vmatmul.bf16.vlgmr.msrb.gmra.mxu3 %v21081_v4  ;;  %v22991_v47 = vadd.f32 %v3632_v43, %v3615_v12  ;;  %v18862_v3 = vld [vmem:[%s30244_s6 + $0xec] sm:$0xf0]  ;;  %v14552_v4 = vld [vmem:[%s30244_s6 + $0x1e0] sm:$0xf] }
 0x216   : > { %3987 = vmatpush.bf16.msra.mxu1 %v13957_v59  ;;  %4022 = vmatpush.bf16.msra.mxu3 %v14229_v0  ;;  %v14425_v19 = vor.u32 %v18862_v3, %v14424_v52  ;;  %v14553_v63 = vor.u32 %v18894_v40, %v14552_v4  ;;  %v18886_v43 = vld [vmem:[%s30244_s6 + $0x1ac] sm:$0xf0]  ;;  %v14472_v61 = vld [vmem:[%s30244_s6 + $0x140] sm:$0xf] }
 0x217   : > { %v14521_v59 = vor.u32 %v18886_v43, %v14520_v36  ;;  %v18850_v12 = vld [vmem:[%s30244_s6 + $0x8c] sm:$0xf0]  ;;  %v14473_v1 = vor.u32 %v18874_v51, %v14472_v61  ;;  %v14328_v41 = vld [vmem:[%s30244_s6 + $0x20] sm:$0xf] }
 0x218   : > { %v3648_v56 = vpop.f32.mrf.mxu2  ;;  %v3666_v30 = vpop.f32.mrf.mxu3  ;;  %3970 = vmatpush.bf16.msra.mxu0 %v13813_v5  ;;  %4005 = vmatpush.bf16.msra.mxu2 %v14085_v2  ;;  %v18882_v0 = vld [vmem:[%s30244_s6 + $0x18c] sm:$0xf0]  ;;  %v14377_v8 = vor.u32 %v18850_v12, %v14376_v20  ;;  %v14920_v20 = vld [vmem:[%s30244_s6 + $0x4c0] sm:$0xf] }
 0x219   : > { %v3649_v62 = vadd.f32 %v3648_v56, %v3631_v46  ;;  %v14536_v46 = vld [vmem:[%s30244_s6 + $0x1c0] sm:$0xf]  ;;  %v14505_v14 = vor.u32 %v18882_v0, %v14504_v50  ;;  %v18846_v52 = vld [vmem:[%s30244_s6 + $0x6c] sm:$0xf0] }
 0x21a   : > { %v3617_v17 = vpop.f32.mrf.mxu0  ;;  %v3635_v33 = vpop.f32.mrf.mxu1  ;;  %3988 = vmatpush.bf16.msra.mxu1 %v13941_v6  ;;  %4023 = vmatpush.bf16.msra.mxu3 %v14213_v32  ;;  %v14537_v22 = vor.u32 %v18890_v15, %v14536_v46  ;;  %v14361_v6 = vor.u32 %v18846_v52, %v14360_v48  ;;  %v18842_v32 = vld [vmem:[%s30244_s6 + $0x4c] sm:$0xf0]  ;;  %v15048_v12 = vld [vmem:[%s30244_s6 + $0x5c0] sm:$0xf] }
 0x21b   : > { %v3667_v16 = vadd.f32 %v3666_v30, %v3649_v62  ;;  %v3618_v34 = vadd.f32 %v3617_v17, %v22887_v37  ;;  %v18854_v37 = vld [vmem:[%s30244_s6 + $0xac] sm:$0xf0]  ;;  %v14344_v30 = vld [vmem:[%s30244_s6 + $0x40] sm:$0xf] }
 0x21c   : > { %6489 = vmatpush.bf16.msrb.mxu0 %v14425_v19  ;;  %4006 = vmatpush.bf16.msra.mxu2 %v14069_v23  ;;  %v18838_v46 = vld [vmem:[%s30244_s6 + $0x2c] sm:$0xf0]  ;;  %v14904_v52 = vld [vmem:[%s30244_s6 + $0x4a0] sm:$0xf] }
 0x21d   : > { %v3636_v39 = vadd.f32 %v3635_v33, %v3618_v34  ;;  %3904 = vmatmul.bf16.gmra.mxu0 %v21148_v44  ;;  %3922 = vmatmul.bf16.gmra.mxu1 %v21151_v45  ;;  %v14393_v45 = vor.u32 %v18854_v37, %v14392_v35  ;;  %v14329_v17 = vor.u32 %v18838_v46, %v14328_v41  ;;  %v14312_v34 = vld [vmem:[%s30244_s6] sm:$0xf]  ;;  %v18834_v23 = vld [vmem:[%s30244_s6 + $0xc] sm:$0xf0] }
 0x21e   : > { %6507 = vmatpush.bf16.msrb.mxu1 %v14553_v63  ;;  %4024 = vmatpush.bf16.msra.mxu3 %v14197_v42  ;;  %v14345_v63 = vor.u32 %v18842_v32, %v14344_v30  ;;  %v18990_v35 = vld [vmem:[%s30244_s6 + $0x4ec] sm:$0xf0]  ;;  %v15064_v37 = vld [vmem:[%s30244_s6 + $0x5e0] sm:$0xf] }
 0x21f   : > { %v19022_v36 = vld [vmem:[%s30244_s6 + $0x5ec] sm:$0xf0]  ;;  %v14888_v30 = vld [vmem:[%s30244_s6 + $0x480] sm:$0xf] }
 0x220   : > { %v3650_v55 = vpop.f32.mrf.mxu2  ;;  %v3668_v44 = vpop.f32.mrf.mxu3  ;;  %6490 = vmatpush.bf16.msrb.mxu0 %v14409_v18  ;;  %v14440_v18 = vld [vmem:[%s30244_s6 + $0x100] sm:$0xf]  ;;  %v19018_v50 = vld [vmem:[%s30244_s6 + $0x5cc] sm:$0xf0] }
 0x221   : > { %v3651_v62 = vadd.f32 %v3650_v55, %v22991_v47  ;;  %v14313_v55 = vor.u32 %v18834_v23, %v14312_v34  ;;  %v19006_v41 = vld [vmem:[%s30244_s6 + $0x56c] sm:$0xf0]  ;;  %v14856_v46 = vld [vmem:[%s30244_s6 + $0x440] sm:$0xf] }
 0x222   : > { %6508 = vmatpush.bf16.msrb.mxu1 %v14537_v22  ;;  %v3619_v28 = vpop.f32.mrf.mxu0  ;;  %v3637_v29 = vpop.f32.mrf.mxu1  ;;  %v18866_v22 = vld [vmem:[%s30244_s6 + $0x10c] sm:$0xf0] }
 0x223   : > { %v3669_v47 = vadd.f32 %v3668_v44, %v3651_v62  ;;  %v18986_v29 = vld [vmem:[%s30244_s6 + $0x4cc] sm:$0xf0] }
 0x224   : > { %6491 = vmatpush.bf16.msrb.mxu0 %v14393_v45 }
 0x225   : > { %3940 = vmatmul.bf16.gmra.mxu2 %v21194_v9  ;;  %3958 = vmatmul.bf16.gmra.mxu3 %v21197_v24  ;;  %v14488_v9 = vld [vmem:[%s30244_s6 + $0x160] sm:$0xf]  ;;  %v18878_v24 = vld [vmem:[%s30244_s6 + $0x16c] sm:$0xf0] }
 0x226   : > { %6509 = vmatpush.bf16.msrb.mxu1 %v14521_v59  ;;  %v14489_v56 = vor.u32 %v18878_v24, %v14488_v9  ;;  %v15065_v59 = vor.u32 %v19022_v36, %v15064_v37  ;;  %v18982_v9 = vld [vmem:[%s30244_s6 + $0x4ac] sm:$0xf0]  ;;  %v15032_v24 = vld [vmem:[%s30244_s6 + $0x5a0] sm:$0xf] }
 0x227   : > { %v18998_v36 = vld [vmem:[%s30244_s6 + $0x52c] sm:$0xf0] }
 0x228   : > { %v3653_v10 = vpop.f32.mrf.mxu2  ;;  %v3671_v38 = vpop.f32.mrf.mxu3  ;;  %6492 = vmatpush.bf16.msrb.mxu0 %v14377_v8 }
 0x229   : > { %v3654_v3 = vadd.f32 %v3653_v10, %v3636_v39  ;;  %v14936_v39 = vld [vmem:[%s30244_s6 + $0x4e0] sm:$0xf]  ;;  %v14921_v10 = vor.u32 %v18986_v29, %v14920_v20  ;;  %v18994_v20 = vld [vmem:[%s30244_s6 + $0x50c] sm:$0xf0] }
 0x22a   : > { %6510 = vmatpush.bf16.msrb.mxu1 %v14505_v14  ;;  %v3684_v40 = vpop.f32.mrf.mxu0  ;;  %v3702_v5 = vpop.f32.mrf.mxu1  ;;  %v14937_v45 = vor.u32 %v18990_v35, %v14936_v39  ;;  %v14968_v39 = vld [vmem:[%s30244_s6 + $0x520] sm:$0xf] }
 0x22b   : > { %v3672_v4 = vadd.f32 %v3671_v38, %v3654_v3  ;;  %v3685_v2 = vadd.f32 %v3684_v40, %v3667_v16  ;;  %v15049_v38 = vor.u32 %v19018_v50, %v15048_v12  ;;  %v19118_v12 = vld [vmem:[%s30244_s6 + $0x8ec] sm:$0xf0]  ;;  %v15576_v50 = vld [vmem:[%s30244_s6 + $0x9e0] sm:$0xf] }
 0x22c   : > { %6493 = vmatpush.bf16.msrb.mxu0 %v14361_v6  ;;  %v14905_v6 = vor.u32 %v18982_v9, %v14904_v52 }
 0x22d   : > { %v3703_v19 = vadd.f32 %v3702_v5, %v3685_v2  ;;  %3971 = vmatmul.bf16.vlgmr.msra.gmra.mxu0 %v21271_v53  ;;  %3989 = vmatmul.bf16.vlgmr.msra.gmra.mxu1 %v21275_v54  ;;  %v14456_v53 = vld [vmem:[%s30244_s6 + $0x120] sm:$0xf]  ;;  %v18870_v54 = vld [vmem:[%s30244_s6 + $0x12c] sm:$0xf0] }
 0x22e   : > { %6511 = vmatpush.bf16.msrb.mxu1 %v14489_v56  ;;  %v14457_v33 = vor.u32 %v18870_v54, %v14456_v53  ;;  %v19010_v2 = vld [vmem:[%s30244_s6 + $0x58c] sm:$0xf0] }
 0x22f   : > { %v18970_v54 = vld [vmem:[%s30244_s6 + $0x44c] sm:$0xf0] }
 0x230   : > { %v3655_v60 = vpop.f32.mrf.mxu2  ;;  %v3673_v11 = vpop.f32.mrf.mxu3  ;;  %6494 = vmatpush.bf16.msrb.mxu0 %v14345_v63  ;;  %v18974_v63 = vld [vmem:[%s30244_s6 + $0x46c] sm:$0xf0]  ;;  %v14857_v23 = vor.u32 %v18970_v54, %v14856_v46 }
 0x231   : > { %v19106_v54 = vld [vmem:[%s30244_s6 + $0x88c] sm:$0xf0] }
 0x232   : > { %v3686_v15 = vpop.f32.mrf.mxu0  ;;  %v3704_v16 = vpop.f32.mrf.mxu1  ;;  %6512 = vmatpush.bf16.msrb.mxu1 %v14473_v1  ;;  %v15000_v1 = vld [vmem:[%s30244_s6 + $0x560] sm:$0xf] }
 0x233   : > { %v3687_v42 = vadd.f32 %v3686_v15, %v3669_v47  ;;  %v15001_v11 = vor.u32 %v19006_v41, %v15000_v1  ;;  %v14984_v47 = vld [vmem:[%s30244_s6 + $0x540] sm:$0xf]  ;;  %v19002_v15 = vld [vmem:[%s30244_s6 + $0x54c] sm:$0xf0] }
 0x234   : > { %6495 = vmatpush.bf16.msrb.mxu0 %v14329_v17 }
 0x235   : > { %4007 = vmatmul.bf16.vlgmr.msra.gmra.mxu2 %v21325_v26  ;;  %4025 = vmatmul.bf16.vlgmr.msra.gmra.mxu3 %v21329_v27  ;;  %v23120_v43 = vadd.f32 %v3704_v16, %v3687_v42  ;;  %v14441_v26 = vor.u32 %v18866_v22, %v14440_v18  ;;  %v14985_v42 = vor.u32 %v19002_v15, %v14984_v47  ;;  %v14840_v18 = vld [vmem:[%s30244_s6 + $0x420] sm:$0xf]  ;;  %v18966_v22 = vld [vmem:[%s30244_s6 + $0x42c] sm:$0xf0] }
 0x236   : > { %6513 = vmatpush.bf16.msrb.mxu1 %v14457_v33  ;;  %v15528_v47 = vld [vmem:[%s30244_s6 + $0x980] sm:$0xf]  ;;  %v19138_v15 = vld [vmem:[%s30244_s6 + $0x98c] sm:$0xf0] }
 0x238   : > { %v3720_v44 = vpop.f32.mrf.mxu2  ;;  %v3738_v27 = vpop.f32.mrf.mxu3  ;;  %6496 = vmatpush.bf16.msrb.mxu0 %v14313_v55 }
 0x239   : > { %v3721_v28 = vadd.f32 %v3720_v44, %v3703_v19  ;;  %v14872_v19 = vld [vmem:[%s30244_s6 + $0x460] sm:$0xf]  ;;  %v14841_v44 = vor.u32 %v18966_v22, %v14840_v18 }
 0x23a   : > { %v3689_v8 = vpop.f32.mrf.mxu0  ;;  %v3707_v14 = vpop.f32.mrf.mxu1  ;;  %6514 = vmatpush.bf16.msrb.mxu1 %v14441_v26 }
 0x23b   : > { %v3739_v0 = vadd.f32 %v3738_v27, %v3721_v28  ;;  %v3690_v48 = vadd.f32 %v3689_v8, %v3672_v4  ;;  %v19014_v4 = vld [vmem:[%s30244_s6 + $0x5ac] sm:$0xf0]  ;;  %v14969_v27 = vor.u32 %v18998_v36, %v14968_v39  ;;  %v15448_v28 = vld [vmem:[%s30244_s6 + $0x8e0] sm:$0xf] }
 0x23c   : > { %6561 = vmatpush.bf16.msra.mxu0 %v14937_v45  ;;  %v15033_v56 = vor.u32 %v19014_v4, %v15032_v24  ;;  %v14824_v45 = vld [vmem:[%s30244_s6 + $0x400] sm:$0xf]  ;;  %v15449_v52 = vor.u32 %v19118_v12, %v15448_v28  ;;  %v19114_v4 = vld [vmem:[%s30244_s6 + $0x8cc] sm:$0xf0] }
 0x23d   : > { %v3708_v3 = vadd.f32 %v3707_v14, %v3690_v48  ;;  %3976 = vmatmul.bf16.gmra.mxu0 %v21200_v31  ;;  %3994 = vmatmul.bf16.gmra.mxu1 %v21203_v13  ;;  %v18978_v31 = vld [vmem:[%s30244_s6 + $0x48c] sm:$0xf0]  ;;  %v15016_v13 = vld [vmem:[%s30244_s6 + $0x580] sm:$0xf] }
 0x23e   : > { %6579 = vmatpush.bf16.msra.mxu1 %v15065_v59  ;;  %v14889_v51 = vor.u32 %v18978_v31, %v14888_v30  ;;  %v15017_v62 = vor.u32 %v19010_v2, %v15016_v13  ;;  %v14952_v59 = vld [vmem:[%s30244_s6 + $0x500] sm:$0xf]  ;;  %v19130_v28 = vld [vmem:[%s30244_s6 + $0x94c] sm:$0xf0] }
 0x23f   : > { %v15384_v39 = vld [vmem:[%s30244_s6 + $0x860] sm:$0xf] }
 0x240   : > { %v3722_v40 = vpop.f32.mrf.mxu2  ;;  %v3740_v5 = vpop.f32.mrf.mxu3  ;;  %6562 = vmatpush.bf16.msra.mxu0 %v14921_v10 }
 0x241   : > { %v3723_v35 = vadd.f32 %v3722_v40, %v23120_v43  ;;  %v18962_v43 = vld [vmem:[%s30244_s6 + $0x40c] sm:$0xf0]  ;;  %v15560_v40 = vld [vmem:[%s30244_s6 + $0x9c0] sm:$0xf] }
 0x242   : > { %6580 = vmatpush.bf16.msra.mxu1 %v15049_v38  ;;  %v3691_v32 = vpop.f32.mrf.mxu0  ;;  %v3709_v61 = vpop.f32.mrf.mxu1  ;;  %v14825_v10 = vor.u32 %v18962_v43, %v14824_v45  ;;  %v14953_v38 = vor.u32 %v18994_v20, %v14952_v59  ;;  %v15368_v43 = vld [vmem:[%s30244_s6 + $0x840] sm:$0xf]  ;;  %v19098_v59 = vld [vmem:[%s30244_s6 + $0x84c] sm:$0xf0] }
 0x243   : > { %v3741_v29 = vadd.f32 %v3740_v5, %v3723_v35  ;;  %v19146_v5 = vld [vmem:[%s30244_s6 + $0x9cc] sm:$0xf0]  ;;  %v15496_v20 = vld [vmem:[%s30244_s6 + $0x940] sm:$0xf] }
 0x244   : > { %6563 = vmatpush.bf16.msra.mxu0 %v14905_v6  ;;  %v4067_v6 = vunpack.c.l.b16 %v22935_v7  ;;  %v15561_v32 = vor.u32 %v19146_v5, %v15560_v40  ;;  %v19102_v35 = vld [vmem:[%s30244_s6 + $0x86c] sm:$0xf0] }
 0x245   : > { %4012 = vmatmul.bf16.gmra.mxu2 %v21278_v57  ;;  %4030 = vmatmul.bf16.gmra.mxu3 %v21281_v58  ;;  %v14873_v58 = vor.u32 %v18974_v63, %v14872_v19  ;;  %v15416_v19 = vld [vmem:[%s30244_s6 + $0x8a0] sm:$0xf] }
 0x246   : > { %6581 = vmatpush.bf16.msra.mxu1 %v15033_v56  ;;  %v4068_v56 = vunpack.c.h.b16 %v22935_v7  ;;  %v19110_v7 = vld [vmem:[%s30244_s6 + $0x8ac] sm:$0xf0]  ;;  %v15544_v63 = vld [vmem:[%s30244_s6 + $0x9a0] sm:$0xf]  ;;  %v23254_v1 = vpack.c.b16 %v4067_v6, %v4067_v6 }
 0x247   : > { %v15352_v6 = vld [vmem:[%s30244_s6 + $0x820] sm:$0xf] }
 0x248   : > { %v3725_v60 = vpop.f32.mrf.mxu2  ;;  %v3743_v57 = vpop.f32.mrf.mxu3  ;;  %6564 = vmatpush.bf16.msra.mxu0 %v14889_v51  ;;  %v23256_v41 = vpack.c.b16 %v4068_v56, %v4068_v56  ;;  %v4095_v36 = vshll.u32 %v23254_v1, 16  ;;  %v19094_v56 = vld [vmem:[%s30244_s6 + $0x82c] sm:$0xf0] }
 0x249   : > { %v3726_v53 = vadd.f32 %v3725_v60, %v3708_v3  ;;  %v15432_v3 = vld [vmem:[%s30244_s6 + $0x8c0] sm:$0xf] }
 0x24a   : > { %6582 = vmatpush.bf16.msra.mxu1 %v15017_v62  ;;  %v3756_v17 = vpop.f32.mrf.mxu0  ;;  %v3774_v33 = vpop.f32.mrf.mxu1  ;;  %v15433_v2 = vor.u32 %v19114_v4, %v15432_v3 }
 0x24b   : > { %v23186_v16 = vadd.f32 %v3743_v57, %v3726_v53  ;;  %v3757_v34 = vadd.f32 %v3756_v17, %v3739_v0  ;;  %v19150_v0 = vld [vmem:[%s30244_s6 + $0x9ec] sm:$0xf0]  ;;  %v15400_v53 = vld [vmem:[%s30244_s6 + $0x880] sm:$0xf] }
 0x24c   : > { %6565 = vmatpush.bf16.msra.mxu0 %v14873_v58  ;;  %v15577_v9 = vor.u32 %v19150_v0, %v15576_v50  ;;  %v19142_v57 = vld [vmem:[%s30244_s6 + $0x9ac] sm:$0xf0]  ;;  %v15417_v58 = vor.u32 %v19110_v7, %v15416_v19  ;;  %v23309_v0 = vperm.slane %v22884_v25, 3  ;;  %v15336_v7 = vld [vmem:[%s30244_s6 + $0x800] sm:$0xf] }
 0x24d   : > { %v3775_v37 = vadd.f32 %v3774_v33, %v3757_v34  ;;  %6497 = vmatmul.bf16.vlgmr.msrb.gmra.mxu0 %v22903_v21  ;;  %6515 = vmatmul.bf16.vlgmr.msrb.gmra.mxu1 %v22905_v49  ;;  %v4090_v33 = vshll.u32 %v22903_v21, 16  ;;  %v15401_v34 = vor.u32 %v19106_v54, %v15400_v53  ;;  %v14426_v53 = vld [vmem:[%s30244_s6 + $0xf0] sm:$0xf0]  ;;  %v18892_v54 = vld [vmem:[%s30244_s6 + $0x1e4] sm:$0xf] }
 0x24e   : > { %6583 = vmatpush.bf16.msra.mxu1 %v15001_v11  ;;  %v15545_v11 = vor.u32 %v19142_v57, %v15544_v63  ;;  %v19090_v63 = vld [vmem:[%s30244_s6 + $0x80c] sm:$0xf0] }
 0x24f   : > { %v19122_v57 = vld [vmem:[%s30244_s6 + $0x90c] sm:$0xf0] }
 0x250   : > { %v3727_v55 = vpop.f32.mrf.mxu2  ;;  %v3745_v26 = vpop.f32.mrf.mxu3  ;;  %6566 = vmatpush.bf16.msra.mxu0 %v14857_v23  ;;  %v15529_v23 = vor.u32 %v19138_v15, %v15528_v47  ;;  %v15337_v47 = vor.u32 %v19090_v63, %v15336_v7  ;;  %v14490_v63 = vld [vmem:[%s30244_s6 + $0x170] sm:$0xf0] }
 0x251   : > { %v19134_v55 = vld [vmem:[%s30244_s6 + $0x96c] sm:$0xf0]  ;;  %v4092_v26 = vrot.slane %v4090_v33, 1  ;;  %v14554_v33 = vld [vmem:[%s30244_s6 + $0x1f0] sm:$0xf0] }
 0x252   : > { %6584 = vmatpush.bf16.msra.mxu1 %v14985_v42  ;;  %v3758_v8 = vpop.f32.mrf.mxu0  ;;  %v3776_v14 = vpop.f32.mrf.mxu1  ;;  %v4102_v42 = vshll.u32 %v22905_v49, 16 }
 0x253   : > { %v3759_v48 = vadd.f32 %v3758_v8, %v3741_v29  ;;  %v4088_v8 = vshrl.u32 %v22903_v21, 16 }
 0x254   : > { %6567 = vmatpush.bf16.msra.mxu0 %v14841_v44  ;;  %v4107_v44 = vshll.u32 %v23256_v41, 16  ;;  %v4104_v29 = vrot.slane %v4102_v42, 1 }
 0x255   : > { %v23227_v24 = vadd.f32 %v3776_v14, %v3759_v48  ;;  %v23312_v14 = vrot.slane %v4095_v36, 1  ;;  %v4100_v48 = vshrl.u32 %v22905_v49, 16  ;;  %v4093_v3 = vor.u32 %v4092_v26, %v4088_v8  ;;  %v14538_v36 = vld [vmem:[%s30244_s6 + $0x1d0] sm:$0xf0] }
 0x256   : > { %6585 = vmatpush.bf16.msra.mxu1 %v14969_v27  ;;  %v15385_v27 = vor.u32 %v19102_v35, %v15384_v39  ;;  %v14410_v39 = vld [vmem:[%s30244_s6 + $0xd0] sm:$0xf0]  ;;  %v18888_v35 = vld [vmem:[%s30244_s6 + $0x1c4] sm:$0xf] }
 0x257   : > { %v4105_v25 = vor.u32 %v4104_v29, %v4100_v48  ;;  %v18884_v29 = vld [vmem:[%s30244_s6 + $0x1a4] sm:$0xf] }
 0x258   : > { %v3792_v30 = vpop.f32.mrf.mxu2  ;;  %v3810_v31 = vpop.f32.mrf.mxu3  ;;  %6568 = vmatpush.bf16.msra.mxu0 %v14825_v10 }
 0x259   : > { %v3793_v13 = vadd.f32 %v3792_v30, %v3775_v37  ;;  %v15512_v37 = vld [vmem:[%s30244_s6 + $0x960] sm:$0xf] }
 0x25a   : > { %6586 = vmatpush.bf16.msra.mxu1 %v14953_v38  ;;  %v3761_v51 = vpop.f32.mrf.mxu0  ;;  %v3779_v62 = vpop.f32.mrf.mxu1  ;;  %v15513_v45 = vor.u32 %v19134_v55, %v15512_v37  ;;  %v23315_v38 = vrot.slane %v4107_v44, 1  ;;  %v15480_v30 = vld [vmem:[%s30244_s6 + $0x920] sm:$0xf]  ;;  %v14541_v44 = vor.u32 %v18888_v35, %v14538_v36  ;;  %v14330_v36 = vld [vmem:[%s30244_s6 + $0x30] sm:$0xf0] }
 0x25b   : > { %v23243_v61 = vadd.f32 %v3810_v31, %v3793_v13  ;;  %v3762_v60 = vadd.f32 %v3761_v51, %v23186_v16  ;;  %v23331_v13 = vsel %vm767_vm0, %v4093_v3, %v23312_v14  ;;  %v15353_v51 = vor.u32 %v19094_v56, %v15352_v6  ;;  %v18880_v3 = vld [vmem:[%s30244_s6 + $0x184] sm:$0xf] }
 0x25c   : > { %6633 = vmatpush.bf16.msrb.mxu0 %v15449_v52  ;;  %v15369_v52 = vor.u32 %v19098_v59, %v15368_v43 }
 0x25d   : > { %v3780_v46 = vadd.f32 %v3779_v62, %v3762_v60  ;;  %6502 = vmatmul.bf16.gmra.mxu0 %v23254_v1  ;;  %6520 = vmatmul.bf16.gmra.mxu1 %v23256_v41  ;;  %v15464_v60 = vld [vmem:[%s30244_s6 + $0x900] sm:$0xf] }
 0x25e   : > { %6651 = vmatpush.bf16.msrb.mxu1 %v15577_v9  ;;  %v15497_v9 = vor.u32 %v19130_v28, %v15496_v20  ;;  %v15465_v15 = vor.u32 %v19122_v57, %v15464_v60  ;;  %v18852_v20 = vld [vmem:[%s30244_s6 + $0xa4] sm:$0xf]  ;;  %v14394_v28 = vld [vmem:[%s30244_s6 + $0xb0] sm:$0xf0] }
 0x25f   : > { %v14397_v48 = vor.u32 %v18852_v20, %v14394_v28  ;;  %v18840_v60 = vld [vmem:[%s30244_s6 + $0x44] sm:$0xf]  ;;  %v14346_v57 = vld [vmem:[%s30244_s6 + $0x50] sm:$0xf0] }
 0x260   : > { %6634 = vmatpush.bf16.msrb.mxu0 %v15433_v2  ;;  %v23276_v16 = vpop.f32.mrf.mxu2  ;;  %v23278_v17 = vpop.f32.mrf.mxu3  ;;  %v19126_v2 = vld [vmem:[%s30244_s6 + $0x92c] sm:$0xf0]  ;;  %v18832_v28 = vld [vmem:[%s30244_s6 + $0x4] sm:$0xf] }
 0x261   : > { %v15481_v62 = vor.u32 %v19126_v2, %v15480_v30  ;;  %v18844_v2 = vld [vmem:[%s30244_s6 + $0x64] sm:$0xf] }
 0x262   : > { %6652 = vmatpush.bf16.msrb.mxu1 %v15561_v32  ;;  %v3763_v18 = vpop.f32.mrf.mxu0  ;;  %v3781_v22 = vpop.f32.mrf.mxu1  ;;  %v23338_v32 = vsel %vm767_vm0, %v4105_v25, %v23315_v38 }
 0x263   : > { %v18856_v22 = vld [vmem:[%s30244_s6 + $0xc4] sm:$0xf] }
 0x264   : > { %6635 = vmatpush.bf16.msrb.mxu0 %v15417_v58  ;;  %v14413_v37 = vor.u32 %v18856_v22, %v14410_v39  ;;  %v4158_v22 = vrot.slane %v22905_v49, 1 }
 0x266   : > { %6653 = vmatpush.bf16.msrb.mxu1 %v15545_v11 }
 0x268   : > { %6636 = vmatpush.bf16.msrb.mxu0 %v15401_v34  ;;  %v3797_v12 = vpop.f32.mrf.mxu2  ;;  %v3815_v50 = vpop.f32.mrf.mxu3 }
 0x269   : > { %v3798_v10 = vadd.f32 %v3797_v12, %v3780_v46  ;;  %v18860_v46 = vld [vmem:[%s30244_s6 + $0xe4] sm:$0xf] }
 0x26a   : > { %6654 = vmatpush.bf16.msrb.mxu1 %v15529_v23  ;;  %v3828_v40 = vpop.f32.mrf.mxu0  ;;  %v3846_v5 = vpop.f32.mrf.mxu1  ;;  %v14429_v34 = vor.u32 %v18860_v46, %v14426_v53  ;;  %v14557_v23 = vor.u32 %v18892_v54, %v14554_v33  ;;  %v14474_v46 = vld [vmem:[%s30244_s6 + $0x150] sm:$0xf0]  ;;  %v14349_v53 = vor.u32 %v18840_v60, %v14346_v57  ;;  %v23458_v33 = vrot.slane %v23254_v1, 1  ;;  %v14664_v57 = vld [vmem:[%s30244_s6 + $0x2c0] sm:$0xf] }
 0x26b   : > { %v23317_v4 = vadd.f32 %v3815_v50, %v3798_v10  ;;  %v3829_v31 = vadd.f32 %v3828_v40, %v23309_v0  ;;  %v14522_v10 = vld [vmem:[%s30244_s6 + $0x1b0] sm:$0xf0] }
 0x26c   : > { %6637 = vmatpush.bf16.msrb.mxu0 %v15385_v27  ;;  %v4135_v27 = vshrl.u32 %v23254_v1, 16 }
 0x26d   : > { %v23340_v19 = vadd.f32 %v3846_v5, %v3829_v31  ;;  %6569 = vmatmul.bf16.vlgmr.msra.gmra.mxu0 %v23331_v13  ;;  %6587 = vmatmul.bf16.vlgmr.msra.gmra.mxu1 %v23338_v32  ;;  %v14506_v5 = vld [vmem:[%s30244_s6 + $0x190] sm:$0xf0] }
 0x26e   : > { %6655 = vmatpush.bf16.msrb.mxu1 %v15513_v45  ;;  %v4138_v45 = vshrl.u32 %v23256_v41, 16  ;;  %v23401_v50 = vor.u32 %v4135_v27, %v23312_v14  ;;  %v18848_v14 = vld [vmem:[%s30244_s6 + $0x84] sm:$0xf]  ;;  %v14509_v56 = vor.u32 %v18880_v3, %v14506_v5 }
 0x270   : > { %6638 = vmatpush.bf16.msrb.mxu0 %v15369_v52  ;;  %v3799_v58 = vpop.f32.mrf.mxu2  ;;  %v3817_v11 = vpop.f32.mrf.mxu3  ;;  %v23404_v8 = vor.u32 %v4138_v45, %v23315_v38  ;;  %v14525_v52 = vor.u32 %v18884_v29, %v14522_v10  ;;  %v14378_v38 = vld [vmem:[%s30244_s6 + $0x90] sm:$0xf0] }
 0x271   : > { %v14381_v40 = vor.u32 %v18848_v14, %v14378_v38  ;;  %v18872_v11 = vld [vmem:[%s30244_s6 + $0x144] sm:$0xf]  ;;  %v14458_v45 = vld [vmem:[%s30244_s6 + $0x130] sm:$0xf0]  ;;  %v18926_v14 = vld [vmem:[%s30244_s6 + $0x2ec] sm:$0xf0] }
 0x272   : > { %6656 = vmatpush.bf16.msrb.mxu1 %v15497_v9  ;;  %v23368_v42 = vpop.f32.mrf.mxu0  ;;  %v23370_v18 = vpop.f32.mrf.mxu1  ;;  %v14477_v54 = vor.u32 %v18872_v11, %v14474_v46  ;;  %v14314_v29 = vld [vmem:[%s30244_s6 + $0x10] sm:$0xf0]  ;;  %v14792_v11 = vld [vmem:[%s30244_s6 + $0x3c0] sm:$0xf] }
 0x273   : > { %v14442_v10 = vld [vmem:[%s30244_s6 + $0x110] sm:$0xf0] }
 0x274   : > { %6639 = vmatpush.bf16.msrb.mxu0 %v15353_v51  ;;  %v14362_v51 = vld [vmem:[%s30244_s6 + $0x70] sm:$0xf0] }
 0x275   : > { %v14365_v7 = vor.u32 %v18844_v2, %v14362_v51  ;;  %v14938_v51 = vld [vmem:[%s30244_s6 + $0x4f0] sm:$0xf0] }
 0x276   : > { %6657 = vmatpush.bf16.msrb.mxu1 %v15481_v62  ;;  %v18876_v62 = vld [vmem:[%s30244_s6 + $0x164] sm:$0xf] }
 0x277   : > { %v14493_v58 = vor.u32 %v18876_v62, %v14490_v63  ;;  %v19020_v62 = vld [vmem:[%s30244_s6 + $0x5e4] sm:$0xf] }
 0x278   : > { %6640 = vmatpush.bf16.msrb.mxu0 %v15337_v47  ;;  %v23384_v55 = vpop.f32.mrf.mxu2  ;;  %v23386_v26 = vpop.f32.mrf.mxu3 }
 0x27a   : > { %6658 = vmatpush.bf16.msrb.mxu1 %v15465_v15  ;;  %v3833_v43 = vpop.f32.mrf.mxu0  ;;  %v3851_v59 = vpop.f32.mrf.mxu1 }
 0x27b   : > { %v3834_v12 = vadd.f32 %v3833_v43, %v23309_v0 }
 0x27c   : > { %6705 = vmatpush.bf16.msra.mxu0 %v14429_v34  ;;  %v23461_v34 = vrot.slane %v23256_v41, 1 }
 0x27d   : > { %v23409_v9 = vadd.f32 %v3851_v59, %v3834_v12  ;;  %6574 = vmatmul.bf16.gmra.mxu0 %v23401_v50  ;;  %6592 = vmatmul.bf16.gmra.mxu1 %v23404_v8  ;;  %v18864_v12 = vld [vmem:[%s30244_s6 + $0x104] sm:$0xf] }
 0x27e   : > { %6723 = vmatpush.bf16.msra.mxu1 %v14557_v23  ;;  %v4155_v23 = vrot.slane %v22903_v21, 1  ;;  %v23487_v59 = vsel %vm836_vm1, %v4158_v22, %v23461_v34 }
 0x280   : > { %6706 = vmatpush.bf16.msra.mxu0 %v14413_v37  ;;  %v23425_v25 = vpop.f32.mrf.mxu2  ;;  %v23427_v6 = vpop.f32.mrf.mxu3  ;;  %v18836_v37 = vld [vmem:[%s30244_s6 + $0x24] sm:$0xf]  ;;  %v23483_v43 = vsel %vm836_vm1, %v4155_v23, %v23458_v33  ;;  %v18954_v23 = vld [vmem:[%s30244_s6 + $0x3cc] sm:$0xf0] }
 0x281   : > { %v14333_v27 = vor.u32 %v18836_v37, %v14330_v36  ;;  %v14793_v22 = vor.u32 %v18954_v23, %v14792_v11  ;;  %v18984_v37 = vld [vmem:[%s30244_s6 + $0x4c4] sm:$0xf]  ;;  %v14922_v36 = vld [vmem:[%s30244_s6 + $0x4d0] sm:$0xf0]  ;;  %v18946_v23 = vld [vmem:[%s30244_s6 + $0x38c] sm:$0xf0] }
 0x282   : > { %6724 = vmatpush.bf16.msra.mxu1 %v14541_v44  ;;  %v3835_v30 = vpop.f32.mrf.mxu0  ;;  %v3853_v31 = vpop.f32.mrf.mxu1  ;;  %v18868_v44 = vld [vmem:[%s30244_s6 + $0x124] sm:$0xf] }
 0x283   : > { %v14461_v20 = vor.u32 %v18868_v44, %v14458_v45  ;;  %v18958_v30 = vld [vmem:[%s30244_s6 + $0x3ec] sm:$0xf0]  ;;  %v18988_v31 = vld [vmem:[%s30244_s6 + $0x4e4] sm:$0xf]  ;;  %v15050_v45 = vld [vmem:[%s30244_s6 + $0x5d0] sm:$0xf0] }
 0x284   : > { %6707 = vmatpush.bf16.msra.mxu0 %v14397_v48  ;;  %v14317_v48 = vor.u32 %v18832_v28, %v14314_v29  ;;  %v14941_v63 = vor.u32 %v18988_v31, %v14938_v51  ;;  %v19016_v44 = vld [vmem:[%s30244_s6 + $0x5c4] sm:$0xf]  ;;  %v18918_v28 = vld [vmem:[%s30244_s6 + $0x2ac] sm:$0xf0] }
 0x285   : > { %v18980_v31 = vld [vmem:[%s30244_s6 + $0x4a4] sm:$0xf] }
 0x286   : > { %6725 = vmatpush.bf16.msra.mxu1 %v14525_v52  ;;  %v14680_v52 = vld [vmem:[%s30244_s6 + $0x2e0] sm:$0xf]  ;;  %v19012_v51 = vld [vmem:[%s30244_s6 + $0x5a4] sm:$0xf] }
 0x287   : > { %v14681_v5 = vor.u32 %v18926_v14, %v14680_v52  ;;  %v14776_v52 = vld [vmem:[%s30244_s6 + $0x3a0] sm:$0xf]  ;;  %v18950_v14 = vld [vmem:[%s30244_s6 + $0x3ac] sm:$0xf0] }
 0x288   : > { %6708 = vmatpush.bf16.msra.mxu0 %v14381_v40  ;;  %v23453_v47 = vpop.f32.mrf.mxu2  ;;  %v23455_v15 = vpop.f32.mrf.mxu3  ;;  %v14445_v40 = vor.u32 %v18864_v12, %v14442_v10 }
 0x289   : > { %6525 = vmatpush.bf16.msrb.mxu2 %v14681_v5 }
 0x28a   : > { %6726 = vmatpush.bf16.msra.mxu1 %v14509_v56  ;;  %v23465_v39 = vpop.f32.mrf.mxu0  ;;  %v23467_v35 = vpop.f32.mrf.mxu1  ;;  %v14808_v56 = vld [vmem:[%s30244_s6 + $0x3e0] sm:$0xf] }
 0x28b   : > { %v14809_v2 = vor.u32 %v18958_v30, %v14808_v56  ;;  %v3865_v30 = vadd.f32 %v23384_v55, %v23340_v19  ;;  %v14632_v19 = vld [vmem:[%s30244_s6 + $0x280] sm:$0xf]  ;;  %v18914_v55 = vld [vmem:[%s30244_s6 + $0x28c] sm:$0xf0] }
 0x28c   : > { %6709 = vmatpush.bf16.msra.mxu0 %v14365_v7  ;;  %v15066_v7 = vld [vmem:[%s30244_s6 + $0x5f0] sm:$0xf0]  ;;  %v14633_v11 = vor.u32 %v18914_v55, %v14632_v19  ;;  %v14600_v55 = vld [vmem:[%s30244_s6 + $0x240] sm:$0xf] }
 0x28d   : > { %6641 = vmatmul.bf16.vlgmr.msrb.gmra.mxu0 %v23483_v43  ;;  %6659 = vmatmul.bf16.vlgmr.msrb.gmra.mxu1 %v23487_v59  ;;  %v15069_v60 = vor.u32 %v19020_v62, %v15066_v7  ;;  %v15034_v7 = vld [vmem:[%s30244_s6 + $0x5b0] sm:$0xf0] }
 0x28e   : > { %6727 = vmatpush.bf16.msra.mxu1 %v14493_v58  ;;  %v18922_v58 = vld [vmem:[%s30244_s6 + $0x2cc] sm:$0xf0]  ;;  %6543 = vmatpush.bf16.msrb.mxu3 %v14809_v2  ;;  %v14906_v2 = vld [vmem:[%s30244_s6 + $0x4b0] sm:$0xf0] }
 0x28f   : > { %v14909_v62 = vor.u32 %v18980_v31, %v14906_v2 }
 0x290   : > { %6710 = vmatpush.bf16.msra.mxu0 %v14349_v53  ;;  %v3871_v38 = vpop.f32.mrf.mxu2  ;;  %v3889_v3 = vpop.f32.mrf.mxu3 }
 0x291   : > { %v14777_v38 = vor.u32 %v18950_v14, %v14776_v52 }
 0x292   : > { %6728 = vmatpush.bf16.msra.mxu1 %v14477_v54  ;;  %v23536_v46 = vpop.f32.mrf.mxu0  ;;  %v23538_v53 = vpop.f32.mrf.mxu1  ;;  %v14665_v54 = vor.u32 %v18922_v58, %v14664_v57  ;;  %6544 = vmatpush.bf16.msrb.mxu3 %v14793_v22  ;;  %v15037_v58 = vor.u32 %v19012_v51, %v15034_v7  ;;  %v18976_v22 = vld [vmem:[%s30244_s6 + $0x484] sm:$0xf] }
 0x294   : > { %6711 = vmatpush.bf16.msra.mxu0 %v14333_v27  ;;  %6526 = vmatpush.bf16.msrb.mxu2 %v14665_v54  ;;  %v14925_v27 = vor.u32 %v18984_v37, %v14922_v36  ;;  %v14760_v54 = vld [vmem:[%s30244_s6 + $0x380] sm:$0xf]  ;;  %v15018_v36 = vld [vmem:[%s30244_s6 + $0x590] sm:$0xf0] }
 0x295   : > { %v14761_v37 = vor.u32 %v18946_v23, %v14760_v54  ;;  %v14728_v54 = vld [vmem:[%s30244_s6 + $0x340] sm:$0xf]  ;;  %v18938_v23 = vld [vmem:[%s30244_s6 + $0x34c] sm:$0xf0] }
 0x296   : > { %6729 = vmatpush.bf16.msra.mxu1 %v14461_v20  ;;  %v14648_v20 = vld [vmem:[%s30244_s6 + $0x2a0] sm:$0xf]  ;;  %6545 = vmatpush.bf16.msrb.mxu3 %v14777_v38 }
 0x297   : > { %v14649_v10 = vor.u32 %v18918_v28, %v14648_v20  ;;  %v14616_v20 = vld [vmem:[%s30244_s6 + $0x260] sm:$0xf]  ;;  %v18910_v28 = vld [vmem:[%s30244_s6 + $0x26c] sm:$0xf0] }
 0x298   : > { %6712 = vmatpush.bf16.msra.mxu0 %v14317_v48  ;;  %v23561_v29 = vpop.f32.mrf.mxu2  ;;  %v23563_v12 = vpop.f32.mrf.mxu3  ;;  %v15053_v48 = vor.u32 %v19016_v44, %v15050_v45  ;;  %v3883_v44 = vadd.f32 %v23386_v26, %v3865_v30  ;;  %v18942_v26 = vld [vmem:[%s30244_s6 + $0x36c] sm:$0xf0] }
 0x299   : > { %6527 = vmatpush.bf16.msrb.mxu2 %v14649_v10  ;;  %v14617_v10 = vor.u32 %v18910_v28, %v14616_v20  ;;  %v14712_v20 = vld [vmem:[%s30244_s6 + $0x320] sm:$0xf]  ;;  %v3870_v28 = vadd.f32 %v23453_v47, %v23409_v9  ;;  %v18964_v9 = vld [vmem:[%s30244_s6 + $0x424] sm:$0xf]  ;;  %v14842_v47 = vld [vmem:[%s30244_s6 + $0x430] sm:$0xf0] }
 0x29a   : > { %6730 = vmatpush.bf16.msra.mxu1 %v14445_v40  ;;  %v23571_v3 = vpop.f32.mrf.mxu0  ;;  %v23573_v40 = vpop.f32.mrf.mxu1  ;;  %6546 = vmatpush.bf16.msrb.mxu3 %v14761_v37  ;;  %v3901_v14 = vadd.f32 %v23465_v39, %v3883_v44  ;;  %v14874_v39 = vld [vmem:[%s30244_s6 + $0x470] sm:$0xf0]  ;;  %v19000_v37 = vld [vmem:[%s30244_s6 + $0x544] sm:$0xf] }
 0x29c   : > { %6777 = vmatpush.bf16.msrb.mxu0 %v14941_v63  ;;  %v3831_v63 = vadd.f32 %v23368_v42, %v23309_v0  ;;  %v14890_v0 = vld [vmem:[%s30244_s6 + $0x490] sm:$0xf0]  ;;  %v19008_v42 = vld [vmem:[%s30244_s6 + $0x584] sm:$0xf]  ;;  %v3919_v51 = vadd.f32 %v23467_v35, %v3901_v14 }
 0x29d   : > { %6646 = vmatmul.bf16.gmra.mxu0 %v23458_v33  ;;  %6664 = vmatmul.bf16.gmra.mxu1 %v23461_v34  ;;  %v15021_v45 = vor.u32 %v19008_v42, %v15018_v36  ;;  %v15002_v35 = vld [vmem:[%s30244_s6 + $0x570] sm:$0xf0] }
 0x29e   : > { %6795 = vmatpush.bf16.msrb.mxu1 %v15069_v60  ;;  %6528 = vmatpush.bf16.msrb.mxu2 %v14633_v11  ;;  %v3849_v52 = vadd.f32 %v23370_v18, %v3831_v63  ;;  %v18972_v18 = vld [vmem:[%s30244_s6 + $0x464] sm:$0xf]  ;;  %v18906_v63 = vld [vmem:[%s30244_s6 + $0x24c] sm:$0xf0] }
 0x29f   : > { %v14877_v19 = vor.u32 %v18972_v18, %v14874_v39  ;;  %v14601_v11 = vor.u32 %v18906_v63, %v14600_v55  ;;  %v14970_v39 = vld [vmem:[%s30244_s6 + $0x530] sm:$0xf0] }
 0x2a0   : > { %6778 = vmatpush.bf16.msrb.mxu0 %v14925_v27  ;;  %v23577_v5 = vpop.f32.mrf.mxu2  ;;  %v23579_v56 = vpop.f32.mrf.mxu3  ;;  %v14893_v27 = vor.u32 %v18976_v22, %v14890_v0  ;;  %v3867_v2 = vadd.f32 %v23425_v25, %v3849_v52  ;;  %v19004_v25 = vld [vmem:[%s30244_s6 + $0x564] sm:$0xf]  ;;  %v14986_v0 = vld [vmem:[%s30244_s6 + $0x550] sm:$0xf0] }
 0x2a1   : > { %v18968_v22 = vld [vmem:[%s30244_s6 + $0x444] sm:$0xf]  ;;  %v14989_v44 = vor.u32 %v19000_v37, %v14986_v0  ;;  %v19054_v0 = vld [vmem:[%s30244_s6 + $0x6ec] sm:$0xf0] }
 0x2a2   : > { %6796 = vmatpush.bf16.msrb.mxu1 %v15053_v48  ;;  %v3907_v60 = vpop.f32.mrf.mxu0  ;;  %v3925_v57 = vpop.f32.mrf.mxu1  ;;  %v14744_v48 = vld [vmem:[%s30244_s6 + $0x360] sm:$0xf]  ;;  %6529 = vmatpush.bf16.msrb.mxu2 %v14617_v10 }
 0x2a3   : > { %v14745_v38 = vor.u32 %v18942_v26, %v14744_v48  ;;  %v3885_v60 = vadd.f32 %v23427_v6, %v3867_v2  ;;  %v3937_v57 = vadd.f32 %v23561_v29, %v3919_v51  ;;  %v14729_v6 = vor.u32 %v18938_v23, %v14728_v54  ;;  %v14858_v29 = vld [vmem:[%s30244_s6 + $0x450] sm:$0xf0]  ;;  %v18934_v26 = vld [vmem:[%s30244_s6 + $0x32c] sm:$0xf0] }
 0x2a4   : > { %6779 = vmatpush.bf16.msrb.mxu0 %v14909_v62  ;;  %v14861_v36 = vor.u32 %v18968_v22, %v14858_v29  ;;  %v14713_v14 = vor.u32 %v18934_v26, %v14712_v20  ;;  %v18992_v22 = vld [vmem:[%s30244_s6 + $0x504] sm:$0xf] }
 0x2a5   : > { %6547 = vmatpush.bf16.msrb.mxu3 %v14745_v38  ;;  %v3903_v42 = vadd.f32 %v23536_v46, %v3885_v60  ;;  %v3955_v52 = vadd.f32 %v23563_v12, %v3937_v57  ;;  %v18996_v12 = vld [vmem:[%s30244_s6 + $0x524] sm:$0xf]  ;;  %v18930_v60 = vld [vmem:[%s30244_s6 + $0x30c] sm:$0xf0] }
 0x2a6   : > { %6797 = vmatpush.bf16.msrb.mxu1 %v15037_v58  ;;  %v15005_v58 = vor.u32 %v19004_v25, %v15002_v35  ;;  %6530 = vmatpush.bf16.msrb.mxu2 %v14601_v11  ;;  %v14568_v25 = vld [vmem:[%s30244_s6 + $0x200] sm:$0xf]  ;;  %v14973_v55 = vor.u32 %v18996_v12, %v14970_v39  ;;  %v18960_v11 = vld [vmem:[%s30244_s6 + $0x404] sm:$0xf] }
 0x2a7   : > { %v3921_v38 = vadd.f32 %v23538_v53, %v3903_v42  ;;  %v3888_v53 = vadd.f32 %v23455_v15, %v3870_v28  ;;  %v14696_v15 = vld [vmem:[%s30244_s6 + $0x300] sm:$0xf]  ;;  %v19116_v28 = vld [vmem:[%s30244_s6 + $0x8e4] sm:$0xf] }
 0x2a8   : > { %v23636_v30 = vpop.f32.mrf.mxu2  ;;  %v23638_v31 = vpop.f32.mrf.mxu3  ;;  %6780 = vmatpush.bf16.msrb.mxu0 %v14893_v27  ;;  %v14584_v27 = vld [vmem:[%s30244_s6 + $0x220] sm:$0xf] }
 0x2a9   : > { %6548 = vmatpush.bf16.msrb.mxu3 %v14729_v6  ;;  %v3939_v35 = vadd.f32 %v23577_v5, %v3921_v38  ;;  %v3906_v57 = vadd.f32 %v23571_v3, %v3888_v53  ;;  %v14826_v5 = vld [vmem:[%s30244_s6 + $0x410] sm:$0xf0]  ;;  %v15192_v6 = vld [vmem:[%s30244_s6 + $0x6e0] sm:$0xf]  ;;  %v19050_v38 = vld [vmem:[%s30244_s6 + $0x6cc] sm:$0xf0] }
 0x2aa   : > { %6798 = vmatpush.bf16.msrb.mxu1 %v15021_v45  ;;  %v3972_v62 = vpop.f32.mrf.mxu0  ;;  %v23642_v7 = vpop.f32.mrf.mxu1  ;;  %v18902_v45 = vld [vmem:[%s30244_s6 + $0x22c] sm:$0xf0]  ;;  %v14829_v23 = vor.u32 %v18960_v11, %v14826_v5  ;;  %v14954_v3 = vld [vmem:[%s30244_s6 + $0x510] sm:$0xf0]  ;;  %v15320_v42 = vld [vmem:[%s30244_s6 + $0x7e0] sm:$0xf] }
 0x2ab   : > { %v14585_v10 = vor.u32 %v18902_v45, %v14584_v27  ;;  %v3973_v2 = vadd.f32 %v3972_v62, %v3955_v52  ;;  %v14845_v62 = vor.u32 %v18964_v9, %v14842_v47  ;;  %v15193_v45 = vor.u32 %v19054_v0, %v15192_v6  ;;  %v15578_v52 = vld [vmem:[%s30244_s6 + $0x9f0] sm:$0xf0]  ;;  %v19112_v53 = vld [vmem:[%s30244_s6 + $0x8c4] sm:$0xf]  ;;  %v15144_v0 = vld [vmem:[%s30244_s6 + $0x680] sm:$0xf] }
 0x2ac   : > { %6781 = vmatpush.bf16.msrb.mxu0 %v14877_v19  ;;  %v18898_v19 = vld [vmem:[%s30244_s6 + $0x20c] sm:$0xf0]  ;;  %v19108_v11 = vld [vmem:[%s30244_s6 + $0x8a4] sm:$0xf]  ;;  %v15546_v6 = vld [vmem:[%s30244_s6 + $0x9b0] sm:$0xf0] }
 0x2ad   : > { %6713 = vmatmul.bf16.vlgmr.msra.gmra.mxu0 %v22903_v21  ;;  %6731 = vmatmul.bf16.vlgmr.msra.gmra.mxu1 %v22905_v49  ;;  %v14569_v63 = vor.u32 %v18898_v19, %v14568_v25  ;;  %v3991_v54 = vadd.f32 %v23642_v7, %v3973_v2  ;;  %v14957_v7 = vor.u32 %v18992_v22, %v14954_v3  ;;  %v15434_v25 = vld [vmem:[%s30244_s6 + $0x8d0] sm:$0xf0]  ;;  %v19144_v19 = vld [vmem:[%s30244_s6 + $0x9c4] sm:$0xf] }
 0x2ae   : > { %6799 = vmatpush.bf16.msrb.mxu1 %v15005_v58  ;;  %6531 = vmatpush.bf16.msrb.mxu2 %v14585_v10  ;;  %v14697_v58 = vor.u32 %v18930_v60, %v14696_v15  ;;  %v3795_v10 = vadd.f32 %v23276_v16, %v23227_v24  ;;  %v15304_v16 = vld [vmem:[%s30244_s6 + $0x7c0] sm:$0xf]  ;;  %v15418_v22 = vld [vmem:[%s30244_s6 + $0x8b0] sm:$0xf0]  ;;  %v19140_v3 = vld [vmem:[%s30244_s6 + $0x9a4] sm:$0xf] }
 0x2af   : > { %6549 = vmatpush.bf16.msrb.mxu3 %v14713_v14  ;;  %v15176_v14 = vld [vmem:[%s30244_s6 + $0x6c0] sm:$0xf] }
 0x2b0   : > { %v3943_v46 = vpop.f32.mrf.mxu2  ;;  %v3961_v48 = vpop.f32.mrf.mxu3  ;;  %6782 = vmatpush.bf16.msrb.mxu0 %v14861_v36  ;;  %v19086_v36 = vld [vmem:[%s30244_s6 + $0x7ec] sm:$0xf0]  ;;  %v15160_v60 = vld [vmem:[%s30244_s6 + $0x6a0] sm:$0xf]  ;;  %v3813_v5 = vadd.f32 %v23278_v17, %v3795_v10 }
 0x2b1   : > { %v15321_v20 = vor.u32 %v19086_v36, %v15320_v42  ;;  %v15450_v46 = vld [vmem:[%s30244_s6 + $0x8f0] sm:$0xf0]  ;;  %v19148_v48 = vld [vmem:[%s30244_s6 + $0x9e4] sm:$0xf]  ;;  %v19042_v42 = vld [vmem:[%s30244_s6 + $0x68c] sm:$0xf0] }
 0x2b2   : > { %v3974_v51 = vpop.f32.mrf.mxu0  ;;  %v23701_v18 = vpop.f32.mrf.mxu1  ;;  %6800 = vmatpush.bf16.msrb.mxu1 %v14989_v44  ;;  %6532 = vmatpush.bf16.msrb.mxu2 %v14569_v63  ;;  %v3957_v44 = vadd.f32 %v23579_v56, %v3939_v35  ;;  %v3924_v56 = vadd.f32 %v23573_v40, %v3906_v57  ;;  %v15453_v26 = vor.u32 %v19116_v28, %v15450_v46  ;;  %v19082_v40 = vld [vmem:[%s30244_s6 + $0x7cc] sm:$0xf0]  ;;  %v15562_v35 = vld [vmem:[%s30244_s6 + $0x9d0] sm:$0xf0]  ;;  %v19136_v46 = vld [vmem:[%s30244_s6 + $0x984] sm:$0xf] }
 0x2b3   : > { %6550 = vmatpush.bf16.msrb.mxu3 %v14697_v58  ;;  %v15581_v24 = vor.u32 %v19148_v48, %v15578_v52  ;;  %v15305_v39 = vor.u32 %v19082_v40, %v15304_v16  ;;  %v15565_v15 = vor.u32 %v19144_v19, %v15562_v35  ;;  %v19046_v57 = vld [vmem:[%s30244_s6 + $0x6ac] sm:$0xf0]  ;;  %v15402_v28 = vld [vmem:[%s30244_s6 + $0x890] sm:$0xf0]  ;;  %v19100_v35 = vld [vmem:[%s30244_s6 + $0x864] sm:$0xf] }
 0x2b4   : > { %6783 = vmatpush.bf16.msrb.mxu0 %v14845_v62  ;;  %v3975_v2 = vadd.f32 %v3974_v51, %v3957_v44  ;;  %v3942_v51 = vadd.f32 %v23636_v30, %v3924_v56  ;;  %v15177_v62 = vor.u32 %v19050_v38, %v15176_v14  ;;  %v15437_v30 = vor.u32 %v19112_v53, %v15434_v25  ;;  %v19078_v58 = vld [vmem:[%s30244_s6 + $0x7ac] sm:$0xf0]  ;;  %v15530_v48 = vld [vmem:[%s30244_s6 + $0x990] sm:$0xf0]  ;;  %v23857_v14 = vld [vmem:[%s30245_s7] sm:$0xf] }
 0x2b5   : > { %v15421_v44 = vor.u32 %v19108_v11, %v15418_v22  ;;  %v15145_v38 = vor.u32 %v19042_v42, %v15144_v0  ;;  %v15533_v53 = vor.u32 %v19136_v46, %v15530_v48  ;;  %v23873_v19 = vperm.slane %v23857_v14, 0  ;;  %v15096_v46 = vld [vmem:[%s30244_s6 + $0x620] sm:$0xf]  ;;  %v19030_v48 = vld [vmem:[%s30244_s6 + $0x62c] sm:$0xf0] }
 0x2b6   : > { %6801 = vmatpush.bf16.msrb.mxu1 %v14973_v55  ;;  %6597 = vmatpush.bf16.msra.mxu2 %v15193_v45  ;;  %v4037_v55 = vmax.f32 %v23243_v61, 0.0  ;;  %v15288_v61 = vld [vmem:[%s30244_s6 + $0x7a0] sm:$0xf]  ;;  %v19074_v45 = vld [vmem:[%s30244_s6 + $0x78c] sm:$0xf0] }
 0x2b7   : > { %6615 = vmatpush.bf16.msra.mxu3 %v15321_v20  ;;  %v19104_v20 = vld [vmem:[%s30244_s6 + $0x884] sm:$0xf] }
 0x2b8   : > { %v4008_v29 = vpop.f32.mrf.mxu2  ;;  %v4026_v37 = vpop.f32.mrf.mxu3  ;;  %6784 = vmatpush.bf16.msrb.mxu0 %v14829_v23  ;;  %v15405_v40 = vor.u32 %v19104_v20, %v15402_v28  ;;  %v15498_v28 = vld [vmem:[%s30244_s6 + $0x950] sm:$0xf0] }
 0x2b9   : > { %v4009_v27 = vadd.f32 %v4008_v29, %v3991_v54  ;;  %v3993_v54 = vadd.f32 %v23701_v18, %v3975_v2  ;;  %v3960_v29 = vadd.f32 %v23638_v31, %v3942_v51  ;;  %v15161_v18 = vor.u32 %v19046_v57, %v15160_v60  ;;  %v15272_v31 = vld [vmem:[%s30244_s6 + $0x780] sm:$0xf]  ;;  %v19132_v57 = vld [vmem:[%s30244_s6 + $0x964] sm:$0xf] }
 0x2ba   : > { %v3977_v47 = vpop.f32.mrf.mxu0  ;;  %v23777_v12 = vpop.f32.mrf.mxu1  ;;  %6802 = vmatpush.bf16.msrb.mxu1 %v14957_v7  ;;  %6598 = vmatpush.bf16.msra.mxu2 %v15177_v62  ;;  %v15289_v7 = vor.u32 %v19078_v58, %v15288_v61  ;;  %v15273_v2 = vor.u32 %v19074_v45, %v15272_v31  ;;  %v15256_v51 = vld [vmem:[%s30244_s6 + $0x760] sm:$0xf]  ;;  %v19070_v62 = vld [vmem:[%s30244_s6 + $0x76c] sm:$0xf0]  ;;  %v15514_v61 = vld [vmem:[%s30244_s6 + $0x970] sm:$0xf0] }
 0x2bb   : > { %v4027_v9 = vadd.f32 %v4026_v37, %v4009_v27  ;;  %6616 = vmatpush.bf16.msra.mxu3 %v15305_v39  ;;  %v15549_v27 = vor.u32 %v19140_v3, %v15546_v6  ;;  %v3978_v10 = vadd.f32 %v3977_v47, %v3960_v29  ;;  %v19038_v47 = vld [vmem:[%s30244_s6 + $0x66c] sm:$0xf0]  ;;  %v15112_v58 = vld [vmem:[%s30244_s6 + $0x640] sm:$0xf]  ;;  %v15517_v42 = vor.u32 %v19132_v57, %v15514_v61 }
 0x2bc   : > { %6849 = vmatpush.bf16.msra.mxu0 %v15453_v26  ;;  %v19034_v3 = vld [vmem:[%s30244_s6 + $0x64c] sm:$0xf0]  ;;  %v15240_v6 = vld [vmem:[%s30244_s6 + $0x740] sm:$0xf] }
 0x2bd   : > { %v4038_v63 = vmax.f32 %v4027_v9, 0.0  ;;  %6718 = vmatmul.bf16.gmra.mxu0 %v23254_v1  ;;  %6736 = vmatmul.bf16.gmra.mxu1 %v23256_v41  ;;  %v15128_v9 = vld [vmem:[%s30244_s6 + $0x660] sm:$0xf]  ;;  %v3996_v39 = vadd.f32 %v23777_v12, %v3978_v10  ;;  %v15257_v12 = vor.u32 %v19070_v62, %v15256_v51  ;;  %v19066_v29 = vld [vmem:[%s30244_s6 + $0x74c] sm:$0xf0]  ;;  %v15113_v45 = vor.u32 %v19034_v3, %v15112_v58 }
 0x2be   : > { %6867 = vmatpush.bf16.msra.mxu1 %v15581_v24  ;;  %6599 = vmatpush.bf16.msra.mxu2 %v15161_v18  ;;  %v4041_v24 = vmax.f32 %v3813_v5, 0.0  ;;  %v15129_v60 = vor.u32 %v19038_v47, %v15128_v9  ;;  %v15241_v20 = vor.u32 %v19066_v29, %v15240_v6  ;;  %v4045_v10 = vmax.f32 %v23317_v4, 0.0  ;;  %v19092_v47 = vld [vmem:[%s30244_s6 + $0x824] sm:$0xf] }
 0x2bf   : > { %v23818_v23 = vpack.c.bf16 %v4038_v63, %v4037_v55  ;;  %6617 = vmatpush.bf16.msra.mxu3 %v15289_v7  ;;  %v15386_v55 = vld [vmem:[%s30244_s6 + $0x870] sm:$0xf0]  ;;  %v15097_v51 = vor.u32 %v19030_v48, %v15096_v46  ;;  %v19120_v29 = vld [vmem:[%s30244_s6 + $0x904] sm:$0xf]  ;;  %v15688_v46 = vld [vmem:[%s30244_s6 + $0xac0] sm:$0xf] }
 0x2c0   : > { %v4010_v37 = vpop.f32.mrf.mxu2  ;;  %v4028_v17 = vpop.f32.mrf.mxu3  ;;  %6850 = vmatpush.bf16.msra.mxu0 %v15437_v30  ;;  %v19178_v48 = vld [vmem:[%s30244_s6 + $0xacc] sm:$0xf0] }
 0x2c1   : > { %v4011_v36 = vadd.f32 %v4010_v37, %v3993_v54  ;;  %v4061_v63 = vunpack.c.l.b16 %v23818_v23  ;;  %v4062_v11 = vunpack.c.h.b16 %v23818_v23  ;;  %v15389_v37 = vor.u32 %v19100_v35, %v15386_v55  ;;  %v19026_v35 = vld [vmem:[%s30244_s6 + $0x60c] sm:$0xf0]  ;;  %v15208_v55 = vld [vmem:[%s30244_s6 + $0x700] sm:$0xf] }
 0x2c2   : > { %6868 = vmatpush.bf16.msra.mxu1 %v15565_v15  ;;  %v3979_v26 = vpop.f32.mrf.mxu0  ;;  %v3997_v52 = vpop.f32.mrf.mxu1  ;;  %6600 = vmatpush.bf16.msra.mxu2 %v15145_v38 }
 0x2c3   : > { %v4029_v56 = vadd.f32 %v4028_v17, %v4011_v36  ;;  %6618 = vmatpush.bf16.msra.mxu3 %v15273_v2  ;;  %v19096_v36 = vld [vmem:[%s30244_s6 + $0x844] sm:$0xf]  ;;  %v15224_v26 = vld [vmem:[%s30244_s6 + $0x720] sm:$0xf]  ;;  %v19062_v52 = vld [vmem:[%s30244_s6 + $0x72c] sm:$0xf0] }
 0x2c4   : > { %6851 = vmatpush.bf16.msra.mxu0 %v15421_v44  ;;  %v15370_v44 = vld [vmem:[%s30244_s6 + $0x850] sm:$0xf0]  ;;  %v15225_v62 = vor.u32 %v19062_v52, %v15224_v26  ;;  %v15816_v26 = vld [vmem:[%s30244_s6 + $0xbc0] sm:$0xf]  ;;  %v19210_v52 = vld [vmem:[%s30244_s6 + $0xbcc] sm:$0xf0] }
 0x2c5   : > { %v4042_v16 = vmax.f32 %v4029_v56, 0.0  ;;  %v15373_v2 = vor.u32 %v19096_v36, %v15370_v44  ;;  %v14560_v36 = vld [vmem:[%s30244_s6 + $0x1e8] sm:$0xf]  ;;  %v18895_v44 = vld [vmem:[%s30244_s6 + $0x1f4] sm:$0xf0] }
 0x2c6   : > { %6869 = vmatpush.bf16.msra.mxu1 %v15549_v27  ;;  %v19128_v27 = vld [vmem:[%s30244_s6 + $0x944] sm:$0xf]  ;;  %6601 = vmatpush.bf16.msra.mxu2 %v15129_v60  ;;  %v15832_v60 = vld [vmem:[%s30244_s6 + $0xbe0] sm:$0xf] }
 0x2c7   : > { %v4050_v25 = vpack.c.bf16 %v4042_v16, %v4041_v24  ;;  %6619 = vmatpush.bf16.msra.mxu3 %v15257_v12  ;;  %v15501_v9 = vor.u32 %v19128_v27, %v15498_v28  ;;  %v15354_v24 = vld [vmem:[%s30244_s6 + $0x830] sm:$0xf0]  ;;  %v19124_v16 = vld [vmem:[%s30244_s6 + $0x924] sm:$0xf]  ;;  %v19214_v12 = vld [vmem:[%s30244_s6 + $0xbec] sm:$0xf0] }
 0x2c8   : > { %v4013_v30 = vpop.f32.mrf.mxu2  ;;  %v4031_v15 = vpop.f32.mrf.mxu3  ;;  %6852 = vmatpush.bf16.msra.mxu0 %v15405_v40  ;;  %v15357_v58 = vor.u32 %v19092_v47, %v15354_v24  ;;  %v18891_v47 = vld [vmem:[%s30244_s6 + $0x1d4] sm:$0xf0] }
 0x2c9   : > { %v4065_v5 = vunpack.c.l.b16 %v4050_v25  ;;  %v4066_v54 = vunpack.c.h.b16 %v4050_v25  ;;  %v4014_v22 = vadd.f32 %v4013_v30, %v3996_v39  ;;  %v15482_v39 = vld [vmem:[%s30244_s6 + $0x930] sm:$0xf0]  ;;  %v15080_v25 = vld [vmem:[%s30244_s6 + $0x600] sm:$0xf] }
 0x2ca   : > { %6870 = vmatpush.bf16.msra.mxu1 %v15533_v53  ;;  %v6498_v7 = vpop.f32.mrf.mxu0  ;;  %v6516_v0 = vpop.f32.mrf.mxu1  ;;  %6602 = vmatpush.bf16.msra.mxu2 %v15113_v45  ;;  %v15704_v30 = vld [vmem:[%s30244_s6 + $0xae0] sm:$0xf]  ;;  %v15081_v3 = vor.u32 %v19026_v35, %v15080_v25  ;;  %v19174_v25 = vld [vmem:[%s30244_s6 + $0xaac] sm:$0xf0] }
 0x2cb   : > { %v23901_v17 = vpack.c.b16 %v4065_v5, %v4061_v63  ;;  %v23903_v23 = vpack.c.b16 %v4066_v54, %v4062_v11  ;;  %v4032_v18 = vadd.f32 %v4031_v15, %v4014_v22  ;;  %v6499_v31 = vadd.f32 %v6498_v7, %v23873_v19  ;;  %6620 = vmatpush.bf16.msra.mxu3 %v15241_v20  ;;  %v19058_v63 = vld [vmem:[%s30244_s6 + $0x70c] sm:$0xf0]  ;;  %v19088_v5 = vld [vmem:[%s30244_s6 + $0x804] sm:$0xf]  ;;  %v15338_v54 = vld [vmem:[%s30244_s6 + $0x810] sm:$0xf0] }
 0x2cc   : > { %6853 = vmatpush.bf16.msra.mxu0 %v15389_v37  ;;  %v19182_v15 = vld [vmem:[%s30244_s6 + $0xaec] sm:$0xf0]  ;;  %v15485_v11 = vor.u32 %v19124_v16, %v15482_v39  ;;  %v15209_v6 = vor.u32 %v19058_v63, %v15208_v55  ;;  %v15466_v37 = vld [vmem:[%s30244_s6 + $0x910] sm:$0xf0]  ;;  %v15341_v20 = vor.u32 %v19088_v5, %v15338_v54  ;;  %v15672_v39 = vld [vmem:[%s30244_s6 + $0xaa0] sm:$0xf] }
 0x2cd   : > { %v4046_v56 = vmax.f32 %v4032_v18, 0.0  ;;  %6533 = vmatmul.bf16.vlgmr.msrb.gmra.mxu2 %v23901_v17  ;;  %6551 = vmatmul.bf16.vlgmr.msrb.gmra.mxu3 %v23903_v23  ;;  %v23933_v38 = vadd.f32 %v6516_v0, %v6499_v31  ;;  %v14432_v18 = vld [vmem:[%s30244_s6 + $0xe8] sm:$0xf]  ;;  %v15705_v7 = vor.u32 %v19182_v15, %v15704_v30  ;;  %v15833_v0 = vor.u32 %v19214_v12, %v15832_v60  ;;  %v15800_v30 = vld [vmem:[%s30244_s6 + $0xba0] sm:$0xf] }
 0x2ce   : > { %6785 = vmatmul.bf16.vlgmr.msrb.gmra.mxu0 %v23331_v13  ;;  %6803 = vmatmul.bf16.vlgmr.msrb.gmra.mxu1 %v23338_v32  ;;  %v15469_v28 = vor.u32 %v19120_v29, %v15466_v37  ;;  %v19206_v15 = vld [vmem:[%s30244_s6 + $0xbac] sm:$0xf0]  ;;  %v14400_v60 = vld [vmem:[%s30244_s6 + $0xa8] sm:$0xf]  ;;  %v15656_v54 = vld [vmem:[%s30244_s6 + $0xa80] sm:$0xf] }
 0x2cf   : > { %v23937_v4 = vpack.c.bf16 %v4046_v56, %v4045_v10  ;;  %6871 = vmatpush.bf16.msra.mxu1 %v15517_v42  ;;  %6603 = vmatpush.bf16.msra.mxu2 %v15097_v51  ;;  %v18863_v42 = vld [vmem:[%s30244_s6 + $0xf4] sm:$0xf0]  ;;  %v14561_v56 = vor.u32 %v18895_v44, %v14560_v36  ;;  %v15689_v51 = vor.u32 %v19178_v48, %v15688_v46  ;;  %v14528_v12 = vld [vmem:[%s30244_s6 + $0x1a8] sm:$0xf]  ;;  %v15784_v29 = vld [vmem:[%s30244_s6 + $0xb80] sm:$0xf] }
 0x2d0   : > { %v4015_v40 = vpop.f32.mrf.mxu2  ;;  %v4033_v53 = vpop.f32.mrf.mxu3  ;;  %6854 = vmatpush.bf16.msra.mxu0 %v15373_v2  ;;  %6621 = vmatpush.bf16.msra.mxu3 %v15225_v62  ;;  %v14433_v10 = vor.u32 %v18863_v42, %v14432_v18  ;;  %v18859_v2 = vld [vmem:[%s30244_s6 + $0xd4] sm:$0xf0]  ;;  %v15817_v62 = vor.u32 %v19210_v52, %v15816_v26  ;;  %v15801_v5 = vor.u32 %v19206_v15, %v15800_v30  ;;  %v19202_v37 = vld [vmem:[%s30244_s6 + $0xb8c] sm:$0xf0]  ;;  %v14384_v18 = vld [vmem:[%s30244_s6 + $0x88] sm:$0xf] }
 0x2d1   : > { %v4069_v27 = vunpack.c.l.b16 %v23937_v4  ;;  %v4070_v45 = vunpack.c.h.b16 %v23937_v4  ;;  %v14416_v4 = vld [vmem:[%s30244_s6 + $0xc8] sm:$0xf]  ;;  %v18883_v42 = vld [vmem:[%s30244_s6 + $0x194] sm:$0xf0]  ;;  %v4126_v44 = vshll.u32 %v23903_v23, 16  ;;  %v15785_v48 = vor.u32 %v19202_v37, %v15784_v29 }
 0x2d2   : > { %v6500_v57 = vpop.f32.mrf.mxu0  ;;  %v6518_v61 = vpop.f32.mrf.mxu1  ;;  %v14417_v55 = vor.u32 %v18859_v2, %v14416_v4  ;;  %v15768_v4 = vld [vmem:[%s30244_s6 + $0xb60] sm:$0xf]  ;;  %v19198_v2 = vld [vmem:[%s30244_s6 + $0xb6c] sm:$0xf0] }
 0x2d3   : > { %6872 = vmatpush.bf16.msra.mxu1 %v15501_v9  ;;  %v6501_v22 = vadd.f32 %v6500_v57, %v23873_v19  ;;  %6604 = vmatpush.bf16.msra.mxu2 %v15081_v3  ;;  %v14544_v9 = vld [vmem:[%s30244_s6 + $0x1c8] sm:$0xf]  ;;  %v24028_v24 = vpack.c.b16 %v4069_v27, %v4069_v27  ;;  %v24030_v16 = vpack.c.b16 %v4070_v45, %v4070_v45  ;;  %v18887_v57 = vld [vmem:[%s30244_s6 + $0x1b4] sm:$0xf0]  ;;  %v15624_v30 = vld [vmem:[%s30244_s6 + $0xa40] sm:$0xf] }
 0x2d4   : > { %6855 = vmatpush.bf16.msra.mxu0 %v15357_v58  ;;  %6622 = vmatpush.bf16.msra.mxu3 %v15209_v6  ;;  %v14545_v63 = vor.u32 %v18891_v47, %v14544_v9  ;;  %v4114_v58 = vshll.u32 %v23901_v17, 16  ;;  %v14529_v6 = vor.u32 %v18887_v57, %v14528_v12  ;;  %v14368_v9 = vld [vmem:[%s30244_s6 + $0x68] sm:$0xf]  ;;  %v18847_v47 = vld [vmem:[%s30244_s6 + $0x74] sm:$0xf0] }
 0x2d5   : > { %v24001_v31 = vadd.f32 %v6518_v61, %v6501_v22  ;;  %v19170_v22 = vld [vmem:[%s30244_s6 + $0xa8c] sm:$0xf0]  ;;  %v15752_v12 = vld [vmem:[%s30244_s6 + $0xb40] sm:$0xf] }
 0x2d6   : > { %v4116_v36 = vrot.slane %v4114_v58, 1  ;;  %v15657_v46 = vor.u32 %v19170_v22, %v15656_v54  ;;  %v19162_v15 = vld [vmem:[%s30244_s6 + $0xa4c] sm:$0xf0]  ;;  %v14352_v58 = vld [vmem:[%s30244_s6 + $0x48] sm:$0xf] }
 0x2d7   : > { %6873 = vmatpush.bf16.msra.mxu1 %v15485_v11  ;;  %6669 = vmatpush.bf16.msrb.mxu2 %v15705_v7  ;;  %v15673_v11 = vor.u32 %v19174_v25, %v15672_v39  ;;  %v18851_v7 = vld [vmem:[%s30244_s6 + $0x94] sm:$0xf0]  ;;  %v4128_v39 = vrot.slane %v4126_v44, 1  ;;  %v19194_v57 = vld [vmem:[%s30244_s6 + $0xb4c] sm:$0xf0] }
 0x2d8   : > { %6687 = vmatpush.bf16.msrb.mxu3 %v15833_v0  ;;  %6856 = vmatpush.bf16.msra.mxu0 %v15341_v20  ;;  %v14512_v0 = vld [vmem:[%s30244_s6 + $0x188] sm:$0xf]  ;;  %v4119_v20 = vshll.u32 %v24028_v24, 16  ;;  %v14385_v26 = vor.u32 %v18851_v7, %v14384_v18  ;;  %v18875_v22 = vld [vmem:[%s30244_s6 + $0x154] sm:$0xf0]  ;;  %v15625_v18 = vor.u32 %v19162_v15, %v15624_v30  ;;  %v15753_v7 = vor.u32 %v19194_v57, %v15752_v12 }
 0x2d9   : > { %v14513_v52 = vor.u32 %v18883_v42, %v14512_v0  ;;  %v14480_v54 = vld [vmem:[%s30244_s6 + $0x148] sm:$0xf]  ;;  %v15608_v0 = vld [vmem:[%s30244_s6 + $0xa20] sm:$0xf]  ;;  %v19158_v42 = vld [vmem:[%s30244_s6 + $0xa2c] sm:$0xf0] }
 0x2da   : > { %v6503_v40 = vpop.f32.mrf.mxu0  ;;  %v6521_v53 = vpop.f32.mrf.mxu1  ;;  %v24117_v25 = vrot.slane %v4119_v20, 1  ;;  %v19190_v20 = vld [vmem:[%s30244_s6 + $0xb2c] sm:$0xf0]  ;;  %v18956_v30 = vld [vmem:[%s30244_s6 + $0x3e4] sm:$0xf] }
 0x2db   : > { %6874 = vmatpush.bf16.msra.mxu1 %v15469_v28  ;;  %v6504_v35 = vadd.f32 %v6503_v40, %v23873_v19  ;;  %v18855_v19 = vld [vmem:[%s30244_s6 + $0xb4] sm:$0xf0]  ;;  %6670 = vmatpush.bf16.msrb.mxu2 %v15689_v51  ;;  %v4131_v28 = vshll.u32 %v24030_v16, 16  ;;  %v14496_v40 = vld [vmem:[%s30244_s6 + $0x168] sm:$0xf]  ;;  %v4112_v51 = vshrl.u32 %v23901_v17, 16 }
 0x2dc   : > { %6921 = vmatpush.bf16.msrb.mxu0 %v14433_v10  ;;  %6688 = vmatpush.bf16.msrb.mxu3 %v15817_v62  ;;  %v14401_v3 = vor.u32 %v18855_v19, %v14400_v60  ;;  %v15640_v10 = vld [vmem:[%s30244_s6 + $0xa60] sm:$0xf]  ;;  %v4124_v62 = vshrl.u32 %v23903_v23, 16  ;;  %v14369_v60 = vor.u32 %v18847_v47, %v14368_v9  ;;  %v19186_v9 = vld [vmem:[%s30244_s6 + $0xb0c] sm:$0xf0] }
 0x2dd   : > { %6538 = vmatmul.bf16.gmra.mxu2 %v24028_v24  ;;  %6556 = vmatmul.bf16.gmra.mxu3 %v24030_v16  ;;  %v24059_v61 = vadd.f32 %v6521_v53, %v6504_v35  ;;  %v18879_v53 = vld [vmem:[%s30244_s6 + $0x174] sm:$0xf0]  ;;  %v24119_v35 = vrot.slane %v4131_v28, 1  ;;  %v14336_v28 = vld [vmem:[%s30244_s6 + $0x28] sm:$0xf] }
 0x2de   : > { %6790 = vmatmul.bf16.gmra.mxu0 %v23401_v50  ;;  %6808 = vmatmul.bf16.gmra.mxu1 %v23404_v8  ;;  %v14497_v19 = vor.u32 %v18879_v53, %v14496_v40  ;;  %v14320_v53 = vld [vmem:[%s30244_s6 + $0x8] sm:$0xf]  ;;  %v14810_v15 = vld [vmem:[%s30244_s6 + $0x3f0] sm:$0xf0] }
 0x2df   : > { %6939 = vmatpush.bf16.msrb.mxu1 %v14561_v56  ;;  %6671 = vmatpush.bf16.msrb.mxu2 %v15673_v11  ;;  %v19166_v56 = vld [vmem:[%s30244_s6 + $0xa6c] sm:$0xf0]  ;;  %v4117_v11 = vor.u32 %v4116_v36, %v4112_v51  ;;  %v18835_v51 = vld [vmem:[%s30244_s6 + $0x14] sm:$0xf0] }
 0x2e0   : > { %6922 = vmatpush.bf16.msrb.mxu0 %v14417_v55  ;;  %6689 = vmatpush.bf16.msrb.mxu3 %v15801_v5  ;;  %v15641_v55 = vor.u32 %v19166_v56, %v15640_v10  ;;  %v18843_v5 = vld [vmem:[%s30244_s6 + $0x54] sm:$0xf0]  ;;  %v15592_v56 = vld [vmem:[%s30244_s6 + $0xa00] sm:$0xf] }
 0x2e1   : > { %v24151_v37 = vsel %vm767_vm0, %v4117_v11, %v24117_v25  ;;  %v14353_v44 = vor.u32 %v18843_v5, %v14352_v58  ;;  %v18871_v10 = vld [vmem:[%s30244_s6 + $0x134] sm:$0xf0]  ;;  %v15072_v5 = vld [vmem:[%s30244_s6 + $0x5e8] sm:$0xf] }
 0x2e2   : > { %v6505_v27 = vpop.f32.mrf.mxu0  ;;  %v6523_v45 = vpop.f32.mrf.mxu1  ;;  %v18991_v11 = vld [vmem:[%s30244_s6 + $0x4f4] sm:$0xf0] }
 0x2e3   : > { %6940 = vmatpush.bf16.msrb.mxu1 %v14545_v63  ;;  %6672 = vmatpush.bf16.msrb.mxu2 %v15657_v46  ;;  %v15769_v63 = vor.u32 %v19198_v2, %v15768_v4  ;;  %v14481_v27 = vor.u32 %v18875_v22, %v14480_v54  ;;  %v15736_v45 = vld [vmem:[%s30244_s6 + $0xb20] sm:$0xf]  ;;  %v18839_v46 = vld [vmem:[%s30244_s6 + $0x34] sm:$0xf0]  ;;  %v19154_v4 = vld [vmem:[%s30244_s6 + $0xa0c] sm:$0xf0]  ;;  %v14321_v22 = vor.u32 %v18835_v51, %v14320_v53 }
 0x2e4   : > { %6923 = vmatpush.bf16.msrb.mxu0 %v14401_v3  ;;  %6690 = vmatpush.bf16.msrb.mxu3 %v15785_v48  ;;  %v4129_v3 = vor.u32 %v4128_v39, %v4124_v62  ;;  %v14464_v48 = vld [vmem:[%s30244_s6 + $0x128] sm:$0xf]  ;;  %v15720_v2 = vld [vmem:[%s30244_s6 + $0xb00] sm:$0xf]  ;;  %v14337_v47 = vor.u32 %v18839_v46, %v14336_v28  ;;  %v18867_v39 = vld [vmem:[%s30244_s6 + $0x114] sm:$0xf0]  ;;  %v15593_v57 = vor.u32 %v19154_v4, %v15592_v56 }
 0x2e5   : > { %v14465_v40 = vor.u32 %v18871_v10, %v14464_v48  ;;  %v14448_v62 = vld [vmem:[%s30244_s6 + $0x108] sm:$0xf]  ;;  %v15721_v58 = vor.u32 %v19186_v9, %v15720_v2  ;;  %v19023_v54 = vld [vmem:[%s30244_s6 + $0x5f4] sm:$0xf0]  ;;  %v18952_v28 = vld [vmem:[%s30244_s6 + $0x3c4] sm:$0xf] }
 0x2e6   : > { %v24161_v36 = vsel %vm767_vm0, %v4129_v3, %v24119_v35  ;;  %v14449_v3 = vor.u32 %v18867_v39, %v14448_v62  ;;  %v14794_v46 = vld [vmem:[%s30244_s6 + $0x3d0] sm:$0xf0]  ;;  %v14928_v48 = vld [vmem:[%s30244_s6 + $0x4c8] sm:$0xf]  ;;  %v18987_v10 = vld [vmem:[%s30244_s6 + $0x4d4] sm:$0xf0] }
 0x2e7   : > { %6941 = vmatpush.bf16.msrb.mxu1 %v14529_v6  ;;  %6673 = vmatpush.bf16.msrb.mxu2 %v15641_v55  ;;  %v18924_v55 = vld [vmem:[%s30244_s6 + $0x2e4] sm:$0xf]  ;;  %v15056_v56 = vld [vmem:[%s30244_s6 + $0x5c8] sm:$0xf]  ;;  %v14650_v51 = vld [vmem:[%s30244_s6 + $0x2b0] sm:$0xf0]  ;;  %v14929_v62 = vor.u32 %v18987_v10, %v14928_v48 }
 0x2e8   : > { %6924 = vmatpush.bf16.msrb.mxu0 %v14385_v26  ;;  %6691 = vmatpush.bf16.msrb.mxu3 %v15769_v63  ;;  %v15609_v26 = vor.u32 %v19158_v42, %v15608_v0  ;;  %v14682_v63 = vld [vmem:[%s30244_s6 + $0x2f0] sm:$0xf0]  ;;  %v15073_v42 = vor.u32 %v19023_v54, %v15072_v5  ;;  %v18916_v53 = vld [vmem:[%s30244_s6 + $0x2a4] sm:$0xf] }
 0x2ea   : > { %v24145_v6 = vpop.f32.mrf.mxu0  ;;  %v24147_v29 = vpop.f32.mrf.mxu1 }
 0x2eb   : > { %6942 = vmatpush.bf16.msrb.mxu1 %v14513_v52  ;;  %6674 = vmatpush.bf16.msrb.mxu2 %v15625_v18  ;;  %v15737_v52 = vor.u32 %v19190_v20, %v15736_v45  ;;  %v14685_v18 = vor.u32 %v18924_v55, %v14682_v63  ;;  %v18920_v45 = vld [vmem:[%s30244_s6 + $0x2c4] sm:$0xf]  ;;  %v14666_v20 = vld [vmem:[%s30244_s6 + $0x2d0] sm:$0xf0]  ;;  %v14912_v55 = vld [vmem:[%s30244_s6 + $0x4a8] sm:$0xf] }
 0x2ec   : > { %6925 = vmatpush.bf16.msrb.mxu0 %v14369_v60  ;;  %6692 = vmatpush.bf16.msrb.mxu3 %v15753_v7  ;;  %v14944_v60 = vld [vmem:[%s30244_s6 + $0x4e8] sm:$0xf]  ;;  %v14813_v7 = vor.u32 %v18956_v30, %v14810_v15  ;;  %v18983_v63 = vld [vmem:[%s30244_s6 + $0x4b4] sm:$0xf0] }
 0x2ed   : > { %6605 = vmatmul.bf16.vlgmr.msra.gmra.mxu2 %v24151_v37  ;;  %6623 = vmatmul.bf16.vlgmr.msra.gmra.mxu3 %v24161_v36  ;;  %v14945_v0 = vor.u32 %v18991_v11, %v14944_v60  ;;  %v15040_v30 = vld [vmem:[%s30244_s6 + $0x5a8] sm:$0xf]  ;;  %v19015_v15 = vld [vmem:[%s30244_s6 + $0x5b4] sm:$0xf0]  ;;  %v14653_v60 = vor.u32 %v18916_v53, %v14650_v51  ;;  %v14634_v11 = vld [vmem:[%s30244_s6 + $0x290] sm:$0xf0]  ;;  %v14913_v5 = vor.u32 %v18983_v63, %v14912_v55 }
 0x2ee   : > { %6857 = vmatmul.bf16.vlgmr.msra.gmra.mxu0 %v23483_v43  ;;  %6875 = vmatmul.bf16.vlgmr.msra.gmra.mxu1 %v23487_v59  ;;  %v15041_v54 = vor.u32 %v19015_v15, %v15040_v30  ;;  %v15008_v53 = vld [vmem:[%s30244_s6 + $0x568] sm:$0xf]  ;;  %v19007_v51 = vld [vmem:[%s30244_s6 + $0x574] sm:$0xf0]  ;;  %v18904_v63 = vld [vmem:[%s30244_s6 + $0x244] sm:$0xf] }
 0x2ef   : > { %6943 = vmatpush.bf16.msrb.mxu1 %v14497_v19  ;;  %6675 = vmatpush.bf16.msrb.mxu2 %v15609_v26  ;;  %v19019_v26 = vld [vmem:[%s30244_s6 + $0x5d4] sm:$0xf0]  ;;  %v14602_v30 = vld [vmem:[%s30244_s6 + $0x250] sm:$0xf0] }
 0x2f0   : > { %6926 = vmatpush.bf16.msrb.mxu0 %v14353_v44  ;;  %6693 = vmatpush.bf16.msrb.mxu3 %v15737_v52  ;;  %v4141_v44 = vshrl.u32 %v24028_v24, 16  ;;  %v15057_v39 = vor.u32 %v19019_v26, %v15056_v56  ;;  %v18940_v56 = vld [vmem:[%s30244_s6 + $0x364] sm:$0xf]  ;;  %v14746_v26 = vld [vmem:[%s30244_s6 + $0x370] sm:$0xf0] }
 0x2f1   : > { %v14749_v55 = vor.u32 %v18940_v56, %v14746_v26  ;;  %v14848_v56 = vld [vmem:[%s30244_s6 + $0x428] sm:$0xf]  ;;  %v18967_v26 = vld [vmem:[%s30244_s6 + $0x434] sm:$0xf0] }
 0x2f2   : > { %v24224_v19 = vpop.f32.mrf.mxu0  ;;  %v24226_v12 = vpop.f32.mrf.mxu1  ;;  %v24268_v2 = vor.u32 %v4141_v44, %v24117_v25  ;;  %v18948_v25 = vld [vmem:[%s30244_s6 + $0x3a4] sm:$0xf] }
 0x2f3   : > { %6944 = vmatpush.bf16.msrb.mxu1 %v14481_v27  ;;  %v4144_v27 = vshrl.u32 %v24030_v16, 16  ;;  %6676 = vmatpush.bf16.msrb.mxu2 %v15593_v57 }
 0x2f4   : > { %6927 = vmatpush.bf16.msrb.mxu0 %v14337_v47  ;;  %6694 = vmatpush.bf16.msrb.mxu3 %v15721_v58  ;;  %v14669_v47 = vor.u32 %v18920_v45, %v14666_v20  ;;  %v18912_v58 = vld [vmem:[%s30244_s6 + $0x284] sm:$0xf] }
 0x2f5   : > { %v24271_v9 = vor.u32 %v4144_v27, %v24119_v35  ;;  %v14778_v35 = vld [vmem:[%s30244_s6 + $0x3b0] sm:$0xf0]  ;;  %v14637_v45 = vor.u32 %v18912_v58, %v14634_v11  ;;  %v14864_v11 = vld [vmem:[%s30244_s6 + $0x448] sm:$0xf] }
 0x2f6   : > { %v14781_v57 = vor.u32 %v18948_v25, %v14778_v35  ;;  %v24354_v25 = vrot.slane %v24030_v16, 1  ;;  %v14730_v58 = vld [vmem:[%s30244_s6 + $0x350] sm:$0xf0] }
 0x2f7   : > { %6945 = vmatpush.bf16.msrb.mxu1 %v14465_v40  ;;  %6741 = vmatpush.bf16.msra.mxu2 %v14685_v18  ;;  %v14797_v40 = vor.u32 %v18952_v28, %v14794_v46  ;;  %v14896_v18 = vld [vmem:[%s30244_s6 + $0x488] sm:$0xf]  ;;  %v18908_v28 = vld [vmem:[%s30244_s6 + $0x264] sm:$0xf]  ;;  %v14618_v46 = vld [vmem:[%s30244_s6 + $0x270] sm:$0xf0] }
 0x2f8   : > { %6928 = vmatpush.bf16.msrb.mxu0 %v14321_v22  ;;  %6759 = vmatpush.bf16.msra.mxu3 %v14813_v7  ;;  %v18944_v22 = vld [vmem:[%s30244_s6 + $0x384] sm:$0xf]  ;;  %v18979_v7 = vld [vmem:[%s30244_s6 + $0x494] sm:$0xf0]  ;;  %v14621_v35 = vor.u32 %v18908_v28, %v14618_v46 }
 0x2f9   : > { %v14897_v48 = vor.u32 %v18979_v7, %v14896_v18 }
 0x2fa   : > { %v24263_v52 = vpop.f32.mrf.mxu0  ;;  %v24265_v4 = vpop.f32.mrf.mxu1 }
 0x2fb   : > { %6946 = vmatpush.bf16.msrb.mxu1 %v14449_v3  ;;  %6742 = vmatpush.bf16.msra.mxu2 %v14669_v47  ;;  %v14762_v3 = vld [vmem:[%s30244_s6 + $0x390] sm:$0xf0]  ;;  %v14880_v47 = vld [vmem:[%s30244_s6 + $0x468] sm:$0xf] }
 0x2fc   : > { %6993 = vmatpush.bf16.msra.mxu0 %v14945_v0  ;;  %6760 = vmatpush.bf16.msra.mxu3 %v14797_v40  ;;  %v15024_v0 = vld [vmem:[%s30244_s6 + $0x588] sm:$0xf]  ;;  %v14765_v20 = vor.u32 %v18944_v22, %v14762_v3  ;;  %v18975_v40 = vld [vmem:[%s30244_s6 + $0x474] sm:$0xf0]  ;;  %v4164_v3 = vrot.slane %v23903_v23, 1 }
 0x2fd   : > { %6610 = vmatmul.bf16.gmra.mxu2 %v24268_v2  ;;  %6628 = vmatmul.bf16.gmra.mxu3 %v24271_v9  ;;  %v14881_v15 = vor.u32 %v18975_v40, %v14880_v47  ;;  %v19003_v22 = vld [vmem:[%s30244_s6 + $0x554] sm:$0xf0]  ;;  %v14976_v47 = vld [vmem:[%s30244_s6 + $0x528] sm:$0xf] }
 0x2fe   : > { %6862 = vmatmul.bf16.gmra.mxu0 %v23458_v33  ;;  %6880 = vmatmul.bf16.gmra.mxu1 %v23461_v34  ;;  %v18999_v40 = vld [vmem:[%s30244_s6 + $0x534] sm:$0xf0] }
 0x2ff   : > { %7011 = vmatpush.bf16.msra.mxu1 %v15073_v42  ;;  %v19011_v42 = vld [vmem:[%s30244_s6 + $0x594] sm:$0xf0]  ;;  %6743 = vmatpush.bf16.msra.mxu2 %v14653_v60  ;;  %v15009_v60 = vor.u32 %v19007_v51, %v15008_v53  ;;  %v18896_v53 = vld [vmem:[%s30244_s6 + $0x204] sm:$0xf] }
 0x300   : > { %6994 = vmatpush.bf16.msra.mxu0 %v14929_v62  ;;  %6761 = vmatpush.bf16.msra.mxu3 %v14781_v57  ;;  %v15025_v10 = vor.u32 %v19011_v42, %v15024_v0  ;;  %v4161_v62 = vrot.slane %v23901_v17, 1  ;;  %v18936_v57 = vld [vmem:[%s30244_s6 + $0x344] sm:$0xf]  ;;  %v14605_v42 = vor.u32 %v18904_v63, %v14602_v30  ;;  %v14698_v63 = vld [vmem:[%s30244_s6 + $0x310] sm:$0xf0]  ;;  %v14849_v30 = vor.u32 %v18967_v26, %v14848_v56 }
 0x302   : > { %v6577_v44 = vpop.f32.mrf.mxu0  ;;  %v6595_v27 = vpop.f32.mrf.mxu1 }
 0x303   : > { %7012 = vmatpush.bf16.msra.mxu1 %v15057_v39  ;;  %v24351_v39 = vrot.slane %v24028_v24, 1  ;;  %6744 = vmatpush.bf16.msra.mxu2 %v14637_v45  ;;  %v14733_v44 = vor.u32 %v18936_v57, %v14730_v58  ;;  %v18900_v27 = vld [vmem:[%s30244_s6 + $0x224] sm:$0xf]  ;;  %v14586_v45 = vld [vmem:[%s30244_s6 + $0x230] sm:$0xf0] }
 0x304   : > { %6995 = vmatpush.bf16.msra.mxu0 %v14913_v5  ;;  %6762 = vmatpush.bf16.msra.mxu3 %v14765_v20  ;;  %v18971_v5 = vld [vmem:[%s30244_s6 + $0x454] sm:$0xf0]  ;;  %v24397_v20 = vsel %vm836_vm1, %v4164_v3, %v24354_v25  ;;  %v14589_v51 = vor.u32 %v18900_v27, %v14586_v45  ;;  %v14960_v58 = vld [vmem:[%s30244_s6 + $0x508] sm:$0xf]  ;;  %v15322_v3 = vld [vmem:[%s30244_s6 + $0x7f0] sm:$0xf0] }
 0x305   : > { %v24387_v0 = vsel %vm836_vm1, %v4161_v62, %v24351_v39  ;;  %v14865_v28 = vor.u32 %v18971_v5, %v14864_v11  ;;  %v18963_v57 = vld [vmem:[%s30244_s6 + $0x414] sm:$0xf0]  ;;  %v19052_v5 = vld [vmem:[%s30244_s6 + $0x6e4] sm:$0xf] }
 0x306   : > { %v18995_v11 = vld [vmem:[%s30244_s6 + $0x514] sm:$0xf0] }
 0x307   : > { %7013 = vmatpush.bf16.msra.mxu1 %v15041_v54  ;;  %v14992_v54 = vld [vmem:[%s30244_s6 + $0x548] sm:$0xf]  ;;  %6745 = vmatpush.bf16.msra.mxu2 %v14621_v35  ;;  %v14570_v35 = vld [vmem:[%s30244_s6 + $0x210] sm:$0xf0]  ;;  %v14961_v26 = vor.u32 %v18995_v11, %v14960_v58 }
 0x308   : > { %6996 = vmatpush.bf16.msra.mxu0 %v14897_v48  ;;  %6763 = vmatpush.bf16.msra.mxu3 %v14749_v55  ;;  %v14993_v46 = vor.u32 %v19003_v22, %v14992_v54  ;;  %v18932_v48 = vld [vmem:[%s30244_s6 + $0x324] sm:$0xf]  ;;  %v15194_v54 = vld [vmem:[%s30244_s6 + $0x6f0] sm:$0xf0]  ;;  %v14573_v45 = vor.u32 %v18896_v53, %v14570_v35 }
 0x309   : > { %v18928_v55 = vld [vmem:[%s30244_s6 + $0x304] sm:$0xf]  ;;  %v15178_v35 = vld [vmem:[%s30244_s6 + $0x6d0] sm:$0xf0] }
 0x30a   : > { %v24381_v18 = vpop.f32.mrf.mxu0  ;;  %v24383_v7 = vpop.f32.mrf.mxu1  ;;  %v19084_v22 = vld [vmem:[%s30244_s6 + $0x7e4] sm:$0xf] }
 0x30b   : > { %7014 = vmatpush.bf16.msra.mxu1 %v15025_v10  ;;  %v14714_v10 = vld [vmem:[%s30244_s6 + $0x330] sm:$0xf0]  ;;  %6746 = vmatpush.bf16.msra.mxu2 %v14605_v42  ;;  %v15456_v42 = vld [vmem:[%s30244_s6 + $0x8e8] sm:$0xf] }
 0x30c   : > { %6997 = vmatpush.bf16.msra.mxu0 %v14881_v15  ;;  %6764 = vmatpush.bf16.msra.mxu3 %v14733_v44  ;;  %v14717_v62 = vor.u32 %v18932_v48, %v14714_v10  ;;  %v14977_v15 = vor.u32 %v18999_v40, %v14976_v47  ;;  %v15584_v48 = vld [vmem:[%s30244_s6 + $0x9e8] sm:$0xf]  ;;  %v19151_v10 = vld [vmem:[%s30244_s6 + $0x9f4] sm:$0xf0]  ;;  %v15197_v47 = vor.u32 %v19052_v5, %v15194_v54 }
 0x30d   : > { %6677 = vmatmul.bf16.vlgmr.msrb.gmra.mxu2 %v24387_v0  ;;  %6695 = vmatmul.bf16.vlgmr.msrb.gmra.mxu3 %v24397_v20  ;;  %v15325_v40 = vor.u32 %v19084_v22, %v15322_v3  ;;  %v19044_v22 = vld [vmem:[%s30244_s6 + $0x6a4] sm:$0xf]  ;;  %v15162_v3 = vld [vmem:[%s30244_s6 + $0x6b0] sm:$0xf0] }
 0x30e   : > { %6929 = vmatmul.bf16.vlgmr.msrb.gmra.mxu0 %v22903_v21  ;;  %6947 = vmatmul.bf16.vlgmr.msrb.gmra.mxu1 %v22905_v49 }
 0x30f   : > { %7015 = vmatpush.bf16.msra.mxu1 %v15009_v60  ;;  %v14832_v60 = vld [vmem:[%s30244_s6 + $0x408] sm:$0xf]  ;;  %6747 = vmatpush.bf16.msra.mxu2 %v14589_v51  ;;  %v15585_v51 = vor.u32 %v19151_v10, %v15584_v48  ;;  %v19111_v10 = vld [vmem:[%s30244_s6 + $0x8b4] sm:$0xf0] }
 0x310   : > { %6998 = vmatpush.bf16.msra.mxu0 %v14865_v28  ;;  %6765 = vmatpush.bf16.msra.mxu3 %v14717_v62  ;;  %v14701_v28 = vor.u32 %v18928_v55, %v14698_v63  ;;  %v14833_v56 = vor.u32 %v18963_v57, %v14832_v60  ;;  %v19048_v62 = vld [vmem:[%s30244_s6 + $0x6c4] sm:$0xf]  ;;  %v15306_v63 = vld [vmem:[%s30244_s6 + $0x7d0] sm:$0xf0]  ;;  %v15568_v60 = vld [vmem:[%s30244_s6 + $0x9c8] sm:$0xf] }
 0x311   : > { %v19080_v55 = vld [vmem:[%s30244_s6 + $0x7c4] sm:$0xf]  ;;  %v19147_v57 = vld [vmem:[%s30244_s6 + $0x9d4] sm:$0xf0]  ;;  %v15181_v5 = vor.u32 %v19048_v62, %v15178_v35  ;;  %v15424_v48 = vld [vmem:[%s30244_s6 + $0x8a8] sm:$0xf] }
 0x312   : > { %v24460_v44 = vpop.f32.mrf.mxu0  ;;  %v24462_v27 = vpop.f32.mrf.mxu1  ;;  %v15309_v54 = vor.u32 %v19080_v55, %v15306_v63  ;;  %v15425_v62 = vor.u32 %v19111_v10, %v15424_v48  ;;  %v19072_v55 = vld [vmem:[%s30244_s6 + $0x784] sm:$0xf]  ;;  %v15274_v63 = vld [vmem:[%s30244_s6 + $0x790] sm:$0xf0] }
 0x313   : > { %7016 = vmatpush.bf16.msra.mxu1 %v14993_v46  ;;  %30284 = vst [vmem:[#allocation13_spill] sm:$0xff] %v24462_v27  ;;  %v19119_v46 = vld [vmem:[%s30244_s6 + $0x8f4] sm:$0xf0]  ;;  %6748 = vmatpush.bf16.msra.mxu2 %v14573_v45  ;;  %v15569_v45 = vor.u32 %v19147_v57, %v15568_v60  ;;  %v15536_v60 = vld [vmem:[%s30244_s6 + $0x988] sm:$0xf] }
 0x314   : > { %6999 = vmatpush.bf16.msra.mxu0 %v14849_v30  ;;  %v15457_v53 = vor.u32 %v19119_v46, %v15456_v42  ;;  %6766 = vmatpush.bf16.msra.mxu3 %v14701_v28  ;;  %v15440_v30 = vld [vmem:[%s30244_s6 + $0x8c8] sm:$0xf]  ;;  %v19076_v28 = vld [vmem:[%s30244_s6 + $0x7a4] sm:$0xf]  ;;  %v15290_v46 = vld [vmem:[%s30244_s6 + $0x7b0] sm:$0xf0] }
 0x315   : > { %v19139_v57 = vld [vmem:[%s30244_s6 + $0x994] sm:$0xf0]  ;;  %v19068_v48 = vld [vmem:[%s30244_s6 + $0x764] sm:$0xf]  ;;  %v15258_v10 = vld [vmem:[%s30244_s6 + $0x770] sm:$0xf0] }
 0x316   : > { %v14434_v27 = vld [vmem:[%s30244_s6 + $0xf8] sm:$0xf0] }
 0x317   : > { %7017 = vmatpush.bf16.msra.mxu1 %v14977_v15  ;;  %6813 = vmatpush.bf16.msrb.mxu2 %v15197_v47  ;;  %v19115_v15 = vld [vmem:[%s30244_s6 + $0x8d4] sm:$0xf0]  ;;  %v15165_v47 = vor.u32 %v19044_v22, %v15162_v3  ;;  %v15277_v3 = vor.u32 %v19072_v55, %v15274_v63  ;;  %v15114_v55 = vld [vmem:[%s30244_s6 + $0x650] sm:$0xf0] }
 0x318   : > { %7000 = vmatpush.bf16.msra.mxu0 %v14833_v56  ;;  %6831 = vmatpush.bf16.msrb.mxu3 %v15325_v40  ;;  %v15441_v42 = vor.u32 %v19115_v15, %v15440_v30  ;;  %v15552_v56 = vld [vmem:[%s30244_s6 + $0x9a8] sm:$0xf]  ;;  %v15293_v40 = vor.u32 %v19076_v28, %v15290_v46  ;;  %v19107_v15 = vld [vmem:[%s30244_s6 + $0x894] sm:$0xf0]  ;;  %v15537_v46 = vor.u32 %v19139_v57, %v15536_v60 }
 0x319   : > { %v15408_v30 = vld [vmem:[%s30244_s6 + $0x888] sm:$0xf]  ;;  %v19099_v57 = vld [vmem:[%s30244_s6 + $0x854] sm:$0xf0] }
 0x31a   : > { %v24497_v58 = vpop.f32.mrf.mxu0  ;;  %v24499_v11 = vpop.f32.mrf.mxu1  ;;  %v15409_v28 = vor.u32 %v19107_v15, %v15408_v30  ;;  %v15242_v15 = vld [vmem:[%s30244_s6 + $0x750] sm:$0xf0]  ;;  %v15376_v60 = vld [vmem:[%s30244_s6 + $0x848] sm:$0xf] }
 0x31b   : > { %7018 = vmatpush.bf16.msra.mxu1 %v14961_v26  ;;  %30285 = vst [vmem:[#allocation14_spill] sm:$0xff] %v24497_v58  ;;  %v19143_v26 = vld [vmem:[%s30244_s6 + $0x9b4] sm:$0xf0]  ;;  %6814 = vmatpush.bf16.msrb.mxu2 %v15181_v5  ;;  %v18861_v58 = vld [vmem:[%s30244_s6 + $0xec] sm:$0xf] }
 0x31c   : > { %7065 = vmatpush.bf16.msrb.mxu0 %v15457_v53  ;;  %30286 = vst [vmem:[#allocation15_spill] sm:$0xff] %v24499_v11  ;;  %6832 = vmatpush.bf16.msrb.mxu3 %v15309_v54  ;;  %v19040_v53 = vld [vmem:[%s30244_s6 + $0x684] sm:$0xf]  ;;  %v15553_v35 = vor.u32 %v19143_v26, %v15552_v56  ;;  %v15392_v56 = vld [vmem:[%s30244_s6 + $0x868] sm:$0xf] }
 0x31d   : > { %6682 = vmatmul.bf16.gmra.mxu2 %v24351_v39  ;;  %6700 = vmatmul.bf16.gmra.mxu3 %v24354_v25  ;;  %v19103_v26 = vld [vmem:[%s30244_s6 + $0x874] sm:$0xf0] }
 0x31e   : > { %6934 = vmatmul.bf16.gmra.mxu0 %v23254_v1  ;;  %6952 = vmatmul.bf16.gmra.mxu1 %v23256_v41  ;;  %v15393_v63 = vor.u32 %v19103_v26, %v15392_v56  ;;  %v19060_v26 = vld [vmem:[%s30244_s6 + $0x724] sm:$0xf] }
 0x31f   : > { %7083 = vmatpush.bf16.msrb.mxu1 %v15585_v51  ;;  %v15146_v51 = vld [vmem:[%s30244_s6 + $0x690] sm:$0xf0]  ;;  %6815 = vmatpush.bf16.msrb.mxu2 %v15165_v47  ;;  %v15520_v47 = vld [vmem:[%s30244_s6 + $0x968] sm:$0xf] }
 0x320   : > { %7066 = vmatpush.bf16.msrb.mxu0 %v15441_v42  ;;  %6833 = vmatpush.bf16.msrb.mxu3 %v15293_v40  ;;  %v15149_v22 = vor.u32 %v19040_v53, %v15146_v51  ;;  %v19036_v42 = vld [vmem:[%s30244_s6 + $0x664] sm:$0xf]  ;;  %v19135_v40 = vld [vmem:[%s30244_s6 + $0x974] sm:$0xf0]  ;;  %v24578_v53 = vperm.slane %v23857_v14, 1 }
 0x321   : > { %v15521_v30 = vor.u32 %v19135_v40, %v15520_v47  ;;  %v19064_v14 = vld [vmem:[%s30244_s6 + $0x744] sm:$0xf]  ;;  %v15226_v47 = vld [vmem:[%s30244_s6 + $0x730] sm:$0xf0]  ;;  %v15360_v40 = vld [vmem:[%s30244_s6 + $0x828] sm:$0xf] }
 0x322   : > { %v6649_v5 = vpop.f32.mrf.mxu0  ;;  %v6667_v54 = vpop.f32.mrf.mxu1 }
 0x323   : > { %7084 = vmatpush.bf16.msrb.mxu1 %v15569_v45  ;;  %v15130_v45 = vld [vmem:[%s30244_s6 + $0x670] sm:$0xf0]  ;;  %6816 = vmatpush.bf16.msrb.mxu2 %v15149_v22  ;;  %v15504_v5 = vld [vmem:[%s30244_s6 + $0x948] sm:$0xf]  ;;  %v19131_v54 = vld [vmem:[%s30244_s6 + $0x954] sm:$0xf0] }
 0x324   : > { %7067 = vmatpush.bf16.msrb.mxu0 %v15425_v62  ;;  %6834 = vmatpush.bf16.msrb.mxu3 %v15277_v3  ;;  %v15133_v51 = vor.u32 %v19036_v42, %v15130_v45  ;;  %v15261_v62 = vor.u32 %v19068_v48, %v15258_v10  ;;  %v15245_v45 = vor.u32 %v19064_v14, %v15242_v15  ;;  %v19024_v14 = vld [vmem:[%s30244_s6 + $0x604] sm:$0xf]  ;;  %v15082_v15 = vld [vmem:[%s30244_s6 + $0x610] sm:$0xf0] }
 0x325   : > { %v15377_v10 = vor.u32 %v19099_v57, %v15376_v60  ;;  %v15505_v56 = vor.u32 %v19131_v54, %v15504_v5  ;;  %v19056_v60 = vld [vmem:[%s30244_s6 + $0x704] sm:$0xf]  ;;  %v15210_v54 = vld [vmem:[%s30244_s6 + $0x710] sm:$0xf0] }
 0x327   : > { %7085 = vmatpush.bf16.msrb.mxu1 %v15553_v35  ;;  %v19032_v35 = vld [vmem:[%s30244_s6 + $0x644] sm:$0xf]  ;;  %6817 = vmatpush.bf16.msrb.mxu2 %v15133_v51  ;;  %v19095_v51 = vld [vmem:[%s30244_s6 + $0x834] sm:$0xf0] }
 0x328   : > { %7068 = vmatpush.bf16.msrb.mxu0 %v15409_v28  ;;  %6835 = vmatpush.bf16.msrb.mxu3 %v15261_v62  ;;  %v15117_v42 = vor.u32 %v19032_v35, %v15114_v55  ;;  %v19028_v28 = vld [vmem:[%s30244_s6 + $0x624] sm:$0xf]  ;;  %v15488_v62 = vld [vmem:[%s30244_s6 + $0x928] sm:$0xf]  ;;  %v19127_v35 = vld [vmem:[%s30244_s6 + $0x934] sm:$0xf0]  ;;  %v15361_v57 = vor.u32 %v19095_v51, %v15360_v40  ;;  %v15213_v40 = vor.u32 %v19056_v60, %v15210_v54 }
 0x329   : > { %v15489_v5 = vor.u32 %v19127_v35, %v15488_v62  ;;  %v18857_v54 = vld [vmem:[%s30244_s6 + $0xcc] sm:$0xf] }
 0x32a   : > { %v6714_v22 = vpop.f32.mrf.mxu0  ;;  %v6732_v3 = vpop.f32.mrf.mxu1 }
 0x32b   : > { %7086 = vmatpush.bf16.msrb.mxu1 %v15537_v46  ;;  %v15098_v46 = vld [vmem:[%s30244_s6 + $0x630] sm:$0xf0]  ;;  %v6715_v48 = vadd.f32 %v6714_v22, %v24578_v53  ;;  %6818 = vmatpush.bf16.msrb.mxu2 %v15117_v42  ;;  %v15344_v22 = vld [vmem:[%s30244_s6 + $0x808] sm:$0xf] }
 0x32c   : > { %7069 = vmatpush.bf16.msrb.mxu0 %v15393_v63  ;;  %6836 = vmatpush.bf16.msrb.mxu3 %v15245_v45  ;;  %v15101_v63 = vor.u32 %v19028_v28, %v15098_v46  ;;  %v15472_v42 = vld [vmem:[%s30244_s6 + $0x908] sm:$0xf]  ;;  %v19123_v45 = vld [vmem:[%s30244_s6 + $0x914] sm:$0xf0]  ;;  %v19180_v28 = vld [vmem:[%s30244_s6 + $0xae4] sm:$0xf] }
 0x32d   : > { %6749 = vmatmul.bf16.vlgmr.msra.gmra.mxu2 %v23901_v17  ;;  %6767 = vmatmul.bf16.vlgmr.msra.gmra.mxu3 %v23903_v23  ;;  %v24631_v55 = vadd.f32 %v6732_v3, %v6715_v48  ;;  %v19091_v3 = vld [vmem:[%s30244_s6 + $0x814] sm:$0xf0]  ;;  %v15706_v46 = vld [vmem:[%s30244_s6 + $0xaf0] sm:$0xf0]  ;;  %v19212_v48 = vld [vmem:[%s30244_s6 + $0xbe4] sm:$0xf]  ;;  %v15473_v35 = vor.u32 %v19123_v45, %v15472_v42 }
 0x32e   : > { %7001 = vmatmul.bf16.vlgmr.msra.gmra.mxu0 %v23331_v13  ;;  %7019 = vmatmul.bf16.vlgmr.msra.gmra.mxu1 %v23338_v32  ;;  %v15345_v62 = vor.u32 %v19091_v3, %v15344_v22  ;;  %v14418_v22 = vld [vmem:[%s30244_s6 + $0xd8] sm:$0xf0]  ;;  %v18889_v3 = vld [vmem:[%s30244_s6 + $0x1cc] sm:$0xf] }
 0x32f   : > { %7087 = vmatpush.bf16.msrb.mxu1 %v15521_v30  ;;  %30287 = vst [vmem:[#allocation16_spill] sm:$0xff] %v24631_v55  ;;  %v15229_v30 = vor.u32 %v19060_v26, %v15226_v47  ;;  %6819 = vmatpush.bf16.msrb.mxu2 %v15101_v63  ;;  %v15085_v47 = vor.u32 %v19024_v14, %v15082_v15  ;;  %v18893_v63 = vld [vmem:[%s30244_s6 + $0x1ec] sm:$0xf]  ;;  %v14562_v15 = vld [vmem:[%s30244_s6 + $0x1f8] sm:$0xf0] }
 0x330   : > { %7070 = vmatpush.bf16.msrb.mxu0 %v15377_v10  ;;  %v15834_v10 = vld [vmem:[%s30244_s6 + $0xbf0] sm:$0xf0]  ;;  %v15709_v55 = vor.u32 %v19180_v28, %v15706_v46  ;;  %v14437_v14 = vor.u32 %v18861_v58, %v14434_v27  ;;  %v14565_v60 = vor.u32 %v18893_v63, %v14562_v15  ;;  %v19208_v27 = vld [vmem:[%s30244_s6 + $0xbc4] sm:$0xf]  ;;  %v14546_v42 = vld [vmem:[%s30244_s6 + $0x1d8] sm:$0xf0] }
 0x331   : > { %6837 = vmatpush.bf16.msrb.mxu3 %v15229_v30  ;;  %v15837_v11 = vor.u32 %v19212_v48, %v15834_v10  ;;  %v15818_v58 = vld [vmem:[%s30244_s6 + $0xbd0] sm:$0xf0]  ;;  %v14421_v10 = vor.u32 %v18857_v54, %v14418_v22  ;;  %v14530_v63 = vld [vmem:[%s30244_s6 + $0x1b8] sm:$0xf0]  ;;  %v18849_v22 = vld [vmem:[%s30244_s6 + $0x8c] sm:$0xf] }
 0x332   : > { %v6734_v26 = vpop.f32.mrf.mxu1  ;;  %v15821_v48 = vor.u32 %v19208_v27, %v15818_v58  ;;  %v19200_v58 = vld [vmem:[%s30244_s6 + $0xb84] sm:$0xf]  ;;  %v15786_v54 = vld [vmem:[%s30244_s6 + $0xb90] sm:$0xf0] }
 0x333   : > { %7088 = vmatpush.bf16.msrb.mxu1 %v15505_v56  ;;  %v6716_v56 = vpop.f32.mrf.mxu0  ;;  %6820 = vmatpush.bf16.msrb.mxu2 %v15085_v47  ;;  %v19204_v47 = vld [vmem:[%s30244_s6 + $0xba4] sm:$0xf] }
 0x334   : > { %v6717_v51 = vadd.f32 %v6716_v56, %v24578_v53  ;;  %7071 = vmatpush.bf16.msrb.mxu0 %v15361_v57  ;;  %v19176_v57 = vld [vmem:[%s30244_s6 + $0xac4] sm:$0xf]  ;;  %v14549_v56 = vor.u32 %v18889_v3, %v14546_v42  ;;  %v14386_v3 = vld [vmem:[%s30244_s6 + $0x98] sm:$0xf0]  ;;  %v18881_v42 = vld [vmem:[%s30244_s6 + $0x18c] sm:$0xf] }
 0x335   : > { %6838 = vmatpush.bf16.msrb.mxu3 %v15213_v40  ;;  %v15802_v40 = vld [vmem:[%s30244_s6 + $0xbb0] sm:$0xf0] }
 0x336   : > { %v24681_v30 = vadd.f32 %v6734_v26, %v6717_v51  ;;  %v15674_v26 = vld [vmem:[%s30244_s6 + $0xab0] sm:$0xf0]  ;;  %v14402_v51 = vld [vmem:[%s30244_s6 + $0xb8] sm:$0xf0]  ;;  %v15805_v15 = vor.u32 %v19204_v47, %v15802_v40  ;;  %v19196_v47 = vld [vmem:[%s30244_s6 + $0xb64] sm:$0xf] }
 0x337   : > { %7089 = vmatpush.bf16.msrb.mxu1 %v15489_v5  ;;  %v15690_v5 = vld [vmem:[%s30244_s6 + $0xad0] sm:$0xf0]  ;;  %6885 = vmatpush.bf16.msra.mxu2 %v15709_v55 }
 0x338   : > { %30288 = vst [vmem:[#allocation17_spill] sm:$0xff] %v24681_v30  ;;  %7072 = vmatpush.bf16.msrb.mxu0 %v15345_v62  ;;  %v15693_v46 = vor.u32 %v19176_v57, %v15690_v5  ;;  %v18885_v62 = vld [vmem:[%s30244_s6 + $0x1ac] sm:$0xf]  ;;  %v15658_v57 = vld [vmem:[%s30244_s6 + $0xa90] sm:$0xf0] }
 0x339   : > { %6903 = vmatpush.bf16.msra.mxu3 %v15837_v11  ;;  %v19172_v11 = vld [vmem:[%s30244_s6 + $0xaa4] sm:$0xf]  ;;  %v14533_v27 = vor.u32 %v18885_v62, %v14530_v63  ;;  %v15770_v40 = vld [vmem:[%s30244_s6 + $0xb70] sm:$0xf0]  ;;  %v18877_v62 = vld [vmem:[%s30244_s6 + $0x16c] sm:$0xf] }
 0x33a   : > { %v6737_v28 = vpop.f32.mrf.mxu1  ;;  %v14498_v63 = vld [vmem:[%s30244_s6 + $0x178] sm:$0xf0]  ;;  %v18989_v30 = vld [vmem:[%s30244_s6 + $0x4ec] sm:$0xf] }
 0x33b   : > { %7090 = vmatpush.bf16.msrb.mxu1 %v15473_v35  ;;  %v6719_v45 = vpop.f32.mrf.mxu0  ;;  %6886 = vmatpush.bf16.msra.mxu2 %v15693_v46 }
 0x33c   : > { %7137 = vmatpush.bf16.msra.mxu0 %v14437_v14  ;;  %v6720_v55 = vadd.f32 %v6719_v45, %v24578_v53  ;;  %v18853_v53 = vld [vmem:[%s30244_s6 + $0xac] sm:$0xf]  ;;  %v15677_v14 = vor.u32 %v19172_v11, %v15674_v26  ;;  %v14514_v45 = vld [vmem:[%s30244_s6 + $0x198] sm:$0xf0]  ;;  %v15789_v11 = vor.u32 %v19200_v58, %v15786_v54  ;;  %v15642_v26 = vld [vmem:[%s30244_s6 + $0xa70] sm:$0xf0] }
 0x33d   : > { %6754 = vmatmul.bf16.gmra.mxu2 %v24028_v24  ;;  %6772 = vmatmul.bf16.gmra.mxu3 %v24030_v16  ;;  %v14405_v5 = vor.u32 %v18853_v53, %v14402_v51  ;;  %v18845_v53 = vld [vmem:[%s30244_s6 + $0x6c] sm:$0xf]  ;;  %v14370_v51 = vld [vmem:[%s30244_s6 + $0x78] sm:$0xf0]  ;;  %v19192_v58 = vld [vmem:[%s30244_s6 + $0xb44] sm:$0xf] }
 0x33e   : > { %v24734_v35 = vadd.f32 %v6737_v28, %v6720_v55  ;;  %7006 = vmatmul.bf16.gmra.mxu0 %v23401_v50  ;;  %7024 = vmatmul.bf16.gmra.mxu1 %v23404_v8  ;;  %v19164_v55 = vld [vmem:[%s30244_s6 + $0xa64] sm:$0xf]  ;;  %v15754_v54 = vld [vmem:[%s30244_s6 + $0xb50] sm:$0xf0] }
 0x33f   : > { %7155 = vmatpush.bf16.msra.mxu1 %v14565_v60  ;;  %6904 = vmatpush.bf16.msra.mxu3 %v15821_v48  ;;  %v19168_v60 = vld [vmem:[%s30244_s6 + $0xa84] sm:$0xf] }
 0x340   : > { %30289 = vst [vmem:[#allocation18_spill] sm:$0xff] %v24734_v35  ;;  %7138 = vmatpush.bf16.msra.mxu0 %v14421_v10  ;;  %6887 = vmatpush.bf16.msra.mxu2 %v15677_v14  ;;  %v15661_v48 = vor.u32 %v19168_v60, %v15658_v57  ;;  %v14389_v10 = vor.u32 %v18849_v22, %v14386_v3  ;;  %v19160_v60 = vld [vmem:[%s30244_s6 + $0xa44] sm:$0xf]  ;;  %v15626_v57 = vld [vmem:[%s30244_s6 + $0xa50] sm:$0xf0] }
 0x341   : > { %v15645_v14 = vor.u32 %v19164_v55, %v15642_v26  ;;  %v18841_v22 = vld [vmem:[%s30244_s6 + $0x4c] sm:$0xf]  ;;  %v14354_v3 = vld [vmem:[%s30244_s6 + $0x58] sm:$0xf0]  ;;  %v19156_v55 = vld [vmem:[%s30244_s6 + $0xa24] sm:$0xf] }
 0x342   : > { %v6739_v46 = vpop.f32.mrf.mxu1 }
 0x343   : > { %7156 = vmatpush.bf16.msra.mxu1 %v14549_v56  ;;  %v6721_v28 = vpop.f32.mrf.mxu0  ;;  %6905 = vmatpush.bf16.msra.mxu3 %v15805_v15  ;;  %v14517_v56 = vor.u32 %v18881_v42, %v14514_v45  ;;  %v15773_v15 = vor.u32 %v19196_v47, %v15770_v40  ;;  %v18873_v42 = vld [vmem:[%s30244_s6 + $0x14c] sm:$0xf]  ;;  %v14482_v45 = vld [vmem:[%s30244_s6 + $0x158] sm:$0xf0]  ;;  %v19188_v47 = vld [vmem:[%s30244_s6 + $0xb24] sm:$0xf] }
 0x344   : > { %7139 = vmatpush.bf16.msra.mxu0 %v14405_v5  ;;  %6888 = vmatpush.bf16.msra.mxu2 %v15661_v48  ;;  %v14373_v5 = vor.u32 %v18845_v53, %v14370_v51  ;;  %v15629_v48 = vor.u32 %v19160_v60, %v15626_v57  ;;  %v14485_v26 = vor.u32 %v18873_v42, %v14482_v45  ;;  %v15738_v40 = vld [vmem:[%s30244_s6 + $0xb30] sm:$0xf0]  ;;  %v18837_v53 = vld [vmem:[%s30244_s6 + $0x2c] sm:$0xf]  ;;  %v14338_v51 = vld [vmem:[%s30244_s6 + $0x38] sm:$0xf0] }
 0x345   : > { %v19152_v60 = vld [vmem:[%s30244_s6 + $0xa04] sm:$0xf]  ;;  %v15594_v57 = vld [vmem:[%s30244_s6 + $0xa10] sm:$0xf0]  ;;  %v18833_v42 = vld [vmem:[%s30244_s6 + $0xc] sm:$0xf] }
 0x346   : > { %v14322_v45 = vld [vmem:[%s30244_s6 + $0x18] sm:$0xf0] }
 0x347   : > { %7157 = vmatpush.bf16.msra.mxu1 %v14533_v27  ;;  %6906 = vmatpush.bf16.msra.mxu3 %v15789_v11  ;;  %v14501_v27 = vor.u32 %v18877_v62, %v14498_v63  ;;  %v15757_v11 = vor.u32 %v19192_v58, %v15754_v54  ;;  %v18869_v62 = vld [vmem:[%s30244_s6 + $0x12c] sm:$0xf]  ;;  %v14466_v63 = vld [vmem:[%s30244_s6 + $0x138] sm:$0xf0]  ;;  %v14341_v54 = vor.u32 %v18837_v53, %v14338_v51 }
 0x348   : > { %7140 = vmatpush.bf16.msra.mxu0 %v14389_v10  ;;  %6889 = vmatpush.bf16.msra.mxu2 %v15645_v14  ;;  %v15610_v10 = vld [vmem:[%s30244_s6 + $0xa30] sm:$0xf0]  ;;  %v15597_v51 = vor.u32 %v19152_v60, %v15594_v57  ;;  %v15074_v60 = vld [vmem:[%s30244_s6 + $0x5f8] sm:$0xf0] }
 0x349   : > { %v15613_v14 = vor.u32 %v19156_v55, %v15610_v10  ;;  %v14450_v55 = vld [vmem:[%s30244_s6 + $0x118] sm:$0xf0]  ;;  %v14688_v10 = vld [vmem:[%s30244_s6 + $0x2e8] sm:$0xf] }
 0x34b   : > { %7158 = vmatpush.bf16.msra.mxu1 %v14517_v56  ;;  %v24813_v28 = vpop.f32.mrf.mxu0  ;;  %v24815_v46 = vpop.f32.mrf.mxu1  ;;  %6907 = vmatpush.bf16.msra.mxu3 %v15773_v15  ;;  %v14357_v56 = vor.u32 %v18841_v22, %v14354_v3  ;;  %v15741_v15 = vor.u32 %v19188_v47, %v15738_v40  ;;  %v14469_v22 = vor.u32 %v18869_v62, %v14466_v63  ;;  %v15722_v3 = vld [vmem:[%s30244_s6 + $0xb10] sm:$0xf0] }
 0x34c   : > { %30290 = vst [vmem:[#allocation19_spill] sm:$0xff] %v24815_v46  ;;  %7141 = vmatpush.bf16.msra.mxu0 %v14373_v5  ;;  %6890 = vmatpush.bf16.msra.mxu2 %v15629_v48  ;;  %v19184_v5 = vld [vmem:[%s30244_s6 + $0xb04] sm:$0xf]  ;;  %v14325_v63 = vor.u32 %v18833_v42, %v14322_v45  ;;  %v18955_v42 = vld [vmem:[%s30244_s6 + $0x3d4] sm:$0xf0] }
 0x34d   : > { %6821 = vmatmul.bf16.vlgmr.msrb.gmra.mxu2 %v24151_v37  ;;  %6839 = vmatmul.bf16.vlgmr.msrb.gmra.mxu3 %v24161_v36  ;;  %v15725_v62 = vor.u32 %v19184_v5, %v15722_v3  ;;  %v14672_v5 = vld [vmem:[%s30244_s6 + $0x2c8] sm:$0xf]  ;;  %v18985_v45 = vld [vmem:[%s30244_s6 + $0x4cc] sm:$0xf] }
 0x34e   : > { %7073 = vmatmul.bf16.vlgmr.msrb.gmra.mxu0 %v23483_v43  ;;  %7091 = vmatmul.bf16.vlgmr.msrb.gmra.mxu1 %v23487_v59 }
 0x34f   : > { %7159 = vmatpush.bf16.msra.mxu1 %v14501_v27  ;;  %6908 = vmatpush.bf16.msra.mxu3 %v15757_v11  ;;  %v18865_v11 = vld [vmem:[%s30244_s6 + $0x10c] sm:$0xf] }
 0x350   : > { %v6534_v27 = vpop.f32.mrf.mxu2  ;;  %v6552_v58 = vpop.f32.mrf.mxu3  ;;  %7142 = vmatpush.bf16.msra.mxu0 %v14357_v56  ;;  %v18927_v56 = vld [vmem:[%s30244_s6 + $0x2f4] sm:$0xf0]  ;;  %6891 = vmatpush.bf16.msra.mxu2 %v15613_v14  ;;  %v19021_v14 = vld [vmem:[%s30244_s6 + $0x5ec] sm:$0xf] }
 0x351   : > { %v6535_v48 = vadd.f32 %v6534_v27, %v23933_v38  ;;  %v14816_v38 = vld [vmem:[%s30244_s6 + $0x3e8] sm:$0xf]  ;;  %v14453_v27 = vor.u32 %v18865_v11, %v14450_v55  ;;  %v14689_v35 = vor.u32 %v18927_v56, %v14688_v10  ;;  %v15077_v57 = vor.u32 %v19021_v14, %v15074_v60  ;;  %v14930_v11 = vld [vmem:[%s30244_s6 + $0x4d8] sm:$0xf0]  ;;  %v19017_v55 = vld [vmem:[%s30244_s6 + $0x5cc] sm:$0xf] }
 0x352   : > { %v15058_v10 = vld [vmem:[%s30244_s6 + $0x5d8] sm:$0xf0]  ;;  %v18981_v14 = vld [vmem:[%s30244_s6 + $0x4ac] sm:$0xf] }
 0x353   : > { %7160 = vmatpush.bf16.msra.mxu1 %v14485_v26  ;;  %v18959_v26 = vld [vmem:[%s30244_s6 + $0x3f4] sm:$0xf0]  ;;  %v24882_v47 = vadd.f32 %v6552_v58, %v6535_v48  ;;  %v24884_v40 = vpop.f32.mrf.mxu0  ;;  %v24886_v53 = vpop.f32.mrf.mxu1  ;;  %6909 = vmatpush.bf16.msra.mxu3 %v15741_v15  ;;  %v14946_v58 = vld [vmem:[%s30244_s6 + $0x4f8] sm:$0xf0]  ;;  %v19013_v60 = vld [vmem:[%s30244_s6 + $0x5ac] sm:$0xf] }
 0x354   : > { %7143 = vmatpush.bf16.msra.mxu0 %v14341_v54  ;;  %v14817_v46 = vor.u32 %v18959_v26, %v14816_v38  ;;  %v14949_v15 = vor.u32 %v18989_v30, %v14946_v58  ;;  %6892 = vmatpush.bf16.msra.mxu2 %v15597_v51  ;;  %v18923_v54 = vld [vmem:[%s30244_s6 + $0x2d4] sm:$0xf0]  ;;  %v14800_v30 = vld [vmem:[%s30244_s6 + $0x3c8] sm:$0xf]  ;;  %v14933_v51 = vor.u32 %v18985_v45, %v14930_v11 }
 0x355   : > { %v14656_v26 = vld [vmem:[%s30244_s6 + $0x2a8] sm:$0xf]  ;;  %v18951_v58 = vld [vmem:[%s30244_s6 + $0x3b4] sm:$0xf0] }
 0x356   : > { %v14768_v11 = vld [vmem:[%s30244_s6 + $0x388] sm:$0xf] }
 0x357   : > { %7161 = vmatpush.bf16.msra.mxu1 %v14469_v22  ;;  %6910 = vmatpush.bf16.msra.mxu3 %v15725_v62  ;;  %v15061_v62 = vor.u32 %v19017_v55, %v15058_v10  ;;  %v18947_v55 = vld [vmem:[%s30244_s6 + $0x394] sm:$0xf0]  ;;  %v18977_v10 = vld [vmem:[%s30244_s6 + $0x48c] sm:$0xf] }
 0x358   : > { %v6536_v22 = vpop.f32.mrf.mxu2  ;;  %v6554_v3 = vpop.f32.mrf.mxu3  ;;  %7144 = vmatpush.bf16.msra.mxu0 %v14325_v63  ;;  %6957 = vmatpush.bf16.msrb.mxu2 %v14689_v35  ;;  %v14673_v35 = vor.u32 %v18923_v54, %v14672_v5  ;;  %v18919_v63 = vld [vmem:[%s30244_s6 + $0x2b4] sm:$0xf0] }
 0x359   : > { %v6537_v48 = vadd.f32 %v6536_v22, %v24001_v31  ;;  %v14657_v5 = vor.u32 %v18919_v63, %v14656_v26  ;;  %v14640_v22 = vld [vmem:[%s30244_s6 + $0x288] sm:$0xf]  ;;  %v19009_v26 = vld [vmem:[%s30244_s6 + $0x58c] sm:$0xf] }
 0x35b   : > { %7162 = vmatpush.bf16.msra.mxu1 %v14453_v27  ;;  %6975 = vmatpush.bf16.msrb.mxu3 %v14817_v46  ;;  %v24925_v56 = vadd.f32 %v6554_v3, %v6537_v48  ;;  %v24927_v38 = vpop.f32.mrf.mxu0  ;;  %v24929_v31 = vpop.f32.mrf.mxu1  ;;  %v14801_v46 = vor.u32 %v18955_v42, %v14800_v30  ;;  %v14784_v27 = vld [vmem:[%s30244_s6 + $0x3a8] sm:$0xf]  ;;  %v18915_v3 = vld [vmem:[%s30244_s6 + $0x294] sm:$0xf0] }
 0x35c   : > { %7209 = vmatpush.bf16.msrb.mxu0 %v14949_v15  ;;  %30291 = vst [vmem:[#allocation20_spill] sm:$0xff] %v24929_v31  ;;  %v14914_v15 = vld [vmem:[%s30244_s6 + $0x4b8] sm:$0xf0]  ;;  %6958 = vmatpush.bf16.msrb.mxu2 %v14673_v35  ;;  %v14785_v54 = vor.u32 %v18951_v58, %v14784_v27  ;;  %v14641_v58 = vor.u32 %v18915_v3, %v14640_v22  ;;  %v19005_v3 = vld [vmem:[%s30244_s6 + $0x56c] sm:$0xf] }
 0x35d   : > { %6826 = vmatmul.bf16.gmra.mxu2 %v24268_v2  ;;  %6844 = vmatmul.bf16.gmra.mxu3 %v24271_v9  ;;  %v14917_v45 = vor.u32 %v18981_v14, %v14914_v15  ;;  %v14624_v14 = vld [vmem:[%s30244_s6 + $0x268] sm:$0xf]  ;;  %v14882_v22 = vld [vmem:[%s30244_s6 + $0x478] sm:$0xf0]  ;;  %v19117_v31 = vld [vmem:[%s30244_s6 + $0x8ec] sm:$0xf] }
 0x35e   : > { %7078 = vmatmul.bf16.gmra.mxu0 %v23458_v33  ;;  %7096 = vmatmul.bf16.gmra.mxu1 %v23461_v34 }
 0x35f   : > { %7227 = vmatpush.bf16.msrb.mxu1 %v15077_v57  ;;  %v15042_v57 = vld [vmem:[%s30244_s6 + $0x5b8] sm:$0xf0]  ;;  %6976 = vmatpush.bf16.msrb.mxu3 %v14801_v46 }
 0x360   : > { %v6539_v30 = vpop.f32.mrf.mxu2  ;;  %v6557_v42 = vpop.f32.mrf.mxu3  ;;  %7210 = vmatpush.bf16.msrb.mxu0 %v14933_v51  ;;  %v15045_v48 = vor.u32 %v19013_v60, %v15042_v57  ;;  %v14898_v46 = vld [vmem:[%s30244_s6 + $0x498] sm:$0xf0]  ;;  %6959 = vmatpush.bf16.msrb.mxu2 %v14657_v5  ;;  %v18911_v57 = vld [vmem:[%s30244_s6 + $0x274] sm:$0xf0] }
 0x361   : > { %v6540_v35 = vadd.f32 %v6539_v30, %v24059_v61  ;;  %v15026_v51 = vld [vmem:[%s30244_s6 + $0x598] sm:$0xf0]  ;;  %v14769_v61 = vor.u32 %v18947_v55, %v14768_v11  ;;  %v14901_v15 = vor.u32 %v18977_v10, %v14898_v46  ;;  %v14752_v30 = vld [vmem:[%s30244_s6 + $0x368] sm:$0xf]  ;;  %v18943_v5 = vld [vmem:[%s30244_s6 + $0x374] sm:$0xf0] }
 0x362   : > { %v15029_v60 = vor.u32 %v19009_v26, %v15026_v51  ;;  %v14608_v11 = vld [vmem:[%s30244_s6 + $0x248] sm:$0xf]  ;;  %v18907_v55 = vld [vmem:[%s30244_s6 + $0x254] sm:$0xf0] }
 0x363   : > { %7228 = vmatpush.bf16.msrb.mxu1 %v15061_v62  ;;  %v24984_v62 = vadd.f32 %v6557_v42, %v6540_v35  ;;  %v6793_v63 = vpop.f32.mrf.mxu0  ;;  %v6811_v27 = vpop.f32.mrf.mxu1  ;;  %6977 = vmatpush.bf16.msrb.mxu3 %v14785_v54  ;;  %v18973_v54 = vld [vmem:[%s30244_s6 + $0x46c] sm:$0xf]  ;;  %v15010_v42 = vld [vmem:[%s30244_s6 + $0x578] sm:$0xf0]  ;;  %v14736_v51 = vld [vmem:[%s30244_s6 + $0x348] sm:$0xf] }
 0x364   : > { %7211 = vmatpush.bf16.msrb.mxu0 %v14917_v45  ;;  %6960 = vmatpush.bf16.msrb.mxu2 %v14641_v58  ;;  %v14625_v45 = vor.u32 %v18911_v57, %v14624_v14  ;;  %v14885_v46 = vor.u32 %v18973_v54, %v14882_v22  ;;  %v15013_v26 = vor.u32 %v19005_v3, %v15010_v42  ;;  %v18939_v63 = vld [vmem:[%s30244_s6 + $0x354] sm:$0xf0]  ;;  %v18969_v27 = vld [vmem:[%s30244_s6 + $0x44c] sm:$0xf]  ;;  %v14866_v58 = vld [vmem:[%s30244_s6 + $0x458] sm:$0xf0] }
 0x365   : > { %v14994_v14 = vld [vmem:[%s30244_s6 + $0x558] sm:$0xf0]  ;;  %v14592_v54 = vld [vmem:[%s30244_s6 + $0x228] sm:$0xf]  ;;  %v18903_v22 = vld [vmem:[%s30244_s6 + $0x234] sm:$0xf0]  ;;  %v14869_v3 = vor.u32 %v18969_v27, %v14866_v58 }
 0x366   : > { %v18935_v42 = vld [vmem:[%s30244_s6 + $0x334] sm:$0xf0] }
 0x367   : > { %7229 = vmatpush.bf16.msrb.mxu1 %v15045_v48  ;;  %6978 = vmatpush.bf16.msrb.mxu3 %v14769_v61  ;;  %v14753_v48 = vor.u32 %v18943_v5, %v14752_v30  ;;  %v19001_v61 = vld [vmem:[%s30244_s6 + $0x54c] sm:$0xf]  ;;  %v14609_v30 = vor.u32 %v18907_v55, %v14608_v11  ;;  %v14737_v5 = vor.u32 %v18939_v63, %v14736_v51  ;;  %v14978_v55 = vld [vmem:[%s30244_s6 + $0x538] sm:$0xf0]  ;;  %v18899_v51 = vld [vmem:[%s30244_s6 + $0x214] sm:$0xf0] }
 0x368   : > { %v6541_v10 = vpop.f32.mrf.mxu2  ;;  %v6559_v35 = vpop.f32.mrf.mxu3  ;;  %7212 = vmatpush.bf16.msrb.mxu0 %v14901_v15  ;;  %v6571_v15 = vadd.f32 %v24145_v6, %v24882_v47  ;;  %6961 = vmatpush.bf16.msrb.mxu2 %v14625_v45  ;;  %v14997_v6 = vor.u32 %v19001_v61, %v14994_v14  ;;  %v14720_v47 = vld [vmem:[%s30244_s6 + $0x328] sm:$0xf]  ;;  %v18965_v45 = vld [vmem:[%s30244_s6 + $0x42c] sm:$0xf]  ;;  %v18931_v58 = vld [vmem:[%s30244_s6 + $0x314] sm:$0xf0] }
 0x369   : > { %v18997_v11 = vld [vmem:[%s30244_s6 + $0x52c] sm:$0xf]  ;;  %v14593_v35 = vor.u32 %v18903_v22, %v14592_v54  ;;  %v14834_v14 = vld [vmem:[%s30244_s6 + $0x418] sm:$0xf0]  ;;  %v15200_v54 = vld [vmem:[%s30244_s6 + $0x6e8] sm:$0xf]  ;;  %v6573_v22 = vadd.f32 %v24224_v19, %v24925_v56 }
 0x36a   : > { %v6589_v10 = vadd.f32 %v24147_v29, %v6571_v15  ;;  %v14981_v27 = vor.u32 %v18997_v11, %v14978_v55  ;;  %v18961_v61 = vld [vmem:[%s30244_s6 + $0x40c] sm:$0xf] }
 0x36b   : > { %7230 = vmatpush.bf16.msrb.mxu1 %v15029_v60  ;;  %v25036_v60 = vpop.f32.mrf.mxu0  ;;  %v25038_v57 = vpop.f32.mrf.mxu1  ;;  %6979 = vmatpush.bf16.msrb.mxu3 %v14753_v48  ;;  %v14850_v48 = vld [vmem:[%s30244_s6 + $0x438] sm:$0xf0]  ;;  %v14837_v11 = vor.u32 %v18961_v61, %v14834_v14  ;;  %v19113_v14 = vld [vmem:[%s30244_s6 + $0x8cc] sm:$0xf] }
 0x36c   : > { %7213 = vmatpush.bf16.msrb.mxu0 %v14885_v46  ;;  %6962 = vmatpush.bf16.msrb.mxu2 %v14609_v30  ;;  %v14721_v46 = vor.u32 %v18935_v42, %v14720_v47  ;;  %v14853_v29 = vor.u32 %v18965_v45, %v14850_v48  ;;  %v18993_v30 = vld [vmem:[%s30244_s6 + $0x50c] sm:$0xf]  ;;  %v19087_v47 = vld [vmem:[%s30244_s6 + $0x7f4] sm:$0xf0] }
 0x36d   : > { %6893 = vmatmul.bf16.vlgmr.msra.gmra.mxu2 %v24387_v0  ;;  %6911 = vmatmul.bf16.vlgmr.msra.gmra.mxu3 %v24397_v20 }
 0x36e   : > { %7145 = vmatmul.bf16.vlgmr.msra.gmra.mxu0 %v22903_v21  ;;  %7163 = vmatmul.bf16.vlgmr.msra.gmra.mxu1 %v22905_v49  ;;  %v14704_v21 = vld [vmem:[%s30244_s6 + $0x308] sm:$0xf] }
 0x36f   : > { %7231 = vmatpush.bf16.msrb.mxu1 %v15013_v26  ;;  %6980 = vmatpush.bf16.msrb.mxu3 %v14737_v5  ;;  %v14576_v26 = vld [vmem:[%s30244_s6 + $0x208] sm:$0xf]  ;;  %v14962_v5 = vld [vmem:[%s30244_s6 + $0x518] sm:$0xf0]  ;;  %v14705_v56 = vor.u32 %v18931_v58, %v14704_v21 }
 0x370   : > { %v6606_v63 = vpop.f32.mrf.mxu2  ;;  %v6624_v49 = vpop.f32.mrf.mxu3  ;;  %7214 = vmatpush.bf16.msrb.mxu0 %v14869_v3  ;;  %v19055_v3 = vld [vmem:[%s30244_s6 + $0x6f4] sm:$0xf0]  ;;  %6963 = vmatpush.bf16.msrb.mxu2 %v14593_v35  ;;  %v14577_v19 = vor.u32 %v18899_v51, %v14576_v26  ;;  %v14965_v55 = vor.u32 %v18993_v30, %v14962_v5  ;;  %v19149_v35 = vld [vmem:[%s30244_s6 + $0x9ec] sm:$0xf]  ;;  %v15586_v26 = vld [vmem:[%s30244_s6 + $0x9f8] sm:$0xf0]  ;;  %v6591_v51 = vadd.f32 %v24226_v12, %v6573_v22 }
 0x371   : > { %v6607_v15 = vadd.f32 %v6606_v63, %v6589_v10  ;;  %v15201_v10 = vor.u32 %v19055_v3, %v15200_v54  ;;  %v15589_v21 = vor.u32 %v19149_v35, %v15586_v26  ;;  %v19083_v12 = vld [vmem:[%s30244_s6 + $0x7d4] sm:$0xf0]  ;;  %v15442_v30 = vld [vmem:[%s30244_s6 + $0x8d8] sm:$0xf0]  ;;  %v19145_v5 = vld [vmem:[%s30244_s6 + $0x9cc] sm:$0xf]  ;;  %v6576_v22 = vadd.f32 %v24263_v52, %v24984_v62 }
 0x372   : > { %v15570_v54 = vld [vmem:[%s30244_s6 + $0x9d8] sm:$0xf0]  ;;  %v15296_v52 = vld [vmem:[%s30244_s6 + $0x7a8] sm:$0xf]  ;;  %v19079_v62 = vld [vmem:[%s30244_s6 + $0x7b4] sm:$0xf0] }
 0x373   : > { %7232 = vmatpush.bf16.msrb.mxu1 %v14997_v6  ;;  %v15328_v6 = vld [vmem:[%s30244_s6 + $0x7e8] sm:$0xf]  ;;  %v25107_v42 = vadd.f32 %v6624_v49, %v6607_v15  ;;  %v25109_v45 = vpop.f32.mrf.mxu0  ;;  %v25111_v48 = vpop.f32.mrf.mxu1  ;;  %6981 = vmatpush.bf16.msrb.mxu3 %v14721_v46  ;;  %v15458_v49 = vld [vmem:[%s30244_s6 + $0x8f8] sm:$0xf0] }
 0x374   : > { %7215 = vmatpush.bf16.msrb.mxu0 %v14853_v29  ;;  %v15329_v63 = vor.u32 %v19087_v47, %v15328_v6  ;;  %v15461_v46 = vor.u32 %v19117_v31, %v15458_v49  ;;  %6964 = vmatpush.bf16.msrb.mxu2 %v14577_v19  ;;  %v15184_v29 = vld [vmem:[%s30244_s6 + $0x6c8] sm:$0xf]  ;;  %v19109_v49 = vld [vmem:[%s30244_s6 + $0x8ac] sm:$0xf]  ;;  %v15426_v35 = vld [vmem:[%s30244_s6 + $0x8b8] sm:$0xf0] }
 0x375   : > { %v15312_v31 = vld [vmem:[%s30244_s6 + $0x7c8] sm:$0xf]  ;;  %v15554_v26 = vld [vmem:[%s30244_s6 + $0x9b8] sm:$0xf0] }
 0x377   : > { %7233 = vmatpush.bf16.msrb.mxu1 %v14981_v27  ;;  %6982 = vmatpush.bf16.msrb.mxu3 %v14705_v56  ;;  %v19051_v27 = vld [vmem:[%s30244_s6 + $0x6d4] sm:$0xf0]  ;;  %v15313_v56 = vor.u32 %v19083_v12, %v15312_v31 }
 0x378   : > { %v6608_v58 = vpop.f32.mrf.mxu2  ;;  %v6626_v61 = vpop.f32.mrf.mxu3  ;;  %7216 = vmatpush.bf16.msrb.mxu0 %v14837_v11  ;;  %7029 = vmatpush.bf16.msra.mxu2 %v15201_v10  ;;  %v15185_v19 = vor.u32 %v19051_v27, %v15184_v29  ;;  %v15168_v11 = vld [vmem:[%s30244_s6 + $0x6a8] sm:$0xf]  ;;  %v15573_v10 = vor.u32 %v19145_v5, %v15570_v54  ;;  %v15297_v29 = vor.u32 %v19079_v62, %v15296_v52  ;;  %v19075_v12 = vld [vmem:[%s30244_s6 + $0x794] sm:$0xf0]  ;;  %v19137_v5 = vld [vmem:[%s30244_s6 + $0x98c] sm:$0xf] }
 0x379   : > { %v6609_v15 = vadd.f32 %v6608_v58, %v6591_v51  ;;  %v6594_v51 = vadd.f32 %v24265_v4, %v6576_v22  ;;  %v15152_v27 = vld [vmem:[%s30244_s6 + $0x688] sm:$0xf]  ;;  %v15538_v54 = vld [vmem:[%s30244_s6 + $0x998] sm:$0xf0]  ;;  %v19039_v62 = vld [vmem:[%s30244_s6 + $0x674] sm:$0xf0] }
 0x37a   : > { %v15280_v4 = vld [vmem:[%s30244_s6 + $0x788] sm:$0xf]  ;;  %v15541_v52 = vor.u32 %v19137_v5, %v15538_v54  ;;  %v19097_v5 = vld [vmem:[%s30244_s6 + $0x84c] sm:$0xf]  ;;  %v15378_v54 = vld [vmem:[%s30244_s6 + $0x858] sm:$0xf0] }
 0x37b   : > { %7234 = vmatpush.bf16.msrb.mxu1 %v14965_v55  ;;  %7047 = vmatpush.bf16.msra.mxu3 %v15329_v63  ;;  %v25152_v3 = vadd.f32 %v6626_v61, %v6609_v15  ;;  %v25154_v6 = vpop.f32.mrf.mxu0  ;;  %v25156_v47 = vpop.f32.mrf.mxu1  ;;  %v15445_v55 = vor.u32 %v19113_v14, %v15442_v30  ;;  %v19047_v63 = vld [vmem:[%s30244_s6 + $0x6b4] sm:$0xf0]  ;;  %v15429_v61 = vor.u32 %v19109_v49, %v15426_v35  ;;  %v19105_v14 = vld [vmem:[%s30244_s6 + $0x88c] sm:$0xf]  ;;  %v15410_v30 = vld [vmem:[%s30244_s6 + $0x898] sm:$0xf0] }
 0x37c   : > { %7281 = vmatpush.bf16.msra.mxu0 %v15461_v46  ;;  %v19141_v46 = vld [vmem:[%s30244_s6 + $0x9ac] sm:$0xf]  ;;  %7030 = vmatpush.bf16.msra.mxu2 %v15185_v19  ;;  %v15264_v49 = vld [vmem:[%s30244_s6 + $0x768] sm:$0xf]  ;;  %v19071_v35 = vld [vmem:[%s30244_s6 + $0x774] sm:$0xf0] }
 0x37d   : > { %6898 = vmatmul.bf16.gmra.mxu2 %v24351_v39  ;;  %6916 = vmatmul.bf16.gmra.mxu3 %v24354_v25  ;;  %v15557_v31 = vor.u32 %v19141_v46, %v15554_v26  ;;  %v19101_v46 = vld [vmem:[%s30244_s6 + $0x86c] sm:$0xf]  ;;  %v15394_v26 = vld [vmem:[%s30244_s6 + $0x878] sm:$0xf0] }
 0x37e   : > { %7150 = vmatmul.bf16.gmra.mxu0 %v23254_v1  ;;  %7168 = vmatmul.bf16.gmra.mxu1 %v23256_v41  ;;  %v19043_v1 = vld [vmem:[%s30244_s6 + $0x694] sm:$0xf0] }
 0x37f   : > { %7299 = vmatpush.bf16.msra.mxu1 %v15589_v21  ;;  %7048 = vmatpush.bf16.msra.mxu3 %v15313_v56  ;;  %v15169_v21 = vor.u32 %v19047_v63, %v15168_v11  ;;  %v15153_v11 = vor.u32 %v19043_v1, %v15152_v27  ;;  %v15413_v63 = vor.u32 %v19105_v14, %v15410_v30  ;;  %v19067_v30 = vld [vmem:[%s30244_s6 + $0x754] sm:$0xf0] }
 0x380   : > { %v6611_v58 = vpop.f32.mrf.mxu2  ;;  %v6629_v41 = vpop.f32.mrf.mxu3  ;;  %7282 = vmatpush.bf16.msra.mxu0 %v15445_v55  ;;  %v15281_v55 = vor.u32 %v19075_v12, %v15280_v4  ;;  %v15397_v12 = vor.u32 %v19101_v46, %v15394_v26  ;;  %v15381_v46 = vor.u32 %v19097_v5, %v15378_v54  ;;  %v19063_v26 = vld [vmem:[%s30244_s6 + $0x734] sm:$0xf0]  ;;  %v19089_v54 = vld [vmem:[%s30244_s6 + $0x80c] sm:$0xf] }
 0x381   : > { %v6612_v15 = vadd.f32 %v6611_v58, %v6594_v51  ;;  %7031 = vmatpush.bf16.msra.mxu2 %v15169_v21  ;;  %v19133_v51 = vld [vmem:[%s30244_s6 + $0x96c] sm:$0xf]  ;;  %v15522_v21 = vld [vmem:[%s30244_s6 + $0x978] sm:$0xf0]  ;;  %v15265_v58 = vor.u32 %v19071_v35, %v15264_v49  ;;  %v19031_v49 = vld [vmem:[%s30244_s6 + $0x634] sm:$0xf0] }
 0x382   : > { %v15525_v14 = vor.u32 %v19133_v51, %v15522_v21  ;;  %v19093_v51 = vld [vmem:[%s30244_s6 + $0x82c] sm:$0xf]  ;;  %v15362_v21 = vld [vmem:[%s30244_s6 + $0x838] sm:$0xf0]  ;;  %v19059_v5 = vld [vmem:[%s30244_s6 + $0x714] sm:$0xf0] }
 0x383   : > { %7300 = vmatpush.bf16.msra.mxu1 %v15573_v10  ;;  %v25211_v22 = vadd.f32 %v6629_v41, %v6612_v15  ;;  %v6865_v19 = vpop.f32.mrf.mxu0  ;;  %v6883_v56 = vpop.f32.mrf.mxu1  ;;  %7049 = vmatpush.bf16.msra.mxu3 %v15297_v29  ;;  %v15136_v10 = vld [vmem:[%s30244_s6 + $0x668] sm:$0xf]  ;;  %v25240_v29 = vld [vmem:[%s30245_s7] sm:$0xf] }
 0x384   : > { %7283 = vmatpush.bf16.msra.mxu0 %v15429_v61  ;;  %v25243_v27 = vperm.slane %v25240_v29, 2  ;;  %v15137_v1 = vor.u32 %v19039_v62, %v15136_v10  ;;  %v15120_v41 = vld [vmem:[%s30244_s6 + $0x648] sm:$0xf]  ;;  %v19035_v61 = vld [vmem:[%s30244_s6 + $0x654] sm:$0xf0] }
 0x385   : > { %7032 = vmatpush.bf16.msra.mxu2 %v15153_v11  ;;  %v15248_v15 = vld [vmem:[%s30244_s6 + $0x748] sm:$0xf]  ;;  %v19129_v19 = vld [vmem:[%s30244_s6 + $0x94c] sm:$0xf]  ;;  %v15506_v56 = vld [vmem:[%s30244_s6 + $0x958] sm:$0xf0]  ;;  %v6643_v11 = vadd.f32 %v24381_v18, %v25107_v42 }
 0x386   : > { %30292 = vst [vmem:[#allocation21_spill] sm:$0xff] %v25243_v27  ;;  %v15104_v62 = vld [vmem:[%s30244_s6 + $0x628] sm:$0xf]  ;;  %v15509_v18 = vor.u32 %v19129_v19, %v15506_v56  ;;  %v15346_v19 = vld [vmem:[%s30244_s6 + $0x818] sm:$0xf0] }
 0x387   : > { %7301 = vmatpush.bf16.msra.mxu1 %v15557_v31  ;;  %7050 = vmatpush.bf16.msra.mxu3 %v15281_v55  ;;  %v15232_v42 = vld [vmem:[%s30244_s6 + $0x728] sm:$0xf] }
 0x388   : > { %v6613_v31 = vpop.f32.mrf.mxu2  ;;  %v6631_v4 = vpop.f32.mrf.mxu3  ;;  %7284 = vmatpush.bf16.msra.mxu0 %v15413_v63  ;;  %v15121_v63 = vor.u32 %v19035_v61, %v15120_v41  ;;  %v6661_v61 = vadd.f32 %v24383_v7, %v6643_v11  ;;  %v15365_v7 = vor.u32 %v19093_v51, %v15362_v21  ;;  %v19121_v11 = vld [vmem:[%s30244_s6 + $0x90c] sm:$0xf] }
 0x389   : > { %7033 = vmatpush.bf16.msra.mxu2 %v15137_v1  ;;  %v19125_v1 = vld [vmem:[%s30244_s6 + $0x92c] sm:$0xf]  ;;  %v15105_v31 = vor.u32 %v19031_v49, %v15104_v62  ;;  %v15233_v4 = vor.u32 %v19063_v26, %v15232_v42  ;;  %v15840_v62 = vld [vmem:[%s30244_s6 + $0xbe8] sm:$0xf]  ;;  %v19215_v49 = vld [vmem:[%s30244_s6 + $0xbf4] sm:$0xf0]  ;;  %v15349_v42 = vor.u32 %v19089_v54, %v15346_v19 }
 0x38a   : > { %v15841_v21 = vor.u32 %v19215_v49, %v15840_v62  ;;  %v30297_v62 = vld [vmem:[#allocation15_spill] sm:$0xff] }
 0x38b   : > { %7302 = vmatpush.bf16.msra.mxu1 %v15541_v52  ;;  %v6930_v55 = vpop.f32.mrf.mxu0  ;;  %v6948_v10 = vpop.f32.mrf.mxu1  ;;  %7051 = vmatpush.bf16.msra.mxu3 %v15265_v58  ;;  %v15249_v52 = vor.u32 %v19067_v30, %v15248_v15  ;;  %v15490_v58 = vld [vmem:[%s30244_s6 + $0x938] sm:$0xf0] }
 0x38c   : > { %v6931_v35 = vadd.f32 %v6930_v55, %v25243_v27  ;;  %7285 = vmatpush.bf16.msra.mxu0 %v15397_v12  ;;  %v15088_v12 = vld [vmem:[%s30244_s6 + $0x608] sm:$0xf]  ;;  %v15493_v30 = vor.u32 %v19125_v1, %v15490_v58  ;;  %v15474_v55 = vld [vmem:[%s30244_s6 + $0x918] sm:$0xf0]  ;;  %v30295_v1 = vld [vmem:[#allocation13_spill] sm:$0xff] }
 0x38d   : > { %6965 = vmatmul.bf16.vlgmr.msrb.gmra.mxu2 %v23901_v17  ;;  %6983 = vmatmul.bf16.vlgmr.msrb.gmra.mxu3 %v23903_v23  ;;  %v15477_v26 = vor.u32 %v19121_v11, %v15474_v55  ;;  %v15680_v11 = vld [vmem:[%s30244_s6 + $0xaa8] sm:$0xf] }
 0x38e   : > { %v25298_v41 = vadd.f32 %v6948_v10, %v6931_v35  ;;  %7217 = vmatmul.bf16.vlgmr.msrb.gmra.mxu0 %v23331_v13  ;;  %7235 = vmatmul.bf16.vlgmr.msrb.gmra.mxu1 %v23338_v32  ;;  %v15216_v13 = vld [vmem:[%s30244_s6 + $0x708] sm:$0xf] }
 0x38f   : > { %7303 = vmatpush.bf16.msra.mxu1 %v15525_v14  ;;  %7034 = vmatpush.bf16.msra.mxu2 %v15121_v63  ;;  %v19027_v14 = vld [vmem:[%s30244_s6 + $0x614] sm:$0xf0]  ;;  %v15712_v10 = vld [vmem:[%s30244_s6 + $0xae8] sm:$0xf]  ;;  %v6645_v63 = vadd.f32 %v24460_v44, %v25152_v3  ;;  %v15217_v3 = vor.u32 %v19059_v5, %v15216_v13 }
 0x390   : > { %7052 = vmatpush.bf16.msra.mxu3 %v15249_v52  ;;  %v6678_v15 = vpop.f32.mrf.mxu2  ;;  %v6696_v32 = vpop.f32.mrf.mxu3  ;;  %7286 = vmatpush.bf16.msra.mxu0 %v15381_v46  ;;  %v19183_v52 = vld [vmem:[%s30244_s6 + $0xaf4] sm:$0xf0]  ;;  %v15089_v44 = vor.u32 %v19027_v14, %v15088_v12  ;;  %v30296_v13 = vld [vmem:[#allocation14_spill] sm:$0xff] }
 0x391   : > { %v6679_v56 = vadd.f32 %v6678_v15, %v6661_v61  ;;  %v15713_v51 = vor.u32 %v19183_v52, %v15712_v10  ;;  %v6663_v58 = vadd.f32 %v30295_v1, %v6645_v63  ;;  %v15696_v61 = vld [vmem:[%s30244_s6 + $0xac8] sm:$0xf]  ;;  %v19211_v12 = vld [vmem:[%s30244_s6 + $0xbd4] sm:$0xf0] }
 0x392   : > { %v19175_v10 = vld [vmem:[%s30244_s6 + $0xab4] sm:$0xf0] }
 0x393   : > { %7304 = vmatpush.bf16.msra.mxu1 %v15509_v18  ;;  %v25341_v35 = vadd.f32 %v6696_v32, %v6679_v56  ;;  %v25343_v46 = vpop.f32.mrf.mxu0  ;;  %v25345_v18 = vpop.f32.mrf.mxu1  ;;  %7035 = vmatpush.bf16.msra.mxu2 %v15105_v31  ;;  %v19179_v31 = vld [vmem:[%s30244_s6 + $0xad4] sm:$0xf0] }
 0x394   : > { %30293 = vst [vmem:[#allocation22_spill] sm:$0xff] %v25343_v46  ;;  %7053 = vmatpush.bf16.msra.mxu3 %v15233_v4  ;;  %7287 = vmatpush.bf16.msra.mxu0 %v15365_v7  ;;  %v15824_v4 = vld [vmem:[%s30244_s6 + $0xbc8] sm:$0xf]  ;;  %v6648_v7 = vadd.f32 %v30296_v13, %v25211_v22  ;;  %v15697_v19 = vor.u32 %v19179_v31, %v15696_v61  ;;  %v19207_v63 = vld [vmem:[%s30244_s6 + $0xbb4] sm:$0xf0] }
 0x395   : > { %30294 = vst [vmem:[#allocation23_spill] sm:$0xff] %v25345_v18  ;;  %v15825_v56 = vor.u32 %v19211_v12, %v15824_v4  ;;  %v15808_v22 = vld [vmem:[%s30244_s6 + $0xba8] sm:$0xf]  ;;  %v19167_v12 = vld [vmem:[%s30244_s6 + $0xa74] sm:$0xf0] }
 0x396   : > { %v6666_v49 = vadd.f32 %v30297_v62, %v6648_v7  ;;  %v15648_v4 = vld [vmem:[%s30244_s6 + $0xa68] sm:$0xf]  ;;  %v19199_v13 = vld [vmem:[%s30244_s6 + $0xb74] sm:$0xf0] }
 0x397   : > { %7305 = vmatpush.bf16.msra.mxu1 %v15493_v30  ;;  %7036 = vmatpush.bf16.msra.mxu2 %v15089_v44  ;;  %v15681_v44 = vor.u32 %v19175_v10, %v15680_v11  ;;  %v15649_v7 = vor.u32 %v19167_v12, %v15648_v4  ;;  %v19163_v11 = vld [vmem:[%s30244_s6 + $0xa54] sm:$0xf0] }
 0x398   : > { %7054 = vmatpush.bf16.msra.mxu3 %v15217_v3  ;;  %v6680_v15 = vpop.f32.mrf.mxu2  ;;  %v6698_v32 = vpop.f32.mrf.mxu3  ;;  %7288 = vmatpush.bf16.msra.mxu0 %v15349_v42  ;;  %v15809_v3 = vor.u32 %v19207_v63, %v15808_v22  ;;  %v15664_v42 = vld [vmem:[%s30244_s6 + $0xa88] sm:$0xf]  ;;  %v19195_v10 = vld [vmem:[%s30244_s6 + $0xb54] sm:$0xf0]  ;;  %v15960_v22 = vld [vmem:[%s30246_s8 + $0xe0] sm:$0xf] }
 0x399   : > { %v6681_v14 = vadd.f32 %v6680_v15, %v6663_v58  ;;  %v19246_v63 = vld [vmem:[%s30246_s8 + $0xec] sm:$0xf0] }
 0x39a   : > { %v15961_v62 = vor.u32 %v19246_v63, %v15960_v22  ;;  %v14818_v22 = vld [vmem:[%s30244_s6 + $0x3f8] sm:$0xf0] }
 0x39b   : > { %7306 = vmatpush.bf16.msra.mxu1 %v15477_v26  ;;  %7101 = vmatpush.bf16.msrb.mxu2 %v15713_v51  ;;  %v25362_v30 = vadd.f32 %v6698_v32, %v6681_v14  ;;  %v6935_v5 = vpop.f32.mrf.mxu0  ;;  %v6953_v54 = vpop.f32.mrf.mxu1  ;;  %v15776_v14 = vld [vmem:[%s30244_s6 + $0xb68] sm:$0xf] }
 0x39c   : > { %7119 = vmatpush.bf16.msrb.mxu3 %v15841_v21  ;;  %v6936_v55 = vadd.f32 %v6935_v5, %v25243_v27  ;;  %v19171_v21 = vld [vmem:[%s30244_s6 + $0xa94] sm:$0xf0]  ;;  %v15777_v5 = vor.u32 %v19199_v13, %v15776_v14  ;;  %11377 = vmatpush.bf16.msrb.mxu0 %v15961_v62  ;;  %v16072_v14 = vld [vmem:[%s30246_s8 + $0x1c0] sm:$0xf]  ;;  %v19274_v13 = vld [vmem:[%s30246_s8 + $0x1cc] sm:$0xf0] }
 0x39d   : > { %6970 = vmatmul.bf16.gmra.mxu2 %v24028_v24  ;;  %6988 = vmatmul.bf16.gmra.mxu3 %v24030_v16  ;;  %v15665_v32 = vor.u32 %v19171_v21, %v15664_v42  ;;  %v15616_v21 = vld [vmem:[%s30244_s6 + $0xa28] sm:$0xf] }
 0x39e   : > { %v25379_v52 = vadd.f32 %v6953_v54, %v6936_v55  ;;  %7222 = vmatmul.bf16.gmra.mxu0 %v23401_v50  ;;  %7240 = vmatmul.bf16.gmra.mxu1 %v23404_v8  ;;  %v15792_v50 = vld [vmem:[%s30244_s6 + $0xb88] sm:$0xf]  ;;  %v19203_v8 = vld [vmem:[%s30244_s6 + $0xb94] sm:$0xf0] }
 0x39f   : > { %7102 = vmatpush.bf16.msrb.mxu2 %v15697_v19  ;;  %v15793_v31 = vor.u32 %v19203_v8, %v15792_v50  ;;  %v15632_v54 = vld [vmem:[%s30244_s6 + $0xa48] sm:$0xf]  ;;  %v19159_v50 = vld [vmem:[%s30244_s6 + $0xa34] sm:$0xf0] }
 0x3a0   : > { %7120 = vmatpush.bf16.msrb.mxu3 %v15825_v56  ;;  %v6683_v26 = vpop.f32.mrf.mxu2  ;;  %v6701_v51 = vpop.f32.mrf.mxu3  ;;  %v15760_v55 = vld [vmem:[%s30244_s6 + $0xb48] sm:$0xf]  ;;  %v15617_v4 = vor.u32 %v19159_v50, %v15616_v21  ;;  %v18921_v21 = vld [vmem:[%s30244_s6 + $0x2cc] sm:$0xf]  ;;  %v14674_v50 = vld [vmem:[%s30244_s6 + $0x2d8] sm:$0xf0] }
 0x3a1   : > { %v6684_v1 = vadd.f32 %v6683_v26, %v6666_v49  ;;  %v16088_v49 = vld [vmem:[%s30246_s8 + $0x1e0] sm:$0xf]  ;;  %v15633_v26 = vor.u32 %v19163_v11, %v15632_v54  ;;  %v15744_v8 = vld [vmem:[%s30244_s6 + $0xb28] sm:$0xf]  ;;  %v16073_v11 = vor.u32 %v19274_v13, %v16072_v14  ;;  %v14677_v14 = vor.u32 %v18921_v21, %v14674_v50 }
 0x3a2   : > { %v15728_v54 = vld [vmem:[%s30244_s6 + $0xb08] sm:$0xf] }
 0x3a3   : > { %v25396_v58 = vadd.f32 %v6701_v51, %v6684_v1  ;;  %v6937_v61 = vpop.f32.mrf.mxu0  ;;  %v6955_v15 = vpop.f32.mrf.mxu1  ;;  %7103 = vmatpush.bf16.msrb.mxu2 %v15681_v44  ;;  %v19278_v44 = vld [vmem:[%s30246_s8 + $0x1ec] sm:$0xf0]  ;;  %v15761_v51 = vor.u32 %v19195_v10, %v15760_v55  ;;  %v19191_v1 = vld [vmem:[%s30244_s6 + $0xb34] sm:$0xf0]  ;;  %v14690_v55 = vld [vmem:[%s30244_s6 + $0x2f8] sm:$0xf0] }
 0x3a4   : > { %7121 = vmatpush.bf16.msrb.mxu3 %v15809_v3  ;;  %v16089_v61 = vor.u32 %v19278_v44, %v16088_v49  ;;  %v15600_v15 = vld [vmem:[%s30244_s6 + $0xa08] sm:$0xf]  ;;  %v15745_v12 = vor.u32 %v19191_v1, %v15744_v8  ;;  %v18957_v10 = vld [vmem:[%s30244_s6 + $0x3ec] sm:$0xf]  ;;  %v14802_v1 = vld [vmem:[%s30244_s6 + $0x3d8] sm:$0xf0] }
 0x3a5   : > { %v18953_v8 = vld [vmem:[%s30244_s6 + $0x3cc] sm:$0xf] }
 0x3a6   : > { %11391 = vmatpush.bf16.msrb.mxu1 %v16089_v61  ;;  %v15928_v61 = vld [vmem:[%s30246_s8 + $0xa0] sm:$0xf]  ;;  %v14805_v13 = vor.u32 %v18953_v8, %v14802_v1  ;;  %v18913_v1 = vld [vmem:[%s30244_s6 + $0x28c] sm:$0xf] }
 0x3a7   : > { %7104 = vmatpush.bf16.msrb.mxu2 %v15665_v32  ;;  %v15944_v32 = vld [vmem:[%s30246_s8 + $0xc0] sm:$0xf] }
 0x3a8   : > { %7122 = vmatpush.bf16.msrb.mxu3 %v15793_v31  ;;  %v6685_v19 = vpop.f32.mrf.mxu2  ;;  %v6703_v56 = vpop.f32.mrf.mxu3  ;;  %v19242_v31 = vld [vmem:[%s30246_s8 + $0xcc] sm:$0xf0] }
 0x3a9   : > { %v19187_v19 = vld [vmem:[%s30244_s6 + $0xb14] sm:$0xf0]  ;;  %v18925_v56 = vld [vmem:[%s30244_s6 + $0x2ec] sm:$0xf] }
 0x3aa   : > { %v15729_v44 = vor.u32 %v19187_v19, %v15728_v54  ;;  %11392 = vmatpush.bf16.msrb.mxu1 %v16073_v11  ;;  %v14658_v19 = vld [vmem:[%s30244_s6 + $0x2b8] sm:$0xf0] }
 0x3ab   : > { %v25434_v3 = vpop.f32.mrf.mxu0  ;;  %v25436_v42 = vpop.f32.mrf.mxu1  ;;  %7105 = vmatpush.bf16.msrb.mxu2 %v15649_v7  ;;  %v14786_v11 = vld [vmem:[%s30244_s6 + $0x3b8] sm:$0xf0] }
 0x3ac   : > { %7123 = vmatpush.bf16.msrb.mxu3 %v15777_v5 }
 0x3ad   : > { %7037 = vmatmul.bf16.vlgmr.msra.gmra.mxu2 %v24151_v37  ;;  %7055 = vmatmul.bf16.vlgmr.msra.gmra.mxu3 %v24161_v36 }
 0x3ae   : > { %7289 = vmatmul.bf16.vlgmr.msra.gmra.mxu0 %v23483_v43  ;;  %7307 = vmatmul.bf16.vlgmr.msra.gmra.mxu1 %v23487_v59  ;;  %v19155_v43 = vld [vmem:[%s30244_s6 + $0xa14] sm:$0xf0]  ;;  %v15945_v59 = vor.u32 %v19242_v31, %v15944_v32  ;;  %v16056_v31 = vld [vmem:[%s30246_s8 + $0x1a0] sm:$0xf] }
 0x3af   : > { %7106 = vmatpush.bf16.msrb.mxu2 %v15633_v26  ;;  %v15601_v49 = vor.u32 %v19155_v43, %v15600_v15  ;;  %v14693_v26 = vor.u32 %v18925_v56, %v14690_v55  ;;  %v19238_v15 = vld [vmem:[%s30246_s8 + $0xac] sm:$0xf0]  ;;  %v18949_v56 = vld [vmem:[%s30244_s6 + $0x3ac] sm:$0xf]  ;;  %v15912_v55 = vld [vmem:[%s30246_s8 + $0x80] sm:$0xf] }
 0x3b0   : > { %7124 = vmatpush.bf16.msrb.mxu3 %v15761_v51  ;;  %v25472_v7 = vpop.f32.mrf.mxu2  ;;  %v25474_v5 = vpop.f32.mrf.mxu3  ;;  %11378 = vmatpush.bf16.msrb.mxu0 %v15945_v59  ;;  %v14821_v51 = vor.u32 %v18957_v10, %v14818_v22  ;;  %v15929_v32 = vor.u32 %v19238_v15, %v15928_v61  ;;  %v19234_v10 = vld [vmem:[%s30246_s8 + $0x8c] sm:$0xf0]  ;;  %v16040_v22 = vld [vmem:[%s30246_s8 + $0x180] sm:$0xf]  ;;  %v14789_v8 = vor.u32 %v18949_v56, %v14786_v11  ;;  %v14642_v61 = vld [vmem:[%s30244_s6 + $0x298] sm:$0xf0] }
 0x3b1   : > { %v18945_v15 = vld [vmem:[%s30244_s6 + $0x38c] sm:$0xf] }
 0x3b3   : > { %v25494_v63 = vpop.f32.mrf.mxu0  ;;  %v25496_v62 = vpop.f32.mrf.mxu1  ;;  %7107 = vmatpush.bf16.msrb.mxu2 %v15617_v4  ;;  %v19270_v4 = vld [vmem:[%s30246_s8 + $0x1ac] sm:$0xf0] }
 0x3b4   : > { %30298 = vst [vmem:[#allocation13_spill] sm:$0xff] %v25494_v63  ;;  %7125 = vmatpush.bf16.msrb.mxu3 %v15745_v12  ;;  %v18917_v12 = vld [vmem:[%s30244_s6 + $0x2ac] sm:$0xf]  ;;  %v16057_v54 = vor.u32 %v19270_v4, %v16056_v31  ;;  %11379 = vmatpush.bf16.msrb.mxu0 %v15929_v32  ;;  %v14770_v32 = vld [vmem:[%s30244_s6 + $0x398] sm:$0xf0] }
 0x3b5   : > { %30299 = vst [vmem:[#allocation14_spill] sm:$0xff] %v25496_v62  ;;  %v14661_v50 = vor.u32 %v18917_v12, %v14658_v19  ;;  %v15896_v31 = vld [vmem:[%s30246_s8 + $0x60] sm:$0xf]  ;;  %v19230_v4 = vld [vmem:[%s30246_s8 + $0x6c] sm:$0xf0]  ;;  %v14645_v19 = vor.u32 %v18913_v1, %v14642_v61  ;;  %v14773_v56 = vor.u32 %v18945_v15, %v14770_v32 }
 0x3b6   : > { %11393 = vmatpush.bf16.msrb.mxu1 %v16057_v54  ;;  %v15897_v12 = vor.u32 %v19230_v4, %v15896_v31  ;;  %v18905_v4 = vld [vmem:[%s30244_s6 + $0x24c] sm:$0xf] }
 0x3b7   : > { %7108 = vmatpush.bf16.msrb.mxu2 %v15601_v49  ;;  %v19266_v49 = vld [vmem:[%s30246_s8 + $0x18c] sm:$0xf0]  ;;  %v18897_v63 = vld [vmem:[%s30244_s6 + $0x20c] sm:$0xf] }
 0x3b8   : > { %7126 = vmatpush.bf16.msrb.mxu3 %v15729_v44  ;;  %v25525_v43 = vpop.f32.mrf.mxu2  ;;  %v25527_v59 = vpop.f32.mrf.mxu3  ;;  %v16041_v21 = vor.u32 %v19266_v49, %v16040_v22  ;;  %v14754_v22 = vld [vmem:[%s30244_s6 + $0x378] sm:$0xf0]  ;;  %v15880_v49 = vld [vmem:[%s30246_s8 + $0x40] sm:$0xf] }
 0x3ba   : > { %11394 = vmatpush.bf16.msrb.mxu1 %v16041_v21  ;;  %v16008_v21 = vld [vmem:[%s30246_s8 + $0x140] sm:$0xf] }
 0x3bb   : > { %7173 = vmatpush.bf16.msra.mxu2 %v14693_v26  ;;  %v25550_v44 = vpop.f32.mrf.mxu0  ;;  %v25552_v26 = vpop.f32.mrf.mxu1 }
 0x3bc   : > { %7191 = vmatpush.bf16.msra.mxu3 %v14821_v51  ;;  %v15913_v51 = vor.u32 %v19234_v10, %v15912_v55  ;;  %v14626_v55 = vld [vmem:[%s30244_s6 + $0x278] sm:$0xf0]  ;;  %v18941_v10 = vld [vmem:[%s30244_s6 + $0x36c] sm:$0xf] }
 0x3bd   : > { %7042 = vmatmul.bf16.gmra.mxu2 %v24268_v2  ;;  %7060 = vmatmul.bf16.gmra.mxu3 %v24271_v9  ;;  %v14757_v31 = vor.u32 %v18941_v10, %v14754_v22  ;;  %v18901_v10 = vld [vmem:[%s30244_s6 + $0x22c] sm:$0xf] }
 0x3be   : > { %7294 = vmatmul.bf16.gmra.mxu0 %v23458_v33  ;;  %7312 = vmatmul.bf16.gmra.mxu1 %v23461_v34  ;;  %v16024_v33 = vld [vmem:[%s30246_s8 + $0x160] sm:$0xf]  ;;  %v19262_v34 = vld [vmem:[%s30246_s8 + $0x16c] sm:$0xf0] }
 0x3bf   : > { %7174 = vmatpush.bf16.msra.mxu2 %v14677_v14  ;;  %11380 = vmatpush.bf16.msrb.mxu0 %v15913_v51  ;;  %v18909_v14 = vld [vmem:[%s30244_s6 + $0x26c] sm:$0xf]  ;;  %v16025_v11 = vor.u32 %v19262_v34, %v16024_v33  ;;  %v19226_v51 = vld [vmem:[%s30246_s8 + $0x4c] sm:$0xf0]  ;;  %v14610_v33 = vld [vmem:[%s30244_s6 + $0x258] sm:$0xf0] }
 0x3c0   : > { %7192 = vmatpush.bf16.msra.mxu3 %v14805_v13  ;;  %v25585_v13 = vpop.f32.mrf.mxu2  ;;  %v25587_v54 = vpop.f32.mrf.mxu3  ;;  %v15881_v61 = vor.u32 %v19226_v51, %v15880_v49  ;;  %v14629_v32 = vor.u32 %v18909_v14, %v14626_v55  ;;  %v18937_v34 = vld [vmem:[%s30244_s6 + $0x34c] sm:$0xf]  ;;  %v15864_v14 = vld [vmem:[%s30246_s8 + $0x20] sm:$0xf]  ;;  %v19254_v55 = vld [vmem:[%s30246_s8 + $0x12c] sm:$0xf0]  ;;  %v14613_v51 = vor.u32 %v18905_v4, %v14610_v33 }
 0x3c1   : > { %11395 = vmatpush.bf16.msrb.mxu1 %v16025_v11  ;;  %v15992_v11 = vld [vmem:[%s30246_s8 + $0x120] sm:$0xf]  ;;  %v19250_v4 = vld [vmem:[%s30246_s8 + $0x10c] sm:$0xf0] }
 0x3c2   : > { %v16472_v33 = vld [vmem:[%s30246_s8 + $0x4e0] sm:$0xf] }
 0x3c3   : > { %7175 = vmatpush.bf16.msra.mxu2 %v14661_v50  ;;  %v19258_v50 = vld [vmem:[%s30246_s8 + $0x14c] sm:$0xf0]  ;;  %v7027_v1 = vpop.f32.mrf.mxu1  ;;  %11381 = vmatpush.bf16.msrb.mxu0 %v15897_v12  ;;  %v14738_v12 = vld [vmem:[%s30244_s6 + $0x358] sm:$0xf0] }
 0x3c4   : > { %7193 = vmatpush.bf16.msra.mxu3 %v14789_v8  ;;  %v7009_v8 = vpop.f32.mrf.mxu0  ;;  %v16009_v15 = vor.u32 %v19258_v50, %v16008_v21  ;;  %v14741_v21 = vor.u32 %v18937_v34, %v14738_v12  ;;  %v15993_v50 = vor.u32 %v19254_v55, %v15992_v11  ;;  %v18933_v1 = vld [vmem:[%s30244_s6 + $0x32c] sm:$0xf]  ;;  %v19374_v34 = vld [vmem:[%s30246_s8 + $0x4ec] sm:$0xf0]  ;;  %v16600_v55 = vld [vmem:[%s30246_s8 + $0x5e0] sm:$0xf] }
 0x3c5   : > { %v14594_v8 = vld [vmem:[%s30244_s6 + $0x238] sm:$0xf0] }
 0x3c6   : > { %11396 = vmatpush.bf16.msrb.mxu1 %v16009_v15  ;;  %v15848_v15 = vld [vmem:[%s30246_s8] sm:$0xf] }
 0x3c7   : > { %7176 = vmatpush.bf16.msra.mxu2 %v14645_v19  ;;  %v19222_v19 = vld [vmem:[%s30246_s8 + $0x2c] sm:$0xf0]  ;;  %11382 = vmatpush.bf16.msrb.mxu0 %v15881_v61  ;;  %v14722_v61 = vld [vmem:[%s30244_s6 + $0x338] sm:$0xf0] }
 0x3c8   : > { %7194 = vmatpush.bf16.msra.mxu3 %v14773_v56  ;;  %v15865_v56 = vor.u32 %v19222_v19, %v15864_v14  ;;  %v6757_v22 = vpop.f32.mrf.mxu2  ;;  %v6775_v49 = vpop.f32.mrf.mxu3  ;;  %v14725_v62 = vor.u32 %v18933_v1, %v14722_v61  ;;  %v16584_v1 = vld [vmem:[%s30246_s8 + $0x5c0] sm:$0xf]  ;;  %v19402_v61 = vld [vmem:[%s30246_s8 + $0x5cc] sm:$0xf0] }
 0x3c9   : > { %v19406_v22 = vld [vmem:[%s30246_s8 + $0x5ec] sm:$0xf0]  ;;  %v14597_v49 = vor.u32 %v18901_v10, %v14594_v8  ;;  %v14706_v10 = vld [vmem:[%s30244_s6 + $0x318] sm:$0xf0]  ;;  %v16585_v18 = vor.u32 %v19402_v61, %v16584_v1 }
 0x3ca   : > { %11397 = vmatpush.bf16.msrb.mxu1 %v15993_v50  ;;  %v16601_v50 = vor.u32 %v19406_v22, %v16600_v55  ;;  %v19370_v8 = vld [vmem:[%s30246_s8 + $0x4cc] sm:$0xf0]  ;;  %v15330_v55 = vld [vmem:[%s30244_s6 + $0x7f8] sm:$0xf0] }
 0x3cb   : > { %7177 = vmatpush.bf16.msra.mxu2 %v14629_v32  ;;  %v19218_v32 = vld [vmem:[%s30246_s8 + $0xc] sm:$0xf0]  ;;  %v25666_v14 = vpop.f32.mrf.mxu1  ;;  %11383 = vmatpush.bf16.msrb.mxu0 %v15865_v56  ;;  %v16473_v56 = vor.u32 %v19374_v34, %v16472_v33 }
 0x3cc   : > { %7195 = vmatpush.bf16.msra.mxu3 %v14757_v31  ;;  %v15976_v31 = vld [vmem:[%s30246_s8 + $0x100] sm:$0xf]  ;;  %v25664_v12 = vpop.f32.mrf.mxu0  ;;  %30300 = vst [vmem:[#allocation15_spill] sm:$0xff] %v25666_v14  ;;  %v15849_v19 = vor.u32 %v19218_v32, %v15848_v15  ;;  %v14578_v15 = vld [vmem:[%s30244_s6 + $0x218] sm:$0xf0] }
 0x3cd   : > { %v15977_v11 = vor.u32 %v19250_v4, %v15976_v31  ;;  %7109 = vmatmul.bf16.vlgmr.msrb.gmra.mxu2 %v24387_v0  ;;  %7127 = vmatmul.bf16.vlgmr.msrb.gmra.mxu3 %v24397_v20  ;;  %v19053_v32 = vld [vmem:[%s30244_s6 + $0x6ec] sm:$0xf]  ;;  %v15202_v31 = vld [vmem:[%s30244_s6 + $0x6f8] sm:$0xf0]  ;;  %v14581_v34 = vor.u32 %v18897_v63, %v14578_v15 }
 0x3ce   : > { %v15205_v46 = vor.u32 %v19053_v32, %v15202_v31  ;;  %v30301_v63 = vld [vmem:[#allocation16_spill] sm:$0xff]  ;;  %v19081_v32 = vld [vmem:[%s30244_s6 + $0x7cc] sm:$0xf] }
 0x3cf   : > { %7178 = vmatpush.bf16.msra.mxu2 %v14613_v51  ;;  %v18929_v51 = vld [vmem:[%s30244_s6 + $0x30c] sm:$0xf]  ;;  %11384 = vmatpush.bf16.msrb.mxu0 %v15849_v19  ;;  %v15314_v31 = vld [vmem:[%s30244_s6 + $0x7d8] sm:$0xf0] }
 0x3d0   : > { %7196 = vmatpush.bf16.msra.mxu3 %v14741_v21  ;;  %v16456_v21 = vld [vmem:[%s30246_s8 + $0x4c0] sm:$0xf]  ;;  %11398 = vmatpush.bf16.msrb.mxu1 %v15977_v11  ;;  %v25706_v4 = vpop.f32.mrf.mxu2  ;;  %v25708_v33 = vpop.f32.mrf.mxu3  ;;  %v14709_v19 = vor.u32 %v18929_v51, %v14706_v10  ;;  %v19085_v11 = vld [vmem:[%s30244_s6 + $0x7ec] sm:$0xf]  ;;  %v15186_v10 = vld [vmem:[%s30244_s6 + $0x6d8] sm:$0xf0] }
 0x3d1   : > { %v16457_v22 = vor.u32 %v19370_v8, %v16456_v21  ;;  %v15333_v27 = vor.u32 %v19085_v11, %v15330_v55  ;;  %v16440_v51 = vld [vmem:[%s30246_s8 + $0x4a0] sm:$0xf]  ;;  %v15317_v11 = vor.u32 %v19081_v32, %v15314_v31  ;;  %v19362_v55 = vld [vmem:[%s30246_s8 + $0x48c] sm:$0xf0] }
 0x3d3   : > { %7179 = vmatpush.bf16.msra.mxu2 %v14597_v49  ;;  %11433 = vmatpush.bf16.msra.mxu0 %v16473_v56  ;;  %v25718_v49 = vpop.f32.mrf.mxu1 }
 0x3d4   : > { %7197 = vmatpush.bf16.msra.mxu3 %v14725_v62  ;;  %11447 = vmatpush.bf16.msra.mxu1 %v16601_v50  ;;  %v25716_v14 = vpop.f32.mrf.mxu0  ;;  %v6751_v62 = vadd.f32 %v25472_v7, %v30301_v63  ;;  %v19366_v7 = vld [vmem:[%s30246_s8 + $0x4ac] sm:$0xf0] }
 0x3d5   : > { %v19394_v63 = vld [vmem:[%s30246_s8 + $0x58c] sm:$0xf0] }
 0x3d6   : > { %v6769_v56 = vadd.f32 %v25474_v5, %v6751_v62  ;;  %v19049_v5 = vld [vmem:[%s30244_s6 + $0x6cc] sm:$0xf]  ;;  %v30302_v62 = vld [vmem:[#allocation17_spill] sm:$0xff] }
 0x3d7   : > { %7180 = vmatpush.bf16.msra.mxu2 %v14581_v34  ;;  %11434 = vmatpush.bf16.msra.mxu0 %v16457_v22  ;;  %v15189_v61 = vor.u32 %v19049_v5, %v15186_v10  ;;  %v16424_v34 = vld [vmem:[%s30246_s8 + $0x480] sm:$0xf]  ;;  %v30303_v10 = vld [vmem:[#allocation19_spill] sm:$0xff] }
 0x3d8   : > { %7198 = vmatpush.bf16.msra.mxu3 %v14709_v19  ;;  %11448 = vmatpush.bf16.msra.mxu1 %v16585_v18  ;;  %v25723_v50 = vpop.f32.mrf.mxu2  ;;  %v25725_v15 = vpop.f32.mrf.mxu3  ;;  %v16568_v18 = vld [vmem:[%s30246_s8 + $0x5a0] sm:$0xf]  ;;  %v6787_v19 = vadd.f32 %v24813_v28, %v6769_v56  ;;  %v16425_v28 = vor.u32 %v19362_v55, %v16424_v34  ;;  %v19045_v56 = vld [vmem:[%s30244_s6 + $0x6ac] sm:$0xf] }
 0x3d9   : > { %v16552_v22 = vld [vmem:[%s30246_s8 + $0x580] sm:$0xf] }
 0x3da   : > { %v6805_v32 = vadd.f32 %v30303_v10, %v6787_v19  ;;  %v19358_v19 = vld [vmem:[%s30246_s8 + $0x46c] sm:$0xf0] }
 0x3db   : > { %7245 = vmatpush.bf16.msrb.mxu2 %v15205_v46  ;;  %v16441_v46 = vor.u32 %v19366_v7, %v16440_v51  ;;  %v25747_v8 = vpop.f32.mrf.mxu1  ;;  %v6753_v51 = vadd.f32 %v25525_v43, %v30302_v62  ;;  %v15170_v7 = vld [vmem:[%s30244_s6 + $0x6b8] sm:$0xf0]  ;;  %v16553_v43 = vor.u32 %v19394_v63, %v16552_v22  ;;  %v16536_v63 = vld [vmem:[%s30246_s8 + $0x560] sm:$0xf]  ;;  %v19041_v62 = vld [vmem:[%s30244_s6 + $0x68c] sm:$0xf] }
 0x3dc   : > { %7263 = vmatpush.bf16.msrb.mxu3 %v15333_v27  ;;  %v19398_v27 = vld [vmem:[%s30246_s8 + $0x5ac] sm:$0xf0]  ;;  %v25745_v21 = vpop.f32.mrf.mxu0 }
 0x3dd   : > { %v16569_v1 = vor.u32 %v19398_v27, %v16568_v18  ;;  %11435 = vmatpush.bf16.msra.mxu0 %v16441_v46  ;;  %7114 = vmatmul.bf16.gmra.mxu2 %v24351_v39  ;;  %v19077_v18 = vld [vmem:[%s30244_s6 + $0x7ac] sm:$0xf]  ;;  %v15173_v46 = vor.u32 %v19045_v56, %v15170_v7  ;;  %v15298_v27 = vld [vmem:[%s30244_s6 + $0x7b8] sm:$0xf0]  ;;  %v6771_v55 = vadd.f32 %v25527_v59, %v6753_v51 }
 0x3de   : > { %7132 = vmatmul.bf16.gmra.mxu3 %v24354_v25  ;;  %v15301_v5 = vor.u32 %v19077_v18, %v15298_v27  ;;  %v15154_v51 = vld [vmem:[%s30244_s6 + $0x698] sm:$0xf0]  ;;  %v30304_v56 = vld [vmem:[#allocation18_spill] sm:$0xff] }
 0x3df   : > { %11449 = vmatpush.bf16.msra.mxu1 %v16569_v1  ;;  %7246 = vmatpush.bf16.msrb.mxu2 %v15189_v61  ;;  %v6823_v1 = vadd.f32 %v25706_v4, %v6805_v32  ;;  %v19390_v4 = vld [vmem:[%s30246_s8 + $0x56c] sm:$0xf0]  ;;  %v6756_v7 = vadd.f32 %v25585_v13, %v30304_v56  ;;  %v15282_v27 = vld [vmem:[%s30244_s6 + $0x798] sm:$0xf0]  ;;  %v16520_v32 = vld [vmem:[%s30246_s8 + $0x540] sm:$0xf] }
 0x3e0   : > { %7264 = vmatpush.bf16.msrb.mxu3 %v15317_v11  ;;  %v25785_v31 = vpop.f32.mrf.mxu2  ;;  %v25787_v34 = vpop.f32.mrf.mxu3  ;;  %v16408_v11 = vld [vmem:[%s30246_s8 + $0x460] sm:$0xf]  ;;  %v16537_v18 = vor.u32 %v19390_v4, %v16536_v63  ;;  %v19354_v13 = vld [vmem:[%s30246_s8 + $0x44c] sm:$0xf0] }
 0x3e1   : > { %11436 = vmatpush.bf16.msra.mxu0 %v16425_v28  ;;  %v16409_v59 = vor.u32 %v19358_v19, %v16408_v11  ;;  %v6789_v28 = vadd.f32 %v24884_v40, %v6771_v55  ;;  %v6841_v10 = vadd.f32 %v25708_v33, %v6823_v1  ;;  %v19386_v55 = vld [vmem:[%s30246_s8 + $0x54c] sm:$0xf0]  ;;  %v19037_v33 = vld [vmem:[%s30244_s6 + $0x66c] sm:$0xf]  ;;  %v15138_v1 = vld [vmem:[%s30244_s6 + $0x678] sm:$0xf0] }
 0x3e2   : > { %v19069_v11 = vld [vmem:[%s30244_s6 + $0x76c] sm:$0xf]  ;;  %v15141_v4 = vor.u32 %v19037_v33, %v15138_v1  ;;  %v16488_v1 = vld [vmem:[%s30246_s8 + $0x500] sm:$0xf] }
 0x3e3   : > { %11450 = vmatpush.bf16.msra.mxu1 %v16553_v43  ;;  %7247 = vmatpush.bf16.msrb.mxu2 %v15173_v46  ;;  %v7099_v22 = vpop.f32.mrf.mxu1  ;;  %v15157_v43 = vor.u32 %v19041_v62, %v15154_v51  ;;  %v19073_v46 = vld [vmem:[%s30244_s6 + $0x78c] sm:$0xf]  ;;  %v15266_v62 = vld [vmem:[%s30244_s6 + $0x778] sm:$0xf0]  ;;  %v6774_v51 = vadd.f32 %v25587_v54, %v6756_v7  ;;  %v6807_v56 = vadd.f32 %v24886_v53, %v6789_v28  ;;  %v19350_v54 = vld [vmem:[%s30246_s8 + $0x42c] sm:$0xf0] }
 0x3e4   : > { %v7081_v61 = vpop.f32.mrf.mxu0  ;;  %7265 = vmatpush.bf16.msrb.mxu3 %v15301_v5  ;;  %v16392_v5 = vld [vmem:[%s30246_s8 + $0x440] sm:$0xf]  ;;  %v15285_v40 = vor.u32 %v19073_v46, %v15282_v27  ;;  %v16521_v22 = vor.u32 %v19386_v55, %v16520_v32  ;;  %v19382_v28 = vld [vmem:[%s30246_s8 + $0x52c] sm:$0xf0]  ;;  %v19033_v7 = vld [vmem:[%s30244_s6 + $0x64c] sm:$0xf] }
 0x3e5   : > { %11437 = vmatpush.bf16.msra.mxu0 %v16409_v59  ;;  %v16393_v61 = vor.u32 %v19354_v13, %v16392_v5  ;;  %v25841_v59 = vperm.slane %v25240_v29, 3  ;;  %v6825_v46 = vadd.f32 %v25723_v50, %v6807_v56  ;;  %v16376_v29 = vld [vmem:[%s30246_s8 + $0x420] sm:$0xf]  ;;  %v19065_v55 = vld [vmem:[%s30244_s6 + $0x74c] sm:$0xf] }
 0x3e6   : > { %v16504_v53 = vld [vmem:[%s30246_s8 + $0x520] sm:$0xf]  ;;  %v16377_v50 = vor.u32 %v19350_v54, %v16376_v29  ;;  %v15106_v56 = vld [vmem:[%s30244_s6 + $0x638] sm:$0xf0] }
 0x3e7   : > { %11451 = vmatpush.bf16.msra.mxu1 %v16537_v18  ;;  %7248 = vmatpush.bf16.msrb.mxu2 %v15157_v43  ;;  %v15269_v18 = vor.u32 %v19069_v11, %v15266_v62  ;;  %v6859_v43 = vadd.f32 %v25036_v60, %v6841_v10  ;;  %v15122_v10 = vld [vmem:[%s30244_s6 + $0x658] sm:$0xf0]  ;;  %v16505_v13 = vor.u32 %v19382_v28, %v16504_v53  ;;  %v19378_v11 = vld [vmem:[%s30246_s8 + $0x50c] sm:$0xf0] }
 0x3e8   : > { %v6829_v19 = vpop.f32.mrf.mxu2  ;;  %v6847_v63 = vpop.f32.mrf.mxu3  ;;  %7266 = vmatpush.bf16.msrb.mxu3 %v15285_v40  ;;  %v6792_v40 = vadd.f32 %v24927_v38, %v6774_v51  ;;  %v15125_v32 = vor.u32 %v19033_v7, %v15122_v10  ;;  %v19346_v38 = vld [vmem:[%s30246_s8 + $0x40c] sm:$0xf0]  ;;  %v19029_v51 = vld [vmem:[%s30244_s6 + $0x62c] sm:$0xf]  ;;  %v15090_v10 = vld [vmem:[%s30244_s6 + $0x618] sm:$0xf0] }
 0x3e9   : > { %11438 = vmatpush.bf16.msra.mxu0 %v16393_v61  ;;  %v15250_v61 = vld [vmem:[%s30244_s6 + $0x758] sm:$0xf0]  ;;  %v6843_v19 = vadd.f32 %v25725_v15, %v6825_v46  ;;  %v19061_v15 = vld [vmem:[%s30244_s6 + $0x72c] sm:$0xf] }
 0x3ea   : > { %v15234_v46 = vld [vmem:[%s30244_s6 + $0x738] sm:$0xf0]  ;;  %v19025_v7 = vld [vmem:[%s30244_s6 + $0x60c] sm:$0xf] }
 0x3eb   : > { %v7164_v5 = vpop.f32.mrf.mxu1  ;;  %11452 = vmatpush.bf16.msra.mxu1 %v16521_v22  ;;  %7249 = vmatpush.bf16.msrb.mxu2 %v15141_v4  ;;  %v16360_v22 = vld [vmem:[%s30246_s8 + $0x400] sm:$0xf]  ;;  %v15237_v29 = vor.u32 %v19061_v15, %v15234_v46  ;;  %v6861_v54 = vadd.f32 %v25109_v45, %v6843_v19  ;;  %v19057_v45 = vld [vmem:[%s30244_s6 + $0x70c] sm:$0xf] }
 0x3ec   : > { %v7146_v27 = vpop.f32.mrf.mxu0  ;;  %7267 = vmatpush.bf16.msrb.mxu3 %v15269_v18  ;;  %v16361_v63 = vor.u32 %v19346_v38, %v16360_v22  ;;  %v30305_v18 = vld [vmem:[#allocation20_spill] sm:$0xff]  ;;  %v19173_v46 = vld [vmem:[%s30244_s6 + $0xaac] sm:$0xf] }
 0x3ed   : > { %v7147_v60 = vadd.f32 %v7146_v27, %v25841_v59  ;;  %7181 = vmatmul.bf16.vlgmr.msra.gmra.mxu2 %v23901_v17  ;;  %v6877_v17 = vadd.f32 %v25038_v57, %v6859_v43  ;;  %11439 = vmatpush.bf16.msra.mxu0 %v16377_v50  ;;  %v16489_v57 = vor.u32 %v19378_v11, %v16488_v1  ;;  %v15714_v22 = vld [vmem:[%s30244_s6 + $0xaf8] sm:$0xf0] }
 0x3ee   : > { %7199 = vmatmul.bf16.vlgmr.msra.gmra.mxu3 %v23903_v23  ;;  %v15253_v23 = vor.u32 %v19065_v55, %v15250_v61  ;;  %v6810_v43 = vadd.f32 %v30305_v18, %v6792_v40  ;;  %v15218_v40 = vld [vmem:[%s30244_s6 + $0x718] sm:$0xf0]  ;;  %v19181_v61 = vld [vmem:[%s30244_s6 + $0xaec] sm:$0xf]  ;;  %v6879_v1 = vadd.f32 %v25111_v48, %v6861_v54 }
 0x3ef   : > { %v25881_v33 = vadd.f32 %v7164_v5, %v7147_v60  ;;  %11453 = vmatpush.bf16.msra.mxu1 %v16505_v13  ;;  %7250 = vmatpush.bf16.msrb.mxu2 %v15125_v32  ;;  %v15109_v5 = vor.u32 %v19029_v51, %v15106_v56  ;;  %v7353_v13 = vmax.f32 %v25341_v35, 0.0  ;;  %v15221_v55 = vor.u32 %v19057_v45, %v15218_v40  ;;  %v15842_v11 = vld [vmem:[%s30244_s6 + $0xbf8] sm:$0xf0]  ;;  %v16984_v45 = vld [vmem:[%s30246_s8 + $0x8e0] sm:$0xf] }
 0x3f0   : > { %v6894_v4 = vpop.f32.mrf.mxu2  ;;  %v6912_v62 = vpop.f32.mrf.mxu3  ;;  %7268 = vmatpush.bf16.msrb.mxu3 %v15253_v23  ;;  %v6828_v53 = vadd.f32 %v25785_v31, %v6810_v43  ;;  %v15093_v31 = vor.u32 %v19025_v7, %v15090_v10  ;;  %v15717_v35 = vor.u32 %v19181_v61, %v15714_v22  ;;  %v15698_v48 = vld [vmem:[%s30244_s6 + $0xad8] sm:$0xf0]  ;;  %v17112_v40 = vld [vmem:[%s30246_s8 + $0x9e0] sm:$0xf] }
 0x3f1   : > { %v6895_v27 = vadd.f32 %v6894_v4, %v6877_v17  ;;  %11440 = vmatpush.bf16.msra.mxu0 %v16361_v63  ;;  %v19213_v17 = vld [vmem:[%s30244_s6 + $0xbec] sm:$0xf]  ;;  %v15826_v51 = vld [vmem:[%s30244_s6 + $0xbd8] sm:$0xf0] }
 0x3f2   : > { %v6846_v23 = vadd.f32 %v25787_v34, %v6828_v53  ;;  %v19177_v4 = vld [vmem:[%s30244_s6 + $0xacc] sm:$0xf]  ;;  %v15666_v61 = vld [vmem:[%s30244_s6 + $0xa98] sm:$0xf0] }
 0x3f3   : > { %v6913_v60 = vadd.f32 %v6912_v62, %v6895_v27  ;;  %v25911_v28 = vpop.f32.mrf.mxu1  ;;  %11454 = vmatpush.bf16.msra.mxu1 %v16489_v57  ;;  %7251 = vmatpush.bf16.msrb.mxu2 %v15109_v5  ;;  %v15845_v57 = vor.u32 %v19213_v17, %v15842_v11  ;;  %v19209_v34 = vld [vmem:[%s30244_s6 + $0xbcc] sm:$0xf]  ;;  %v15701_v56 = vor.u32 %v19177_v4, %v15698_v48  ;;  %v19498_v48 = vld [vmem:[%s30246_s8 + $0x8cc] sm:$0xf0] }
 0x3f4   : > { %v25909_v50 = vpop.f32.mrf.mxu0  ;;  %7269 = vmatpush.bf16.msrb.mxu3 %v15237_v29  ;;  %v15829_v18 = vor.u32 %v19209_v34, %v15826_v51  ;;  %v6864_v43 = vadd.f32 %v25154_v6, %v6846_v23  ;;  %v15682_v29 = vld [vmem:[%s30244_s6 + $0xab8] sm:$0xf0]  ;;  %v19205_v53 = vld [vmem:[%s30244_s6 + $0xbac] sm:$0xf] }
 0x3f5   : > { %v7354_v32 = vmax.f32 %v6913_v60, 0.0  ;;  %v15810_v6 = vld [vmem:[%s30244_s6 + $0xbb8] sm:$0xf0]  ;;  %v7357_v60 = vmax.f32 %v25362_v30, 0.0  ;;  %v15685_v30 = vor.u32 %v19173_v46, %v15682_v29  ;;  %v19165_v46 = vld [vmem:[%s30244_s6 + $0xa6c] sm:$0xf] }
 0x3f6   : > { %v15650_v29 = vld [vmem:[%s30244_s6 + $0xa78] sm:$0xf0] }
 0x3f7   : > { %v7365_v38 = vpack.c.bf16 %v7354_v32, %v7353_v13  ;;  %7252 = vmatpush.bf16.msrb.mxu2 %v15093_v31  ;;  %v19502_v31 = vld [vmem:[%s30246_s8 + $0x8ec] sm:$0xf0] }
 0x3f8   : > { %v6896_v19 = vpop.f32.mrf.mxu2  ;;  %v6914_v63 = vpop.f32.mrf.mxu3  ;;  %7270 = vmatpush.bf16.msrb.mxu3 %v15221_v55  ;;  %v19534_v32 = vld [vmem:[%s30246_s8 + $0x9ec] sm:$0xf0]  ;;  %v19169_v55 = vld [vmem:[%s30244_s6 + $0xa8c] sm:$0xf] }
 0x3f9   : > { %v6897_v62 = vadd.f32 %v6896_v19, %v6879_v1  ;;  %v7375_v22 = vunpack.c.l.b16 %v7365_v38  ;;  %v19201_v1 = vld [vmem:[%s30244_s6 + $0xb8c] sm:$0xf]  ;;  %v17113_v4 = vor.u32 %v19534_v32, %v17112_v40  ;;  %v15669_v34 = vor.u32 %v19169_v55, %v15666_v61  ;;  %v19494_v40 = vld [vmem:[%s30246_s8 + $0x8ac] sm:$0xf0] }
 0x3fa   : > { %v19161_v32 = vld [vmem:[%s30244_s6 + $0xa4c] sm:$0xf] }
 0x3fb   : > { %7317 = vmatpush.bf16.msra.mxu2 %v15717_v35  ;;  %v6915_v27 = vadd.f32 %v6914_v63, %v6897_v62  ;;  %v7169_v15 = vpop.f32.mrf.mxu1  ;;  %v7376_v35 = vunpack.c.h.b16 %v7365_v38  ;;  %v16968_v62 = vld [vmem:[%s30246_s8 + $0x8c0] sm:$0xf] }
 0x3fc   : > { %7335 = vmatpush.bf16.msra.mxu3 %v15845_v57  ;;  %v7151_v5 = vpop.f32.mrf.mxu0  ;;  %v16985_v57 = vor.u32 %v19502_v31, %v16984_v45  ;;  %v16952_v31 = vld [vmem:[%s30246_s8 + $0x8a0] sm:$0xf] }
 0x3fd   : > { %v7152_v54 = vadd.f32 %v7151_v5, %v25841_v59  ;;  %v7358_v7 = vmax.f32 %v6915_v27, 0.0  ;;  %7186 = vmatmul.bf16.gmra.mxu2 %v24028_v24  ;;  %v15813_v24 = vor.u32 %v19205_v53, %v15810_v6  ;;  %v17096_v27 = vld [vmem:[%s30246_s8 + $0x9c0] sm:$0xf]  ;;  %v19530_v5 = vld [vmem:[%s30246_s8 + $0x9cc] sm:$0xf0]  ;;  %v7361_v6 = vmax.f32 %v25396_v58, 0.0 }
 0x3fe   : > { %7204 = vmatmul.bf16.gmra.mxu3 %v24030_v16  ;;  %v6882_v16 = vadd.f32 %v25156_v47, %v6864_v43  ;;  %v15794_v47 = vld [vmem:[%s30244_s6 + $0xb98] sm:$0xf0]  ;;  %v17097_v45 = vor.u32 %v19530_v5, %v17096_v27  ;;  %v17080_v58 = vld [vmem:[%s30246_s8 + $0x9a0] sm:$0xf]  ;;  %v19522_v27 = vld [vmem:[%s30246_s8 + $0x98c] sm:$0xf0] }
 0x3ff   : > { %v25969_v10 = vadd.f32 %v7169_v15, %v7152_v54  ;;  %7318 = vmatpush.bf16.msra.mxu2 %v15701_v56  ;;  %v7367_v13 = vpack.c.bf16 %v7358_v7, %v7357_v60  ;;  %v15797_v15 = vor.u32 %v19201_v1, %v15794_v47  ;;  %v19197_v54 = vld [vmem:[%s30244_s6 + $0xb6c] sm:$0xf]  ;;  %v15778_v53 = vld [vmem:[%s30244_s6 + $0xb78] sm:$0xf0]  ;;  %v16969_v7 = vor.u32 %v19498_v48, %v16968_v62 }
 0x400   : > { %7336 = vmatpush.bf16.msra.mxu3 %v15829_v18  ;;  %v6899_v17 = vpop.f32.mrf.mxu2  ;;  %v6917_v23 = vpop.f32.mrf.mxu3  ;;  %v16953_v47 = vor.u32 %v19494_v40, %v16952_v31  ;;  %v17048_v40 = vld [vmem:[%s30246_s8 + $0x960] sm:$0xf] }
 0x401   : > { %v7379_v11 = vunpack.c.l.b16 %v7367_v13  ;;  %v7380_v19 = vunpack.c.h.b16 %v7367_v13  ;;  %v6900_v63 = vadd.f32 %v6899_v17, %v6882_v16  ;;  %v15653_v13 = vor.u32 %v19165_v46, %v15650_v29  ;;  %v19193_v17 = vld [vmem:[%s30244_s6 + $0xb4c] sm:$0xf]  ;;  %v15618_v46 = vld [vmem:[%s30244_s6 + $0xa38] sm:$0xf0] }
 0x402   : > { %v15781_v16 = vor.u32 %v19197_v54, %v15778_v53  ;;  %v19189_v29 = vld [vmem:[%s30244_s6 + $0xb2c] sm:$0xf]  ;;  %v15746_v54 = vld [vmem:[%s30244_s6 + $0xb38] sm:$0xf0] }
 0x403   : > { %7319 = vmatpush.bf16.msra.mxu2 %v15685_v30  ;;  %v26002_v51 = vpack.c.b16 %v7379_v11, %v7375_v22  ;;  %v26004_v56 = vpack.c.b16 %v7380_v19, %v7376_v35  ;;  %v6918_v38 = vadd.f32 %v6917_v23, %v6900_v63  ;;  %v7171_v43 = vpop.f32.mrf.mxu1  ;;  %v15634_v22 = vld [vmem:[%s30244_s6 + $0xa58] sm:$0xf0]  ;;  %v16936_v19 = vld [vmem:[%s30246_s8 + $0x880] sm:$0xf]  ;;  %v19490_v63 = vld [vmem:[%s30246_s8 + $0x88c] sm:$0xf0] }
 0x404   : > { %7337 = vmatpush.bf16.msra.mxu3 %v15813_v24  ;;  %v7153_v18 = vpop.f32.mrf.mxu0  ;;  %v19526_v24 = vld [vmem:[%s30246_s8 + $0x9ac] sm:$0xf0]  ;;  %v15762_v35 = vld [vmem:[%s30244_s6 + $0xb58] sm:$0xf0]  ;;  %v15637_v62 = vor.u32 %v19161_v32, %v15634_v22  ;;  %v17064_v43 = vld [vmem:[%s30246_s8 + $0x980] sm:$0xf] }
 0x405   : > { %30306 = vst [vmem:[#allocation16_spill] sm:$0xff] %v26002_v51  ;;  %v7362_v60 = vmax.f32 %v6918_v38, 0.0  ;;  %11385 = vmatmul.bf16.vlgmr.msrb.gmra.mxu0 %v26002_v51  ;;  %11399 = vmatmul.bf16.vlgmr.msrb.gmra.mxu1 %v26004_v56  ;;  %v17081_v11 = vor.u32 %v19526_v24, %v17080_v58  ;;  %v15765_v5 = vor.u32 %v19193_v17, %v15762_v35  ;;  %v7402_v58 = vshrl.u32 %v26002_v51, 16  ;;  %v19153_v32 = vld [vmem:[%s30244_s6 + $0xa0c] sm:$0xf] }
 0x406   : > { %30307 = vst [vmem:[#allocation17_spill] sm:$0xff] %v26004_v56  ;;  %11489 = vmatpush.bf16.msrb.mxu0 %v16985_v57  ;;  %11503 = vmatpush.bf16.msrb.mxu1 %v17113_v4  ;;  %v7404_v57 = vshll.u32 %v26002_v51, 16  ;;  %v7416_v4 = vshll.u32 %v26004_v56, 16  ;;  %v17065_v31 = vor.u32 %v19522_v27, %v17064_v43  ;;  %v7414_v24 = vshrl.u32 %v26004_v56, 16  ;;  %v16904_v43 = vld [vmem:[%s30246_s8 + $0x840] sm:$0xf] }
 0x407   : > { %v7369_v30 = vpack.c.bf16 %v7362_v60, %v7361_v6  ;;  %7320 = vmatpush.bf16.msra.mxu2 %v15669_v34  ;;  %v16920_v60 = vld [vmem:[%s30246_s8 + $0x860] sm:$0xf] }
 0x408   : > { %7338 = vmatpush.bf16.msra.mxu3 %v15797_v15  ;;  %v6901_v55 = vpop.f32.mrf.mxu2  ;;  %v6919_v61 = vpop.f32.mrf.mxu3  ;;  %v19157_v15 = vld [vmem:[%s30244_s6 + $0xa2c] sm:$0xf] }
 0x409   : > { %v7393_v23 = vunpack.c.l.b16 %v7369_v30  ;;  %v7394_v1 = vunpack.c.h.b16 %v7369_v30  ;;  %v19518_v30 = vld [vmem:[%s30246_s8 + $0x96c] sm:$0xf0]  ;;  %v15602_v55 = vld [vmem:[%s30244_s6 + $0xa18] sm:$0xf0] }
 0x40a   : > { %11490 = vmatpush.bf16.msrb.mxu0 %v16969_v7  ;;  %11504 = vmatpush.bf16.msrb.mxu1 %v17097_v45  ;;  %v19486_v7 = vld [vmem:[%s30246_s8 + $0x86c] sm:$0xf0]  ;;  %v16937_v45 = vor.u32 %v19490_v63, %v16936_v19 }
 0x40b   : > { %v26059_v48 = vpack.c.b16 %v7393_v23, %v7393_v23  ;;  %v26061_v34 = vpack.c.b16 %v7394_v1, %v7394_v1  ;;  %v26065_v18 = vpop.f32.mrf.mxu1  ;;  %7321 = vmatpush.bf16.msra.mxu2 %v15653_v13  ;;  %v15621_v13 = vor.u32 %v19157_v15, %v15618_v46  ;;  %v19185_v1 = vld [vmem:[%s30244_s6 + $0xb0c] sm:$0xf]  ;;  %v17032_v46 = vld [vmem:[%s30246_s8 + $0x940] sm:$0xf] }
 0x40c   : > { %v26063_v38 = vpop.f32.mrf.mxu0  ;;  %7339 = vmatpush.bf16.msra.mxu3 %v15781_v16  ;;  %v15749_v16 = vor.u32 %v19189_v29, %v15746_v54  ;;  %v19514_v29 = vld [vmem:[%s30246_s8 + $0x94c] sm:$0xf0]  ;;  %v15605_v54 = vor.u32 %v19153_v32, %v15602_v55 }
 0x40d   : > { %7253 = vmatmul.bf16.vlgmr.msrb.gmra.mxu2 %v24151_v37  ;;  %v7409_v53 = vshll.u32 %v26059_v48, 16  ;;  %v7421_v6 = vshll.u32 %v26061_v34, 16  ;;  %v7406_v37 = vrot.slane %v7404_v57, 1 }
 0x40e   : > { %7271 = vmatmul.bf16.vlgmr.msrb.gmra.mxu3 %v24161_v36  ;;  %11491 = vmatpush.bf16.msrb.mxu0 %v16953_v47  ;;  %v7418_v36 = vrot.slane %v7416_v4, 1  ;;  %v15730_v47 = vld [vmem:[%s30244_s6 + $0xb18] sm:$0xf0] }
 0x40f   : > { %11505 = vmatpush.bf16.msrb.mxu1 %v17081_v11  ;;  %7322 = vmatpush.bf16.msra.mxu2 %v15637_v62  ;;  %v7411_v17 = vrot.slane %v7409_v53, 1  ;;  %v7423_v23 = vrot.slane %v7421_v6, 1  ;;  %v16921_v11 = vor.u32 %v19486_v7, %v16920_v60  ;;  %v7407_v19 = vor.u32 %v7406_v37, %v7402_v58 }
 0x410   : > { %7340 = vmatpush.bf16.msra.mxu3 %v15765_v5  ;;  %v6966_v61 = vpop.f32.mrf.mxu2  ;;  %v6984_v22 = vpop.f32.mrf.mxu3  ;;  %v7419_v63 = vor.u32 %v7418_v36, %v7414_v24  ;;  %v17049_v62 = vor.u32 %v19518_v30, %v17048_v40  ;;  %v15733_v60 = vor.u32 %v19185_v1, %v15730_v47  ;;  %v17033_v37 = vor.u32 %v19514_v29, %v17032_v46  ;;  %v16888_v36 = vld [vmem:[%s30246_s8 + $0x820] sm:$0xf]  ;;  %v19478_v40 = vld [vmem:[%s30246_s8 + $0x82c] sm:$0xf0] }
 0x411   : > { %v6967_v35 = vadd.f32 %v6966_v61, %v25298_v41  ;;  %v19482_v41 = vld [vmem:[%s30246_s8 + $0x84c] sm:$0xf0]  ;;  %v26147_v7 = vsel %vm767_vm0, %v7407_v19, %v7411_v17  ;;  %v17016_v30 = vld [vmem:[%s30246_s8 + $0x920] sm:$0xf]  ;;  %v16889_v55 = vor.u32 %v19478_v40, %v16888_v36 }
 0x412   : > { %11492 = vmatpush.bf16.msrb.mxu0 %v16937_v45  ;;  %v26150_v45 = vsel %vm767_vm0, %v7419_v63, %v7423_v23  ;;  %v19474_v17 = vld [vmem:[%s30246_s8 + $0x80c] sm:$0xf0]  ;;  %v17000_v47 = vld [vmem:[%s30246_s8 + $0x900] sm:$0xf] }
 0x413   : > { %11506 = vmatpush.bf16.msrb.mxu1 %v17065_v31  ;;  %v26131_v27 = vadd.f32 %v6984_v22, %v6967_v35  ;;  %v26135_v15 = vpop.f32.mrf.mxu1  ;;  %7323 = vmatpush.bf16.msra.mxu2 %v15621_v13  ;;  %v16905_v31 = vor.u32 %v19482_v41, %v16904_v43  ;;  %v19510_v13 = vld [vmem:[%s30246_s8 + $0x92c] sm:$0xf0]  ;;  %v16872_v22 = vld [vmem:[%s30246_s8 + $0x800] sm:$0xf] }
 0x414   : > { %v26133_v5 = vpop.f32.mrf.mxu0  ;;  %7341 = vmatpush.bf16.msra.mxu3 %v15749_v16  ;;  %v17017_v61 = vor.u32 %v19510_v13, %v17016_v30  ;;  %v19506_v35 = vld [vmem:[%s30246_s8 + $0x90c] sm:$0xf0]  ;;  %v17624_v63 = vld [vmem:[%s30246_s8 + $0xde0] sm:$0xf]  ;;  %v16873_v43 = vor.u32 %v19474_v17, %v16872_v22  ;;  %v7453_v13 = vrot.slane %v26002_v51, 1 }
 0x415   : > { %11441 = vmatmul.bf16.vlgmr.msra.gmra.mxu0 %v26147_v7  ;;  %11455 = vmatmul.bf16.vlgmr.msra.gmra.mxu1 %v26150_v45  ;;  %v19630_v19 = vld [vmem:[%s30246_s8 + $0xcec] sm:$0xf0]  ;;  %v17001_v41 = vor.u32 %v19506_v35, %v17000_v47  ;;  %v17608_v36 = vld [vmem:[%s30246_s8 + $0xdc0] sm:$0xf] }
 0x416   : > { %11493 = vmatpush.bf16.msrb.mxu0 %v16921_v11  ;;  %v17496_v11 = vld [vmem:[%s30246_s8 + $0xce0] sm:$0xf]  ;;  %v19658_v40 = vld [vmem:[%s30246_s8 + $0xdcc] sm:$0xf0] }
 0x417   : > { %11507 = vmatpush.bf16.msrb.mxu1 %v17049_v62  ;;  %7324 = vmatpush.bf16.msra.mxu2 %v15605_v54  ;;  %v19662_v62 = vld [vmem:[%s30246_s8 + $0xdec] sm:$0xf0]  ;;  %v17497_v46 = vor.u32 %v19630_v19, %v17496_v11  ;;  %v17480_v54 = vld [vmem:[%s30246_s8 + $0xcc0] sm:$0xf]  ;;  %v17609_v35 = vor.u32 %v19658_v40, %v17608_v36 }
 0x418   : > { %7342 = vmatpush.bf16.msra.mxu3 %v15733_v60  ;;  %v26166_v16 = vpop.f32.mrf.mxu2  ;;  %v26168_v32 = vpop.f32.mrf.mxu3  ;;  %v17625_v29 = vor.u32 %v19662_v62, %v17624_v63  ;;  %v19626_v60 = vld [vmem:[%s30246_s8 + $0xccc] sm:$0xf0]  ;;  %v17464_v11 = vld [vmem:[%s30246_s8 + $0xca0] sm:$0xf] }
 0x419   : > { %v17481_v47 = vor.u32 %v19626_v60, %v17480_v54  ;;  %v19622_v63 = vld [vmem:[%s30246_s8 + $0xcac] sm:$0xf0]  ;;  %v17592_v62 = vld [vmem:[%s30246_s8 + $0xda0] sm:$0xf] }
 0x41a   : > { %11494 = vmatpush.bf16.msrb.mxu0 %v16905_v31 }
 0x41b   : > { %11508 = vmatpush.bf16.msrb.mxu1 %v17033_v37  ;;  %v26178_v1 = vpop.f32.mrf.mxu1 }
 0x41c   : > { %v26176_v23 = vpop.f32.mrf.mxu0 }
 0x41d   : > { %7258 = vmatmul.bf16.gmra.mxu2 %v24268_v2  ;;  %v7454_v2 = vrot.slane %v26059_v48, 1 }
 0x41e   : > { %7276 = vmatmul.bf16.gmra.mxu3 %v24271_v9  ;;  %11495 = vmatpush.bf16.msrb.mxu0 %v16889_v55  ;;  %v7457_v9 = vrot.slane %v26061_v34, 1  ;;  %v7456_v55 = vrot.slane %v26004_v56, 1 }
 0x41f   : > { %11509 = vmatpush.bf16.msrb.mxu1 %v17017_v61 }
 0x420   : > { %v6971_v31 = vpop.f32.mrf.mxu2  ;;  %v6989_v37 = vpop.f32.mrf.mxu3  ;;  %v26226_v19 = vsel %vm836_vm1, %v7456_v55, %v7457_v9  ;;  %v7003_v9 = vadd.f32 %v25434_v3, %v26131_v27  ;;  %v17432_v55 = vld [vmem:[%s30246_s8 + $0xc60] sm:$0xf]  ;;  %v19646_v27 = vld [vmem:[%s30246_s8 + $0xd6c] sm:$0xf0] }
 0x421   : > { %v6972_v30 = vadd.f32 %v6971_v31, %v25379_v52  ;;  %v26223_v52 = vsel %vm836_vm1, %v7453_v13, %v7454_v2  ;;  %30308 = vst [vmem:[#allocation19_spill] sm:$0xff] %v26226_v19  ;;  %v19618_v31 = vld [vmem:[%s30246_s8 + $0xc8c] sm:$0xf0]  ;;  %v17560_v3 = vld [vmem:[%s30246_s8 + $0xd60] sm:$0xf] }
 0x422   : > { %11496 = vmatpush.bf16.msrb.mxu0 %v16873_v43  ;;  %v19654_v43 = vld [vmem:[%s30246_s8 + $0xdac] sm:$0xf0] }
 0x423   : > { %11510 = vmatpush.bf16.msrb.mxu1 %v17001_v41  ;;  %v26217_v61 = vadd.f32 %v6989_v37, %v6972_v30  ;;  %v7243_v17 = vpop.f32.mrf.mxu1  ;;  %v17465_v41 = vor.u32 %v19622_v63, %v17464_v11  ;;  %v17576_v37 = vld [vmem:[%s30246_s8 + $0xd80] sm:$0xf]  ;;  %v19650_v2 = vld [vmem:[%s30246_s8 + $0xd8c] sm:$0xf0] }
 0x424   : > { %v7225_v22 = vpop.f32.mrf.mxu0  ;;  %v17577_v13 = vor.u32 %v19650_v2, %v17576_v37  ;;  %v7021_v17 = vadd.f32 %v25436_v42, %v7003_v9  ;;  %v17416_v11 = vld [vmem:[%s30246_s8 + $0xc40] sm:$0xf]  ;;  %v7482_v2 = vshrl.u32 %v26061_v34, 16  ;;  %v19606_v9 = vld [vmem:[%s30246_s8 + $0xc2c] sm:$0xf0] }
 0x425   : > { %11497 = vmatmul.bf16.vlgmr.msrb.gmra.mxu0 %v26223_v52  ;;  %v19614_v22 = vld [vmem:[%s30246_s8 + $0xc6c] sm:$0xf0]  ;;  %v17400_v37 = vld [vmem:[%s30246_s8 + $0xc20] sm:$0xf] }
 0x426   : > { %11545 = vmatpush.bf16.msra.mxu0 %v17497_v46  ;;  %11511 = vmatmul.bf16.vlgmr.msrb.gmra.mxu1 %v26226_v19  ;;  %v17593_v46 = vor.u32 %v19654_v43, %v17592_v62  ;;  %v19610_v43 = vld [vmem:[%s30246_s8 + $0xc4c] sm:$0xf0] }
 0x427   : > { %11559 = vmatpush.bf16.msra.mxu1 %v17625_v29  ;;  %v17448_v29 = vld [vmem:[%s30246_s8 + $0xc80] sm:$0xf] }
 0x428   : > { %v6973_v54 = vpop.f32.mrf.mxu2  ;;  %v6991_v60 = vpop.f32.mrf.mxu3  ;;  %v17449_v30 = vor.u32 %v19618_v31, %v17448_v29 }
 0x429   : > { %v17417_v60 = vor.u32 %v19610_v43, %v17416_v11  ;;  %v7485_v11 = vrot.slane %v7421_v6, 2  ;;  %v19634_v43 = vld [vmem:[%s30246_s8 + $0xd0c] sm:$0xf0] }
 0x42a   : > { %11546 = vmatpush.bf16.msra.mxu0 %v17481_v47  ;;  %v17433_v47 = vor.u32 %v19614_v22, %v17432_v55  ;;  %v7476_v22 = vrot.slane %v7409_v53, 2  ;;  %v17512_v53 = vld [vmem:[%s30246_s8 + $0xd00] sm:$0xf]  ;;  %v19758_v6 = vld [vmem:[%s30246_s8 + $0x10ec] sm:$0xf0] }
 0x42b   : > { %11560 = vmatpush.bf16.msra.mxu1 %v17609_v35  ;;  %v26255_v40 = vpop.f32.mrf.mxu1  ;;  %v17561_v35 = vor.u32 %v19646_v27, %v17560_v3  ;;  %v17401_v3 = vor.u32 %v19606_v9, %v17400_v37  ;;  %v7008_v37 = vadd.f32 %v25550_v44, %v26217_v61  ;;  %v19754_v61 = vld [vmem:[%s30246_s8 + $0x10cc] sm:$0xf0] }
 0x42c   : > { %v26253_v36 = vpop.f32.mrf.mxu0 }
 0x42d   : > { %7325 = vmatmul.bf16.vlgmr.msra.gmra.mxu2 %v24387_v0  ;;  %v17544_v0 = vld [vmem:[%s30246_s8 + $0xd40] sm:$0xf] }
 0x42e   : > { %11547 = vmatpush.bf16.msra.mxu0 %v17465_v41  ;;  %7343 = vmatmul.bf16.vlgmr.msra.gmra.mxu3 %v24397_v20  ;;  %v19642_v20 = vld [vmem:[%s30246_s8 + $0xd4c] sm:$0xf0]  ;;  %v7473_v41 = vshrl.u32 %v26059_v48, 16 }
 0x42f   : > { %11561 = vmatpush.bf16.msra.mxu1 %v17593_v46  ;;  %v17545_v31 = vor.u32 %v19642_v20, %v17544_v0  ;;  %v18008_v0 = vld [vmem:[%s30246_s8 + $0x10e0] sm:$0xf] }
 0x430   : > { %v7038_v63 = vpop.f32.mrf.mxu2  ;;  %v7056_v62 = vpop.f32.mrf.mxu3  ;;  %v7475_v55 = vrot.slane %v7473_v41, 1  ;;  %v18136_v20 = vld [vmem:[%s30246_s8 + $0x11e0] sm:$0xf]  ;;  %v7470_v41 = vrot.slane %v7402_v58, 1  ;;  %v7480_v58 = vrot.slane %v7416_v4, 2 }
 0x431   : > { %v7039_v42 = vadd.f32 %v7038_v63, %v7021_v17  ;;  %v17384_v17 = vld [vmem:[%s30246_s8 + $0xc00] sm:$0xf] }
 0x432   : > { %11548 = vmatpush.bf16.msra.mxu0 %v17449_v30  ;;  %v17528_v30 = vld [vmem:[%s30246_s8 + $0xd20] sm:$0xf]  ;;  %v7477_v44 = vor.u32 %v7476_v22, %v7475_v55 }
 0x433   : > { %11562 = vmatpush.bf16.msra.mxu1 %v17577_v13  ;;  %v26285_v46 = vadd.f32 %v7056_v62, %v7039_v42  ;;  %v26289_v54 = vpop.f32.mrf.mxu1  ;;  %v19638_v13 = vld [vmem:[%s30246_s8 + $0xd2c] sm:$0xf0]  ;;  %v18120_v4 = vld [vmem:[%s30246_s8 + $0x11c0] sm:$0xf] }
 0x434   : > { %v26287_v29 = vpop.f32.mrf.mxu0  ;;  %30309 = vst [vmem:[#allocation18_spill] sm:$0xff] %v26289_v54  ;;  %v17529_v27 = vor.u32 %v19638_v13, %v17528_v30  ;;  %v19790_v42 = vld [vmem:[%s30246_s8 + $0x11ec] sm:$0xf0]  ;;  %v17513_v13 = vor.u32 %v19634_v43, %v17512_v53  ;;  %v18009_v54 = vor.u32 %v19758_v6, %v18008_v0 }
 0x435   : > { %v18137_v19 = vor.u32 %v19790_v42, %v18136_v20 }
 0x436   : > { %11549 = vmatpush.bf16.msra.mxu0 %v17433_v47  ;;  %v19602_v47 = vld [vmem:[%s30246_s8 + $0xc0c] sm:$0xf0] }
 0x437   : > { %11563 = vmatpush.bf16.msra.mxu1 %v17561_v35  ;;  %v7484_v35 = vrot.slane %v7482_v2, 1  ;;  %v17385_v30 = vor.u32 %v19602_v47, %v17384_v17 }
 0x438   : > { %v26314_v63 = vpop.f32.mrf.mxu2  ;;  %v26316_v62 = vpop.f32.mrf.mxu3 }
 0x43a   : > { %11550 = vmatpush.bf16.msra.mxu0 %v17417_v60  ;;  %v7471_v60 = vrot.slane %v7404_v57, 2  ;;  %v17992_v57 = vld [vmem:[%s30246_s8 + $0x10c0] sm:$0xf] }
 0x43b   : > { %11564 = vmatpush.bf16.msra.mxu1 %v17545_v31  ;;  %v7479_v31 = vrot.slane %v7414_v24, 1  ;;  %v26346_v9 = vpop.f32.mrf.mxu1  ;;  %v7486_v24 = vor.u32 %v7485_v11, %v7484_v35  ;;  %v17993_v17 = vor.u32 %v19754_v61, %v17992_v57  ;;  %v17976_v35 = vld [vmem:[%s30246_s8 + $0x10a0] sm:$0xf]  ;;  %v19742_v61 = vld [vmem:[%s30246_s8 + $0x106c] sm:$0xf0] }
 0x43c   : > { %v26344_v2 = vpop.f32.mrf.mxu0 }
 0x43d   : > { %7330 = vmatmul.bf16.gmra.mxu2 %v24351_v39  ;;  %v7026_v39 = vadd.f32 %v25552_v26, %v7008_v37  ;;  %v7481_v55 = vor.u32 %v7480_v58, %v7479_v31  ;;  %v19750_v26 = vld [vmem:[%s30246_s8 + $0x10ac] sm:$0xf0]  ;;  %v18088_v37 = vld [vmem:[%s30246_s8 + $0x1180] sm:$0xf] }
 0x43e   : > { %11551 = vmatpush.bf16.msra.mxu0 %v17401_v3  ;;  %7348 = vmatmul.bf16.gmra.mxu3 %v24354_v25  ;;  %v19786_v3 = vld [vmem:[%s30246_s8 + $0x11cc] sm:$0xf0]  ;;  %v7472_v25 = vor.u32 %v7471_v60, %v7470_v41  ;;  %v17977_v42 = vor.u32 %v19750_v26, %v17976_v35  ;;  %v17960_v60 = vld [vmem:[%s30246_s8 + $0x1080] sm:$0xf] }
 0x43f   : > { %11565 = vmatpush.bf16.msra.mxu1 %v17529_v27  ;;  %v18121_v47 = vor.u32 %v19786_v3, %v18120_v4  ;;  %v26372_v43 = vsel %vm7469_vm2, %v7481_v55, %v7486_v24  ;;  %v19746_v31 = vld [vmem:[%s30246_s8 + $0x108c] sm:$0xf0]  ;;  %v17944_v24 = vld [vmem:[%s30246_s8 + $0x1060] sm:$0xf] }
 0x440   : > { %v7043_v22 = vpop.f32.mrf.mxu2  ;;  %v7061_v27 = vpop.f32.mrf.mxu3  ;;  %v26369_v53 = vsel %vm7469_vm2, %v7472_v25, %v7477_v44  ;;  %30311 = vst [vmem:[#allocation24_spill] sm:$0xff] %v26372_v43  ;;  %v17961_v57 = vor.u32 %v19746_v31, %v17960_v60  ;;  %v18072_v4 = vld [vmem:[%s30246_s8 + $0x1160] sm:$0xf]  ;;  %v19774_v3 = vld [vmem:[%s30246_s8 + $0x116c] sm:$0xf0]  ;;  %v17945_v25 = vor.u32 %v19742_v61, %v17944_v24 }
 0x441   : > { %v7044_v11 = vadd.f32 %v7043_v22, %v7026_v39  ;;  %30310 = vst [vmem:[#allocation20_spill] sm:$0xff] %v26369_v53  ;;  %v7075_v39 = vadd.f32 %v25664_v12, %v26285_v46  ;;  %v18073_v55 = vor.u32 %v19774_v3, %v18072_v4  ;;  %v17928_v22 = vld [vmem:[%s30246_s8 + $0x1040] sm:$0xf]  ;;  %v19770_v12 = vld [vmem:[%s30246_s8 + $0x114c] sm:$0xf0] }
 0x442   : > { %11552 = vmatpush.bf16.msra.mxu0 %v17385_v30  ;;  %v19778_v30 = vld [vmem:[%s30246_s8 + $0x118c] sm:$0xf0]  ;;  %v15962_v24 = vld [vmem:[%s30246_s8 + $0xf0] sm:$0xf0]  ;;  %v19276_v61 = vld [vmem:[%s30246_s8 + $0x1e4] sm:$0xf] }
 0x443   : > { %11566 = vmatpush.bf16.msra.mxu1 %v17513_v13  ;;  %v26385_v0 = vadd.f32 %v7061_v27, %v7044_v11  ;;  %v7315_v20 = vpop.f32.mrf.mxu1  ;;  %v18089_v44 = vor.u32 %v19778_v30, %v18088_v37  ;;  %v19738_v27 = vld [vmem:[%s30246_s8 + $0x104c] sm:$0xf0]  ;;  %v17896_v30 = vld [vmem:[%s30246_s8 + $0x1000] sm:$0xf]  ;;  %v16090_v4 = vld [vmem:[%s30246_s8 + $0x1f0] sm:$0xf0] }
 0x444   : > { %v7297_v6 = vpop.f32.mrf.mxu0  ;;  %v30312_v46 = vld [vmem:[#allocation15_spill] sm:$0xff]  ;;  %v17929_v26 = vor.u32 %v19738_v27, %v17928_v22  ;;  %v16093_v27 = vor.u32 %v19276_v61, %v16090_v4  ;;  %v19264_v61 = vld [vmem:[%s30246_s8 + $0x184] sm:$0xf] }
 0x445   : > { %11553 = vmatmul.bf16.vlgmr.msra.gmra.mxu0 %v26369_v53  ;;  %v19734_v20 = vld [vmem:[%s30246_s8 + $0x102c] sm:$0xf0] }
 0x446   : > { %11601 = vmatpush.bf16.msrb.mxu0 %v18009_v54  ;;  %v19782_v54 = vld [vmem:[%s30246_s8 + $0x11ac] sm:$0xf0]  ;;  %11567 = vmatmul.bf16.vlgmr.msra.gmra.mxu1 %v26372_v43  ;;  %v19496_v43 = vld [vmem:[%s30246_s8 + $0x8c4] sm:$0xf] }
 0x447   : > { %11615 = vmatpush.bf16.msrb.mxu1 %v18137_v19  ;;  %v18104_v19 = vld [vmem:[%s30246_s8 + $0x11a0] sm:$0xf] }
 0x448   : > { %v18105_v41 = vor.u32 %v19782_v54, %v18104_v19  ;;  %v7045_v13 = vpop.f32.mrf.mxu2  ;;  %v7063_v58 = vpop.f32.mrf.mxu3  ;;  %v17912_v54 = vld [vmem:[%s30246_s8 + $0x1020] sm:$0xf] }
 0x449   : > { %v17913_v31 = vor.u32 %v19734_v20, %v17912_v54  ;;  %v19730_v13 = vld [vmem:[%s30246_s8 + $0x100c] sm:$0xf0]  ;;  %v18024_v58 = vld [vmem:[%s30246_s8 + $0x1100] sm:$0xf] }
 0x44a   : > { %11602 = vmatpush.bf16.msrb.mxu0 %v17993_v17  ;;  %v18056_v17 = vld [vmem:[%s30246_s8 + $0x1140] sm:$0xf] }
 0x44b   : > { %11616 = vmatpush.bf16.msrb.mxu1 %v18121_v47  ;;  %v7093_v47 = vadd.f32 %v30312_v46, %v7075_v39  ;;  %v18057_v19 = vor.u32 %v19770_v12, %v18056_v17  ;;  %v7512_v17 = vrot.slane %v26059_v48, 2  ;;  %v7515_v12 = vrot.slane %v26061_v34, 2  ;;  %v19240_v46 = vld [vmem:[%s30246_s8 + $0xc4] sm:$0xf] }
 0x44c   : > { %v7080_v48 = vadd.f32 %v25745_v21, %v26385_v0  ;;  %v7511_v34 = vrot.slane %v26002_v51, 2  ;;  %v15930_v0 = vld [vmem:[%s30246_s8 + $0xb0] sm:$0xf0] }
 0x44e   : > { %11603 = vmatpush.bf16.msrb.mxu0 %v17977_v42  ;;  %v18040_v42 = vld [vmem:[%s30246_s8 + $0x1120] sm:$0xf]  ;;  %v26490_v20 = vsel %vm7510_vm3, %v7511_v34, %v7512_v17  ;;  %v19260_v17 = vld [vmem:[%s30246_s8 + $0x164] sm:$0xf]  ;;  %v15882_v34 = vld [vmem:[%s30246_s8 + $0x50] sm:$0xf0] }
 0x44f   : > { %11617 = vmatpush.bf16.msrb.mxu1 %v18105_v41  ;;  %v19766_v41 = vld [vmem:[%s30246_s8 + $0x112c] sm:$0xf0]  ;;  %30313 = vst [vmem:[#allocation15_spill] sm:$0xff] %v26490_v20 }
 0x450   : > { %v7110_v35 = vpop.f32.mrf.mxu2  ;;  %v7128_v11 = vpop.f32.mrf.mxu3  ;;  %v18041_v37 = vor.u32 %v19766_v41, %v18040_v42  ;;  %v19268_v42 = vld [vmem:[%s30246_s8 + $0x1a4] sm:$0xf]  ;;  %v16058_v41 = vld [vmem:[%s30246_s8 + $0x1b0] sm:$0xf0] }
 0x451   : > { %v7111_v6 = vadd.f32 %v7110_v35, %v7093_v47  ;;  %v15946_v47 = vld [vmem:[%s30246_s8 + $0xd0] sm:$0xf0]  ;;  %v19272_v35 = vld [vmem:[%s30246_s8 + $0x1c4] sm:$0xf] }
 0x452   : > { %11604 = vmatpush.bf16.msrb.mxu0 %v17961_v57  ;;  %v19762_v57 = vld [vmem:[%s30246_s8 + $0x110c] sm:$0xf0] }
 0x453   : > { %11618 = vmatpush.bf16.msrb.mxu1 %v18089_v44  ;;  %v26438_v60 = vadd.f32 %v7128_v11, %v7111_v6  ;;  %v19244_v44 = vld [vmem:[%s30246_s8 + $0xe4] sm:$0xf]  ;;  %v16074_v11 = vld [vmem:[%s30246_s8 + $0x1d0] sm:$0xf0] }
 0x454   : > { %v15965_v22 = vor.u32 %v19244_v44, %v15962_v24  ;;  %v16077_v54 = vor.u32 %v19272_v35, %v16074_v11  ;;  %v19236_v6 = vld [vmem:[%s30246_s8 + $0xa4] sm:$0xf]  ;;  %v15914_v24 = vld [vmem:[%s30246_s8 + $0x90] sm:$0xf0] }
 0x455   : > { %v19232_v44 = vld [vmem:[%s30246_s8 + $0x84] sm:$0xf] }
 0x456   : > { %11605 = vmatpush.bf16.msrb.mxu0 %v17945_v25  ;;  %v17897_v25 = vor.u32 %v19730_v13, %v17896_v30 }
 0x457   : > { %11619 = vmatpush.bf16.msrb.mxu1 %v18073_v55  ;;  %v18025_v55 = vor.u32 %v19762_v57, %v18024_v58  ;;  %v15933_v58 = vor.u32 %v19236_v6, %v15930_v0  ;;  %v16061_v57 = vor.u32 %v19268_v42, %v16058_v41  ;;  %v15866_v6 = vld [vmem:[%s30246_s8 + $0x30] sm:$0xf0]  ;;  %v16216_v41 = vld [vmem:[%s30246_s8 + $0x2e0] sm:$0xf] }
 0x458   : > { %v26464_v3 = vpop.f32.mrf.mxu2  ;;  %v26466_v39 = vpop.f32.mrf.mxu3 }
 0x45a   : > { %11606 = vmatpush.bf16.msrb.mxu0 %v17929_v26  ;;  %v7514_v26 = vrot.slane %v26004_v56, 2 }
 0x45b   : > { %11620 = vmatpush.bf16.msrb.mxu1 %v18057_v19  ;;  %v15949_v19 = vor.u32 %v19240_v46, %v15946_v47 }
 0x45c   : > { %v26493_v21 = vsel %vm7510_vm3, %v7514_v26, %v7515_v12  ;;  %v16026_v12 = vld [vmem:[%s30246_s8 + $0x170] sm:$0xf0]  ;;  %v19256_v26 = vld [vmem:[%s30246_s8 + $0x144] sm:$0xf] }
 0x45d   : > { %30314 = vst [vmem:[#allocation25_spill] sm:$0xff] %v26493_v21  ;;  %v16029_v11 = vor.u32 %v19260_v17, %v16026_v12  ;;  %v19216_v12 = vld [vmem:[%s30246_s8 + $0x4] sm:$0xf] }
 0x45e   : > { %11607 = vmatpush.bf16.msrb.mxu0 %v17913_v31  ;;  %v7098_v31 = vadd.f32 %v25747_v8, %v7080_v48  ;;  %v16042_v8 = vld [vmem:[%s30246_s8 + $0x190] sm:$0xf0]  ;;  %v19224_v48 = vld [vmem:[%s30246_s8 + $0x44] sm:$0xf] }
 0x45f   : > { %11621 = vmatpush.bf16.msrb.mxu1 %v18041_v37  ;;  %v15885_v0 = vor.u32 %v19224_v48, %v15882_v34  ;;  %v19372_v48 = vld [vmem:[%s30246_s8 + $0x4e4] sm:$0xf] }
 0x460   : > { %v7115_v37 = vpop.f32.mrf.mxu2 }
 0x461   : > { %v7133_v30 = vpop.f32.mrf.mxu3  ;;  %v7116_v13 = vadd.f32 %v7115_v37, %v7098_v31  ;;  %v19310_v31 = vld [vmem:[%s30246_s8 + $0x2ec] sm:$0xf0]  ;;  %v16344_v37 = vld [vmem:[%s30246_s8 + $0x3e0] sm:$0xf] }
 0x462   : > { %11608 = vmatpush.bf16.msrb.mxu0 %v17897_v25  ;;  %v15917_v25 = vor.u32 %v19232_v44, %v15914_v24  ;;  %v16200_v24 = vld [vmem:[%s30246_s8 + $0x2c0] sm:$0xf] }
 0x463   : > { %11622 = vmatpush.bf16.msrb.mxu1 %v18025_v55  ;;  %v26519_v4 = vadd.f32 %v7133_v30, %v7116_v13  ;;  %v16045_v55 = vor.u32 %v19264_v61, %v16042_v8  ;;  %v19252_v30 = vld [vmem:[%s30246_s8 + $0x124] sm:$0xf]  ;;  %v15994_v13 = vld [vmem:[%s30246_s8 + $0x130] sm:$0xf0] }
 0x464   : > { %v15997_v17 = vor.u32 %v19252_v30, %v15994_v13  ;;  %v19400_v30 = vld [vmem:[%s30246_s8 + $0x5c4] sm:$0xf]  ;;  %v16184_v13 = vld [vmem:[%s30246_s8 + $0x2a0] sm:$0xf] }
 0x465   : > { %11609 = vmatmul.bf16.vlgmr.msrb.gmra.mxu0 %v26490_v20 }
 0x466   : > { %11657 = vmatpush.bf16.msra.mxu0 %v15965_v22  ;;  %11623 = vmatmul.bf16.vlgmr.msrb.gmra.mxu1 %v26493_v21  ;;  %v19228_v22 = vld [vmem:[%s30246_s8 + $0x64] sm:$0xf] }
 0x467   : > { %11671 = vmatpush.bf16.msra.mxu1 %v16093_v27  ;;  %v15898_v27 = vld [vmem:[%s30246_s8 + $0x70] sm:$0xf0] }
 0x468   : > { %v7117_v46 = vpop.f32.mrf.mxu2  ;;  %v15901_v35 = vor.u32 %v19228_v22, %v15898_v27  ;;  %v19338_v22 = vld [vmem:[%s30246_s8 + $0x3cc] sm:$0xf0] }
 0x469   : > { %v7135_v47 = vpop.f32.mrf.mxu3  ;;  %v15850_v46 = vld [vmem:[%s30246_s8 + $0x10] sm:$0xf0] }
 0x46a   : > { %11658 = vmatpush.bf16.msra.mxu0 %v15949_v19  ;;  %v16010_v19 = vld [vmem:[%s30246_s8 + $0x150] sm:$0xf0] }
 0x46b   : > { %11672 = vmatpush.bf16.msra.mxu1 %v16077_v54  ;;  %v19220_v54 = vld [vmem:[%s30246_s8 + $0x24] sm:$0xf]  ;;  %v16013_v42 = vor.u32 %v19256_v26, %v16010_v19  ;;  %v16474_v26 = vld [vmem:[%s30246_s8 + $0x4f0] sm:$0xf0] }
 0x46c   : > { %v15869_v27 = vor.u32 %v19220_v54, %v15866_v6  ;;  %v19404_v19 = vld [vmem:[%s30246_s8 + $0x5e4] sm:$0xf]  ;;  %v16602_v54 = vld [vmem:[%s30246_s8 + $0x5f0] sm:$0xf0]  ;;  %v15853_v6 = vor.u32 %v19216_v12, %v15850_v46 }
 0x46d   : > { %v16442_v12 = vld [vmem:[%s30246_s8 + $0x4b0] sm:$0xf0] }
 0x46e   : > { %11659 = vmatpush.bf16.msra.mxu0 %v15933_v58  ;;  %v16217_v58 = vor.u32 %v19310_v31, %v16216_v41  ;;  %v16458_v41 = vld [vmem:[%s30246_s8 + $0x4d0] sm:$0xf0]  ;;  %v16477_v31 = vor.u32 %v19372_v48, %v16474_v26  ;;  %v19298_v48 = vld [vmem:[%s30246_s8 + $0x28c] sm:$0xf0] }
 0x46f   : > { %11673 = vmatpush.bf16.msra.mxu1 %v16061_v57  ;;  %v19342_v57 = vld [vmem:[%s30246_s8 + $0x3ec] sm:$0xf0] }
 0x470   : > { %v16345_v44 = vor.u32 %v19342_v57, %v16344_v37  ;;  %v26572_v61 = vpop.f32.mrf.mxu2  ;;  %11405 = vmatpush.bf16.msrb.mxu2 %v16217_v58  ;;  %v16605_v37 = vor.u32 %v19404_v19, %v16602_v54  ;;  %v19302_v58 = vld [vmem:[%s30246_s8 + $0x2ac] sm:$0xf0]  ;;  %v16586_v57 = vld [vmem:[%s30246_s8 + $0x5d0] sm:$0xf0]  ;;  %v16296_v19 = vld [vmem:[%s30246_s8 + $0x380] sm:$0xf] }
 0x471   : > { %v26574_v8 = vpop.f32.mrf.mxu3  ;;  %v19330_v54 = vld [vmem:[%s30246_s8 + $0x38c] sm:$0xf0]  ;;  %v7183_v53 = vadd.f32 %v26572_v61, %v25881_v33 }
 0x472   : > { %11660 = vmatpush.bf16.msra.mxu0 %v15917_v25  ;;  %v19306_v25 = vld [vmem:[%s30246_s8 + $0x2cc] sm:$0xf0]  ;;  %11419 = vmatpush.bf16.msrb.mxu3 %v16345_v44  ;;  %v16185_v44 = vor.u32 %v19302_v58, %v16184_v13  ;;  %v16554_v58 = vld [vmem:[%s30246_s8 + $0x590] sm:$0xf0] }
 0x473   : > { %11674 = vmatpush.bf16.msra.mxu1 %v16045_v55  ;;  %v16328_v55 = vld [vmem:[%s30246_s8 + $0x3c0] sm:$0xf]  ;;  %v16201_v47 = vor.u32 %v19306_v25, %v16200_v24  ;;  %v19334_v25 = vld [vmem:[%s30246_s8 + $0x3ac] sm:$0xf0] }
 0x474   : > { %v16329_v34 = vor.u32 %v19338_v22, %v16328_v55  ;;  %v16312_v24 = vld [vmem:[%s30246_s8 + $0x3a0] sm:$0xf]  ;;  %v19294_v13 = vld [vmem:[%s30246_s8 + $0x26c] sm:$0xf0] }
 0x475   : > { %11406 = vmatpush.bf16.msrb.mxu2 %v16201_v47  ;;  %v16589_v47 = vor.u32 %v19400_v30, %v16586_v57  ;;  %v16152_v30 = vld [vmem:[%s30246_s8 + $0x260] sm:$0xf] }
 0x476   : > { %11661 = vmatpush.bf16.msra.mxu0 %v15901_v35  ;;  %v19248_v35 = vld [vmem:[%s30246_s8 + $0x104] sm:$0xf]  ;;  %11420 = vmatpush.bf16.msrb.mxu3 %v16329_v34  ;;  %v16570_v34 = vld [vmem:[%s30246_s8 + $0x5b0] sm:$0xf0]  ;;  %v16153_v57 = vor.u32 %v19294_v13, %v16152_v30  ;;  %v16120_v13 = vld [vmem:[%s30246_s8 + $0x220] sm:$0xf] }
 0x477   : > { %11675 = vmatpush.bf16.msra.mxu1 %v16029_v11  ;;  %v15978_v11 = vld [vmem:[%s30246_s8 + $0x110] sm:$0xf0]  ;;  %v19384_v30 = vld [vmem:[%s30246_s8 + $0x544] sm:$0xf] }
 0x478   : > { %v26633_v55 = vpop.f32.mrf.mxu2 }
 0x479   : > { %v26635_v22 = vpop.f32.mrf.mxu3  ;;  %11407 = vmatpush.bf16.msrb.mxu2 %v16185_v44  ;;  %v16280_v44 = vld [vmem:[%s30246_s8 + $0x360] sm:$0xf] }
 0x47a   : > { %11662 = vmatpush.bf16.msra.mxu0 %v15885_v0  ;;  %v15981_v0 = vor.u32 %v19248_v35, %v15978_v11  ;;  %v19396_v35 = vld [vmem:[%s30246_s8 + $0x5a4] sm:$0xf]  ;;  %v16168_v11 = vld [vmem:[%s30246_s8 + $0x280] sm:$0xf] }
 0x47b   : > { %11676 = vmatpush.bf16.msra.mxu1 %v16013_v42  ;;  %v19368_v42 = vld [vmem:[%s30246_s8 + $0x4c4] sm:$0xf]  ;;  %v16169_v26 = vor.u32 %v19298_v48, %v16168_v11 }
 0x47c   : > { %v16461_v46 = vor.u32 %v19368_v42, %v16458_v41  ;;  %v16426_v42 = vld [vmem:[%s30246_s8 + $0x490] sm:$0xf0]  ;;  %v19356_v48 = vld [vmem:[%s30246_s8 + $0x464] sm:$0xf] }
 0x47d   : > { %11408 = vmatpush.bf16.msrb.mxu2 %v16169_v26  ;;  %v16410_v26 = vld [vmem:[%s30246_s8 + $0x470] sm:$0xf0] }
 0x47e   : > { %11663 = vmatpush.bf16.msra.mxu0 %v15869_v27  ;;  %v16313_v27 = vor.u32 %v19334_v25, %v16312_v24  ;;  %v19326_v24 = vld [vmem:[%s30246_s8 + $0x36c] sm:$0xf0] }
 0x47f   : > { %11677 = vmatpush.bf16.msra.mxu1 %v15997_v17  ;;  %v19364_v17 = vld [vmem:[%s30246_s8 + $0x4a4] sm:$0xf] }
 0x480   : > { %11421 = vmatpush.bf16.msrb.mxu3 %v16313_v27  ;;  %v16445_v41 = vor.u32 %v19364_v17, %v16442_v12  ;;  %v26687_v25 = vpop.f32.mrf.mxu2  ;;  %v16281_v17 = vor.u32 %v19326_v24, %v16280_v44  ;;  %v16136_v12 = vld [vmem:[%s30246_s8 + $0x240] sm:$0xf] }
 0x481   : > { %v26689_v27 = vpop.f32.mrf.mxu3  ;;  %11409 = vmatpush.bf16.msrb.mxu2 %v16153_v57  ;;  %v16522_v57 = vld [vmem:[%s30246_s8 + $0x550] sm:$0xf0]  ;;  %v16248_v24 = vld [vmem:[%s30246_s8 + $0x320] sm:$0xf] }
 0x482   : > { %11664 = vmatpush.bf16.msra.mxu0 %v15853_v6  ;;  %v16297_v6 = vor.u32 %v19330_v54, %v16296_v19  ;;  %v19388_v19 = vld [vmem:[%s30246_s8 + $0x564] sm:$0xf]  ;;  %v16538_v54 = vld [vmem:[%s30246_s8 + $0x570] sm:$0xf0] }
 0x483   : > { %11678 = vmatpush.bf16.msra.mxu1 %v15981_v0  ;;  %v19360_v0 = vld [vmem:[%s30246_s8 + $0x484] sm:$0xf] }
 0x484   : > { %11422 = vmatpush.bf16.msrb.mxu3 %v16297_v6 }
 0x485   : > { %11665 = vmatmul.bf16.vlgmr.msra.gmra.mxu0 %v26002_v51 }
 0x486   : > { %11713 = vmatpush.bf16.msrb.mxu0 %v16477_v31  ;;  %11679 = vmatmul.bf16.vlgmr.msra.gmra.mxu1 %v26004_v56  ;;  %v16573_v31 = vor.u32 %v19396_v35, %v16570_v34  ;;  %v16429_v35 = vor.u32 %v19360_v0, %v16426_v42  ;;  %v19322_v34 = vld [vmem:[%s30246_s8 + $0x34c] sm:$0xf0]  ;;  %v19352_v42 = vld [vmem:[%s30246_s8 + $0x444] sm:$0xf] }
 0x487   : > { %11727 = vmatpush.bf16.msrb.mxu1 %v16605_v37  ;;  %v19392_v37 = vld [vmem:[%s30246_s8 + $0x584] sm:$0xf] }
 0x488   : > { %v16557_v11 = vor.u32 %v19392_v37, %v16554_v58  ;;  %11423 = vmatpush.bf16.msrb.mxu3 %v16281_v17  ;;  %v16541_v37 = vor.u32 %v19388_v19, %v16538_v54  ;;  %v19286_v58 = vld [vmem:[%s30246_s8 + $0x22c] sm:$0xf0]  ;;  %v16232_v19 = vld [vmem:[%s30246_s8 + $0x300] sm:$0xf] }
 0x489   : > { %v16121_v44 = vor.u32 %v19286_v58, %v16120_v13  ;;  %v19318_v17 = vld [vmem:[%s30246_s8 + $0x32c] sm:$0xf0]  ;;  %v16728_v13 = vld [vmem:[%s30246_s8 + $0x6e0] sm:$0xf] }
 0x48a   : > { %11714 = vmatpush.bf16.msrb.mxu0 %v16461_v46  ;;  %v19290_v46 = vld [vmem:[%s30246_s8 + $0x24c] sm:$0xf0] }
 0x48b   : > { %11728 = vmatpush.bf16.msrb.mxu1 %v16589_v47  ;;  %v16264_v47 = vld [vmem:[%s30246_s8 + $0x340] sm:$0xf]  ;;  %v16137_v6 = vor.u32 %v19290_v46, %v16136_v12  ;;  %v7189_v12 = vpop.f32.mrf.mxu2  ;;  %v7207_v46 = vpop.f32.mrf.mxu3  ;;  %v19438_v58 = vld [vmem:[%s30246_s8 + $0x6ec] sm:$0xf0] }
 0x48c   : > { %v16265_v0 = vor.u32 %v19322_v34, %v16264_v47  ;;  %v16249_v47 = vor.u32 %v19318_v17, %v16248_v24  ;;  %v16104_v34 = vld [vmem:[%s30246_s8 + $0x200] sm:$0xf]  ;;  %v16506_v24 = vld [vmem:[%s30246_s8 + $0x530] sm:$0xf0] }
 0x48d   : > { %11410 = vmatpush.bf16.msrb.mxu2 %v16137_v6  ;;  %v16525_v6 = vor.u32 %v19384_v30, %v16522_v57  ;;  %v16729_v30 = vor.u32 %v19438_v58, %v16728_v13  ;;  %v16712_v17 = vld [vmem:[%s30246_s8 + $0x6c0] sm:$0xf]  ;;  %v19532_v13 = vld [vmem:[%s30246_s8 + $0x9e4] sm:$0xf]  ;;  %v17114_v58 = vld [vmem:[%s30246_s8 + $0x9f0] sm:$0xf0] }
 0x48e   : > { %11715 = vmatpush.bf16.msrb.mxu0 %v16445_v41  ;;  %v16394_v41 = vld [vmem:[%s30246_s8 + $0x450] sm:$0xf0]  ;;  %11424 = vmatpush.bf16.msrb.mxu3 %v16265_v0  ;;  %v19314_v0 = vld [vmem:[%s30246_s8 + $0x30c] sm:$0xf0]  ;;  %v16840_v12 = vld [vmem:[%s30246_s8 + $0x7c0] sm:$0xf]  ;;  %v17117_v20 = vor.u32 %v19532_v13, %v17114_v58 }
 0x48f   : > { %11729 = vmatpush.bf16.msrb.mxu1 %v16573_v31  ;;  %v16413_v31 = vor.u32 %v19356_v48, %v16410_v26  ;;  %v19380_v48 = vld [vmem:[%s30246_s8 + $0x524] sm:$0xf]  ;;  %v19282_v26 = vld [vmem:[%s30246_s8 + $0x20c] sm:$0xf0]  ;;  %v16397_v54 = vor.u32 %v19352_v42, %v16394_v41  ;;  %v16233_v41 = vor.u32 %v19314_v0, %v16232_v19 }
 0x490   : > { %v16105_v42 = vor.u32 %v19282_v26, %v16104_v34  ;;  %v19344_v34 = vld [vmem:[%s30246_s8 + $0x404] sm:$0xf]  ;;  %v16362_v26 = vld [vmem:[%s30246_s8 + $0x410] sm:$0xf0]  ;;  %v19466_v19 = vld [vmem:[%s30246_s8 + $0x7cc] sm:$0xf0] }
 0x491   : > { %11411 = vmatpush.bf16.msrb.mxu2 %v16121_v44  ;;  %v19434_v44 = vld [vmem:[%s30246_s8 + $0x6cc] sm:$0xf0]  ;;  %v19376_v0 = vld [vmem:[%s30246_s8 + $0x504] sm:$0xf]  ;;  %v16365_v56 = vor.u32 %v19344_v34, %v16362_v26  ;;  %v7201_v26 = vadd.f32 %v26574_v8, %v7183_v53  ;;  %v16824_v53 = vld [vmem:[%s30246_s8 + $0x7a0] sm:$0xf] }
 0x492   : > { %11716 = vmatpush.bf16.msrb.mxu0 %v16429_v35  ;;  %v19348_v35 = vld [vmem:[%s30246_s8 + $0x424] sm:$0xf]  ;;  %11425 = vmatpush.bf16.msrb.mxu3 %v16249_v47  ;;  %v16509_v47 = vor.u32 %v19380_v48, %v16506_v24  ;;  %v16713_v24 = vor.u32 %v19434_v44, %v16712_v17  ;;  %v17098_v17 = vld [vmem:[%s30246_s8 + $0x9d0] sm:$0xf0] }
 0x493   : > { %11730 = vmatpush.bf16.msrb.mxu1 %v16557_v11  ;;  %v16378_v11 = vld [vmem:[%s30246_s8 + $0x430] sm:$0xf0]  ;;  %v26802_v48 = vpop.f32.mrf.mxu2  ;;  %v7219_v58 = vadd.f32 %v26063_v38, %v7201_v26  ;;  %v16680_v38 = vld [vmem:[%s30246_s8 + $0x680] sm:$0xf] }
 0x494   : > { %v16381_v46 = vor.u32 %v19348_v35, %v16378_v11  ;;  %v16490_v35 = vld [vmem:[%s30246_s8 + $0x510] sm:$0xf0]  ;;  %v19500_v11 = vld [vmem:[%s30246_s8 + $0x8e4] sm:$0xf] }
 0x495   : > { %11412 = vmatpush.bf16.msrb.mxu2 %v16105_v42  ;;  %v16841_v42 = vor.u32 %v19466_v19, %v16840_v12  ;;  %v16493_v51 = vor.u32 %v19376_v0, %v16490_v35  ;;  %v30317_v44 = vld [vmem:[#allocation23_spill] sm:$0xff] }
 0x496   : > { %11717 = vmatpush.bf16.msrb.mxu0 %v16413_v31  ;;  %v16856_v31 = vld [vmem:[%s30246_s8 + $0x7e0] sm:$0xf]  ;;  %11426 = vmatpush.bf16.msrb.mxu3 %v16233_v41  ;;  %v16922_v26 = vld [vmem:[%s30246_s8 + $0x870] sm:$0xf0] }
 0x497   : > { %11731 = vmatpush.bf16.msrb.mxu1 %v16541_v37  ;;  %v19470_v37 = vld [vmem:[%s30246_s8 + $0x7ec] sm:$0xf0]  ;;  %v30315_v41 = vld [vmem:[#allocation21_spill] sm:$0xff] }
 0x498   : > { %v16857_v57 = vor.u32 %v19470_v37, %v16856_v31  ;;  %v30316_v31 = vld [vmem:[#allocation22_spill] sm:$0xff] }
 0x499   : > { %11461 = vmatpush.bf16.msra.mxu2 %v16729_v30  ;;  %v6933_v37 = vadd.f32 %v30316_v31, %v30315_v41  ;;  %v16970_v30 = vld [vmem:[%s30246_s8 + $0x8d0] sm:$0xf0] }
 0x49a   : > { %11718 = vmatpush.bf16.msrb.mxu0 %v16397_v54  ;;  %v26804_v54 = vpop.f32.mrf.mxu3  ;;  %11475 = vmatpush.bf16.msra.mxu3 %v16857_v57  ;;  %v19528_v57 = vld [vmem:[%s30246_s8 + $0x9c4] sm:$0xf]  ;;  %v16973_v33 = vor.u32 %v19496_v43, %v16970_v30  ;;  %v17066_v41 = vld [vmem:[%s30246_s8 + $0x990] sm:$0xf0] }
 0x49b   : > { %11732 = vmatpush.bf16.msrb.mxu1 %v16525_v6  ;;  %v16986_v6 = vld [vmem:[%s30246_s8 + $0x8f0] sm:$0xf0]  ;;  %v6951_v12 = vadd.f32 %v30317_v44, %v6933_v37  ;;  %v17101_v61 = vor.u32 %v19528_v57, %v17098_v17  ;;  %v26839_v19 = vpop.f32.mrf.mxu2  ;;  %v19458_v37 = vld [vmem:[%s30246_s8 + $0x78c] sm:$0xf0]  ;;  %v19484_v17 = vld [vmem:[%s30246_s8 + $0x864] sm:$0xf] }
 0x49c   : > { %v16989_v21 = vor.u32 %v19500_v11, %v16986_v6  ;;  %v19488_v11 = vld [vmem:[%s30246_s8 + $0x884] sm:$0xf] }
 0x49d   : > { %11462 = vmatpush.bf16.msra.mxu2 %v16713_v24  ;;  %v6969_v34 = vadd.f32 %v26166_v16, %v6951_v12  ;;  %v19430_v16 = vld [vmem:[%s30246_s8 + $0x6ac] sm:$0xf0]  ;;  %v16938_v24 = vld [vmem:[%s30246_s8 + $0x890] sm:$0xf0]  ;;  %v30318_v12 = vld [vmem:[#allocation13_spill] sm:$0xff] }
 0x49e   : > { %11719 = vmatpush.bf16.msrb.mxu0 %v16381_v46  ;;  %11476 = vmatpush.bf16.msra.mxu3 %v16841_v42  ;;  %v7149_v46 = vadd.f32 %v25909_v50, %v25841_v59  ;;  %v16954_v59 = vld [vmem:[%s30246_s8 + $0x8b0] sm:$0xf0]  ;;  %v19524_v50 = vld [vmem:[%s30246_s8 + $0x9a4] sm:$0xf]  ;;  %v16941_v30 = vor.u32 %v19488_v11, %v16938_v24 }
 0x49f   : > { %11733 = vmatpush.bf16.msrb.mxu1 %v16509_v47  ;;  %v19492_v47 = vld [vmem:[%s30246_s8 + $0x8a4] sm:$0xf]  ;;  %v6987_v13 = vadd.f32 %v26168_v32, %v6969_v34  ;;  %v19426_v32 = vld [vmem:[%s30246_s8 + $0x68c] sm:$0xf0]  ;;  %v17034_v11 = vld [vmem:[%s30246_s8 + $0x950] sm:$0xf0] }
 0x4a0   : > { %v7167_v43 = vadd.f32 %v25911_v28, %v7149_v46  ;;  %v16957_v8 = vor.u32 %v19492_v47, %v16954_v59  ;;  %v19520_v42 = vld [vmem:[%s30246_s8 + $0x984] sm:$0xf]  ;;  %v16681_v31 = vor.u32 %v19426_v32, %v16680_v38  ;;  %v16776_v38 = vld [vmem:[%s30246_s8 + $0x740] sm:$0xf] }
 0x4a1   : > { %v17069_v57 = vor.u32 %v19520_v42, %v17066_v41  ;;  %v7005_v46 = vadd.f32 %v30318_v12, %v6987_v13  ;;  %v19516_v59 = vld [vmem:[%s30246_s8 + $0x964] sm:$0xf]  ;;  %v19454_v13 = vld [vmem:[%s30246_s8 + $0x76c] sm:$0xf0] }
 0x4a2   : > { %11720 = vmatpush.bf16.msrb.mxu0 %v16365_v56  ;;  %v26841_v0 = vpop.f32.mrf.mxu3  ;;  %v16696_v56 = vld [vmem:[%s30246_s8 + $0x6a0] sm:$0xf]  ;;  %v7185_v28 = vadd.f32 %v26633_v55, %v7167_v43  ;;  %v19418_v41 = vld [vmem:[%s30246_s8 + $0x64c] sm:$0xf0] }
 0x4a3   : > { %11734 = vmatpush.bf16.msrb.mxu1 %v16493_v51  ;;  %v17082_v51 = vld [vmem:[%s30246_s8 + $0x9b0] sm:$0xf0]  ;;  %v16808_v55 = vld [vmem:[%s30246_s8 + $0x780] sm:$0xf]  ;;  %v26900_v47 = vpop.f32.mrf.mxu2 }
 0x4a4   : > { %v17085_v35 = vor.u32 %v19524_v50, %v17082_v51  ;;  %v16809_v44 = vor.u32 %v19458_v37, %v16808_v55  ;;  %v17050_v50 = vld [vmem:[%s30246_s8 + $0x970] sm:$0xf0]  ;;  %v16792_v43 = vld [vmem:[%s30246_s8 + $0x760] sm:$0xf] }
 0x4a5   : > { %11721 = vmatmul.bf16.vlgmr.msrb.gmra.mxu0 %v26147_v7  ;;  %v16906_v51 = vld [vmem:[%s30246_s8 + $0x850] sm:$0xf0] }
 0x4a6   : > { %11769 = vmatpush.bf16.msra.mxu0 %v16989_v21  ;;  %11735 = vmatmul.bf16.vlgmr.msrb.gmra.mxu1 %v26150_v45  ;;  %v19462_v21 = vld [vmem:[%s30246_s8 + $0x7ac] sm:$0xf0] }
 0x4a7   : > { %11783 = vmatpush.bf16.msra.mxu1 %v17117_v20  ;;  %v16697_v20 = vor.u32 %v19430_v16, %v16696_v56  ;;  %v16825_v6 = vor.u32 %v19462_v21, %v16824_v53  ;;  %v16925_v56 = vor.u32 %v19484_v17, %v16922_v26  ;;  %v17053_v16 = vor.u32 %v19516_v59, %v17050_v50  ;;  %v16664_v53 = vld [vmem:[%s30246_s8 + $0x660] sm:$0xf]  ;;  %v17018_v17 = vld [vmem:[%s30246_s8 + $0x930] sm:$0xf0]  ;;  %v19504_v59 = vld [vmem:[%s30246_s8 + $0x904] sm:$0xf] }
 0x4a8   : > { %v16874_v26 = vld [vmem:[%s30246_s8 + $0x810] sm:$0xf0]  ;;  %v19414_v50 = vld [vmem:[%s30246_s8 + $0x62c] sm:$0xf0] }
 0x4a9   : > { %11463 = vmatpush.bf16.msra.mxu2 %v16697_v20  ;;  %11477 = vmatpush.bf16.msra.mxu3 %v16825_v6  ;;  %v30319_v20 = vld [vmem:[#allocation14_spill] sm:$0xff] }
 0x4aa   : > { %11770 = vmatpush.bf16.msra.mxu0 %v16973_v33  ;;  %v7203_v33 = vadd.f32 %v26635_v22, %v7185_v28  ;;  %v26902_v34 = vpop.f32.mrf.mxu3  ;;  %v19480_v22 = vld [vmem:[%s30246_s8 + $0x844] sm:$0xf]  ;;  %v7023_v21 = vadd.f32 %v30319_v20, %v7005_v46  ;;  %v16793_v28 = vor.u32 %v19454_v13, %v16792_v43  ;;  %v17626_v43 = vld [vmem:[%s30246_s8 + $0xdf0] sm:$0xf0]  ;;  %v19442_v13 = vld [vmem:[%s30246_s8 + $0x70c] sm:$0xf0] }
 0x4ab   : > { %11784 = vmatpush.bf16.msra.mxu1 %v17101_v61  ;;  %v7237_v61 = vadd.f32 %v26065_v18, %v7219_v58  ;;  %v7188_v58 = vadd.f32 %v26687_v25, %v25969_v10  ;;  %v19450_v10 = vld [vmem:[%s30246_s8 + $0x74c] sm:$0xf0]  ;;  %v16909_v25 = vor.u32 %v19480_v22, %v16906_v51  ;;  %v19628_v22 = vld [vmem:[%s30246_s8 + $0xce4] sm:$0xf]  ;;  %v17498_v51 = vld [vmem:[%s30246_s8 + $0xcf0] sm:$0xf0] }
 0x4ac   : > { %v7041_v24 = vadd.f32 %v26314_v63, %v7023_v21  ;;  %v19476_v63 = vld [vmem:[%s30246_s8 + $0x824] sm:$0xf]  ;;  %v16616_v21 = vld [vmem:[%s30246_s8 + $0x600] sm:$0xf] }
 0x4ad   : > { %11464 = vmatpush.bf16.msra.mxu2 %v16681_v31  ;;  %11478 = vmatpush.bf16.msra.mxu3 %v16809_v44  ;;  %v7255_v18 = vadd.f32 %v26802_v48, %v7237_v61  ;;  %v19422_v48 = vld [vmem:[%s30246_s8 + $0x66c] sm:$0xf0]  ;;  %v7261_v31 = vpop.f32.mrf.mxu2  ;;  %v16777_v44 = vor.u32 %v19450_v10, %v16776_v38  ;;  %v7206_v12 = vadd.f32 %v26689_v27, %v7188_v58  ;;  %v19472_v61 = vld [vmem:[%s30246_s8 + $0x804] sm:$0xf]  ;;  %v17482_v10 = vld [vmem:[%s30246_s8 + $0xcd0] sm:$0xf0] }
 0x4ae   : > { %11771 = vmatpush.bf16.msra.mxu0 %v16957_v8  ;;  %v7221_v8 = vadd.f32 %v26133_v5, %v7203_v33  ;;  %v16665_v6 = vor.u32 %v19422_v48, %v16664_v53  ;;  %v16648_v5 = vld [vmem:[%s30246_s8 + $0x640] sm:$0xf]  ;;  %v19660_v48 = vld [vmem:[%s30246_s8 + $0xde4] sm:$0xf] }
 0x4af   : > { %11785 = vmatpush.bf16.msra.mxu1 %v17085_v35  ;;  %v19512_v35 = vld [vmem:[%s30246_s8 + $0x944] sm:$0xf]  ;;  %v7273_v42 = vadd.f32 %v26804_v54, %v7255_v18  ;;  %v16649_v54 = vor.u32 %v19418_v41, %v16648_v5  ;;  %v16760_v18 = vld [vmem:[%s30246_s8 + $0x720] sm:$0xf]  ;;  %v7224_v53 = vadd.f32 %v26176_v23, %v7206_v12  ;;  %v19410_v23 = vld [vmem:[%s30246_s8 + $0x60c] sm:$0xf0]  ;;  %v17501_v5 = vor.u32 %v19628_v22, %v17498_v51 }
 0x4b0   : > { %v17037_v32 = vor.u32 %v19512_v35, %v17034_v11  ;;  %v7239_v55 = vadd.f32 %v26135_v15, %v7221_v8  ;;  %v7059_v15 = vadd.f32 %v26316_v62, %v7041_v24  ;;  %v17002_v62 = vld [vmem:[%s30246_s8 + $0x910] sm:$0xf0]  ;;  %v17629_v24 = vor.u32 %v19660_v48, %v17626_v43 }
 0x4b1   : > { %11465 = vmatpush.bf16.msra.mxu2 %v16665_v6  ;;  %11479 = vmatpush.bf16.msra.mxu3 %v16793_v28  ;;  %v7291_v46 = vadd.f32 %v26253_v36, %v7273_v42  ;;  %v16744_v6 = vld [vmem:[%s30246_s8 + $0x700] sm:$0xf]  ;;  %v17005_v58 = vor.u32 %v19504_v59, %v17002_v62  ;;  %v19624_v42 = vld [vmem:[%s30246_s8 + $0xcc4] sm:$0xf]  ;;  %v7242_v41 = vadd.f32 %v26178_v1, %v7224_v53  ;;  %v17594_v12 = vld [vmem:[%s30246_s8 + $0xdb0] sm:$0xf0] }
 0x4b2   : > { %11772 = vmatpush.bf16.msra.mxu0 %v16941_v30  ;;  %v7279_v37 = vpop.f32.mrf.mxu3  ;;  %v16890_v30 = vld [vmem:[%s30246_s8 + $0x830] sm:$0xf0]  ;;  %v7257_v33 = vadd.f32 %v26839_v19, %v7239_v55  ;;  %v16632_v19 = vld [vmem:[%s30246_s8 + $0x620] sm:$0xf]  ;;  %v7077_v8 = vadd.f32 %v25716_v14, %v7059_v15  ;;  %v16877_v14 = vor.u32 %v19472_v61, %v16874_v26 }
 0x4b3   : > { %11786 = vmatpush.bf16.msra.mxu1 %v17069_v57  ;;  %v19508_v57 = vld [vmem:[%s30246_s8 + $0x924] sm:$0xf]  ;;  %v16893_v36 = vor.u32 %v19476_v63, %v16890_v30  ;;  %v7309_v11 = vadd.f32 %v26255_v40, %v7291_v46  ;;  %v16745_v63 = vor.u32 %v19442_v13, %v16744_v6  ;;  %v7260_v1 = vadd.f32 %v26900_v47, %v7242_v41  ;;  %v30320_v15 = vld [vmem:[#allocation19_spill] sm:$0xff] }
 0x4b4   : > { %v17021_v27 = vor.u32 %v19508_v57, %v17018_v17  ;;  %v7275_v35 = vadd.f32 %v26841_v0, %v7257_v33  ;;  %v16617_v0 = vor.u32 %v19410_v23, %v16616_v21  ;;  %v17485_v37 = vor.u32 %v19624_v42, %v17482_v10  ;;  %v19620_v57 = vld [vmem:[%s30246_s8 + $0xca4] sm:$0xf]  ;;  %v17434_v53 = vld [vmem:[%s30246_s8 + $0xc70] sm:$0xf0]  ;;  %v17240_v21 = vld [vmem:[%s30246_s8 + $0xae0] sm:$0xf] }
 0x4b5   : > { %11466 = vmatpush.bf16.msra.mxu2 %v16649_v54  ;;  %11480 = vmatpush.bf16.msra.mxu3 %v16777_v44  ;;  %v7326_v28 = vpop.f32.mrf.mxu2  ;;  %v7095_v54 = vadd.f32 %v25718_v49, %v7077_v8  ;;  %v17466_v49 = vld [vmem:[%s30246_s8 + $0xcb0] sm:$0xf0]  ;;  %v7355_v17 = vmax.f32 %v26438_v60, 0.0  ;;  %v19652_v44 = vld [vmem:[%s30246_s8 + $0xda4] sm:$0xf]  ;;  %v7278_v46 = vadd.f32 %v26902_v34, %v7260_v1  ;;  %v30321_v60 = vld [vmem:[#allocation18_spill] sm:$0xff] }
 0x4b6   : > { %11773 = vmatpush.bf16.msra.mxu0 %v16925_v56  ;;  %v16633_v56 = vor.u32 %v19414_v50, %v16632_v19  ;;  %v7327_v38 = vadd.f32 %v7326_v28, %v7309_v11  ;;  %v7293_v55 = vadd.f32 %v26287_v29, %v7275_v35  ;;  %v17469_v59 = vor.u32 %v19620_v57, %v17466_v49  ;;  %v17450_v34 = vld [vmem:[%s30246_s8 + $0xc90] sm:$0xf0]  ;;  %v19648_v50 = vld [vmem:[%s30246_s8 + $0xd84] sm:$0xf]  ;;  %v19566_v11 = vld [vmem:[%s30246_s8 + $0xaec] sm:$0xf0] }
 0x4b7   : > { %11787 = vmatpush.bf16.msra.mxu1 %v17053_v16  ;;  %v19446_v16 = vld [vmem:[%s30246_s8 + $0x72c] sm:$0xf0]  ;;  %v7113_v29 = vadd.f32 %v26464_v3, %v7095_v54  ;;  %v17597_v62 = vor.u32 %v19652_v44, %v17594_v12  ;;  %v7296_v22 = vadd.f32 %v26344_v2, %v7278_v46  ;;  %v17562_v2 = vld [vmem:[%s30246_s8 + $0xd70] sm:$0xf0]  ;;  %v17368_v23 = vld [vmem:[%s30246_s8 + $0xbe0] sm:$0xf] }
 0x4b8   : > { %v16761_v20 = vor.u32 %v19446_v16, %v16760_v18  ;;  %v7311_v61 = vadd.f32 %v30321_v60, %v7293_v55  ;;  %v17578_v18 = vld [vmem:[%s30246_s8 + $0xd90] sm:$0xf0]  ;;  %v19612_v16 = vld [vmem:[%s30246_s8 + $0xc64] sm:$0xf]  ;;  %v19598_v6 = vld [vmem:[%s30246_s8 + $0xbec] sm:$0xf0] }
 0x4b9   : > { %11467 = vmatpush.bf16.msra.mxu2 %v16633_v56  ;;  %v7314_v35 = vadd.f32 %v26346_v9, %v7296_v22  ;;  %v19608_v9 = vld [vmem:[%s30246_s8 + $0xc44] sm:$0xf]  ;;  %v17418_v41 = vld [vmem:[%s30246_s8 + $0xc50] sm:$0xf0] }
 0x4ba   : > { %11774 = vmatpush.bf16.msra.mxu0 %v16909_v25  ;;  %v7344_v40 = vpop.f32.mrf.mxu3  ;;  %11481 = vmatpush.bf16.msra.mxu3 %v16761_v20  ;;  %v19656_v25 = vld [vmem:[%s30246_s8 + $0xdc4] sm:$0xf]  ;;  %v17546_v10 = vld [vmem:[%s30246_s8 + $0xd50] sm:$0xf0]  ;;  %v17421_v57 = vor.u32 %v19608_v9, %v17418_v41 }
 0x4bb   : > { %11788 = vmatpush.bf16.msra.mxu1 %v17037_v32  ;;  %v17610_v32 = vld [vmem:[%s30246_s8 + $0xdd0] sm:$0xf0]  ;;  %v7345_v31 = vadd.f32 %v7344_v40, %v7327_v38  ;;  %v19644_v20 = vld [vmem:[%s30246_s8 + $0xd64] sm:$0xf] }
 0x4bc   : > { %v17613_v30 = vor.u32 %v19656_v25, %v17610_v32  ;;  %v17565_v28 = vor.u32 %v19644_v20, %v17562_v2  ;;  %v19640_v38 = vld [vmem:[%s30246_s8 + $0xd44] sm:$0xf]  ;;  %v17241_v25 = vor.u32 %v19566_v11, %v17240_v21  ;;  %v17369_v32 = vor.u32 %v19598_v6, %v17368_v23  ;;  %v17530_v46 = vld [vmem:[%s30246_s8 + $0xd30] sm:$0xf0]  ;;  %v17192_v2 = vld [vmem:[%s30246_s8 + $0xa80] sm:$0xf] }
 0x4bd   : > { %11468 = vmatpush.bf16.msra.mxu2 %v16617_v0  ;;  %v7356_v47 = vmax.f32 %v7345_v31, 0.0  ;;  %v7328_v3 = vpop.f32.mrf.mxu2  ;;  %v17437_v0 = vor.u32 %v19612_v16, %v17434_v53  ;;  %v19562_v31 = vld [vmem:[%s30246_s8 + $0xacc] sm:$0xf0]  ;;  %v17549_v49 = vor.u32 %v19640_v38, %v17546_v10  ;;  %v19636_v12 = vld [vmem:[%s30246_s8 + $0xd24] sm:$0xf] }
 0x4be   : > { %11775 = vmatpush.bf16.msra.mxu0 %v16893_v36  ;;  %11482 = vmatpush.bf16.msra.mxu3 %v16745_v63  ;;  %v19616_v36 = vld [vmem:[%s30246_s8 + $0xc84] sm:$0xf]  ;;  %v7329_v19 = vadd.f32 %v7328_v3, %v7311_v61  ;;  %v17224_v63 = vld [vmem:[%s30246_s8 + $0xac0] sm:$0xf]  ;;  %v19558_v61 = vld [vmem:[%s30246_s8 + $0xaac] sm:$0xf0] }
 0x4bf   : > { %11789 = vmatpush.bf16.msra.mxu1 %v17021_v27  ;;  %v7366_v33 = vpack.c.bf16 %v7356_v47, %v7355_v17  ;;  %v7131_v27 = vadd.f32 %v26466_v39, %v7113_v29  ;;  %v17453_v56 = vor.u32 %v19616_v36, %v17450_v34  ;;  %v17581_v39 = vor.u32 %v19648_v50, %v17578_v18  ;;  %v19604_v17 = vld [vmem:[%s30246_s8 + $0xc24] sm:$0xf]  ;;  %v17402_v29 = vld [vmem:[%s30246_s8 + $0xc30] sm:$0xf0]  ;;  %v19554_v21 = vld [vmem:[%s30246_s8 + $0xa8c] sm:$0xf0] }
 0x4c0   : > { %v7363_v47 = vmax.f32 %v26519_v4, 0.0  ;;  %v17208_v4 = vld [vmem:[%s30246_s8 + $0xaa0] sm:$0xf]  ;;  %v17533_v34 = vor.u32 %v19636_v12, %v17530_v46  ;;  %v17386_v50 = vld [vmem:[%s30246_s8 + $0xc10] sm:$0xf0]  ;;  %v17193_v38 = vor.u32 %v19554_v21, %v17192_v2 }
 0x4c1   : > { %v7359_v48 = vmax.f32 %v7131_v27, 0.0  ;;  %v7377_v13 = vunpack.c.l.b16 %v7366_v33  ;;  %v7378_v40 = vunpack.c.h.b16 %v7366_v33  ;;  %v17225_v33 = vor.u32 %v19562_v31, %v17224_v63  ;;  %v19632_v18 = vld [vmem:[%s30246_s8 + $0xd04] sm:$0xf]  ;;  %v17514_v22 = vld [vmem:[%s30246_s8 + $0xd10] sm:$0xf0] }
 0x4c2   : > { %11776 = vmatpush.bf16.msra.mxu0 %v16877_v14  ;;  %v7346_v26 = vpop.f32.mrf.mxu3  ;;  %v18010_v16 = vld [vmem:[%s30246_s8 + $0x10f0] sm:$0xf0]  ;;  %v19788_v53 = vld [vmem:[%s30246_s8 + $0x11e4] sm:$0xf]  ;;  %v17320_v11 = vld [vmem:[%s30246_s8 + $0xb80] sm:$0xf] }
 0x4c3   : > { %11790 = vmatpush.bf16.msra.mxu1 %v17005_v58  ;;  %v7347_v51 = vadd.f32 %v7346_v26, %v7329_v19  ;;  %v17336_v26 = vld [vmem:[%s30246_s8 + $0xba0] sm:$0xf]  ;;  %v17405_v19 = vor.u32 %v19604_v17, %v17402_v29  ;;  %v18138_v20 = vld [vmem:[%s30246_s8 + $0x11f0] sm:$0xf0]  ;;  %v19586_v23 = vld [vmem:[%s30246_s8 + $0xb8c] sm:$0xf0] }
 0x4c4   : > { %v17321_v10 = vor.u32 %v19586_v23, %v17320_v11  ;;  %v17176_v63 = vld [vmem:[%s30246_s8 + $0xa60] sm:$0xf]  ;;  %v17978_v12 = vld [vmem:[%s30246_s8 + $0x10b0] sm:$0xf0]  ;;  %v19574_v21 = vld [vmem:[%s30246_s8 + $0xb2c] sm:$0xf0] }
 0x4c5   : > { %11777 = vmatmul.bf16.vlgmr.msra.gmra.mxu0 %v26223_v52  ;;  %v7360_v43 = vmax.f32 %v7347_v51, 0.0  ;;  %v7331_v14 = vpop.f32.mrf.mxu2  ;;  %v17272_v2 = vld [vmem:[%s30246_s8 + $0xb20] sm:$0xf] }
 0x4c6   : > { %11825 = vmatpush.bf16.msrb.mxu0 %v17501_v5  ;;  %11791 = vmatmul.bf16.vlgmr.msra.gmra.mxu1 %v30320_v15  ;;  %v7332_v42 = vadd.f32 %v7331_v14, %v7314_v35 }
 0x4c7   : > { %11839 = vmatpush.bf16.msrb.mxu1 %v17629_v24  ;;  %v7368_v8 = vpack.c.bf16 %v7360_v43, %v7359_v48  ;;  %v17209_v48 = vor.u32 %v19558_v61, %v17208_v4  ;;  %v30322_v4 = vld [vmem:[#allocation20_spill] sm:$0xff] }
 0x4c8   : > { %v30323_v61 = vld [vmem:[#allocation24_spill] sm:$0xff] }
 0x4c9   : > { %v7381_v5 = vunpack.c.l.b16 %v7368_v8  ;;  %v7382_v24 = vunpack.c.h.b16 %v7368_v8 }
 0x4ca   : > { %11826 = vmatpush.bf16.msrb.mxu0 %v17485_v37  ;;  %v7349_v58 = vpop.f32.mrf.mxu3  ;;  %v17352_v37 = vld [vmem:[%s30246_s8 + $0xbc0] sm:$0xf] }
 0x4cb   : > { %11840 = vmatpush.bf16.msrb.mxu1 %v17613_v30  ;;  %v27113_v54 = vpack.c.b16 %v7381_v5, %v7377_v13  ;;  %v27115_v55 = vpack.c.b16 %v7382_v24, %v7378_v40  ;;  %v7350_v1 = vadd.f32 %v7349_v58, %v7332_v42  ;;  %v19594_v30 = vld [vmem:[%s30246_s8 + $0xbcc] sm:$0xf0]  ;;  %v17517_v58 = vor.u32 %v19632_v18, %v17514_v22  ;;  %v19784_v5 = vld [vmem:[%s30246_s8 + $0x11c4] sm:$0xf]  ;;  %v18122_v24 = vld [vmem:[%s30246_s8 + $0x11d0] sm:$0xf0] }
 0x4cc   : > { %v17353_v60 = vor.u32 %v19594_v30, %v17352_v37  ;;  %v18141_v40 = vor.u32 %v19788_v53, %v18138_v20  ;;  %v18125_v37 = vor.u32 %v19784_v5, %v18122_v24  ;;  %v17304_v30 = vld [vmem:[%s30246_s8 + $0xb60] sm:$0xf]  ;;  %v19542_v20 = vld [vmem:[%s30246_s8 + $0xa2c] sm:$0xf0] }
 0x4cd   : > { %v7364_v44 = vmax.f32 %v7350_v1, 0.0  ;;  %11413 = vmatmul.bf16.vlgmr.msrb.gmra.mxu2 %v27113_v54  ;;  %11427 = vmatmul.bf16.vlgmr.msrb.gmra.mxu3 %v27115_v55  ;;  %v7333_v36 = vpop.f32.mrf.mxu2  ;;  %v7428_v6 = vshll.u32 %v27113_v54, 16  ;;  %v7440_v13 = vshll.u32 %v27115_v55, 16  ;;  %v19550_v1 = vld [vmem:[%s30246_s8 + $0xa6c] sm:$0xf0]  ;;  %v7426_v17 = vshrl.u32 %v27113_v54, 16 }
 0x4ce   : > { %11827 = vmatpush.bf16.msrb.mxu0 %v17469_v59  ;;  %11517 = vmatpush.bf16.msrb.mxu2 %v17241_v25  ;;  %v19590_v59 = vld [vmem:[%s30246_s8 + $0xbac] sm:$0xf0]  ;;  %v17177_v46 = vor.u32 %v19550_v1, %v17176_v63  ;;  %v17128_v5 = vld [vmem:[%s30246_s8 + $0xa00] sm:$0xf] }
 0x4cf   : > { %11841 = vmatpush.bf16.msrb.mxu1 %v17597_v62  ;;  %11531 = vmatpush.bf16.msrb.mxu3 %v17369_v32  ;;  %v7370_v3 = vpack.c.bf16 %v7364_v44, %v7363_v47  ;;  %v19600_v62 = vld [vmem:[%s30246_s8 + $0xc04] sm:$0xf]  ;;  %v17337_v43 = vor.u32 %v19590_v59, %v17336_v26  ;;  %v7430_v25 = vrot.slane %v7428_v6, 1  ;;  %v7442_v32 = vrot.slane %v7440_v13, 1  ;;  %v19538_v24 = vld [vmem:[%s30246_s8 + $0xa0c] sm:$0xf0] }
 0x4d0   : > { %v17389_v14 = vor.u32 %v19600_v62, %v17386_v50  ;;  %v7438_v47 = vshrl.u32 %v27115_v55, 16  ;;  %v17160_v62 = vld [vmem:[%s30246_s8 + $0xa40] sm:$0xf] }
 0x4d1   : > { %v7395_v51 = vunpack.c.l.b16 %v7370_v3 }
 0x4d2   : > { %11828 = vmatpush.bf16.msrb.mxu0 %v17453_v56  ;;  %v7351_v27 = vpop.f32.mrf.mxu3  ;;  %v7396_v56 = vunpack.c.h.b16 %v7370_v3  ;;  %11518 = vmatpush.bf16.msrb.mxu2 %v17225_v33  ;;  %v19780_v33 = vld [vmem:[%s30246_s8 + $0x11a4] sm:$0xf]  ;;  %v7431_v3 = vor.u32 %v7430_v25, %v7426_v17  ;;  %v7443_v26 = vor.u32 %v7442_v32, %v7438_v47  ;;  %v17752_v25 = vld [vmem:[%s30246_s8 + $0xee0] sm:$0xf]  ;;  %v19694_v32 = vld [vmem:[%s30246_s8 + $0xeec] sm:$0xf0] }
 0x4d3   : > { %11842 = vmatpush.bf16.msrb.mxu1 %v17581_v39  ;;  %v19756_v39 = vld [vmem:[%s30246_s8 + $0x10e4] sm:$0xf]  ;;  %11532 = vmatpush.bf16.msrb.mxu3 %v17353_v60  ;;  %v27183_v8 = vpack.c.b16 %v7395_v51, %v7395_v51  ;;  %v18106_v60 = vld [vmem:[%s30246_s8 + $0x11b0] sm:$0xf0]  ;;  %v19546_v27 = vld [vmem:[%s30246_s8 + $0xa4c] sm:$0xf0] }
 0x4d4   : > { %v27185_v35 = vpack.c.b16 %v7396_v56, %v7396_v56  ;;  %v18013_v9 = vor.u32 %v19756_v39, %v18010_v16  ;;  %v18109_v22 = vor.u32 %v19780_v33, %v18106_v60  ;;  %v19744_v51 = vld [vmem:[%s30246_s8 + $0x1084] sm:$0xf]  ;;  %v17962_v56 = vld [vmem:[%s30246_s8 + $0x1090] sm:$0xf0]  ;;  %v17161_v53 = vor.u32 %v19546_v27, %v17160_v62 }
 0x4d5   : > { %v7433_v42 = vshll.u32 %v27183_v8, 16  ;;  %v19776_v39 = vld [vmem:[%s30246_s8 + $0x1184] sm:$0xf]  ;;  %v18090_v16 = vld [vmem:[%s30246_s8 + $0x1190] sm:$0xf0]  ;;  %v17965_v11 = vor.u32 %v19744_v51, %v17962_v56  ;;  %v17753_v33 = vor.u32 %v19694_v32, %v17752_v25  ;;  %v7460_v27 = vrot.slane %v27183_v8, 1 }
 0x4d6   : > { %11829 = vmatpush.bf16.msrb.mxu0 %v17437_v0  ;;  %v19752_v0 = vld [vmem:[%s30246_s8 + $0x10c4] sm:$0xf]  ;;  %v7445_v41 = vshll.u32 %v27185_v35, 16  ;;  %11519 = vmatpush.bf16.msrb.mxu2 %v17209_v48  ;;  %v18093_v23 = vor.u32 %v19776_v39, %v18090_v16  ;;  %v18042_v56 = vld [vmem:[%s30246_s8 + $0x1130] sm:$0xf0]  ;;  %v7459_v39 = vrot.slane %v27113_v54, 1 }
 0x4d7   : > { %11843 = vmatpush.bf16.msrb.mxu1 %v17565_v28  ;;  %v17994_v28 = vld [vmem:[%s30246_s8 + $0x10d0] sm:$0xf0]  ;;  %11533 = vmatpush.bf16.msrb.mxu3 %v17337_v43  ;;  %v7435_v29 = vrot.slane %v7433_v42, 1  ;;  %v17144_v43 = vld [vmem:[%s30246_s8 + $0xa20] sm:$0xf]  ;;  %v7462_v16 = vrot.slane %v27115_v55, 1 }
 0x4d8   : > { %v17997_v31 = vor.u32 %v19752_v0, %v17994_v28  ;;  %v7447_v44 = vrot.slane %v7445_v41, 1  ;;  %v19772_v0 = vld [vmem:[%s30246_s8 + $0x1164] sm:$0xf]  ;;  %v18074_v28 = vld [vmem:[%s30246_s8 + $0x1170] sm:$0xf0] }
 0x4d9   : > { %v27262_v50 = vsel %vm767_vm0, %v7431_v3, %v7435_v29  ;;  %v18077_v1 = vor.u32 %v19772_v0, %v18074_v28  ;;  %v18058_v29 = vld [vmem:[%s30246_s8 + $0x1150] sm:$0xf0]  ;;  %v19690_v3 = vld [vmem:[%s30246_s8 + $0xecc] sm:$0xf0]  ;;  %v19764_v51 = vld [vmem:[%s30246_s8 + $0x1124] sm:$0xf] }
 0x4da   : > { %11830 = vmatpush.bf16.msrb.mxu0 %v17421_v57  ;;  %v19582_v57 = vld [vmem:[%s30246_s8 + $0xb6c] sm:$0xf0]  ;;  %11520 = vmatpush.bf16.msrb.mxu2 %v17193_v38  ;;  %v27265_v18 = vsel %vm767_vm0, %v7443_v26, %v7447_v44  ;;  %v17256_v38 = vld [vmem:[%s30246_s8 + $0xb00] sm:$0xf]  ;;  %v17129_v44 = vor.u32 %v19538_v24, %v17128_v5  ;;  %v19728_v0 = vld [vmem:[%s30246_s8 + $0x1004] sm:$0xf] }
 0x4db   : > { %11844 = vmatpush.bf16.msrb.mxu1 %v17549_v49  ;;  %v19748_v49 = vld [vmem:[%s30246_s8 + $0x10a4] sm:$0xf]  ;;  %11534 = vmatpush.bf16.msrb.mxu3 %v17321_v10  ;;  %v17305_v59 = vor.u32 %v19582_v57, %v17304_v30  ;;  %v19570_v10 = vld [vmem:[%s30246_s8 + $0xb0c] sm:$0xf0]  ;;  %v17930_v57 = vld [vmem:[%s30246_s8 + $0x1050] sm:$0xf0] }
 0x4dc   : > { %v17981_v36 = vor.u32 %v19748_v49, %v17978_v12  ;;  %v19736_v30 = vld [vmem:[%s30246_s8 + $0x1044] sm:$0xf]  ;;  %v17257_v12 = vor.u32 %v19570_v10, %v17256_v38  ;;  %v17864_v26 = vld [vmem:[%s30246_s8 + $0xfc0] sm:$0xf]  ;;  %v17898_v28 = vld [vmem:[%s30246_s8 + $0x1010] sm:$0xf0] }
 0x4dd   : > { %11469 = vmatmul.bf16.vlgmr.msra.gmra.mxu2 %v27262_v50  ;;  %11483 = vmatmul.bf16.vlgmr.msra.gmra.mxu3 %v27265_v18  ;;  %v19768_v49 = vld [vmem:[%s30246_s8 + $0x1144] sm:$0xf]  ;;  %v17933_v62 = vor.u32 %v19736_v30, %v17930_v57  ;;  %v15968_v5 = vld [vmem:[%s30246_s8 + $0xe8] sm:$0xf]  ;;  %v19247_v24 = vld [vmem:[%s30246_s8 + $0xf4] sm:$0xf0] }
 0x4de   : > { %11831 = vmatpush.bf16.msrb.mxu0 %v17405_v19  ;;  %v17288_v19 = vld [vmem:[%s30246_s8 + $0xb40] sm:$0xf]  ;;  %11521 = vmatpush.bf16.msrb.mxu2 %v17177_v46  ;;  %v16096_v38 = vld [vmem:[%s30246_s8 + $0x1e8] sm:$0xf]  ;;  %v19279_v10 = vld [vmem:[%s30246_s8 + $0x1f4] sm:$0xf0] }
 0x4df   : > { %11845 = vmatpush.bf16.msrb.mxu1 %v17533_v34  ;;  %v19578_v34 = vld [vmem:[%s30246_s8 + $0xb4c] sm:$0xf0]  ;;  %11535 = vmatpush.bf16.msrb.mxu3 %v17305_v59  ;;  %v17736_v46 = vld [vmem:[%s30246_s8 + $0xec0] sm:$0xf] }
 0x4e0   : > { %v17289_v48 = vor.u32 %v19578_v34, %v17288_v19  ;;  %v19722_v59 = vld [vmem:[%s30246_s8 + $0xfcc] sm:$0xf0]  ;;  %v7463_v19 = vrot.slane %v27185_v35, 1  ;;  %v19732_v34 = vld [vmem:[%s30246_s8 + $0x1024] sm:$0xf] }
 0x4e1   : > { %v17832_v30 = vld [vmem:[%s30246_s8 + $0xf80] sm:$0xf]  ;;  %v19714_v57 = vld [vmem:[%s30246_s8 + $0xf8c] sm:$0xf0] }
 0x4e2   : > { %11832 = vmatpush.bf16.msrb.mxu0 %v17389_v14  ;;  %v19740_v14 = vld [vmem:[%s30246_s8 + $0x1064] sm:$0xf]  ;;  %11522 = vmatpush.bf16.msrb.mxu2 %v17161_v53  ;;  %v17737_v53 = vor.u32 %v19690_v3, %v17736_v46  ;;  %v16080_v46 = vld [vmem:[%s30246_s8 + $0x1c8] sm:$0xf]  ;;  %v17833_v3 = vor.u32 %v19714_v57, %v17832_v30 }
 0x4e3   : > { %11846 = vmatpush.bf16.msrb.mxu1 %v17517_v58  ;;  %v17946_v58 = vld [vmem:[%s30246_s8 + $0x1070] sm:$0xf0]  ;;  %11536 = vmatpush.bf16.msrb.mxu3 %v17289_v48  ;;  %v17865_v48 = vor.u32 %v19722_v59, %v17864_v26  ;;  %v17688_v26 = vld [vmem:[%s30246_s8 + $0xe60] sm:$0xf]  ;;  %v19678_v59 = vld [vmem:[%s30246_s8 + $0xe6c] sm:$0xf0] }
 0x4e4   : > { %v17949_v63 = vor.u32 %v19740_v14, %v17946_v58  ;;  %v18045_v14 = vor.u32 %v19764_v51, %v18042_v56  ;;  %v19718_v58 = vld [vmem:[%s30246_s8 + $0xfac] sm:$0xf0]  ;;  %v16064_v51 = vld [vmem:[%s30246_s8 + $0x1a8] sm:$0xf]  ;;  %v19271_v56 = vld [vmem:[%s30246_s8 + $0x1b4] sm:$0xf0] }
 0x4e5   : > { %11833 = vmatmul.bf16.vlgmr.msrb.gmra.mxu0 %v30322_v4 }
 0x4e6   : > { %11881 = vmatpush.bf16.msra.mxu0 %v18013_v9  ;;  %11847 = vmatmul.bf16.vlgmr.msrb.gmra.mxu1 %v30323_v61  ;;  %v17145_v9 = vor.u32 %v19542_v20, %v17144_v43  ;;  %v17720_v20 = vld [vmem:[%s30246_s8 + $0xea0] sm:$0xf] }
 0x4e7   : > { %11895 = vmatpush.bf16.msra.mxu1 %v18141_v40  ;;  %v17273_v40 = vor.u32 %v19574_v21, %v17272_v2  ;;  %v19686_v2 = vld [vmem:[%s30246_s8 + $0xeac] sm:$0xf0]  ;;  %v17848_v21 = vld [vmem:[%s30246_s8 + $0xfa0] sm:$0xf] }
 0x4e8   : > { %11523 = vmatpush.bf16.msrb.mxu2 %v17145_v9  ;;  %v19760_v9 = vld [vmem:[%s30246_s8 + $0x1104] sm:$0xf]  ;;  %v17721_v25 = vor.u32 %v19686_v2, %v17720_v20  ;;  %v17849_v32 = vor.u32 %v19718_v58, %v17848_v21  ;;  %v30324_v20 = vld [vmem:[#allocation15_spill] sm:$0xff] }
 0x4e9   : > { %11537 = vmatpush.bf16.msrb.mxu3 %v17273_v40  ;;  %v18026_v40 = vld [vmem:[%s30246_s8 + $0x1110] sm:$0xf0]  ;;  %v30325_v2 = vld [vmem:[#allocation25_spill] sm:$0xff]  ;;  %v19674_v21 = vld [vmem:[%s30246_s8 + $0xe4c] sm:$0xf0] }
 0x4ea   : > { %11882 = vmatpush.bf16.msra.mxu0 %v17997_v31  ;;  %v17880_v31 = vld [vmem:[%s30246_s8 + $0xfe0] sm:$0xf]  ;;  %v19706_v58 = vld [vmem:[%s30246_s8 + $0xf4c] sm:$0xf0] }
 0x4eb   : > { %11896 = vmatpush.bf16.msra.mxu1 %v18125_v37  ;;  %v19726_v37 = vld [vmem:[%s30246_s8 + $0xfec] sm:$0xf0] }
 0x4ec   : > { %v17881_v60 = vor.u32 %v19726_v37, %v17880_v31  ;;  %11524 = vmatpush.bf16.msrb.mxu2 %v17129_v44  ;;  %v18029_v31 = vor.u32 %v19760_v9, %v18026_v40  ;;  %v19682_v37 = vld [vmem:[%s30246_s8 + $0xe8c] sm:$0xf0]  ;;  %v15952_v44 = vld [vmem:[%s30246_s8 + $0xc8] sm:$0xf]  ;;  %v27485_v9 = vrot.slane %v7428_v6, 2  ;;  %v7500_v40 = vshrl.u32 %v27185_v35, 16 }
 0x4ed   : > { %11538 = vmatpush.bf16.msrb.mxu3 %v17257_v12  ;;  %v19243_v12 = vld [vmem:[%s30246_s8 + $0xd4] sm:$0xf0]  ;;  %v17656_v6 = vld [vmem:[%s30246_s8 + $0xe20] sm:$0xf] }
 0x4ee   : > { %11883 = vmatpush.bf16.msra.mxu0 %v17981_v36  ;;  %v18061_v36 = vor.u32 %v19768_v49, %v18058_v29  ;;  %v15969_v49 = vor.u32 %v19247_v24, %v15968_v5  ;;  %v16097_v29 = vor.u32 %v19279_v10, %v16096_v38  ;;  %v19235_v5 = vld [vmem:[%s30246_s8 + $0x94] sm:$0xf0]  ;;  %v16048_v24 = vld [vmem:[%s30246_s8 + $0x188] sm:$0xf] }
 0x4ef   : > { %11897 = vmatpush.bf16.msra.mxu1 %v18109_v22  ;;  %v17914_v22 = vld [vmem:[%s30246_s8 + $0x1030] sm:$0xf0]  ;;  %v19267_v38 = vld [vmem:[%s30246_s8 + $0x194] sm:$0xf0] }
 0x4f0   : > { %11573 = vmatpush.bf16.msra.mxu2 %v17753_v33  ;;  %v17917_v43 = vor.u32 %v19732_v34, %v17914_v22  ;;  %v19275_v33 = vld [vmem:[%s30246_s8 + $0x1d4] sm:$0xf0]  ;;  %v15936_v34 = vld [vmem:[%s30246_s8 + $0xa8] sm:$0xf]  ;;  %v16049_v57 = vor.u32 %v19267_v38, %v16048_v24  ;;  %v19850_v38 = vld [vmem:[%s30246_s8 + $0x13cc] sm:$0xf0] }
 0x4f1   : > { %11587 = vmatpush.bf16.msra.mxu3 %v17881_v60  ;;  %v19239_v22 = vld [vmem:[%s30246_s8 + $0xb4] sm:$0xf0] }
 0x4f2   : > { %11884 = vmatpush.bf16.msra.mxu0 %v17965_v11  ;;  %v27379_v11 = vsel %vm836_vm1, %v7459_v39, %v7460_v27  ;;  %v15953_v27 = vor.u32 %v19243_v12, %v15952_v44  ;;  %v17689_v39 = vor.u32 %v19678_v59, %v17688_v26  ;;  %v19231_v44 = vld [vmem:[%s30246_s8 + $0x74] sm:$0xf0]  ;;  %v16032_v12 = vld [vmem:[%s30246_s8 + $0x168] sm:$0xf]  ;;  %v17768_v26 = vld [vmem:[%s30246_s8 + $0xf00] sm:$0xf] }
 0x4f3   : > { %11898 = vmatpush.bf16.msra.mxu1 %v18093_v23  ;;  %v27382_v23 = vsel %vm836_vm1, %v7462_v16, %v7463_v19  ;;  %11525 = vmatmul.bf16.vlgmr.msrb.gmra.mxu2 %v27379_v11  ;;  %v16081_v19 = vor.u32 %v19275_v33, %v16080_v46  ;;  %v19263_v46 = vld [vmem:[%s30246_s8 + $0x174] sm:$0xf0]  ;;  %v19698_v59 = vld [vmem:[%s30246_s8 + $0xf0c] sm:$0xf0] }
 0x4f4   : > { %11539 = vmatmul.bf16.vlgmr.msrb.gmra.mxu3 %v27382_v23  ;;  %11574 = vmatpush.bf16.msra.mxu2 %v17737_v53  ;;  %v17672_v53 = vld [vmem:[%s30246_s8 + $0xe40] sm:$0xf] }
 0x4f5   : > { %11588 = vmatpush.bf16.msra.mxu3 %v17865_v48  ;;  %v27466_v48 = vrot.slane %v7426_v17, 1  ;;  %v15937_v17 = vor.u32 %v19239_v22, %v15936_v34  ;;  %v17673_v10 = vor.u32 %v19674_v21, %v17672_v53  ;;  %v18392_v34 = vld [vmem:[%s30246_s8 + $0x13e0] sm:$0xf]  ;;  %v19854_v22 = vld [vmem:[%s30246_s8 + $0x13ec] sm:$0xf0]  ;;  %v7497_v21 = vrot.slane %v7438_v47, 1 }
 0x4f6   : > { %11885 = vmatpush.bf16.msra.mxu0 %v17949_v63  ;;  %v17704_v63 = vld [vmem:[%s30246_s8 + $0xe80] sm:$0xf] }
 0x4f7   : > { %11899 = vmatpush.bf16.msra.mxu1 %v18077_v1  ;;  %v17901_v1 = vor.u32 %v19728_v0, %v17898_v28  ;;  %v17705_v60 = vor.u32 %v19682_v37, %v17704_v63  ;;  %v16065_v0 = vor.u32 %v19271_v56, %v16064_v51  ;;  %v15920_v28 = vld [vmem:[%s30246_s8 + $0x88] sm:$0xf]  ;;  %v27504_v63 = vrot.slane %v7433_v42, 2  ;;  %v19702_v37 = vld [vmem:[%s30246_s8 + $0xf2c] sm:$0xf0] }
 0x4f8   : > { %11575 = vmatpush.bf16.msra.mxu2 %v17721_v25  ;;  %v15921_v30 = vor.u32 %v19235_v5, %v15920_v28  ;;  %v15904_v42 = vld [vmem:[%s30246_s8 + $0x68] sm:$0xf]  ;;  %v19227_v56 = vld [vmem:[%s30246_s8 + $0x54] sm:$0xf0]  ;;  %v18248_v28 = vld [vmem:[%s30246_s8 + $0x12c0] sm:$0xf] }
 0x4f9   : > { %11589 = vmatpush.bf16.msra.mxu3 %v17849_v32  ;;  %v15888_v51 = vld [vmem:[%s30246_s8 + $0x48] sm:$0xf] }
 0x4fa   : > { %11886 = vmatpush.bf16.msra.mxu0 %v17933_v62  ;;  %v17816_v62 = vld [vmem:[%s30246_s8 + $0xf60] sm:$0xf]  ;;  %v15889_v47 = vor.u32 %v19227_v56, %v15888_v51  ;;  %v19842_v56 = vld [vmem:[%s30246_s8 + $0x138c] sm:$0xf0] }
 0x4fb   : > { %11900 = vmatpush.bf16.msra.mxu1 %v18061_v36  ;;  %v19710_v36 = vld [vmem:[%s30246_s8 + $0xf6c] sm:$0xf0]  ;;  %v18344_v51 = vld [vmem:[%s30246_s8 + $0x1380] sm:$0xf] }
 0x4fc   : > { %11576 = vmatpush.bf16.msra.mxu2 %v17705_v60  ;;  %v17817_v16 = vor.u32 %v19710_v36, %v17816_v62  ;;  %v18264_v62 = vld [vmem:[%s30246_s8 + $0x12e0] sm:$0xf]  ;;  %v19822_v36 = vld [vmem:[%s30246_s8 + $0x12ec] sm:$0xf0] }
 0x4fd   : > { %11590 = vmatpush.bf16.msra.mxu3 %v17833_v3  ;;  %v19666_v3 = vld [vmem:[%s30246_s8 + $0xe0c] sm:$0xf0] }
 0x4fe   : > { %11887 = vmatpush.bf16.msra.mxu0 %v17917_v43  ;;  %v7491_v43 = vshrl.u32 %v27183_v8, 16 }
 0x4ff   : > { %11901 = vmatpush.bf16.msra.mxu1 %v18045_v14  ;;  %v17800_v14 = vld [vmem:[%s30246_s8 + $0xf40] sm:$0xf] }
 0x500   : > { %11577 = vmatpush.bf16.msra.mxu2 %v17689_v39  ;;  %v17801_v25 = vor.u32 %v19706_v58, %v17800_v14  ;;  %v27500_v32 = vrot.slane %v7491_v43, 1  ;;  %v16016_v39 = vld [vmem:[%s30246_s8 + $0x148] sm:$0xf]  ;;  %v17769_v43 = vor.u32 %v19698_v59, %v17768_v26  ;;  %v7498_v14 = vrot.slane %v7440_v13, 2  ;;  %v18376_v13 = vld [vmem:[%s30246_s8 + $0x13c0] sm:$0xf] }
 0x501   : > { %11591 = vmatpush.bf16.msra.mxu3 %v17817_v16  ;;  %v19259_v16 = vld [vmem:[%s30246_s8 + $0x154] sm:$0xf0]  ;;  %v18265_v58 = vor.u32 %v19822_v36, %v18264_v62  ;;  %v16608_v26 = vld [vmem:[%s30246_s8 + $0x5e8] sm:$0xf] }
 0x502   : > { %11888 = vmatpush.bf16.msra.mxu0 %v17901_v1  ;;  %v19670_v1 = vld [vmem:[%s30246_s8 + $0xe2c] sm:$0xf0]  ;;  %v16017_v24 = vor.u32 %v19259_v16, %v16016_v39  ;;  %v19407_v59 = vld [vmem:[%s30246_s8 + $0x5f4] sm:$0xf0] }
 0x503   : > { %11902 = vmatpush.bf16.msra.mxu1 %v18029_v31  ;;  %v17784_v31 = vld [vmem:[%s30246_s8 + $0xf20] sm:$0xf]  ;;  %v17657_v33 = vor.u32 %v19670_v1, %v17656_v6  ;;  %v19223_v6 = vld [vmem:[%s30246_s8 + $0x34] sm:$0xf0]  ;;  %v7499_v1 = vor.u32 %v7498_v14, %v7497_v21  ;;  %v16609_v16 = vor.u32 %v19407_v59, %v16608_v26  ;;  %v16592_v21 = vld [vmem:[%s30246_s8 + $0x5c8] sm:$0xf] }
 0x504   : > { %11578 = vmatpush.bf16.msra.mxu2 %v17673_v10  ;;  %v17785_v60 = vor.u32 %v19702_v37, %v17784_v31  ;;  %v15872_v10 = vld [vmem:[%s30246_s8 + $0x28] sm:$0xf]  ;;  %v18232_v37 = vld [vmem:[%s30246_s8 + $0x12a0] sm:$0xf]  ;;  %v19403_v14 = vld [vmem:[%s30246_s8 + $0x5d4] sm:$0xf0] }
 0x505   : > { %11889 = vmatmul.bf16.vlgmr.msra.gmra.mxu0 %v30324_v20  ;;  %11592 = vmatpush.bf16.msra.mxu3 %v17801_v25  ;;  %v7490_v25 = vor.u32 %v27485_v9, %v27466_v48  ;;  %v18377_v9 = vor.u32 %v19850_v38, %v18376_v13  ;;  %v16448_v13 = vld [vmem:[%s30246_s8 + $0x4a8] sm:$0xf]  ;;  %v19367_v38 = vld [vmem:[%s30246_s8 + $0x4b4] sm:$0xf0]  ;;  %v18296_v26 = vld [vmem:[%s30246_s8 + $0x1320] sm:$0xf] }
 0x506   : > { %11937 = vmatpush.bf16.msrb.mxu0 %v15969_v49  ;;  %11903 = vmatmul.bf16.vlgmr.msra.gmra.mxu1 %v30325_v2  ;;  %v7502_v49 = vrot.slane %v7500_v40, 1  ;;  %v19818_v40 = vld [vmem:[%s30246_s8 + $0x12cc] sm:$0xf0] }
 0x507   : > { %11951 = vmatpush.bf16.msrb.mxu1 %v16097_v29  ;;  %v7503_v29 = vrot.slane %v7445_v41, 2  ;;  %v17640_v41 = vld [vmem:[%s30246_s8 + $0xe00] sm:$0xf]  ;;  %v18249_v48 = vor.u32 %v19818_v40, %v18248_v28  ;;  %v19806_v28 = vld [vmem:[%s30246_s8 + $0x126c] sm:$0xf0] }
 0x508   : > { %11579 = vmatpush.bf16.msra.mxu2 %v17657_v33  ;;  %v17641_v53 = vor.u32 %v19666_v3, %v17640_v41  ;;  %v15984_v33 = vld [vmem:[%s30246_s8 + $0x108] sm:$0xf]  ;;  %v19375_v3 = vld [vmem:[%s30246_s8 + $0x4f4] sm:$0xf0]  ;;  %v18328_v40 = vld [vmem:[%s30246_s8 + $0x1360] sm:$0xf] }
 0x509   : > { %11593 = vmatpush.bf16.msra.mxu3 %v17785_v60  ;;  %v7504_v5 = vor.u32 %v7503_v29, %v7502_v49  ;;  %v15873_v49 = vor.u32 %v19223_v6, %v15872_v10  ;;  %v19251_v60 = vld [vmem:[%s30246_s8 + $0x114] sm:$0xf0]  ;;  %v16480_v41 = vld [vmem:[%s30246_s8 + $0x4e8] sm:$0xf]  ;;  %v19830_v59 = vld [vmem:[%s30246_s8 + $0x132c] sm:$0xf0] }
 0x50a   : > { %11938 = vmatpush.bf16.msrb.mxu0 %v15953_v27  ;;  %v15905_v27 = vor.u32 %v19231_v44, %v15904_v42  ;;  %v19846_v44 = vld [vmem:[%s30246_s8 + $0x13ac] sm:$0xf0]  ;;  %v16481_v39 = vor.u32 %v19375_v3, %v16480_v41  ;;  %v16576_v10 = vld [vmem:[%s30246_s8 + $0x5a8] sm:$0xf]  ;;  %v18168_v41 = vld [vmem:[%s30246_s8 + $0x1220] sm:$0xf] }
 0x50b   : > { %11952 = vmatpush.bf16.msrb.mxu1 %v16081_v19  ;;  %v16033_v19 = vor.u32 %v19263_v46, %v16032_v12  ;;  %v27610_v42 = vsel %vm7469_vm2, %v7499_v1, %v7504_v5  ;;  %v15856_v12 = vld [vmem:[%s30246_s8 + $0x8] sm:$0xf]  ;;  %v19219_v46 = vld [vmem:[%s30246_s8 + $0x14] sm:$0xf0]  ;;  %v19838_v5 = vld [vmem:[%s30246_s8 + $0x136c] sm:$0xf0] }
 0x50c   : > { %11580 = vmatpush.bf16.msra.mxu2 %v17641_v53  ;;  %v16464_v53 = vld [vmem:[%s30246_s8 + $0x4c8] sm:$0xf]  ;;  %v30326_v1 = vld [vmem:[#allocation16_spill] sm:$0xff]  ;;  %v19798_v3 = vld [vmem:[%s30246_s8 + $0x122c] sm:$0xf0] }
 0x50d   : > { %11594 = vmatpush.bf16.msra.mxu3 %v17769_v43  ;;  %v19371_v43 = vld [vmem:[%s30246_s8 + $0x4d4] sm:$0xf0] }
 0x50e   : > { %11939 = vmatpush.bf16.msrb.mxu0 %v15937_v17  ;;  %v18393_v17 = vor.u32 %v19854_v22, %v18392_v34  ;;  %v15985_v34 = vor.u32 %v19251_v60, %v15984_v33  ;;  %v19810_v22 = vld [vmem:[%s30246_s8 + $0x128c] sm:$0xf0] }
 0x50f   : > { %11953 = vmatpush.bf16.msrb.mxu1 %v16065_v0  ;;  %v7495_v0 = vor.u32 %v27504_v63, %v27500_v32  ;;  %v16000_v32 = vld [vmem:[%s30246_s8 + $0x128] sm:$0xf]  ;;  %v19255_v63 = vld [vmem:[%s30246_s8 + $0x134] sm:$0xf0] }
 0x510   : > { %11629 = vmatpush.bf16.msrb.mxu2 %v18265_v58  ;;  %v16001_v29 = vor.u32 %v19255_v63, %v16000_v32  ;;  %11595 = vmatmul.bf16.vlgmr.msra.gmra.mxu3 %v27610_v42  ;;  %v18329_v32 = vor.u32 %v19838_v5, %v18328_v40  ;;  %v18184_v63 = vld [vmem:[%s30246_s8 + $0x1240] sm:$0xf]  ;;  %v16400_v40 = vld [vmem:[%s30246_s8 + $0x448] sm:$0xf]  ;;  %v19355_v5 = vld [vmem:[%s30246_s8 + $0x454] sm:$0xf0] }
 0x511   : > { %11643 = vmatpush.bf16.msrb.mxu3 %v18393_v17  ;;  %v27598_v31 = vsel %vm7469_vm2, %v7490_v25, %v7495_v0  ;;  %v18345_v17 = vor.u32 %v19842_v56, %v18344_v51  ;;  %v18200_v0 = vld [vmem:[%s30246_s8 + $0x1260] sm:$0xf]  ;;  %v19399_v25 = vld [vmem:[%s30246_s8 + $0x5b4] sm:$0xf0]  ;;  %v18169_v51 = vor.u32 %v19798_v3, %v18168_v41  ;;  %v18297_v56 = vor.u32 %v19830_v59, %v18296_v26  ;;  %v19300_v3 = vld [vmem:[%s30246_s8 + $0x2a4] sm:$0xf] }
 0x512   : > { %11940 = vmatpush.bf16.msrb.mxu0 %v15921_v30  ;;  %v19814_v30 = vld [vmem:[%s30246_s8 + $0x12ac] sm:$0xf0]  ;;  %11581 = vmatmul.bf16.vlgmr.msra.gmra.mxu2 %v27598_v31  ;;  %v18201_v6 = vor.u32 %v19806_v28, %v18200_v0  ;;  %v19340_v0 = vld [vmem:[%s30246_s8 + $0x3e4] sm:$0xf]  ;;  %v16346_v28 = vld [vmem:[%s30246_s8 + $0x3f0] sm:$0xf0] }
 0x513   : > { %11954 = vmatpush.bf16.msrb.mxu1 %v16049_v57  ;;  %v18360_v57 = vld [vmem:[%s30246_s8 + $0x13a0] sm:$0xf]  ;;  %v18233_v62 = vor.u32 %v19814_v30, %v18232_v37  ;;  %v19834_v30 = vld [vmem:[%s30246_s8 + $0x134c] sm:$0xf0]  ;;  %v16186_v26 = vld [vmem:[%s30246_s8 + $0x2b0] sm:$0xf0] }
 0x514   : > { %11630 = vmatpush.bf16.msrb.mxu2 %v18249_v48  ;;  %v18361_v36 = vor.u32 %v19846_v44, %v18360_v57  ;;  %v30327_v48 = vld [vmem:[#allocation17_spill] sm:$0xff]  ;;  %v16449_v57 = vor.u32 %v19367_v38, %v16448_v13  ;;  %v19363_v44 = vld [vmem:[%s30246_s8 + $0x494] sm:$0xf0] }
 0x515   : > { %11644 = vmatpush.bf16.msrb.mxu3 %v18377_v9  ;;  %v19802_v9 = vld [vmem:[%s30246_s8 + $0x124c] sm:$0xf0]  ;;  %v18312_v37 = vld [vmem:[%s30246_s8 + $0x1340] sm:$0xf]  ;;  %v19332_v59 = vld [vmem:[%s30246_s8 + $0x3a4] sm:$0xf] }
 0x516   : > { %11941 = vmatpush.bf16.msrb.mxu0 %v15905_v27  ;;  %v18216_v27 = vld [vmem:[%s30246_s8 + $0x1280] sm:$0xf]  ;;  %v18185_v33 = vor.u32 %v19802_v9, %v18184_v63  ;;  %v18313_v60 = vor.u32 %v19834_v30, %v18312_v37  ;;  %v7521_v63 = vrot.slane %v27185_v35, 2  ;;  %v19304_v9 = vld [vmem:[%s30246_s8 + $0x2c4] sm:$0xf]  ;;  %v16401_v30 = vor.u32 %v19355_v5, %v16400_v40 }
 0x517   : > { %11955 = vmatpush.bf16.msrb.mxu1 %v16033_v19  ;;  %v15857_v19 = vor.u32 %v19219_v46, %v15856_v12  ;;  %v18217_v58 = vor.u32 %v19810_v22, %v18216_v27  ;;  %v16560_v12 = vld [vmem:[%s30246_s8 + $0x588] sm:$0xf]  ;;  %v19395_v46 = vld [vmem:[%s30246_s8 + $0x594] sm:$0xf0]  ;;  %v16202_v37 = vld [vmem:[%s30246_s8 + $0x2d0] sm:$0xf0] }
 0x518   : > { %11631 = vmatpush.bf16.msrb.mxu2 %v18233_v62  ;;  %v16416_v27 = vld [vmem:[%s30246_s8 + $0x468] sm:$0xf]  ;;  %v19391_v22 = vld [vmem:[%s30246_s8 + $0x574] sm:$0xf0]  ;;  %v19328_v40 = vld [vmem:[%s30246_s8 + $0x384] sm:$0xf] }
 0x519   : > { %11645 = vmatpush.bf16.msrb.mxu3 %v18361_v36  ;;  %v16561_v36 = vor.u32 %v19395_v46, %v16560_v12  ;;  %v16384_v35 = vld [vmem:[%s30246_s8 + $0x428] sm:$0xf]  ;;  %v19383_v12 = vld [vmem:[%s30246_s8 + $0x534] sm:$0xf0]  ;;  %v7520_v46 = vrot.slane %v27115_v55, 2 }
 0x51a   : > { %11942 = vmatpush.bf16.msrb.mxu0 %v15889_v47  ;;  %v16465_v47 = vor.u32 %v19371_v43, %v16464_v53  ;;  %v18280_v53 = vld [vmem:[%s30246_s8 + $0x1300] sm:$0xf]  ;;  %v19826_v43 = vld [vmem:[%s30246_s8 + $0x130c] sm:$0xf0]  ;;  %v16298_v5 = vld [vmem:[%s30246_s8 + $0x390] sm:$0xf0] }
 0x51b   : > { %11956 = vmatpush.bf16.msrb.mxu1 %v16017_v24  ;;  %v16593_v24 = vor.u32 %v19403_v14, %v16592_v21  ;;  %v19308_v21 = vld [vmem:[%s30246_s8 + $0x2e4] sm:$0xf]  ;;  %v16218_v14 = vld [vmem:[%s30246_s8 + $0x2f0] sm:$0xf0]  ;;  %v18281_v38 = vor.u32 %v19826_v43, %v18280_v53  ;;  %v17120_v53 = vld [vmem:[%s30246_s8 + $0x9e8] sm:$0xf] }
 0x51c   : > { %11632 = vmatpush.bf16.msrb.mxu2 %v18217_v58  ;;  %v19535_v43 = vld [vmem:[%s30246_s8 + $0x9f4] sm:$0xf0] }
 0x51d   : > { %11646 = vmatpush.bf16.msrb.mxu3 %v18345_v17 }
 0x51e   : > { %11943 = vmatpush.bf16.msrb.mxu0 %v15873_v49  ;;  %v16577_v49 = vor.u32 %v19399_v25, %v16576_v10  ;;  %v7517_v10 = vrot.slane %v27113_v54, 2  ;;  %v16221_v25 = vor.u32 %v19308_v21, %v16218_v14  ;;  %v16189_v21 = vor.u32 %v19300_v3, %v16186_v26  ;;  %v19320_v3 = vld [vmem:[%s30246_s8 + $0x344] sm:$0xf]  ;;  %v16266_v26 = vld [vmem:[%s30246_s8 + $0x350] sm:$0xf0] }
 0x51f   : > { %11957 = vmatpush.bf16.msrb.mxu1 %v16001_v29  ;;  %v16432_v29 = vld [vmem:[%s30246_s8 + $0x488] sm:$0xf] }
 0x520   : > { %11633 = vmatpush.bf16.msrb.mxu2 %v18201_v6  ;;  %v16433_v62 = vor.u32 %v19363_v44, %v16432_v29  ;;  %v16349_v6 = vor.u32 %v19340_v0, %v16346_v28  ;;  %v19351_v29 = vld [vmem:[%s30246_s8 + $0x434] sm:$0xf0]  ;;  %v16512_v44 = vld [vmem:[%s30246_s8 + $0x528] sm:$0xf]  ;;  %v16170_v28 = vld [vmem:[%s30246_s8 + $0x290] sm:$0xf0] }
 0x521   : > { %11647 = vmatpush.bf16.msrb.mxu3 %v18329_v32  ;;  %v7518_v32 = vrot.slane %v27183_v8, 2  ;;  %v16330_v8 = vld [vmem:[%s30246_s8 + $0x3d0] sm:$0xf0] }
 0x522   : > { %11944 = vmatpush.bf16.msrb.mxu0 %v15857_v19  ;;  %v19359_v19 = vld [vmem:[%s30246_s8 + $0x474] sm:$0xf0] }
 0x523   : > { %11958 = vmatpush.bf16.msrb.mxu1 %v15985_v34  ;;  %v16544_v34 = vld [vmem:[%s30246_s8 + $0x568] sm:$0xf]  ;;  %v16417_v58 = vor.u32 %v19359_v19, %v16416_v27  ;;  %v16513_v27 = vor.u32 %v19383_v12, %v16512_v44  ;;  %v16314_v19 = vld [vmem:[%s30246_s8 + $0x3b0] sm:$0xf0]  ;;  %v19527_v44 = vld [vmem:[%s30246_s8 + $0x9b4] sm:$0xf0] }
 0x524   : > { %11634 = vmatpush.bf16.msrb.mxu2 %v18185_v33  ;;  %v16545_v17 = vor.u32 %v19391_v22, %v16544_v34  ;;  %v27804_v33 = vsel %vm7510_vm3, %v7517_v10, %v7518_v32  ;;  %v16368_v34 = vld [vmem:[%s30246_s8 + $0x408] sm:$0xf]  ;;  %v19347_v22 = vld [vmem:[%s30246_s8 + $0x414] sm:$0xf0]  ;;  %v16317_v14 = vor.u32 %v19332_v59, %v16314_v19  ;;  %v16301_v32 = vor.u32 %v19328_v40, %v16298_v5 }
 0x525   : > { %11945 = vmatmul.bf16.vlgmr.msrb.gmra.mxu0 %v30326_v1  ;;  %11648 = vmatpush.bf16.msrb.mxu3 %v18313_v60  ;;  %v16205_v60 = vor.u32 %v19304_v9, %v16202_v37  ;;  %v17104_v10 = vld [vmem:[%s30246_s8 + $0x9c8] sm:$0xf]  ;;  %v16154_v9 = vld [vmem:[%s30246_s8 + $0x270] sm:$0xf0]  ;;  %v19324_v37 = vld [vmem:[%s30246_s8 + $0x364] sm:$0xf] }
 0x526   : > { %11993 = vmatpush.bf16.msra.mxu0 %v16481_v39  ;;  %11959 = vmatmul.bf16.vlgmr.msrb.gmra.mxu1 %v30327_v48  ;;  %v18152_v39 = vld [vmem:[%s30246_s8 + $0x1200] sm:$0xf]  ;;  %v19491_v19 = vld [vmem:[%s30246_s8 + $0x894] sm:$0xf0] }
 0x527   : > { %12007 = vmatpush.bf16.msra.mxu1 %v16609_v16  ;;  %v19794_v16 = vld [vmem:[%s30246_s8 + $0x120c] sm:$0xf0] }
 0x528   : > { %11635 = vmatpush.bf16.msrb.mxu2 %v18169_v51  ;;  %v18153_v13 = vor.u32 %v19794_v16, %v18152_v39  ;;  %v16496_v51 = vld [vmem:[%s30246_s8 + $0x508] sm:$0xf]  ;;  %v19503_v16 = vld [vmem:[%s30246_s8 + $0x8f4] sm:$0xf0] }
 0x529   : > { %11649 = vmatpush.bf16.msrb.mxu3 %v18297_v56  ;;  %v19379_v56 = vld [vmem:[%s30246_s8 + $0x514] sm:$0xf0]  ;;  %v16992_v39 = vld [vmem:[%s30246_s8 + $0x8e8] sm:$0xf] }
 0x52a   : > { %11994 = vmatpush.bf16.msra.mxu0 %v16465_v47  ;;  %v16528_v47 = vld [vmem:[%s30246_s8 + $0x548] sm:$0xf]  ;;  %v16497_v0 = vor.u32 %v19379_v56, %v16496_v51  ;;  %v16269_v56 = vor.u32 %v19320_v3, %v16266_v26  ;;  %v19464_v3 = vld [vmem:[%s30246_s8 + $0x7c4] sm:$0xf]  ;;  %v16842_v26 = vld [vmem:[%s30246_s8 + $0x7d0] sm:$0xf0] }
 0x52b   : > { %12008 = vmatpush.bf16.msra.mxu1 %v16593_v24  ;;  %v19387_v24 = vld [vmem:[%s30246_s8 + $0x554] sm:$0xf0] }
 0x52c   : > { %11636 = vmatpush.bf16.msrb.mxu2 %v18153_v13  ;;  %v16976_v13 = vld [vmem:[%s30246_s8 + $0x8c8] sm:$0xf] }
 0x52d   : > { %11650 = vmatpush.bf16.msrb.mxu3 %v18281_v38  ;;  %v19499_v38 = vld [vmem:[%s30246_s8 + $0x8d4] sm:$0xf0] }
 0x52e   : > { %11995 = vmatpush.bf16.msra.mxu0 %v16449_v57  ;;  %v16529_v57 = vor.u32 %v19387_v24, %v16528_v47  ;;  %v16993_v47 = vor.u32 %v19503_v16, %v16992_v39  ;;  %v17121_v24 = vor.u32 %v19535_v43, %v17120_v53  ;;  %v19284_v39 = vld [vmem:[%s30246_s8 + $0x224] sm:$0xf]  ;;  %v16122_v16 = vld [vmem:[%s30246_s8 + $0x230] sm:$0xf0] }
 0x52f   : > { %12009 = vmatpush.bf16.msra.mxu1 %v16577_v49  ;;  %v19336_v49 = vld [vmem:[%s30246_s8 + $0x3c4] sm:$0xf]  ;;  %11637 = vmatmul.bf16.vlgmr.msrb.gmra.mxu2 %v27804_v33  ;;  %v16250_v43 = vld [vmem:[%s30246_s8 + $0x330] sm:$0xf0]  ;;  %v16125_v40 = vor.u32 %v19284_v39, %v16122_v16 }
 0x530   : > { %11685 = vmatpush.bf16.msra.mxu2 %v16221_v25  ;;  %v16333_v41 = vor.u32 %v19336_v49, %v16330_v8  ;;  %v19531_v25 = vld [vmem:[%s30246_s8 + $0x9d4] sm:$0xf0]  ;;  %v16960_v8 = vld [vmem:[%s30246_s8 + $0x8a8] sm:$0xf]  ;;  %v19316_v53 = vld [vmem:[%s30246_s8 + $0x324] sm:$0xf] }
 0x531   : > { %11699 = vmatpush.bf16.msra.mxu3 %v16349_v6  ;;  %v17105_v49 = vor.u32 %v19531_v25, %v17104_v10  ;;  %v16253_v5 = vor.u32 %v19316_v53, %v16250_v43  ;;  %v19436_v10 = vld [vmem:[%s30246_s8 + $0x6e4] sm:$0xf]  ;;  %v16730_v25 = vld [vmem:[%s30246_s8 + $0x6f0] sm:$0xf0] }
 0x532   : > { %11996 = vmatpush.bf16.msra.mxu0 %v16433_v62  ;;  %v27816_v62 = vsel %vm7510_vm3, %v7520_v46, %v7521_v63  ;;  %v19292_v63 = vld [vmem:[%s30246_s8 + $0x264] sm:$0xf]  ;;  %v16826_v43 = vld [vmem:[%s30246_s8 + $0x7b0] sm:$0xf0] }
 0x533   : > { %12010 = vmatpush.bf16.msra.mxu1 %v16561_v36  ;;  %v16385_v36 = vor.u32 %v19351_v29, %v16384_v35  ;;  %11651 = vmatmul.bf16.vlgmr.msrb.gmra.mxu3 %v27816_v62  ;;  %v19495_v35 = vld [vmem:[%s30246_s8 + $0x8b4] sm:$0xf0]  ;;  %v17088_v29 = vld [vmem:[%s30246_s8 + $0x9a8] sm:$0xf]  ;;  %v16157_v12 = vor.u32 %v19292_v63, %v16154_v9  ;;  %v19468_v63 = vld [vmem:[%s30246_s8 + $0x7e4] sm:$0xf] }
 0x534   : > { %11686 = vmatpush.bf16.msra.mxu2 %v16205_v60  ;;  %v19288_v60 = vld [vmem:[%s30246_s8 + $0x244] sm:$0xf]  ;;  %v16961_v59 = vor.u32 %v19495_v35, %v16960_v8  ;;  %v16858_v9 = vld [vmem:[%s30246_s8 + $0x7f0] sm:$0xf0] }
 0x535   : > { %11700 = vmatpush.bf16.msra.mxu3 %v16333_v41  ;;  %v16138_v41 = vld [vmem:[%s30246_s8 + $0x250] sm:$0xf0]  ;;  %v19460_v39 = vld [vmem:[%s30246_s8 + $0x7a4] sm:$0xf] }
 0x536   : > { %11997 = vmatpush.bf16.msra.mxu0 %v16417_v58  ;;  %v19296_v58 = vld [vmem:[%s30246_s8 + $0x284] sm:$0xf]  ;;  %v16141_v51 = vor.u32 %v19288_v60, %v16138_v41 }
 0x537   : > { %12011 = vmatpush.bf16.msra.mxu1 %v16545_v17  ;;  %v16369_v17 = vor.u32 %v19347_v22, %v16368_v34  ;;  %v16173_v6 = vor.u32 %v19296_v58, %v16170_v28  ;;  %v17072_v34 = vld [vmem:[%s30246_s8 + $0x988] sm:$0xf]  ;;  %v19523_v22 = vld [vmem:[%s30246_s8 + $0x994] sm:$0xf0] }
 0x538   : > { %11687 = vmatpush.bf16.msra.mxu2 %v16189_v21  ;;  %v16928_v58 = vld [vmem:[%s30246_s8 + $0x868] sm:$0xf]  ;;  %v19519_v28 = vld [vmem:[%s30246_s8 + $0x974] sm:$0xf0] }
 0x539   : > { %11701 = vmatpush.bf16.msra.mxu3 %v16317_v14  ;;  %v17073_v14 = vor.u32 %v19523_v22, %v17072_v34  ;;  %v16845_v22 = vor.u32 %v19464_v3, %v16842_v26 }
 0x53a   : > { %11998 = vmatpush.bf16.msra.mxu0 %v16401_v30  ;;  %v16282_v30 = vld [vmem:[%s30246_s8 + $0x370] sm:$0xf0] }
 0x53b   : > { %12012 = vmatpush.bf16.msra.mxu1 %v16529_v57  ;;  %v16977_v57 = vor.u32 %v19499_v38, %v16976_v13  ;;  %v16285_v46 = vor.u32 %v19324_v37, %v16282_v30  ;;  %v19312_v13 = vld [vmem:[%s30246_s8 + $0x304] sm:$0xf]  ;;  %v16234_v38 = vld [vmem:[%s30246_s8 + $0x310] sm:$0xf0]  ;;  %v16912_v37 = vld [vmem:[%s30246_s8 + $0x848] sm:$0xf] }
 0x53c   : > { %11688 = vmatpush.bf16.msra.mxu2 %v16173_v6  ;;  %v19483_v30 = vld [vmem:[%s30246_s8 + $0x854] sm:$0xf0]  ;;  %v16237_v35 = vor.u32 %v19312_v13, %v16234_v38  ;;  %v16829_v38 = vor.u32 %v19460_v39, %v16826_v43  ;;  %v16778_v43 = vld [vmem:[%s30246_s8 + $0x750] sm:$0xf0] }
 0x53d   : > { %11702 = vmatpush.bf16.msra.mxu3 %v16301_v32  ;;  %v16913_v60 = vor.u32 %v19483_v30, %v16912_v37 }
 0x53e   : > { %11999 = vmatpush.bf16.msra.mxu0 %v16385_v36  ;;  %v17089_v36 = vor.u32 %v19527_v44, %v17088_v29  ;;  %v16733_v29 = vor.u32 %v19436_v10, %v16730_v25  ;;  %v16861_v44 = vor.u32 %v19468_v63, %v16858_v9  ;;  %v19424_v10 = vld [vmem:[%s30246_s8 + $0x684] sm:$0xf]  ;;  %v16810_v9 = vld [vmem:[%s30246_s8 + $0x790] sm:$0xf0] }
 0x53f   : > { %12013 = vmatpush.bf16.msra.mxu1 %v16513_v27  ;;  %v16944_v27 = vld [vmem:[%s30246_s8 + $0x888] sm:$0xf]  ;;  %v19456_v63 = vld [vmem:[%s30246_s8 + $0x784] sm:$0xf] }
 0x540   : > { %11689 = vmatpush.bf16.msra.mxu2 %v16157_v12  ;;  %v16945_v21 = vor.u32 %v19491_v19, %v16944_v27  ;;  %v19432_v12 = vld [vmem:[%s30246_s8 + $0x6c4] sm:$0xf]  ;;  %v17024_v27 = vld [vmem:[%s30246_s8 + $0x928] sm:$0xf]  ;;  %v19511_v19 = vld [vmem:[%s30246_s8 + $0x934] sm:$0xf0] }
 0x541   : > { %11703 = vmatpush.bf16.msra.mxu3 %v16285_v46  ;;  %v16714_v46 = vld [vmem:[%s30246_s8 + $0x6d0] sm:$0xf0]  ;;  %v17025_v53 = vor.u32 %v19511_v19, %v17024_v27  ;;  %v17600_v27 = vld [vmem:[%s30246_s8 + $0xda8] sm:$0xf]  ;;  %v19655_v19 = vld [vmem:[%s30246_s8 + $0xdb4] sm:$0xf0] }
 0x542   : > { %12000 = vmatpush.bf16.msra.mxu0 %v16369_v17  ;;  %v19487_v17 = vld [vmem:[%s30246_s8 + $0x874] sm:$0xf0]  ;;  %v16717_v34 = vor.u32 %v19432_v12, %v16714_v46  ;;  %v19420_v12 = vld [vmem:[%s30246_s8 + $0x664] sm:$0xf]  ;;  %v16666_v46 = vld [vmem:[%s30246_s8 + $0x670] sm:$0xf0] }
 0x543   : > { %12014 = vmatpush.bf16.msra.mxu1 %v16497_v0  ;;  %v17056_v0 = vld [vmem:[%s30246_s8 + $0x968] sm:$0xf]  ;;  %v16929_v6 = vor.u32 %v19487_v17, %v16928_v58  ;;  %v19507_v17 = vld [vmem:[%s30246_s8 + $0x914] sm:$0xf0] }
 0x544   : > { %11690 = vmatpush.bf16.msra.mxu2 %v16141_v51  ;;  %v17057_v32 = vor.u32 %v19519_v28, %v17056_v0  ;;  %v19428_v51 = vld [vmem:[%s30246_s8 + $0x6a4] sm:$0xf]  ;;  %v17008_v58 = vld [vmem:[%s30246_s8 + $0x908] sm:$0xf]  ;;  %v28034_v28 = vpop.f32.mrf.mxu0 }
 0x545   : > { %12001 = vmatmul.bf16.vlgmr.msra.gmra.mxu0 %v26147_v7  ;;  %11704 = vmatpush.bf16.msra.mxu3 %v16269_v56  ;;  %v16698_v56 = vld [vmem:[%s30246_s8 + $0x6b0] sm:$0xf0]  ;;  %v17504_v0 = vld [vmem:[%s30246_s8 + $0xce8] sm:$0xf] }
 0x546   : > { %12049 = vmatpush.bf16.msrb.mxu0 %v16993_v47  ;;  %12015 = vmatmul.bf16.vlgmr.msra.gmra.mxu1 %v26150_v45  ;;  %v19280_v47 = vld [vmem:[%s30246_s8 + $0x204] sm:$0xf]  ;;  %v16701_v13 = vor.u32 %v19428_v51, %v16698_v56 }
 0x547   : > { %12063 = vmatpush.bf16.msrb.mxu1 %v17121_v24  ;;  %v16106_v24 = vld [vmem:[%s30246_s8 + $0x210] sm:$0xf0]  ;;  %v19416_v51 = vld [vmem:[%s30246_s8 + $0x644] sm:$0xf] }
 0x548   : > { %11691 = vmatpush.bf16.msra.mxu2 %v16125_v40  ;;  %v16109_v8 = vor.u32 %v19280_v47, %v16106_v24  ;;  %v28036_v40 = vpop.f32.mrf.mxu1  ;;  %v17632_v47 = vld [vmem:[%s30246_s8 + $0xde8] sm:$0xf]  ;;  %v19663_v24 = vld [vmem:[%s30246_s8 + $0xdf4] sm:$0xf0] }
 0x549   : > { %11705 = vmatpush.bf16.msra.mxu3 %v16253_v5  ;;  %v19631_v5 = vld [vmem:[%s30246_s8 + $0xcf4] sm:$0xf0]  ;;  %v17633_v30 = vor.u32 %v19663_v24, %v17632_v47 }
 0x54a   : > { %12050 = vmatpush.bf16.msrb.mxu0 %v16977_v57  ;;  %v17040_v57 = vld [vmem:[%s30246_s8 + $0x948] sm:$0xf]  ;;  %v17505_v37 = vor.u32 %v19631_v5, %v17504_v0  ;;  %v19651_v5 = vld [vmem:[%s30246_s8 + $0xd94] sm:$0xf0] }
 0x54b   : > { %12064 = vmatpush.bf16.msrb.mxu1 %v17105_v49  ;;  %v19515_v49 = vld [vmem:[%s30246_s8 + $0x954] sm:$0xf0]  ;;  %v17584_v0 = vld [vmem:[%s30246_s8 + $0xd88] sm:$0xf] }
 0x54c   : > { %v17041_v41 = vor.u32 %v19515_v49, %v17040_v57  ;;  %11692 = vmatpush.bf16.msra.mxu2 %v16109_v8  ;;  %v17488_v57 = vld [vmem:[%s30246_s8 + $0xcc8] sm:$0xf]  ;;  %v19627_v49 = vld [vmem:[%s30246_s8 + $0xcd4] sm:$0xf0]  ;;  %v28098_v56 = vpop.f32.mrf.mxu0 }
 0x54d   : > { %11706 = vmatpush.bf16.msra.mxu3 %v16237_v35  ;;  %v17616_v8 = vld [vmem:[%s30246_s8 + $0xdc8] sm:$0xf]  ;;  %v19659_v35 = vld [vmem:[%s30246_s8 + $0xdd4] sm:$0xf0]  ;;  %v17489_v3 = vor.u32 %v19627_v49, %v17488_v57 }
 0x54e   : > { %12051 = vmatpush.bf16.msrb.mxu0 %v16961_v59  ;;  %v16896_v59 = vld [vmem:[%s30246_s8 + $0x828] sm:$0xf]  ;;  %v17617_v26 = vor.u32 %v19659_v35, %v17616_v8  ;;  %v19408_v8 = vld [vmem:[%s30246_s8 + $0x604] sm:$0xf]  ;;  %v16618_v35 = vld [vmem:[%s30246_s8 + $0x610] sm:$0xf0] }
 0x54f   : > { %12065 = vmatpush.bf16.msrb.mxu1 %v17089_v36  ;;  %v19479_v36 = vld [vmem:[%s30246_s8 + $0x834] sm:$0xf0]  ;;  %11693 = vmatmul.bf16.vlgmr.msra.gmra.mxu2 %v27113_v54 }
 0x550   : > { %11741 = vmatpush.bf16.msrb.mxu2 %v16733_v29  ;;  %v16897_v16 = vor.u32 %v19479_v36, %v16896_v59  ;;  %11707 = vmatmul.bf16.vlgmr.msra.gmra.mxu3 %v27115_v55  ;;  %v17472_v59 = vld [vmem:[%s30246_s8 + $0xca8] sm:$0xf]  ;;  %v19623_v36 = vld [vmem:[%s30246_s8 + $0xcb4] sm:$0xf0]  ;;  %v28100_v39 = vpop.f32.mrf.mxu1 }
 0x551   : > { %11755 = vmatpush.bf16.msrb.mxu3 %v16861_v44  ;;  %v16813_v44 = vor.u32 %v19456_v63, %v16810_v9  ;;  %v17440_v63 = vld [vmem:[%s30246_s8 + $0xc68] sm:$0xf]  ;;  %v19615_v9 = vld [vmem:[%s30246_s8 + $0xc74] sm:$0xf0] }
 0x552   : > { %12052 = vmatpush.bf16.msrb.mxu0 %v16945_v21  ;;  %v16880_v21 = vld [vmem:[%s30246_s8 + $0x808] sm:$0xf] }
 0x553   : > { %12066 = vmatpush.bf16.msrb.mxu1 %v17073_v14  ;;  %v19475_v14 = vld [vmem:[%s30246_s8 + $0x814] sm:$0xf0] }
 0x554   : > { %11742 = vmatpush.bf16.msrb.mxu2 %v16717_v34  ;;  %v16881_v25 = vor.u32 %v19475_v14, %v16880_v21  ;;  %v16669_v34 = vor.u32 %v19420_v12, %v16666_v46  ;;  %v17473_v21 = vor.u32 %v19623_v36, %v17472_v59  ;;  %v17601_v14 = vor.u32 %v19655_v19, %v17600_v27  ;;  %v19564_v12 = vld [vmem:[%s30246_s8 + $0xae4] sm:$0xf]  ;;  %v17242_v46 = vld [vmem:[%s30246_s8 + $0xaf0] sm:$0xf0]  ;;  %v17424_v59 = vld [vmem:[%s30246_s8 + $0xc48] sm:$0xf] }
 0x555   : > { %11756 = vmatpush.bf16.msrb.mxu3 %v16845_v22  ;;  %v19611_v36 = vld [vmem:[%s30246_s8 + $0xc54] sm:$0xf0]  ;;  %v17552_v27 = vld [vmem:[%s30246_s8 + $0xd48] sm:$0xf] }
 0x556   : > { %12053 = vmatpush.bf16.msrb.mxu0 %v16929_v6  ;;  %v17009_v6 = vor.u32 %v19507_v17, %v17008_v58  ;;  %v17456_v58 = vld [vmem:[%s30246_s8 + $0xc88] sm:$0xf]  ;;  %v19619_v17 = vld [vmem:[%s30246_s8 + $0xc94] sm:$0xf0] }
 0x557   : > { %12067 = vmatpush.bf16.msrb.mxu1 %v17057_v32  ;;  %v16682_v32 = vld [vmem:[%s30246_s8 + $0x690] sm:$0xf0]  ;;  %v19643_v19 = vld [vmem:[%s30246_s8 + $0xd54] sm:$0xf0] }
 0x558   : > { %11743 = vmatpush.bf16.msrb.mxu2 %v16701_v13  ;;  %v16685_v29 = vor.u32 %v19424_v10, %v16682_v32  ;;  %v19412_v13 = vld [vmem:[%s30246_s8 + $0x624] sm:$0xf]  ;;  %v17585_v32 = vor.u32 %v19651_v5, %v17584_v0  ;;  %v17408_v0 = vld [vmem:[%s30246_s8 + $0xc28] sm:$0xf]  ;;  %v19607_v5 = vld [vmem:[%s30246_s8 + $0xc34] sm:$0xf0] }
 0x559   : > { %11757 = vmatpush.bf16.msrb.mxu3 %v16829_v38  ;;  %v16634_v38 = vld [vmem:[%s30246_s8 + $0x630] sm:$0xf0]  ;;  %v19444_v10 = vld [vmem:[%s30246_s8 + $0x724] sm:$0xf] }
 0x55a   : > { %12054 = vmatpush.bf16.msrb.mxu0 %v16913_v60  ;;  %v19452_v60 = vld [vmem:[%s30246_s8 + $0x764] sm:$0xf]  ;;  %v16637_v57 = vor.u32 %v19412_v13, %v16634_v38  ;;  %v28209_v13 = vpop.f32.mrf.mxu2  ;;  %v28211_v38 = vpop.f32.mrf.mxu3 }
 0x55b   : > { %12068 = vmatpush.bf16.msrb.mxu1 %v17041_v41  ;;  %v16794_v41 = vld [vmem:[%s30246_s8 + $0x770] sm:$0xf0] }
 0x55c   : > { %11744 = vmatpush.bf16.msrb.mxu2 %v16685_v29  ;;  %v16797_v22 = vor.u32 %v19452_v60, %v16794_v41  ;;  %v19440_v29 = vld [vmem:[%s30246_s8 + $0x704] sm:$0xf]  ;;  %v17441_v60 = vor.u32 %v19615_v9, %v17440_v63  ;;  %v17409_v9 = vor.u32 %v19607_v5, %v17408_v0 }
 0x55d   : > { %11758 = vmatpush.bf16.msrb.mxu3 %v16813_v44  ;;  %v16746_v44 = vld [vmem:[%s30246_s8 + $0x710] sm:$0xf0]  ;;  %v19588_v63 = vld [vmem:[%s30246_s8 + $0xba4] sm:$0xf] }
 0x55e   : > { %12055 = vmatpush.bf16.msrb.mxu0 %v16897_v16  ;;  %v16650_v16 = vld [vmem:[%s30246_s8 + $0x650] sm:$0xf0]  ;;  %v19548_v5 = vld [vmem:[%s30246_s8 + $0xa64] sm:$0xf] }
 0x55f   : > { %12069 = vmatpush.bf16.msrb.mxu1 %v17025_v53  ;;  %v19448_v53 = vld [vmem:[%s30246_s8 + $0x744] sm:$0xf]  ;;  %v16653_v47 = vor.u32 %v19416_v51, %v16650_v16  ;;  %v17245_v51 = vor.u32 %v19564_v12, %v17242_v46  ;;  %v28244_v12 = vpop.f32.mrf.mxu1  ;;  %v19759_v46 = vld [vmem:[%s30246_s8 + $0x10f4] sm:$0xf0] }
 0x560   : > { %11745 = vmatpush.bf16.msrb.mxu2 %v16669_v34  ;;  %v16781_v24 = vor.u32 %v19448_v53, %v16778_v43  ;;  %v16621_v34 = vor.u32 %v19408_v8, %v16618_v35  ;;  %v19560_v53 = vld [vmem:[%s30246_s8 + $0xac4] sm:$0xf]  ;;  %v17226_v43 = vld [vmem:[%s30246_s8 + $0xad0] sm:$0xf0]  ;;  %v17520_v8 = vld [vmem:[%s30246_s8 + $0xd08] sm:$0xf] }
 0x561   : > { %11759 = vmatpush.bf16.msrb.mxu3 %v16797_v22  ;;  %v16749_v22 = vor.u32 %v19440_v29, %v16746_v44  ;;  %v19635_v35 = vld [vmem:[%s30246_s8 + $0xd14] sm:$0xf0]  ;;  %v18016_v29 = vld [vmem:[%s30246_s8 + $0x10e8] sm:$0xf]  ;;  %v28242_v44 = vpop.f32.mrf.mxu0 }
 0x562   : > { %12056 = vmatpush.bf16.msrb.mxu0 %v16881_v25  ;;  %v16762_v25 = vld [vmem:[%s30246_s8 + $0x730] sm:$0xf0] }
 0x563   : > { %12070 = vmatpush.bf16.msrb.mxu1 %v17009_v6  ;;  %v17457_v6 = vor.u32 %v19619_v17, %v17456_v58  ;;  %v16765_v49 = vor.u32 %v19444_v10, %v16762_v25  ;;  %v19592_v58 = vld [vmem:[%s30246_s8 + $0xbc4] sm:$0xf]  ;;  %v17354_v17 = vld [vmem:[%s30246_s8 + $0xbd0] sm:$0xf0]  ;;  %v17229_v10 = vor.u32 %v19560_v53, %v17226_v43  ;;  %v18000_v43 = vld [vmem:[%s30246_s8 + $0x10c8] sm:$0xf] }
 0x564   : > { %11746 = vmatpush.bf16.msrb.mxu2 %v16653_v47  ;;  %v17536_v47 = vld [vmem:[%s30246_s8 + $0xd28] sm:$0xf]  ;;  %v17357_v25 = vor.u32 %v19592_v58, %v17354_v17  ;;  %v19787_v58 = vld [vmem:[%s30246_s8 + $0x11d4] sm:$0xf0] }
 0x565   : > { %12057 = vmatmul.bf16.vlgmr.msrb.gmra.mxu0 %v26223_v52  ;;  %11760 = vmatpush.bf16.msrb.mxu3 %v16781_v24  ;;  %v19639_v24 = vld [vmem:[%s30246_s8 + $0xd34] sm:$0xf0] }
 0x566   : > { %12105 = vmatpush.bf16.msra.mxu0 %v17505_v37  ;;  %12071 = vmatmul.bf16.vlgmr.msrb.gmra.mxu1 %v30320_v15  ;;  %v17568_v37 = vld [vmem:[%s30246_s8 + $0xd68] sm:$0xf] }
 0x567   : > { %12119 = vmatpush.bf16.msra.mxu1 %v17633_v30  ;;  %v19647_v30 = vld [vmem:[%s30246_s8 + $0xd74] sm:$0xf0] }
 0x568   : > { %v17569_v41 = vor.u32 %v19647_v30, %v17568_v37  ;;  %11747 = vmatpush.bf16.msrb.mxu2 %v16637_v57  ;;  %v17537_v37 = vor.u32 %v19639_v24, %v17536_v47  ;;  %v17338_v30 = vld [vmem:[%s30246_s8 + $0xbb0] sm:$0xf0]  ;;  %v17392_v57 = vld [vmem:[%s30246_s8 + $0xc08] sm:$0xf]  ;;  %v28287_v47 = vpop.f32.mrf.mxu2  ;;  %v28289_v24 = vpop.f32.mrf.mxu3 }
 0x569   : > { %11761 = vmatpush.bf16.msrb.mxu3 %v16765_v49  ;;  %v19603_v49 = vld [vmem:[%s30246_s8 + $0xc14] sm:$0xf0] }
 0x56a   : > { %12106 = vmatpush.bf16.msra.mxu0 %v17489_v3  ;;  %v19596_v3 = vld [vmem:[%s30246_s8 + $0xbe4] sm:$0xf] }
 0x56b   : > { %12120 = vmatpush.bf16.msra.mxu1 %v17617_v26  ;;  %v17370_v26 = vld [vmem:[%s30246_s8 + $0xbf0] sm:$0xf0] }
 0x56c   : > { %v17373_v16 = vor.u32 %v19596_v3, %v17370_v26  ;;  %11748 = vmatpush.bf16.msrb.mxu2 %v16621_v34  ;;  %v17341_v26 = vor.u32 %v19588_v63, %v17338_v30  ;;  %v19584_v34 = vld [vmem:[%s30246_s8 + $0xb84] sm:$0xf]  ;;  %v19751_v30 = vld [vmem:[%s30246_s8 + $0x10b4] sm:$0xf0] }
 0x56d   : > { %11762 = vmatpush.bf16.msrb.mxu3 %v16749_v22  ;;  %v17322_v22 = vld [vmem:[%s30246_s8 + $0xb90] sm:$0xf0] }
 0x56e   : > { %12107 = vmatpush.bf16.msra.mxu0 %v17473_v21  ;;  %v17425_v21 = vor.u32 %v19611_v36, %v17424_v59  ;;  %v19552_v59 = vld [vmem:[%s30246_s8 + $0xa84] sm:$0xf]  ;;  %v17393_v36 = vor.u32 %v19603_v49, %v17392_v57  ;;  %v17325_v0 = vor.u32 %v19584_v34, %v17322_v22  ;;  %v18112_v57 = vld [vmem:[%s30246_s8 + $0x11a8] sm:$0xf]  ;;  %v19783_v49 = vld [vmem:[%s30246_s8 + $0x11b4] sm:$0xf0] }
 0x56f   : > { %12121 = vmatpush.bf16.msra.mxu1 %v17601_v14  ;;  %v17553_v14 = vor.u32 %v19643_v19, %v17552_v27  ;;  %11749 = vmatmul.bf16.vlgmr.msrb.gmra.mxu2 %v27262_v50  ;;  %v17521_v27 = vor.u32 %v19635_v35, %v17520_v8  ;;  %v17194_v19 = vld [vmem:[%s30246_s8 + $0xa90] sm:$0xf0]  ;;  %v19747_v34 = vld [vmem:[%s30246_s8 + $0x1094] sm:$0xf0]  ;;  %v18096_v22 = vld [vmem:[%s30246_s8 + $0x1188] sm:$0xf] }
 0x570   : > { %11797 = vmatpush.bf16.msra.mxu2 %v17245_v51  ;;  %11763 = vmatmul.bf16.vlgmr.msrb.gmra.mxu3 %v27265_v18  ;;  %v28270_v51 = vld [vmem:[%s30247_s9] sm:$0xf]  ;;  %v17197_v17 = vor.u32 %v19552_v59, %v17194_v19  ;;  %v17968_v19 = vld [vmem:[%s30246_s8 + $0x1088] sm:$0xf] }
 0x571   : > { %11811 = vmatpush.bf16.msra.mxu3 %v17373_v16  ;;  %v18017_v16 = vor.u32 %v19759_v46, %v18016_v29  ;;  %v19544_v29 = vld [vmem:[%s30246_s8 + $0xa44] sm:$0xf]  ;;  %v28316_v46 = vpop.f32.mrf.mxu0 }
 0x572   : > { %12108 = vmatpush.bf16.msra.mxu0 %v17457_v6  ;;  %v19556_v6 = vld [vmem:[%s30246_s8 + $0xaa4] sm:$0xf] }
 0x573   : > { %12122 = vmatpush.bf16.msra.mxu1 %v17585_v32  ;;  %v17210_v32 = vld [vmem:[%s30246_s8 + $0xab0] sm:$0xf0] }
 0x574   : > { %11798 = vmatpush.bf16.msra.mxu2 %v17229_v10  ;;  %v17213_v3 = vor.u32 %v19556_v6, %v17210_v32  ;;  %v17178_v10 = vld [vmem:[%s30246_s8 + $0xa70] sm:$0xf0]  ;;  %v8169_v32 = vperm.slane %v28270_v51, 0 }
 0x575   : > { %11812 = vmatpush.bf16.msra.mxu3 %v17357_v25  ;;  %v19580_v25 = vld [vmem:[%s30246_s8 + $0xb64] sm:$0xf]  ;;  %v17306_v6 = vld [vmem:[%s30246_s8 + $0xb70] sm:$0xf0]  ;;  %v17181_v8 = vor.u32 %v19548_v5, %v17178_v10  ;;  %v17952_v5 = vld [vmem:[%s30246_s8 + $0x1068] sm:$0xf]  ;;  %v28360_v10 = vpop.f32.mrf.mxu2 }
 0x576   : > { %12109 = vmatpush.bf16.msra.mxu0 %v17441_v60  ;;  %v18144_v60 = vld [vmem:[%s30246_s8 + $0x11e8] sm:$0xf]  ;;  %v17309_v35 = vor.u32 %v19580_v25, %v17306_v6  ;;  %v11387_v59 = vadd.f32 %v28034_v28, %v8169_v32  ;;  %v19779_v28 = vld [vmem:[%s30246_s8 + $0x1194] sm:$0xf0]  ;;  %v28362_v25 = vpop.f32.mrf.mxu3 }
 0x577   : > { %12123 = vmatpush.bf16.msra.mxu1 %v17569_v41  ;;  %v19791_v41 = vld [vmem:[%s30246_s8 + $0x11f4] sm:$0xf0] }
 0x578   : > { %v18145_v53 = vor.u32 %v19791_v41, %v18144_v60  ;;  %11799 = vmatpush.bf16.msra.mxu2 %v17213_v3  ;;  %v28318_v60 = vpop.f32.mrf.mxu1  ;;  %v17162_v41 = vld [vmem:[%s30246_s8 + $0xa50] sm:$0xf0]  ;;  %v19576_v3 = vld [vmem:[%s30246_s8 + $0xb44] sm:$0xf]  ;;  %v19743_v6 = vld [vmem:[%s30246_s8 + $0x1074] sm:$0xf0] }
 0x579   : > { %11813 = vmatpush.bf16.msra.mxu3 %v17341_v26  ;;  %v17290_v26 = vld [vmem:[%s30246_s8 + $0xb50] sm:$0xf0]  ;;  %v17165_v51 = vor.u32 %v19544_v29, %v17162_v41  ;;  %v11389_v41 = vadd.f32 %v28098_v56, %v8169_v32  ;;  %v19739_v56 = vld [vmem:[%s30246_s8 + $0x1054] sm:$0xf0]  ;;  %v18064_v32 = vld [vmem:[%s30246_s8 + $0x1148] sm:$0xf] }
 0x57a   : > { %12110 = vmatpush.bf16.msra.mxu0 %v17425_v21  ;;  %v19755_v21 = vld [vmem:[%s30246_s8 + $0x10d4] sm:$0xf0]  ;;  %v17754_v29 = vld [vmem:[%s30246_s8 + $0xef0] sm:$0xf0] }
 0x57b   : > { %12124 = vmatpush.bf16.msra.mxu1 %v17553_v14  ;;  %v18128_v14 = vld [vmem:[%s30246_s8 + $0x11c8] sm:$0xf]  ;;  %v18001_v63 = vor.u32 %v19755_v21, %v18000_v43  ;;  %v17146_v43 = vld [vmem:[%s30246_s8 + $0xa30] sm:$0xf0]  ;;  %v19572_v21 = vld [vmem:[%s30246_s8 + $0xb24] sm:$0xf] }
 0x57c   : > { %11800 = vmatpush.bf16.msra.mxu2 %v17197_v17  ;;  %v17969_v17 = vor.u32 %v19747_v34, %v17968_v19  ;;  %v19771_v19 = vld [vmem:[%s30246_s8 + $0x1154] sm:$0xf0] }
 0x57d   : > { %11814 = vmatpush.bf16.msra.mxu3 %v17325_v0  ;;  %v18097_v0 = vor.u32 %v19779_v28, %v18096_v22 }
 0x57e   : > { %12111 = vmatpush.bf16.msra.mxu0 %v17409_v9  ;;  %v18129_v9 = vor.u32 %v19787_v58, %v18128_v14  ;;  %v17274_v14 = vld [vmem:[%s30246_s8 + $0xb30] sm:$0xf0]  ;;  %v11401_v58 = vadd.f32 %v28036_v40, %v11387_v59  ;;  %v18080_v40 = vld [vmem:[%s30246_s8 + $0x1168] sm:$0xf]  ;;  %v19724_v59 = vld [vmem:[%s30246_s8 + $0xfe4] sm:$0xf] }
 0x57f   : > { %12125 = vmatpush.bf16.msra.mxu1 %v17537_v37  ;;  %v17984_v37 = vld [vmem:[%s30246_s8 + $0x10a8] sm:$0xf] }
 0x580   : > { %11801 = vmatpush.bf16.msra.mxu2 %v17181_v8  ;;  %v19568_v8 = vld [vmem:[%s30246_s8 + $0xb04] sm:$0xf] }
 0x581   : > { %11815 = vmatpush.bf16.msra.mxu3 %v17309_v35  ;;  %v19692_v35 = vld [vmem:[%s30246_s8 + $0xee4] sm:$0xf] }
 0x582   : > { %12112 = vmatpush.bf16.msra.mxu0 %v17393_v36  ;;  %v17985_v36 = vor.u32 %v19751_v30, %v17984_v37  ;;  %v17277_v30 = vor.u32 %v19572_v21, %v17274_v14  ;;  %v11403_v21 = vadd.f32 %v28100_v39, %v11389_v41  ;;  %v19735_v39 = vld [vmem:[%s30246_s8 + $0x1034] sm:$0xf0]  ;;  %v17904_v41 = vld [vmem:[%s30246_s8 + $0x1008] sm:$0xf] }
 0x583   : > { %12126 = vmatpush.bf16.msra.mxu1 %v17521_v27  ;;  %v18113_v27 = vor.u32 %v19783_v49, %v18112_v57  ;;  %v19536_v57 = vld [vmem:[%s30246_s8 + $0xa04] sm:$0xf]  ;;  %v17130_v49 = vld [vmem:[%s30246_s8 + $0xa10] sm:$0xf0] }
 0x584   : > { %11802 = vmatpush.bf16.msra.mxu2 %v17165_v51  ;;  %v17133_v22 = vor.u32 %v19536_v57, %v17130_v49  ;;  %v17757_v51 = vor.u32 %v19692_v35, %v17754_v29  ;;  %v19684_v49 = vld [vmem:[%s30246_s8 + $0xea4] sm:$0xf]  ;;  %v17850_v29 = vld [vmem:[%s30246_s8 + $0xfb0] sm:$0xf0] }
 0x585   : > { %12113 = vmatmul.bf16.vlgmr.msra.gmra.mxu0 %v30322_v4 }
 0x586   : > { %12161 = vmatpush.bf16.msrb.mxu0 %v18017_v16  ;;  %12127 = vmatmul.bf16.vlgmr.msra.gmra.mxu1 %v30323_v61  ;;  %v17293_v16 = vor.u32 %v19576_v3, %v17290_v26  ;;  %v17953_v3 = vor.u32 %v19743_v6, %v17952_v5  ;;  %v18048_v5 = vld [vmem:[%s30246_s8 + $0x1128] sm:$0xf]  ;;  %v19767_v6 = vld [vmem:[%s30246_s8 + $0x1134] sm:$0xf0] }
 0x587   : > { %12175 = vmatpush.bf16.msrb.mxu1 %v18145_v53  ;;  %v19540_v53 = vld [vmem:[%s30246_s8 + $0xa24] sm:$0xf]  ;;  %v18049_v35 = vor.u32 %v19767_v6, %v18048_v5  ;;  %v16082_v5 = vld [vmem:[%s30246_s8 + $0x1d8] sm:$0xf0] }
 0x588   : > { %11816 = vmatpush.bf16.msra.mxu3 %v17293_v16  ;;  %v17149_v37 = vor.u32 %v19540_v53, %v17146_v43  ;;  %v19688_v53 = vld [vmem:[%s30246_s8 + $0xec4] sm:$0xf]  ;;  %v17738_v43 = vld [vmem:[%s30246_s8 + $0xed0] sm:$0xf0] }
 0x58a   : > { %12162 = vmatpush.bf16.msrb.mxu0 %v18001_v63  ;;  %v19775_v63 = vld [vmem:[%s30246_s8 + $0x1174] sm:$0xf0]  ;;  %11803 = vmatpush.bf16.msra.mxu2 %v17149_v37  ;;  %v28441_v37 = vpop.f32.mrf.mxu3 }
 0x58b   : > { %12176 = vmatpush.bf16.msrb.mxu1 %v18129_v9  ;;  %v11415_v9 = vadd.f32 %v28209_v13, %v11401_v58  ;;  %v17258_v13 = vld [vmem:[%s30246_s8 + $0xb10] sm:$0xf0]  ;;  %v18081_v26 = vor.u32 %v19775_v63, %v18080_v40  ;;  %v19720_v58 = vld [vmem:[%s30246_s8 + $0xfc4] sm:$0xf]  ;;  %v11417_v63 = vadd.f32 %v28287_v47, %v11403_v21 }
 0x58c   : > { %11817 = vmatpush.bf16.msra.mxu3 %v17277_v30  ;;  %v17261_v28 = vor.u32 %v19568_v8, %v17258_v13  ;;  %v17741_v30 = vor.u32 %v19688_v53, %v17738_v43  ;;  %v19716_v47 = vld [vmem:[%s30246_s8 + $0xfa4] sm:$0xf]  ;;  %v28452_v8 = vpop.f32.mrf.mxu0  ;;  %v17706_v43 = vld [vmem:[%s30246_s8 + $0xe90] sm:$0xf0] }
 0x58d   : > { %v11429_v34 = vadd.f32 %v28211_v38, %v11415_v9  ;;  %v18065_v38 = vor.u32 %v19771_v19, %v18064_v32  ;;  %v28439_v9 = vpop.f32.mrf.mxu2  ;;  %v15970_v19 = vld [vmem:[%s30246_s8 + $0xf8] sm:$0xf0]  ;;  %v19712_v21 = vld [vmem:[%s30246_s8 + $0xf84] sm:$0xf] }
 0x58e   : > { %12163 = vmatpush.bf16.msrb.mxu0 %v17985_v36  ;;  %v17882_v36 = vld [vmem:[%s30246_s8 + $0xff0] sm:$0xf0]  ;;  %11804 = vmatpush.bf16.msra.mxu2 %v17133_v22  ;;  %v16098_v22 = vld [vmem:[%s30246_s8 + $0x1f8] sm:$0xf0] }
 0x58f   : > { %12177 = vmatpush.bf16.msrb.mxu1 %v18113_v27  ;;  %v17936_v27 = vld [vmem:[%s30246_s8 + $0x1048] sm:$0xf]  ;;  %v17885_v16 = vor.u32 %v19724_v59, %v17882_v36  ;;  %v11443_v40 = vadd.f32 %v28242_v44, %v11429_v34  ;;  %v17722_v44 = vld [vmem:[%s30246_s8 + $0xeb0] sm:$0xf0]  ;;  %v19763_v59 = vld [vmem:[%s30246_s8 + $0x1114] sm:$0xf0] }
 0x590   : > { %v17937_v14 = vor.u32 %v19739_v56, %v17936_v27  ;;  %11818 = vmatpush.bf16.msra.mxu3 %v17261_v28  ;;  %v19245_v36 = vld [vmem:[%s30246_s8 + $0xec] sm:$0xf]  ;;  %v28474_v27 = vpop.f32.mrf.mxu1  ;;  %v11431_v56 = vadd.f32 %v28289_v24, %v11417_v63  ;;  %v17725_v28 = vor.u32 %v19684_v49, %v17722_v44  ;;  %v17818_v49 = vld [vmem:[%s30246_s8 + $0xf70] sm:$0xf0] }
 0x591   : > { %11805 = vmatmul.bf16.vlgmr.msra.gmra.mxu2 %v27379_v11  ;;  %v11457_v32 = vadd.f32 %v28244_v12, %v11443_v40  ;;  %v19277_v34 = vld [vmem:[%s30246_s8 + $0x1ec] sm:$0xf]  ;;  %v19680_v12 = vld [vmem:[%s30246_s8 + $0xe84] sm:$0xf] }
 0x592   : > { %12164 = vmatpush.bf16.msrb.mxu0 %v17969_v17  ;;  %v17866_v17 = vld [vmem:[%s30246_s8 + $0xfd0] sm:$0xf0]  ;;  %11853 = vmatpush.bf16.msrb.mxu2 %v17757_v51  ;;  %v17853_v51 = vor.u32 %v19716_v47, %v17850_v29  ;;  %v17709_v6 = vor.u32 %v19680_v12, %v17706_v43  ;;  %v28526_v47 = vpop.f32.mrf.mxu3  ;;  %v19233_v12 = vld [vmem:[%s30246_s8 + $0x8c] sm:$0xf] }
 0x593   : > { %12178 = vmatpush.bf16.msrb.mxu1 %v18097_v0  ;;  %v17920_v0 = vld [vmem:[%s30246_s8 + $0x1028] sm:$0xf]  ;;  %v17869_v57 = vor.u32 %v19720_v58, %v17866_v17  ;;  %11819 = vmatmul.bf16.vlgmr.msra.gmra.mxu3 %v27382_v23  ;;  %v11471_v24 = vadd.f32 %v28360_v10, %v11457_v32  ;;  %v16101_v58 = vor.u32 %v19277_v34, %v16098_v22  ;;  %v19241_v10 = vld [vmem:[%s30246_s8 + $0xcc] sm:$0xf]  ;;  %v17674_v22 = vld [vmem:[%s30246_s8 + $0xe50] sm:$0xf0] }
 0x594   : > { %11867 = vmatpush.bf16.msrb.mxu3 %v17885_v16  ;;  %v17921_v13 = vor.u32 %v19735_v39, %v17920_v0  ;;  %v11445_v17 = vadd.f32 %v28316_v46, %v11431_v56  ;;  %v15954_v0 = vld [vmem:[%s30246_s8 + $0xd8] sm:$0xf0]  ;;  %v19273_v39 = vld [vmem:[%s30246_s8 + $0x1cc] sm:$0xf]  ;;  %v19676_v46 = vld [vmem:[%s30246_s8 + $0xe64] sm:$0xf]  ;;  %v11500_v29 = vpop.f32.mrf.mxu0 }
 0x595   : > { %v11485_v63 = vadd.f32 %v28362_v25, %v11471_v24  ;;  %v11526_v44 = vpop.f32.mrf.mxu2  ;;  %v15957_v25 = vor.u32 %v19241_v10, %v15954_v0  ;;  %v15922_v24 = vld [vmem:[%s30246_s8 + $0x98] sm:$0xf0]  ;;  %v17658_v10 = vld [vmem:[%s30246_s8 + $0xe30] sm:$0xf0] }
 0x596   : > { %12165 = vmatpush.bf16.msrb.mxu0 %v17953_v3  ;;  %v19731_v3 = vld [vmem:[%s30246_s8 + $0x1014] sm:$0xf0]  ;;  %11854 = vmatpush.bf16.msrb.mxu2 %v17741_v30  ;;  %v17690_v30 = vld [vmem:[%s30246_s8 + $0xe70] sm:$0xf0] }
 0x597   : > { %12179 = vmatpush.bf16.msrb.mxu1 %v18081_v26  ;;  %v18032_v26 = vld [vmem:[%s30246_s8 + $0x1108] sm:$0xf]  ;;  %v17905_v16 = vor.u32 %v19731_v3, %v17904_v41  ;;  %v11459_v41 = vadd.f32 %v28318_v60, %v11445_v17  ;;  %v15938_v3 = vld [vmem:[%s30246_s8 + $0xb8] sm:$0xf0]  ;;  %v19672_v60 = vld [vmem:[%s30246_s8 + $0xe44] sm:$0xf] }
 0x598   : > { %11868 = vmatpush.bf16.msrb.mxu3 %v17869_v57  ;;  %v18033_v53 = vor.u32 %v19763_v59, %v18032_v26  ;;  %v19708_v57 = vld [vmem:[%s30246_s8 + $0xf64] sm:$0xf]  ;;  %v19269_v26 = vld [vmem:[%s30246_s8 + $0x1ac] sm:$0xf]  ;;  %v16066_v59 = vld [vmem:[%s30246_s8 + $0x1b8] sm:$0xf0]  ;;  %v28544_v32 = vpop.f32.mrf.mxu1  ;;  %v17677_v43 = vor.u32 %v19672_v60, %v17674_v22 }
 0x599   : > { %v17821_v56 = vor.u32 %v19708_v57, %v17818_v49  ;;  %v11473_v34 = vadd.f32 %v28439_v9, %v11459_v41  ;;  %v16069_v9 = vor.u32 %v19269_v26, %v16066_v59  ;;  %v19700_v17 = vld [vmem:[%s30246_s8 + $0xf24] sm:$0xf]  ;;  %v17786_v0 = vld [vmem:[%s30246_s8 + $0xf30] sm:$0xf0]  ;;  %v15890_v22 = vld [vmem:[%s30246_s8 + $0x58] sm:$0xf0] }
 0x59a   : > { %12166 = vmatpush.bf16.msrb.mxu0 %v17937_v14  ;;  %v17834_v14 = vld [vmem:[%s30246_s8 + $0xf90] sm:$0xf0]  ;;  %11855 = vmatpush.bf16.msrb.mxu2 %v17725_v28  ;;  %v19704_v28 = vld [vmem:[%s30246_s8 + $0xf44] sm:$0xf]  ;;  %v28597_v57 = vpop.f32.mrf.mxu3 }
 0x59b   : > { %12180 = vmatpush.bf16.msrb.mxu1 %v18065_v38  ;;  %v15973_v38 = vor.u32 %v19245_v36, %v15970_v19  ;;  %v17837_v40 = vor.u32 %v19712_v21, %v17834_v14  ;;  %v17693_v36 = vor.u32 %v19676_v46, %v17690_v30  ;;  %v11499_v19 = vadd.f32 %v28452_v8, %v11485_v63  ;;  %v19668_v14 = vld [vmem:[%s30246_s8 + $0xe24] sm:$0xf]  ;;  %v19261_v46 = vld [vmem:[%s30246_s8 + $0x16c] sm:$0xf]  ;;  %v16034_v63 = vld [vmem:[%s30246_s8 + $0x178] sm:$0xf0] }
 0x59c   : > { %11869 = vmatpush.bf16.msrb.mxu3 %v17853_v51  ;;  %v17802_v51 = vld [vmem:[%s30246_s8 + $0xf50] sm:$0xf0]  ;;  %v17661_v49 = vor.u32 %v19668_v14, %v17658_v10  ;;  %v19820_v26 = vld [vmem:[%s30246_s8 + $0x12e4] sm:$0xf] }
 0x59d   : > { %v17805_v21 = vor.u32 %v19704_v28, %v17802_v51  ;;  %v11528_v30 = vpop.f32.mrf.mxu2  ;;  %v18266_v59 = vld [vmem:[%s30246_s8 + $0x12f0] sm:$0xf0]  ;;  %v19257_v28 = vld [vmem:[%s30246_s8 + $0x14c] sm:$0xf]  ;;  %v16018_v51 = vld [vmem:[%s30246_s8 + $0x158] sm:$0xf0] }
 0x59e   : > { %12167 = vmatpush.bf16.msrb.mxu0 %v17921_v13  ;;  %v16085_v13 = vor.u32 %v19273_v39, %v16082_v5  ;;  %11856 = vmatpush.bf16.msrb.mxu2 %v17709_v6  ;;  %v15925_v39 = vor.u32 %v19233_v12, %v15922_v24  ;;  %v18394_v60 = vld [vmem:[%s30246_s8 + $0x13f0] sm:$0xf0]  ;;  %v16021_v14 = vor.u32 %v19257_v28, %v16018_v51  ;;  %v19808_v28 = vld [vmem:[%s30246_s8 + $0x1284] sm:$0xf] }
 0x59f   : > { %12181 = vmatpush.bf16.msrb.mxu1 %v18049_v35  ;;  %v19237_v35 = vld [vmem:[%s30246_s8 + $0xac] sm:$0xf] }
 0x5a0   : > { %11870 = vmatpush.bf16.msrb.mxu3 %v17837_v40  ;;  %v15941_v8 = vor.u32 %v19237_v35, %v15938_v3  ;;  %v15906_v40 = vld [vmem:[%s30246_s8 + $0x78] sm:$0xf0]  ;;  %v19696_v35 = vld [vmem:[%s30246_s8 + $0xf04] sm:$0xf]  ;;  %v17770_v3 = vld [vmem:[%s30246_s8 + $0xf10] sm:$0xf0] }
 0x5a1   : > { %v17773_v12 = vor.u32 %v19696_v35, %v17770_v3  ;;  %v19217_v35 = vld [vmem:[%s30246_s8 + $0xc] sm:$0xf] }
 0x5a2   : > { %12168 = vmatpush.bf16.msrb.mxu0 %v17905_v16  ;;  %v19265_v16 = vld [vmem:[%s30246_s8 + $0x18c] sm:$0xf]  ;;  %11857 = vmatpush.bf16.msrb.mxu2 %v17693_v36 }
 0x5a3   : > { %12182 = vmatpush.bf16.msrb.mxu1 %v18033_v53  ;;  %v16050_v53 = vld [vmem:[%s30246_s8 + $0x198] sm:$0xf0] }
 0x5a4   : > { %11871 = vmatpush.bf16.msrb.mxu3 %v17821_v56  ;;  %v16053_v5 = vor.u32 %v19265_v16, %v16050_v53  ;;  %v16037_v56 = vor.u32 %v19261_v46, %v16034_v63  ;;  %v19816_v53 = vld [vmem:[%s30246_s8 + $0x12c4] sm:$0xf] }
 0x5a5   : > { %12169 = vmatmul.bf16.vlgmr.msrb.gmra.mxu0 %v30324_v20  ;;  %v19812_v63 = vld [vmem:[%s30246_s8 + $0x12a4] sm:$0xf] }
 0x5a6   : > { %12217 = vmatpush.bf16.msra.mxu0 %v15973_v38  ;;  %12183 = vmatmul.bf16.vlgmr.msrb.gmra.mxu1 %v30325_v2  ;;  %v11487_v38 = vadd.f32 %v28441_v37, %v11473_v34  ;;  %v19229_v37 = vld [vmem:[%s30246_s8 + $0x6c] sm:$0xf] }
 0x5a7   : > { %12231 = vmatpush.bf16.msra.mxu1 %v16101_v58  ;;  %v11513_v58 = vadd.f32 %v28474_v27, %v11499_v19  ;;  %v11554_v27 = vpop.f32.mrf.mxu0  ;;  %11858 = vmatpush.bf16.msrb.mxu2 %v17677_v43  ;;  %v15909_v36 = vor.u32 %v19229_v37, %v15906_v40  ;;  %v19225_v19 = vld [vmem:[%s30246_s8 + $0x4c] sm:$0xf]  ;;  %v18250_v43 = vld [vmem:[%s30246_s8 + $0x12d0] sm:$0xf0]  ;;  %v11582_v37 = vpop.f32.mrf.mxu2 }
 0x5a8   : > { %11872 = vmatpush.bf16.msrb.mxu3 %v17805_v21  ;;  %v11501_v41 = vadd.f32 %v11500_v29, %v11487_v38  ;;  %v19852_v29 = vld [vmem:[%s30246_s8 + $0x13e4] sm:$0xf]  ;;  %v15893_v21 = vor.u32 %v19225_v19, %v15890_v22 }
 0x5a9   : > { %v11527_v6 = vadd.f32 %v11526_v44, %v11513_v58  ;;  %v19664_v44 = vld [vmem:[%s30246_s8 + $0xe04] sm:$0xf]  ;;  %v18397_v16 = vor.u32 %v19852_v29, %v18394_v60  ;;  %v19221_v58 = vld [vmem:[%s30246_s8 + $0x2c] sm:$0xf]  ;;  %v16610_v60 = vld [vmem:[%s30246_s8 + $0x5f8] sm:$0xf0] }
 0x5aa   : > { %12218 = vmatpush.bf16.msra.mxu0 %v15957_v25  ;;  %v17789_v25 = vor.u32 %v19700_v17, %v17786_v0  ;;  %v11515_v24 = vadd.f32 %v28544_v32, %v11501_v41  ;;  %v19848_v38 = vld [vmem:[%s30246_s8 + $0x13c4] sm:$0xf]  ;;  %v18378_v32 = vld [vmem:[%s30246_s8 + $0x13d0] sm:$0xf0]  ;;  %v15874_v0 = vld [vmem:[%s30246_s8 + $0x38] sm:$0xf0] }
 0x5ab   : > { %12232 = vmatpush.bf16.msra.mxu1 %v16085_v13  ;;  %v17642_v13 = vld [vmem:[%s30246_s8 + $0xe10] sm:$0xf0]  ;;  %v11541_v34 = vadd.f32 %v28526_v47, %v11527_v6  ;;  %11859 = vmatpush.bf16.msrb.mxu2 %v17661_v49  ;;  %v18269_v47 = vor.u32 %v19820_v26, %v18266_v59  ;;  %v11596_v6 = vpop.f32.mrf.mxu3  ;;  %v18381_v46 = vor.u32 %v19848_v38, %v18378_v32  ;;  %v19844_v49 = vld [vmem:[%s30246_s8 + $0x13a4] sm:$0xf]  ;;  %v15858_v41 = vld [vmem:[%s30246_s8 + $0x18] sm:$0xf0] }
 0x5ac   : > { %11873 = vmatpush.bf16.msrb.mxu3 %v17789_v25  ;;  %v11529_v17 = vadd.f32 %v11528_v30, %v11515_v24  ;;  %v18234_v30 = vld [vmem:[%s30246_s8 + $0x12b0] sm:$0xf0]  ;;  %v15877_v25 = vor.u32 %v19221_v58, %v15874_v0  ;;  %v19249_v59 = vld [vmem:[%s30246_s8 + $0x10c] sm:$0xf]  ;;  %v19840_v24 = vld [vmem:[%s30246_s8 + $0x1384] sm:$0xf] }
 0x5ad   : > { %v11555_v10 = vadd.f32 %v11554_v27, %v11541_v34  ;;  %v18253_v27 = vor.u32 %v19816_v53, %v18250_v43  ;;  %v19405_v29 = vld [vmem:[%s30246_s8 + $0x5ec] sm:$0xf]  ;;  %v18237_v34 = vor.u32 %v19812_v63, %v18234_v30  ;;  %v16594_v32 = vld [vmem:[%s30246_s8 + $0x5d8] sm:$0xf0] }
 0x5ae   : > { %12219 = vmatpush.bf16.msra.mxu0 %v15941_v8  ;;  %v11568_v8 = vpop.f32.mrf.mxu1  ;;  %v11543_v3 = vadd.f32 %v28597_v57, %v11529_v17  ;;  %v16482_v57 = vld [vmem:[%s30246_s8 + $0x4f8] sm:$0xf0]  ;;  %v16613_v43 = vor.u32 %v19405_v29, %v16610_v60  ;;  %v19401_v38 = vld [vmem:[%s30246_s8 + $0x5cc] sm:$0xf]  ;;  %v18314_v29 = vld [vmem:[%s30246_s8 + $0x1350] sm:$0xf0] }
 0x5af   : > { %12233 = vmatpush.bf16.msra.mxu1 %v16069_v9  ;;  %v17645_v9 = vor.u32 %v19664_v44, %v17642_v13  ;;  %v11556_v40 = vpop.f32.mrf.mxu0  ;;  %v18362_v13 = vld [vmem:[%s30246_s8 + $0x13b0] sm:$0xf0]  ;;  %v11569_v26 = vadd.f32 %v11568_v8, %v11555_v10  ;;  %v15861_v8 = vor.u32 %v19217_v35, %v15858_v41  ;;  %v16597_v30 = vor.u32 %v19401_v38, %v16594_v32  ;;  %v16578_v35 = vld [vmem:[%s30246_s8 + $0x5b8] sm:$0xf0]  ;;  %v19357_v32 = vld [vmem:[%s30246_s8 + $0x46c] sm:$0xf] }
 0x5b0   : > { %11874 = vmatpush.bf16.msrb.mxu3 %v17773_v12  ;;  %v18365_v22 = vor.u32 %v19844_v49, %v18362_v13  ;;  %v18218_v12 = vld [vmem:[%s30246_s8 + $0x1290] sm:$0xf0]  ;;  %v19365_v49 = vld [vmem:[%s30246_s8 + $0x4ac] sm:$0xf] }
 0x5b1   : > { %11860 = vmatpush.bf16.msrb.mxu2 %v17645_v9  ;;  %v11583_v19 = vadd.f32 %v11582_v37, %v11569_v26  ;;  %v18221_v17 = vor.u32 %v19808_v28, %v18218_v12  ;;  %v11584_v37 = vpop.f32.mrf.mxu2  ;;  %v19397_v13 = vld [vmem:[%s30246_s8 + $0x5ac] sm:$0xf]  ;;  %v16562_v28 = vld [vmem:[%s30246_s8 + $0x598] sm:$0xf0]  ;;  %v19796_v12 = vld [vmem:[%s30246_s8 + $0x1224] sm:$0xf] }
 0x5b2   : > { %12220 = vmatpush.bf16.msra.mxu0 %v15925_v39  ;;  %v19253_v39 = vld [vmem:[%s30246_s8 + $0x12c] sm:$0xf] }
 0x5b3   : > { %12234 = vmatpush.bf16.msra.mxu1 %v16053_v5  ;;  %v16002_v5 = vld [vmem:[%s30246_s8 + $0x138] sm:$0xf0]  ;;  %11875 = vmatmul.bf16.vlgmr.msrb.gmra.mxu3 %v27610_v42  ;;  %v11597_v10 = vadd.f32 %v11596_v6, %v11583_v19  ;;  %v19836_v6 = vld [vmem:[%s30246_s8 + $0x1364] sm:$0xf]  ;;  %v16581_v19 = vor.u32 %v19397_v13, %v16578_v35 }
 0x5b4   : > { %11923 = vmatpush.bf16.msra.mxu3 %v18397_v16  ;;  %v16005_v44 = vor.u32 %v19253_v39, %v16002_v5  ;;  %11861 = vmatmul.bf16.vlgmr.msrb.gmra.mxu2 %v27598_v31  ;;  %v11557_v16 = vadd.f32 %v11556_v40, %v11543_v3  ;;  %v19804_v39 = vld [vmem:[%s30246_s8 + $0x1264] sm:$0xf]  ;;  %v18202_v5 = vld [vmem:[%s30246_s8 + $0x1270] sm:$0xf0]  ;;  %v11598_v40 = vpop.f32.mrf.mxu3 }
 0x5b5   : > { %11909 = vmatpush.bf16.msra.mxu2 %v18269_v47  ;;  %v18346_v47 = vld [vmem:[%s30246_s8 + $0x1390] sm:$0xf0] }
 0x5b6   : > { %12221 = vmatpush.bf16.msra.mxu0 %v15909_v36  ;;  %v15986_v36 = vld [vmem:[%s30246_s8 + $0x118] sm:$0xf0]  ;;  %v11570_v51 = vpop.f32.mrf.mxu1  ;;  %v18349_v0 = vor.u32 %v19840_v24, %v18346_v47  ;;  %v18170_v24 = vld [vmem:[%s30246_s8 + $0x1230] sm:$0xf0] }
 0x5b7   : > { %12235 = vmatpush.bf16.msra.mxu1 %v16037_v56  ;;  %v19373_v56 = vld [vmem:[%s30246_s8 + $0x4ec] sm:$0xf]  ;;  %v15989_v9 = vor.u32 %v19249_v59, %v15986_v36  ;;  %v11610_v58 = vpop.f32.mrf.mxu0  ;;  %v19800_v59 = vld [vmem:[%s30246_s8 + $0x1244] sm:$0xf]  ;;  %v18186_v36 = vld [vmem:[%s30246_s8 + $0x1250] sm:$0xf0] }
 0x5b8   : > { %11924 = vmatpush.bf16.msra.mxu3 %v18381_v46  ;;  %v16485_v53 = vor.u32 %v19373_v56, %v16482_v57  ;;  %v11571_v46 = vadd.f32 %v11570_v51, %v11557_v16  ;;  %v11611_v41 = vadd.f32 %v11610_v58, %v11597_v10  ;;  %v19832_v57 = vld [vmem:[%s30246_s8 + $0x1344] sm:$0xf]  ;;  %v16418_v58 = vld [vmem:[%s30246_s8 + $0x478] sm:$0xf0] }
 0x5b9   : > { %11910 = vmatpush.bf16.msra.mxu2 %v18253_v27  ;;  %v18330_v27 = vld [vmem:[%s30246_s8 + $0x1370] sm:$0xf0]  ;;  %v11638_v47 = vpop.f32.mrf.mxu2  ;;  %v16421_v13 = vor.u32 %v19357_v32, %v16418_v58 }
 0x5ba   : > { %12222 = vmatpush.bf16.msra.mxu0 %v15893_v21  ;;  %v19369_v21 = vld [vmem:[%s30246_s8 + $0x4cc] sm:$0xf]  ;;  %v11585_v3 = vadd.f32 %v11584_v37, %v11571_v46  ;;  %v18333_v26 = vor.u32 %v19836_v6, %v18330_v27  ;;  %v18154_v27 = vld [vmem:[%s30246_s8 + $0x1210] sm:$0xf0]  ;;  %v19824_v46 = vld [vmem:[%s30246_s8 + $0x1304] sm:$0xf] }
 0x5bb   : > { %12236 = vmatpush.bf16.msra.mxu1 %v16021_v14  ;;  %v16466_v14 = vld [vmem:[%s30246_s8 + $0x4d8] sm:$0xf0] }
 0x5bc   : > { %11925 = vmatpush.bf16.msra.mxu3 %v18365_v22  ;;  %v16469_v63 = vor.u32 %v19369_v21, %v16466_v14  ;;  %v19393_v22 = vld [vmem:[%s30246_s8 + $0x58c] sm:$0xf]  ;;  %v11599_v51 = vadd.f32 %v11598_v40, %v11585_v3  ;;  %v11652_v16 = vpop.f32.mrf.mxu3 }
 0x5bd   : > { %11911 = vmatpush.bf16.msra.mxu2 %v18237_v34  ;;  %v16434_v34 = vld [vmem:[%s30246_s8 + $0x498] sm:$0xf0]  ;;  %v16565_v38 = vor.u32 %v19393_v22, %v16562_v28  ;;  %v19353_v3 = vld [vmem:[%s30246_s8 + $0x44c] sm:$0xf]  ;;  %v19307_v22 = vld [vmem:[%s30246_s8 + $0x2d4] sm:$0xf0] }
 0x5be   : > { %12223 = vmatpush.bf16.msra.mxu0 %v15877_v25  ;;  %v18205_v25 = vor.u32 %v19804_v39, %v18202_v5  ;;  %v11624_v56 = vpop.f32.mrf.mxu1  ;;  %v16546_v39 = vld [vmem:[%s30246_s8 + $0x578] sm:$0xf0]  ;;  %v19792_v5 = vld [vmem:[%s30246_s8 + $0x1204] sm:$0xf] }
 0x5bf   : > { %12237 = vmatpush.bf16.msra.mxu1 %v16005_v44  ;;  %v16450_v44 = vld [vmem:[%s30246_s8 + $0x4b8] sm:$0xf0]  ;;  %v11612_v10 = vpop.f32.mrf.mxu0 }
 0x5c0   : > { %11926 = vmatpush.bf16.msra.mxu3 %v18349_v0  ;;  %v16453_v60 = vor.u32 %v19365_v49, %v16450_v44  ;;  %v19389_v0 = vld [vmem:[%s30246_s8 + $0x56c] sm:$0xf]  ;;  %v11613_v37 = vadd.f32 %v11612_v10, %v11599_v51  ;;  %v19311_v49 = vld [vmem:[%s30246_s8 + $0x2f4] sm:$0xf0]  ;;  %v16320_v10 = vld [vmem:[%s30246_s8 + $0x3a8] sm:$0xf] }
 0x5c1   : > { %11912 = vmatpush.bf16.msra.mxu2 %v18221_v17  ;;  %v18173_v17 = vor.u32 %v19796_v12, %v18170_v24  ;;  %v16549_v35 = vor.u32 %v19389_v0, %v16546_v39  ;;  %v19339_v12 = vld [vmem:[%s30246_s8 + $0x3d4] sm:$0xf0]  ;;  %v19349_v24 = vld [vmem:[%s30246_s8 + $0x42c] sm:$0xf] }
 0x5c2   : > { %12224 = vmatpush.bf16.msra.mxu0 %v15861_v8  ;;  %v11625_v8 = vadd.f32 %v11624_v56, %v11611_v41  ;;  %v19343_v41 = vld [vmem:[%s30246_s8 + $0x3f4] sm:$0xf0]  ;;  %v16530_v56 = vld [vmem:[%s30246_s8 + $0x558] sm:$0xf0]  ;;  %v19345_v0 = vld [vmem:[%s30246_s8 + $0x40c] sm:$0xf] }
 0x5c3   : > { %12238 = vmatpush.bf16.msra.mxu1 %v15989_v9  ;;  %v18317_v9 = vor.u32 %v19832_v57, %v18314_v29  ;;  %v18157_v29 = vor.u32 %v19792_v5, %v18154_v27  ;;  %v16498_v27 = vld [vmem:[%s30246_s8 + $0x518] sm:$0xf0] }
 0x5c4   : > { %11927 = vmatpush.bf16.msra.mxu3 %v18333_v26  ;;  %v11639_v21 = vadd.f32 %v11638_v47, %v11625_v8  ;;  %v11654_v47 = vpop.f32.mrf.mxu3 }
 0x5c5   : > { %12225 = vmatmul.bf16.vlgmr.msra.gmra.mxu0 %v30326_v1  ;;  %v19361_v1 = vld [vmem:[%s30246_s8 + $0x48c] sm:$0xf]  ;;  %11913 = vmatpush.bf16.msra.mxu2 %v18205_v25  ;;  %v16352_v25 = vld [vmem:[%s30246_s8 + $0x3e8] sm:$0xf] }
 0x5c6   : > { %12273 = vmatpush.bf16.msrb.mxu0 %v16485_v53  ;;  %12239 = vmatmul.bf16.vlgmr.msra.gmra.mxu1 %v30327_v48  ;;  %v18189_v48 = vor.u32 %v19800_v59, %v18186_v36  ;;  %v19828_v53 = vld [vmem:[%s30246_s8 + $0x1324] sm:$0xf]  ;;  %v16437_v14 = vor.u32 %v19361_v1, %v16434_v34  ;;  %v11653_v40 = vadd.f32 %v11652_v16, %v11639_v21  ;;  %v11626_v26 = vpop.f32.mrf.mxu1  ;;  %v16402_v59 = vld [vmem:[%s30246_s8 + $0x458] sm:$0xf0]  ;;  %v19385_v36 = vld [vmem:[%s30246_s8 + $0x54c] sm:$0xf] }
 0x5c7   : > { %12287 = vmatpush.bf16.msrb.mxu1 %v16613_v43  ;;  %v18298_v43 = vld [vmem:[%s30246_s8 + $0x1330] sm:$0xf0]  ;;  %v11627_v57 = vadd.f32 %v11626_v26, %v11613_v37  ;;  %v16208_v34 = vld [vmem:[%s30246_s8 + $0x2c8] sm:$0xf]  ;;  %v16405_v51 = vor.u32 %v19353_v3, %v16402_v59  ;;  %v16533_v8 = vor.u32 %v19385_v36, %v16530_v56  ;;  %v16386_v16 = vld [vmem:[%s30246_s8 + $0x438] sm:$0xf0] }
 0x5c8   : > { %11928 = vmatpush.bf16.msra.mxu3 %v18317_v9  ;;  %v18301_v6 = vor.u32 %v19828_v53, %v18298_v43  ;;  %v12497_v44 = vmax.f32 %v11653_v40, 0.0  ;;  %v16336_v9 = vld [vmem:[%s30246_s8 + $0x3c8] sm:$0xf]  ;;  %v19381_v53 = vld [vmem:[%s30246_s8 + $0x52c] sm:$0xf]  ;;  %v16209_v32 = vor.u32 %v19307_v22, %v16208_v34  ;;  %v16389_v5 = vor.u32 %v19349_v24, %v16386_v16 }
 0x5c9   : > { %11914 = vmatpush.bf16.msra.mxu2 %v18189_v48  ;;  %v16353_v48 = vor.u32 %v19343_v41, %v16352_v25  ;;  %v16514_v43 = vld [vmem:[%s30246_s8 + $0x538] sm:$0xf0]  ;;  %v16337_v58 = vor.u32 %v19339_v12, %v16336_v9  ;;  %v19299_v3 = vld [vmem:[%s30246_s8 + $0x294] sm:$0xf0]  ;;  %v16304_v26 = vld [vmem:[%s30246_s8 + $0x388] sm:$0xf] }
 0x5ca   : > { %12274 = vmatpush.bf16.msrb.mxu0 %v16469_v63  ;;  %v18282_v63 = vld [vmem:[%s30246_s8 + $0x1310] sm:$0xf0]  ;;  %12505 = vst [vmem:[%s28840_s22] sm:$0xff] %v12497_v44  ;;  %v16517_v37 = vor.u32 %v19381_v53, %v16514_v43  ;;  %v16370_v40 = vld [vmem:[%s30246_s8 + $0x418] sm:$0xf0]  ;;  %v19331_v59 = vld [vmem:[%s30246_s8 + $0x394] sm:$0xf0] }
 0x5cb   : > { %12288 = vmatpush.bf16.msrb.mxu1 %v16597_v30  ;;  %v16224_v30 = vld [vmem:[%s30246_s8 + $0x2e8] sm:$0xf]  ;;  %v19295_v22 = vld [vmem:[%s30246_s8 + $0x274] sm:$0xf0]  ;;  %v19493_v12 = vld [vmem:[%s30246_s8 + $0x8ac] sm:$0xf] }
 0x5cc   : > { %11929 = vmatpush.bf16.msra.mxu3 %v18301_v6  ;;  %v16225_v1 = vor.u32 %v19311_v49, %v16224_v30  ;;  %v19377_v6 = vld [vmem:[%s30246_s8 + $0x50c] sm:$0xf]  ;;  %v17122_v49 = vld [vmem:[%s30246_s8 + $0x9f8] sm:$0xf0]  ;;  %v16160_v34 = vld [vmem:[%s30246_s8 + $0x268] sm:$0xf] }
 0x5cd   : > { %11915 = vmatpush.bf16.msra.mxu2 %v18173_v17  ;;  %v19335_v17 = vld [vmem:[%s30246_s8 + $0x3b4] sm:$0xf0]  ;;  %v19533_v30 = vld [vmem:[%s30246_s8 + $0x9ec] sm:$0xf]  ;;  %v16501_v41 = vor.u32 %v19377_v6, %v16498_v27  ;;  %v16962_v24 = vld [vmem:[%s30246_s8 + $0x8b8] sm:$0xf0]  ;;  %v16161_v53 = vor.u32 %v19295_v22, %v16160_v34 }
 0x5ce   : > { %12275 = vmatpush.bf16.msrb.mxu0 %v16453_v60  ;;  %v18285_v60 = vor.u32 %v19824_v46, %v18282_v63  ;;  %v19501_v46 = vld [vmem:[%s30246_s8 + $0x8ec] sm:$0xf]  ;;  %v16994_v63 = vld [vmem:[%s30246_s8 + $0x8f8] sm:$0xf0]  ;;  %v16321_v44 = vor.u32 %v19335_v17, %v16320_v10  ;;  %v17125_v56 = vor.u32 %v19533_v30, %v17122_v49  ;;  %v16256_v6 = vld [vmem:[%s30246_s8 + $0x328] sm:$0xf] }
 0x5cf   : > { %12289 = vmatpush.bf16.msrb.mxu1 %v16581_v19  ;;  %v11640_v19 = vpop.f32.mrf.mxu2  ;;  %v16997_v36 = vor.u32 %v19501_v46, %v16994_v63  ;;  %v17090_v16 = vld [vmem:[%s30246_s8 + $0x9b8] sm:$0xf0]  ;;  %v19521_v17 = vld [vmem:[%s30246_s8 + $0x98c] sm:$0xf]  ;;  %v19319_v27 = vld [vmem:[%s30246_s8 + $0x334] sm:$0xf0] }
 0x5d0   : > { %v11641_v28 = vadd.f32 %v11640_v19, %v11627_v57  ;;  %11930 = vmatpush.bf16.msra.mxu3 %v18285_v60  ;;  %v19497_v57 = vld [vmem:[%s30246_s8 + $0x8cc] sm:$0xf]  ;;  %v17106_v19 = vld [vmem:[%s30246_s8 + $0x9d8] sm:$0xf0] }
 0x5d1   : > { %11916 = vmatpush.bf16.msra.mxu2 %v18157_v29  ;;  %v16978_v29 = vld [vmem:[%s30246_s8 + $0x8d8] sm:$0xf0]  ;;  %v19529_v60 = vld [vmem:[%s30246_s8 + $0x9cc] sm:$0xf] }
 0x5d2   : > { %12276 = vmatpush.bf16.msrb.mxu0 %v16437_v14  ;;  %v11655_v21 = vadd.f32 %v11654_v47, %v11641_v28  ;;  %v16192_v14 = vld [vmem:[%s30246_s8 + $0x2a8] sm:$0xf]  ;;  %v17109_v9 = vor.u32 %v19529_v60, %v17106_v19  ;;  %v19525_v47 = vld [vmem:[%s30246_s8 + $0x9ac] sm:$0xf]  ;;  %v16930_v49 = vld [vmem:[%s30246_s8 + $0x878] sm:$0xf0] }
 0x5d3   : > { %12290 = vmatpush.bf16.msrb.mxu1 %v16565_v38  ;;  %v19303_v38 = vld [vmem:[%s30246_s8 + $0x2b4] sm:$0xf0]  ;;  %11931 = vmatmul.bf16.vlgmr.msra.gmra.mxu3 %v27816_v62  ;;  %v16288_v28 = vld [vmem:[%s30246_s8 + $0x368] sm:$0xf]  ;;  %v17093_v10 = vor.u32 %v19525_v47, %v17090_v16  ;;  %v19485_v30 = vld [vmem:[%s30246_s8 + $0x86c] sm:$0xf] }
 0x5d4   : > { %11979 = vmatpush.bf16.msrb.mxu3 %v16353_v48  ;;  %v12501_v39 = vmax.f32 %v11655_v21, 0.0  ;;  %11917 = vmatmul.bf16.vlgmr.msra.gmra.mxu2 %v27804_v33  ;;  %v16193_v25 = vor.u32 %v19303_v38, %v16192_v14  ;;  %v16305_v48 = vor.u32 %v19331_v59, %v16304_v26  ;;  %v16144_v21 = vld [vmem:[%s30246_s8 + $0x248] sm:$0xf]  ;;  %v19291_v14 = vld [vmem:[%s30246_s8 + $0x254] sm:$0xf0] }
 0x5d5   : > { %11965 = vmatpush.bf16.msrb.mxu2 %v16225_v1  ;;  %v16272_v38 = vld [vmem:[%s30246_s8 + $0x348] sm:$0xf]  ;;  %v19315_v59 = vld [vmem:[%s30246_s8 + $0x314] sm:$0xf0]  ;;  %v19513_v34 = vld [vmem:[%s30246_s8 + $0x94c] sm:$0xf] }
 0x5d6   : > { %12277 = vmatpush.bf16.msrb.mxu0 %v16421_v13  ;;  %12509 = vst [vmem:[%s28840_s22 + $0x20] sm:$0xff] %v12501_v39  ;;  %v16176_v13 = vld [vmem:[%s30246_s8 + $0x288] sm:$0xf]  ;;  %v16145_v39 = vor.u32 %v19291_v14, %v16144_v21  ;;  %v19471_v19 = vld [vmem:[%s30246_s8 + $0x7f4] sm:$0xf0] }
 0x5d7   : > { %12291 = vmatpush.bf16.msrb.mxu1 %v16549_v35  ;;  %v16373_v35 = vor.u32 %v19345_v0, %v16370_v40  ;;  %v16177_v1 = vor.u32 %v19299_v3, %v16176_v13  ;;  %v17074_v0 = vld [vmem:[%s30246_s8 + $0x998] sm:$0xf0]  ;;  %v19287_v40 = vld [vmem:[%s30246_s8 + $0x234] sm:$0xf0]  ;;  %v16240_v26 = vld [vmem:[%s30246_s8 + $0x308] sm:$0xf] }
 0x5d8   : > { %11980 = vmatpush.bf16.msrb.mxu3 %v16337_v58  ;;  %v16965_v58 = vor.u32 %v19493_v12, %v16962_v24  ;;  %v17077_v63 = vor.u32 %v19521_v17, %v17074_v0  ;;  %v19283_v3 = vld [vmem:[%s30246_s8 + $0x214] sm:$0xf0]  ;;  %v16864_v60 = vld [vmem:[%s30246_s8 + $0x7e8] sm:$0xf]  ;;  %v17042_v22 = vld [vmem:[%s30246_s8 + $0x958] sm:$0xf0] }
 0x5d9   : > { %11966 = vmatpush.bf16.msrb.mxu2 %v16209_v32  ;;  %v19323_v32 = vld [vmem:[%s30246_s8 + $0x354] sm:$0xf0]  ;;  %v16720_v12 = vld [vmem:[%s30246_s8 + $0x6c8] sm:$0xf]  ;;  %v17045_v16 = vor.u32 %v19513_v34, %v17042_v22  ;;  %v19477_v21 = vld [vmem:[%s30246_s8 + $0x82c] sm:$0xf] }
 0x5da   : > { %12278 = vmatpush.bf16.msrb.mxu0 %v16405_v51  ;;  %v19327_v51 = vld [vmem:[%s30246_s8 + $0x374] sm:$0xf0]  ;;  %v16898_v14 = vld [vmem:[%s30246_s8 + $0x838] sm:$0xf0]  ;;  %v16832_v17 = vld [vmem:[%s30246_s8 + $0x7a8] sm:$0xf] }
 0x5db   : > { %12292 = vmatpush.bf16.msrb.mxu1 %v16533_v8  ;;  %v16981_v8 = vor.u32 %v19497_v57, %v16978_v29  ;;  %v16289_v43 = vor.u32 %v19327_v51, %v16288_v28  ;;  %v16933_v57 = vor.u32 %v19485_v30, %v16930_v49  ;;  %v16241_v51 = vor.u32 %v19315_v59, %v16240_v26  ;;  %v19435_v24 = vld [vmem:[%s30246_s8 + $0x6d4] sm:$0xf0]  ;;  %v29095_v30 = vpop.f32.mrf.mxu1  ;;  %v17506_v49 = vld [vmem:[%s30246_s8 + $0xcf8] sm:$0xf0] }
 0x5dc   : > { %11981 = vmatpush.bf16.msrb.mxu3 %v16321_v44  ;;  %v17058_v44 = vld [vmem:[%s30246_s8 + $0x978] sm:$0xf0]  ;;  %v16901_v0 = vor.u32 %v19477_v21, %v16898_v14  ;;  %v19427_v59 = vld [vmem:[%s30246_s8 + $0x694] sm:$0xf0] }
 0x5dd   : > { %11967 = vmatpush.bf16.msrb.mxu2 %v16193_v25  ;;  %v19517_v25 = vld [vmem:[%s30246_s8 + $0x96c] sm:$0xf] }
 0x5de   : > { %12279 = vmatpush.bf16.msrb.mxu0 %v16389_v5  ;;  %v16273_v5 = vor.u32 %v19323_v32, %v16272_v38  ;;  %v17061_v29 = vor.u32 %v19517_v25, %v17058_v44  ;;  %v19509_v38 = vld [vmem:[%s30246_s8 + $0x92c] sm:$0xf]  ;;  %v17026_v32 = vld [vmem:[%s30246_s8 + $0x938] sm:$0xf0] }
 0x5df   : > { %12293 = vmatpush.bf16.msrb.mxu1 %v16517_v37  ;;  %v16128_v37 = vld [vmem:[%s30246_s8 + $0x228] sm:$0xf]  ;;  %v19661_v25 = vld [vmem:[%s30246_s8 + $0xdec] sm:$0xf]  ;;  %v17634_v44 = vld [vmem:[%s30246_s8 + $0xdf8] sm:$0xf0] }
 0x5e0   : > { %11982 = vmatpush.bf16.msrb.mxu3 %v16305_v48  ;;  %v16129_v13 = vor.u32 %v19287_v40, %v16128_v37  ;;  %v16914_v48 = vld [vmem:[%s30246_s8 + $0x858] sm:$0xf0]  ;;  %v19473_v37 = vld [vmem:[%s30246_s8 + $0x80c] sm:$0xf] }
 0x5e1   : > { %11968 = vmatpush.bf16.msrb.mxu2 %v16177_v1  ;;  %v19481_v1 = vld [vmem:[%s30246_s8 + $0x84c] sm:$0xf]  ;;  %v16882_v40 = vld [vmem:[%s30246_s8 + $0x818] sm:$0xf0] }
 0x5e2   : > { %12280 = vmatpush.bf16.msrb.mxu0 %v16373_v35  ;;  %v16257_v35 = vor.u32 %v19319_v27, %v16256_v6  ;;  %v16917_v47 = vor.u32 %v19481_v1, %v16914_v48  ;;  %v19505_v6 = vld [vmem:[%s30246_s8 + $0x90c] sm:$0xf]  ;;  %v17010_v27 = vld [vmem:[%s30246_s8 + $0x918] sm:$0xf0] }
 0x5e3   : > { %12294 = vmatpush.bf16.msrb.mxu1 %v16501_v41  ;;  %v16112_v41 = vld [vmem:[%s30246_s8 + $0x208] sm:$0xf]  ;;  %v17013_v26 = vor.u32 %v19505_v6, %v17010_v27  ;;  %v19657_v1 = vld [vmem:[%s30246_s8 + $0xdcc] sm:$0xf]  ;;  %v17618_v48 = vld [vmem:[%s30246_s8 + $0xdd8] sm:$0xf0] }
 0x5e4   : > { %11983 = vmatpush.bf16.msrb.mxu3 %v16289_v43  ;;  %v16113_v28 = vor.u32 %v19283_v3, %v16112_v41  ;;  %v19467_v43 = vld [vmem:[%s30246_s8 + $0x7d4] sm:$0xf0]  ;;  %v16688_v41 = vld [vmem:[%s30246_s8 + $0x688] sm:$0xf]  ;;  %v16885_v3 = vor.u32 %v19473_v37, %v16882_v40 }
 0x5e5   : > { %12281 = vmatmul.bf16.vlgmr.msrb.gmra.mxu0 %v26147_v7  ;;  %v19489_v7 = vld [vmem:[%s30246_s8 + $0x88c] sm:$0xf]  ;;  %11969 = vmatpush.bf16.msrb.mxu2 %v16161_v53  ;;  %v16848_v53 = vld [vmem:[%s30246_s8 + $0x7c8] sm:$0xf]  ;;  %v16689_v34 = vor.u32 %v19427_v59, %v16688_v41  ;;  %v19415_v27 = vld [vmem:[%s30246_s8 + $0x634] sm:$0xf0] }
 0x5e6   : > { %12329 = vmatpush.bf16.msra.mxu0 %v16997_v36  ;;  %12295 = vmatmul.bf16.vlgmr.msrb.gmra.mxu1 %v26150_v45  ;;  %v16946_v45 = vld [vmem:[%s30246_s8 + $0x898] sm:$0xf0]  ;;  %v16736_v36 = vld [vmem:[%s30246_s8 + $0x6e8] sm:$0xf]  ;;  %v19645_v41 = vld [vmem:[%s30246_s8 + $0xd6c] sm:$0xf] }
 0x5e7   : > { %12343 = vmatpush.bf16.msra.mxu1 %v17125_v56  ;;  %v16949_v46 = vor.u32 %v19489_v7, %v16946_v45  ;;  %v19439_v56 = vld [vmem:[%s30246_s8 + $0x6f4] sm:$0xf0]  ;;  %v16704_v7 = vld [vmem:[%s30246_s8 + $0x6a8] sm:$0xf] }
 0x5e8   : > { %11984 = vmatpush.bf16.msrb.mxu3 %v16273_v5  ;;  %v19431_v45 = vld [vmem:[%s30246_s8 + $0x6b4] sm:$0xf0]  ;;  %v16640_v6 = vld [vmem:[%s30246_s8 + $0x628] sm:$0xf] }
 0x5e9   : > { %11970 = vmatpush.bf16.msrb.mxu2 %v16145_v39  ;;  %v17029_v39 = vor.u32 %v19509_v38, %v17026_v32  ;;  %v19463_v5 = vld [vmem:[%s30246_s8 + $0x7b4] sm:$0xf0]  ;;  %v16656_v38 = vld [vmem:[%s30246_s8 + $0x648] sm:$0xf] }
 0x5ea   : > { %12330 = vmatpush.bf16.msra.mxu0 %v16981_v8  ;;  %v16737_v8 = vor.u32 %v19439_v56, %v16736_v36  ;;  %v16816_v36 = vld [vmem:[%s30246_s8 + $0x788] sm:$0xf]  ;;  %v19459_v56 = vld [vmem:[%s30246_s8 + $0x794] sm:$0xf0] }
 0x5eb   : > { %12344 = vmatpush.bf16.msra.mxu1 %v17109_v9  ;;  %v16865_v9 = vor.u32 %v19471_v19, %v16864_v60  ;;  %v19625_v60 = vld [vmem:[%s30246_s8 + $0xccc] sm:$0xf]  ;;  %v17490_v19 = vld [vmem:[%s30246_s8 + $0xcd8] sm:$0xf0]  ;;  %v16817_v22 = vor.u32 %v19459_v56, %v16816_v36  ;;  %v16624_v36 = vld [vmem:[%s30246_s8 + $0x608] sm:$0xf] }
 0x5ec   : > { %11985 = vmatpush.bf16.msrb.mxu3 %v16257_v35  ;;  %v16833_v35 = vor.u32 %v19463_v5, %v16832_v17  ;;  %v17586_v5 = vld [vmem:[%s30246_s8 + $0xd98] sm:$0xf0]  ;;  %v19411_v56 = vld [vmem:[%s30246_s8 + $0x614] sm:$0xf0] }
 0x5ed   : > { %11971 = vmatpush.bf16.msrb.mxu2 %v16129_v13  ;;  %v16705_v13 = vor.u32 %v19431_v45, %v16704_v7  ;;  %v16784_v7 = vld [vmem:[%s30246_s8 + $0x748] sm:$0xf]  ;;  %v19451_v45 = vld [vmem:[%s30246_s8 + $0x754] sm:$0xf0] }
 0x5ee   : > { %12331 = vmatpush.bf16.msra.mxu0 %v16965_v58  ;;  %v16721_v58 = vor.u32 %v19435_v24, %v16720_v12  ;;  %v17493_v12 = vor.u32 %v19625_v60, %v17490_v19  ;;  %v17621_v24 = vor.u32 %v19657_v1, %v17618_v48  ;;  %v16785_v40 = vor.u32 %v19451_v45, %v16784_v7  ;;  %v17248_v60 = vld [vmem:[%s30246_s8 + $0xae8] sm:$0xf]  ;;  %v19567_v19 = vld [vmem:[%s30246_s8 + $0xaf4] sm:$0xf0]  ;;  %v19605_v7 = vld [vmem:[%s30246_s8 + $0xc2c] sm:$0xf] }
 0x5ef   : > { %12345 = vmatpush.bf16.msra.mxu1 %v17093_v10  ;;  %v16849_v10 = vor.u32 %v19467_v43, %v16848_v53  ;;  %v19653_v53 = vld [vmem:[%s30246_s8 + $0xdac] sm:$0xf]  ;;  %v17602_v43 = vld [vmem:[%s30246_s8 + $0xdb8] sm:$0xf0] }
 0x5f0   : > { %11986 = vmatpush.bf16.msrb.mxu3 %v16241_v51  ;;  %v19423_v51 = vld [vmem:[%s30246_s8 + $0x674] sm:$0xf0]  ;;  %v17410_v45 = vld [vmem:[%s30246_s8 + $0xc38] sm:$0xf0] }
 0x5f1   : > { %11972 = vmatpush.bf16.msrb.mxu2 %v16113_v28  ;;  %v16672_v28 = vld [vmem:[%s30246_s8 + $0x668] sm:$0xf] }
 0x5f2   : > { %12332 = vmatpush.bf16.msra.mxu0 %v16949_v46  ;;  %v19629_v46 = vld [vmem:[%s30246_s8 + $0xcec] sm:$0xf]  ;;  %v16673_v21 = vor.u32 %v19423_v51, %v16672_v28  ;;  %v17426_v51 = vld [vmem:[%s30246_s8 + $0xc58] sm:$0xf0] }
 0x5f3   : > { %12346 = vmatpush.bf16.msra.mxu1 %v17077_v63  ;;  %11987 = vmatmul.bf16.vlgmr.msrb.gmra.mxu3 %v27115_v55  ;;  %v29093_v63 = vpop.f32.mrf.mxu0  ;;  %v19609_v28 = vld [vmem:[%s30246_s8 + $0xc4c] sm:$0xf] }
 0x5f4   : > { %12035 = vmatpush.bf16.msra.mxu3 %v16865_v9  ;;  %11973 = vmatmul.bf16.vlgmr.msrb.gmra.mxu2 %v27113_v54  ;;  %v19455_v9 = vld [vmem:[%s30246_s8 + $0x774] sm:$0xf0] }
 0x5f5   : > { %12021 = vmatpush.bf16.msra.mxu2 %v16737_v8  ;;  %v16800_v8 = vld [vmem:[%s30246_s8 + $0x768] sm:$0xf] }
 0x5f6   : > { %12333 = vmatpush.bf16.msra.mxu0 %v16933_v57  ;;  %v17509_v57 = vor.u32 %v19629_v46, %v17506_v49  ;;  %v16801_v14 = vor.u32 %v19455_v9, %v16800_v8  ;;  %v16768_v46 = vld [vmem:[%s30246_s8 + $0x728] sm:$0xf]  ;;  %v19447_v49 = vld [vmem:[%s30246_s8 + $0x734] sm:$0xf0]  ;;  %v19641_v8 = vld [vmem:[%s30246_s8 + $0xd4c] sm:$0xf] }
 0x5f7   : > { %12347 = vmatpush.bf16.msra.mxu1 %v17061_v29  ;;  %v17637_v29 = vor.u32 %v19661_v25, %v17634_v44  ;;  %v16769_v59 = vor.u32 %v19447_v49, %v16768_v46  ;;  %v17554_v9 = vld [vmem:[%s30246_s8 + $0xd58] sm:$0xf0]  ;;  %v19601_v46 = vld [vmem:[%s30246_s8 + $0xc0c] sm:$0xf] }
 0x5f8   : > { %12036 = vmatpush.bf16.msra.mxu3 %v16849_v10  ;;  %v19419_v10 = vld [vmem:[%s30246_s8 + $0x654] sm:$0xf0]  ;;  %v17394_v49 = vld [vmem:[%s30246_s8 + $0xc18] sm:$0xf0] }
 0x5f9   : > { %12022 = vmatpush.bf16.msra.mxu2 %v16721_v58  ;;  %v29159_v58 = vpop.f32.mrf.mxu1  ;;  %v16657_v37 = vor.u32 %v19419_v10, %v16656_v38  ;;  %v17360_v38 = vld [vmem:[%s30246_s8 + $0xbc8] sm:$0xf]  ;;  %v19595_v10 = vld [vmem:[%s30246_s8 + $0xbd4] sm:$0xf0] }
 0x5fa   : > { %12334 = vmatpush.bf16.msra.mxu0 %v16917_v47  ;;  %v19621_v47 = vld [vmem:[%s30246_s8 + $0xcac] sm:$0xf] }
 0x5fb   : > { %12348 = vmatpush.bf16.msra.mxu1 %v17045_v16  ;;  %v17474_v16 = vld [vmem:[%s30246_s8 + $0xcb8] sm:$0xf0]  ;;  %v29157_v32 = vpop.f32.mrf.mxu0 }
 0x5fc   : > { %12037 = vmatpush.bf16.msra.mxu3 %v16833_v35  ;;  %v17477_v17 = vor.u32 %v19621_v47, %v17474_v16  ;;  %v17442_v35 = vld [vmem:[%s30246_s8 + $0xc78] sm:$0xf0]  ;;  %v17249_v47 = vor.u32 %v19567_v19, %v17248_v60  ;;  %v17200_v60 = vld [vmem:[%s30246_s8 + $0xa88] sm:$0xf]  ;;  %v17397_v19 = vor.u32 %v19601_v46, %v17394_v49  ;;  %v19547_v49 = vld [vmem:[%s30246_s8 + $0xa54] sm:$0xf0] }
 0x5fd   : > { %12023 = vmatpush.bf16.msra.mxu2 %v16705_v13  ;;  %v19613_v13 = vld [vmem:[%s30246_s8 + $0xc6c] sm:$0xf] }
 0x5fe   : > { %12335 = vmatpush.bf16.msra.mxu0 %v16901_v0  ;;  %v17605_v0 = vor.u32 %v19653_v53, %v17602_v43  ;;  %v17445_v1 = vor.u32 %v19613_v13, %v17442_v35  ;;  %v17232_v53 = vld [vmem:[%s30246_s8 + $0xac8] sm:$0xf]  ;;  %v19563_v43 = vld [vmem:[%s30246_s8 + $0xad4] sm:$0xf0]  ;;  %v19633_v13 = vld [vmem:[%s30246_s8 + $0xd0c] sm:$0xf] }
 0x5ff   : > { %12349 = vmatpush.bf16.msra.mxu1 %v17029_v39  ;;  %v19649_v39 = vld [vmem:[%s30246_s8 + $0xd8c] sm:$0xf]  ;;  %v17522_v35 = vld [vmem:[%s30246_s8 + $0xd18] sm:$0xf0] }
 0x600   : > { %12038 = vmatpush.bf16.msra.mxu3 %v16817_v22  ;;  %v17589_v44 = vor.u32 %v19649_v39, %v17586_v5  ;;  %v19599_v22 = vld [vmem:[%s30246_s8 + $0xbf4] sm:$0xf0]  ;;  %v17216_v39 = vld [vmem:[%s30246_s8 + $0xaa8] sm:$0xf] }
 0x601   : > { %12024 = vmatpush.bf16.msra.mxu2 %v16689_v34  ;;  %v17376_v34 = vld [vmem:[%s30246_s8 + $0xbe8] sm:$0xf]  ;;  %v19559_v5 = vld [vmem:[%s30246_s8 + $0xab4] sm:$0xf0] }
 0x602   : > { %12336 = vmatpush.bf16.msra.mxu0 %v16885_v3  ;;  %v17570_v3 = vld [vmem:[%s30246_s8 + $0xd78] sm:$0xf0]  ;;  %v17377_v16 = vor.u32 %v19599_v22, %v17376_v34  ;;  %v17328_v34 = vld [vmem:[%s30246_s8 + $0xb88] sm:$0xf]  ;;  %v19587_v22 = vld [vmem:[%s30246_s8 + $0xb94] sm:$0xf0] }
 0x603   : > { %12350 = vmatpush.bf16.msra.mxu1 %v17013_v26  ;;  %v16641_v26 = vor.u32 %v19415_v27, %v16640_v6  ;;  %v17573_v48 = vor.u32 %v19645_v41, %v17570_v3  ;;  %v19591_v27 = vld [vmem:[%s30246_s8 + $0xbb4] sm:$0xf0]  ;;  %v19757_v41 = vld [vmem:[%s30246_s8 + $0x10ec] sm:$0xf]  ;;  %v29301_v3 = vpop.f32.mrf.mxu2 }
 0x604   : > { %12039 = vmatpush.bf16.msra.mxu3 %v16801_v14  ;;  %v17557_v14 = vor.u32 %v19641_v8, %v17554_v9  ;;  %v19753_v8 = vld [vmem:[%s30246_s8 + $0x10cc] sm:$0xf]  ;;  %v18002_v9 = vld [vmem:[%s30246_s8 + $0x10d8] sm:$0xf0] }
 0x605   : > { %12337 = vmatmul.bf16.vlgmr.msra.gmra.mxu0 %v26223_v52  ;;  %v19617_v52 = vld [vmem:[%s30246_s8 + $0xc8c] sm:$0xf]  ;;  %12025 = vmatpush.bf16.msra.mxu2 %v16673_v21  ;;  %v17429_v21 = vor.u32 %v19609_v28, %v17426_v51 }
 0x606   : > { %12385 = vmatpush.bf16.msrb.mxu0 %v17509_v57  ;;  %12351 = vmatmul.bf16.vlgmr.msra.gmra.mxu1 %v30320_v15  ;;  %v17458_v15 = vld [vmem:[%s30246_s8 + $0xc98] sm:$0xf0]  ;;  %v16752_v57 = vld [vmem:[%s30246_s8 + $0x708] sm:$0xf] }
 0x607   : > { %12399 = vmatpush.bf16.msrb.mxu1 %v17637_v29  ;;  %v17461_v25 = vor.u32 %v19617_v52, %v17458_v15  ;;  %v19443_v29 = vld [vmem:[%s30246_s8 + $0x714] sm:$0xf0]  ;;  %v17233_v52 = vor.u32 %v19563_v43, %v17232_v53  ;;  %v17361_v15 = vor.u32 %v19595_v10, %v17360_v38  ;;  %v17184_v53 = vld [vmem:[%s30246_s8 + $0xa68] sm:$0xf]  ;;  %v29353_v38 = vld [vmem:[%s30247_s9] sm:$0xf] }
 0x608   : > { %12040 = vmatpush.bf16.msra.mxu3 %v16785_v40  ;;  %v17413_v40 = vor.u32 %v19605_v7, %v17410_v45  ;;  %v19551_v43 = vld [vmem:[%s30246_s8 + $0xa74] sm:$0xf0]  ;;  %v8170_v10 = vperm.slane %v29353_v38, 1  ;;  %v18005_v7 = vor.u32 %v19753_v8, %v18002_v9  ;;  %v17954_v8 = vld [vmem:[%s30246_s8 + $0x1078] sm:$0xf0] }
 0x609   : > { %12026 = vmatpush.bf16.msra.mxu2 %v16657_v37  ;;  %v17344_v37 = vld [vmem:[%s30246_s8 + $0xba8] sm:$0xf]  ;;  %v19773_v9 = vld [vmem:[%s30246_s8 + $0x116c] sm:$0xf] }
 0x60a   : > { %12386 = vmatpush.bf16.msrb.mxu0 %v17493_v12  ;;  %v16625_v12 = vor.u32 %v19411_v56, %v16624_v36  ;;  %v19789_v36 = vld [vmem:[%s30246_s8 + $0x11ec] sm:$0xf]  ;;  %v18146_v56 = vld [vmem:[%s30246_s8 + $0x11f8] sm:$0xf0] }
 0x60b   : > { %12400 = vmatpush.bf16.msrb.mxu1 %v17621_v24  ;;  %v16753_v24 = vor.u32 %v19443_v29, %v16752_v57  ;;  %v17217_v57 = vor.u32 %v19559_v5, %v17216_v39  ;;  %v17345_v29 = vor.u32 %v19591_v27, %v17344_v37  ;;  %v18149_v51 = vor.u32 %v19789_v36, %v18146_v56  ;;  %v29375_v27 = vpop.f32.mrf.mxu2  ;;  %v17970_v36 = vld [vmem:[%s30246_s8 + $0x1098] sm:$0xf0]  ;;  %v19777_v56 = vld [vmem:[%s30246_s8 + $0x118c] sm:$0xf] }
 0x60c   : > { %12041 = vmatpush.bf16.msra.mxu3 %v16769_v59  ;;  %v18018_v59 = vld [vmem:[%s30246_s8 + $0x10f8] sm:$0xf0]  ;;  %v17185_v37 = vor.u32 %v19551_v43, %v17184_v53  ;;  %v19539_v53 = vld [vmem:[%s30246_s8 + $0xa14] sm:$0xf0]  ;;  %v17264_v43 = vld [vmem:[%s30246_s8 + $0xb08] sm:$0xf] }
 0x60d   : > { %12027 = vmatpush.bf16.msra.mxu2 %v16641_v26  ;;  %v29303_v26 = vpop.f32.mrf.mxu3  ;;  %v18021_v28 = vor.u32 %v19757_v41, %v18018_v59  ;;  %v11667_v41 = vadd.f32 %v29093_v63, %v8170_v10  ;;  %v18098_v63 = vld [vmem:[%s30246_s8 + $0x1198] sm:$0xf0] }
 0x60e   : > { %12387 = vmatpush.bf16.msrb.mxu0 %v17477_v17  ;;  %v19637_v17 = vld [vmem:[%s30246_s8 + $0xd2c] sm:$0xf] }
 0x60f   : > { %12401 = vmatpush.bf16.msrb.mxu1 %v17605_v0  ;;  %v17538_v0 = vld [vmem:[%s30246_s8 + $0xd38] sm:$0xf0] }
 0x610   : > { %12042 = vmatpush.bf16.msra.mxu3 %v16753_v24  ;;  %v17541_v6 = vor.u32 %v19637_v17, %v17538_v0  ;;  %v18130_v24 = vld [vmem:[%s30246_s8 + $0x11d8] sm:$0xf0]  ;;  %v19749_v17 = vld [vmem:[%s30246_s8 + $0x10ac] sm:$0xf] }
 0x611   : > { %12028 = vmatpush.bf16.msra.mxu2 %v16625_v12  ;;  %v19785_v12 = vld [vmem:[%s30246_s8 + $0x11cc] sm:$0xf]  ;;  %v17986_v0 = vld [vmem:[%s30246_s8 + $0x10b8] sm:$0xf0] }
 0x612   : > { %12388 = vmatpush.bf16.msrb.mxu0 %v17461_v25  ;;  %v29286_v25 = vpop.f32.mrf.mxu0  ;;  %v18133_v45 = vor.u32 %v19785_v12, %v18130_v24  ;;  %v17989_v59 = vor.u32 %v19749_v17, %v17986_v0  ;;  %v11669_v17 = vadd.f32 %v29157_v32, %v8170_v10  ;;  %v17938_v32 = vld [vmem:[%s30246_s8 + $0x1058] sm:$0xf0]  ;;  %v19769_v10 = vld [vmem:[%s30246_s8 + $0x114c] sm:$0xf] }
 0x613   : > { %12402 = vmatpush.bf16.msrb.mxu1 %v17589_v44  ;;  %v29288_v44 = vpop.f32.mrf.mxu1  ;;  %12043 = vmatmul.bf16.vlgmr.msra.gmra.mxu3 %v27265_v18 }
 0x614   : > { %12091 = vmatpush.bf16.msrb.mxu3 %v17377_v16  ;;  %12029 = vmatmul.bf16.vlgmr.msra.gmra.mxu2 %v27262_v50  ;;  %v17329_v16 = vor.u32 %v19587_v22, %v17328_v34  ;;  %v11681_v34 = vadd.f32 %v29095_v30, %v11667_v41  ;;  %v18082_v30 = vld [vmem:[%s30246_s8 + $0x1178] sm:$0xf0] }
 0x615   : > { %12077 = vmatpush.bf16.msrb.mxu2 %v17249_v47  ;;  %v29377_v46 = vpop.f32.mrf.mxu3 }
 0x616   : > { %12389 = vmatpush.bf16.msrb.mxu0 %v17445_v1  ;;  %v17525_v1 = vor.u32 %v19633_v13, %v17522_v35  ;;  %v17296_v13 = vld [vmem:[%s30246_s8 + $0xb48] sm:$0xf]  ;;  %v19579_v35 = vld [vmem:[%s30246_s8 + $0xb54] sm:$0xf0]  ;;  %v11695_v12 = vadd.f32 %v29301_v3, %v11681_v34 }
 0x617   : > { %12403 = vmatpush.bf16.msrb.mxu1 %v17573_v48  ;;  %v19555_v48 = vld [vmem:[%s30246_s8 + $0xa94] sm:$0xf0] }
 0x618   : > { %12092 = vmatpush.bf16.msrb.mxu3 %v17361_v15  ;;  %v17201_v47 = vor.u32 %v19555_v48, %v17200_v60  ;;  %v18114_v15 = vld [vmem:[%s30246_s8 + $0x11b8] sm:$0xf0]  ;;  %v17152_v60 = vld [vmem:[%s30246_s8 + $0xa28] sm:$0xf]  ;;  %v19575_v48 = vld [vmem:[%s30246_s8 + $0xb34] sm:$0xf0] }
 0x619   : > { %12078 = vmatpush.bf16.msrb.mxu2 %v17233_v52  ;;  %v19781_v52 = vld [vmem:[%s30246_s8 + $0x11ac] sm:$0xf]  ;;  %v19571_v3 = vld [vmem:[%s30246_s8 + $0xb14] sm:$0xf0] }
 0x61a   : > { %12390 = vmatpush.bf16.msrb.mxu0 %v17429_v21  ;;  %v17312_v21 = vld [vmem:[%s30246_s8 + $0xb68] sm:$0xf]  ;;  %v29368_v39 = vpop.f32.mrf.mxu0 }
 0x61b   : > { %12404 = vmatpush.bf16.msrb.mxu1 %v17557_v14  ;;  %v19583_v14 = vld [vmem:[%s30246_s8 + $0xb74] sm:$0xf0]  ;;  %v29370_v5 = vpop.f32.mrf.mxu1 }
 0x61c   : > { %12093 = vmatpush.bf16.msrb.mxu3 %v17345_v29  ;;  %v17297_v29 = vor.u32 %v19579_v35, %v17296_v13  ;;  %v17265_v35 = vor.u32 %v19571_v3, %v17264_v43  ;;  %v18034_v43 = vld [vmem:[%s30246_s8 + $0x1118] sm:$0xf0] }
 0x61d   : > { %12079 = vmatpush.bf16.msrb.mxu2 %v17217_v57 }
 0x61e   : > { %12391 = vmatpush.bf16.msrb.mxu0 %v17413_v40  ;;  %v17313_v40 = vor.u32 %v19583_v14, %v17312_v21  ;;  %v29438_v21 = vpop.f32.mrf.mxu2  ;;  %v29440_v14 = vpop.f32.mrf.mxu3 }
 0x61f   : > { %12405 = vmatpush.bf16.msrb.mxu1 %v17541_v6  ;;  %v17168_v6 = vld [vmem:[%s30246_s8 + $0xa48] sm:$0xf] }
 0x620   : > { %12094 = vmatpush.bf16.msrb.mxu3 %v17329_v16  ;;  %v17169_v57 = vor.u32 %v19547_v49, %v17168_v6  ;;  %v17136_v16 = vld [vmem:[%s30246_s8 + $0xa08] sm:$0xf]  ;;  %v18066_v6 = vld [vmem:[%s30246_s8 + $0x1158] sm:$0xf0]  ;;  %v11709_v49 = vadd.f32 %v29303_v26, %v11695_v12  ;;  %v19729_v12 = vld [vmem:[%s30246_s8 + $0x100c] sm:$0xf] }
 0x621   : > { %12080 = vmatpush.bf16.msrb.mxu2 %v17201_v47  ;;  %v17137_v13 = vor.u32 %v19539_v53, %v17136_v16  ;;  %v18069_v26 = vor.u32 %v19769_v10, %v18066_v6  ;;  %v17906_v16 = vld [vmem:[%s30246_s8 + $0x1018] sm:$0xf0]  ;;  %v19761_v53 = vld [vmem:[%s30246_s8 + $0x110c] sm:$0xf] }
 0x622   : > { %12392 = vmatpush.bf16.msrb.mxu0 %v17397_v19  ;;  %v19543_v19 = vld [vmem:[%s30246_s8 + $0xa34] sm:$0xf0] }
 0x623   : > { %12406 = vmatpush.bf16.msrb.mxu1 %v17525_v1  ;;  %v17280_v1 = vld [vmem:[%s30246_s8 + $0xb28] sm:$0xf]  ;;  %v17153_v24 = vor.u32 %v19543_v19, %v17152_v60  ;;  %v19765_v60 = vld [vmem:[%s30246_s8 + $0x112c] sm:$0xf]  ;;  %v18050_v19 = vld [vmem:[%s30246_s8 + $0x1138] sm:$0xf0]  ;;  %v11792_v3 = vpop.f32.mrf.mxu1 }
 0x624   : > { %12095 = vmatpush.bf16.msrb.mxu3 %v17313_v40  ;;  %v17281_v47 = vor.u32 %v19575_v48, %v17280_v1  ;;  %v19737_v40 = vld [vmem:[%s30246_s8 + $0x104c] sm:$0xf]  ;;  %v11723_v1 = vadd.f32 %v29286_v25, %v11709_v49  ;;  %v17696_v49 = vld [vmem:[%s30246_s8 + $0xe68] sm:$0xf] }
 0x625   : > { %12393 = vmatmul.bf16.vlgmr.msrb.gmra.mxu0 %v30322_v4  ;;  %v18117_v4 = vor.u32 %v19781_v52, %v18114_v15  ;;  %12081 = vmatpush.bf16.msrb.mxu2 %v17185_v37  ;;  %v18085_v52 = vor.u32 %v19773_v9, %v18082_v30  ;;  %v17888_v15 = vld [vmem:[%s30246_s8 + $0xfe8] sm:$0xf]  ;;  %v19727_v37 = vld [vmem:[%s30246_s8 + $0xff4] sm:$0xf0]  ;;  %v18053_v9 = vor.u32 %v19765_v60, %v18050_v19 }
 0x626   : > { %12441 = vmatpush.bf16.msra.mxu0 %v18021_v28  ;;  %12407 = vmatmul.bf16.vlgmr.msrb.gmra.mxu1 %v30323_v61  ;;  %v19745_v61 = vld [vmem:[%s30246_s8 + $0x108c] sm:$0xf]  ;;  %v18101_v28 = vor.u32 %v19777_v56, %v18098_v63  ;;  %v17941_v56 = vor.u32 %v19737_v40, %v17938_v32  ;;  %v17872_v63 = vld [vmem:[%s30246_s8 + $0xfc8] sm:$0xf]  ;;  %v19719_v30 = vld [vmem:[%s30246_s8 + $0xfb4] sm:$0xf0]  ;;  %v18037_v40 = vor.u32 %v19761_v53, %v18034_v43 }
 0x627   : > { %12455 = vmatpush.bf16.msra.mxu1 %v18149_v51  ;;  %v17973_v22 = vor.u32 %v19745_v61, %v17970_v36  ;;  %v19741_v51 = vld [vmem:[%s30246_s8 + $0x106c] sm:$0xf]  ;;  %v19691_v61 = vld [vmem:[%s30246_s8 + $0xed4] sm:$0xf0]  ;;  %v11683_v36 = vadd.f32 %v29159_v58, %v11669_v17  ;;  %v17922_v58 = vld [vmem:[%s30246_s8 + $0x1038] sm:$0xf0] }
 0x628   : > { %12096 = vmatpush.bf16.msrb.mxu3 %v17297_v29  ;;  %v17957_v0 = vor.u32 %v19741_v51, %v17954_v8  ;;  %v19733_v29 = vld [vmem:[%s30246_s8 + $0x102c] sm:$0xf]  ;;  %v19687_v51 = vld [vmem:[%s30246_s8 + $0xeb4] sm:$0xf0]  ;;  %v11778_v8 = vpop.f32.mrf.mxu0  ;;  %v18272_v43 = vld [vmem:[%s30246_s8 + $0x12e8] sm:$0xf] }
 0x629   : > { %12082 = vmatpush.bf16.msrb.mxu2 %v17169_v57  ;;  %v19723_v57 = vld [vmem:[%s30246_s8 + $0xfd4] sm:$0xf0]  ;;  %v11697_v48 = vadd.f32 %v29375_v27, %v11683_v36  ;;  %v17925_v25 = vor.u32 %v19733_v29, %v17922_v58  ;;  %v17856_v27 = vld [vmem:[%s30246_s8 + $0xfa8] sm:$0xf] }
 0x62a   : > { %12442 = vmatpush.bf16.msra.mxu0 %v18005_v7  ;;  %v17760_v7 = vld [vmem:[%s30246_s8 + $0xee8] sm:$0xf]  ;;  %v19715_v32 = vld [vmem:[%s30246_s8 + $0xf94] sm:$0xf0] }
 0x62b   : > { %12456 = vmatpush.bf16.msra.mxu1 %v18133_v45  ;;  %v19695_v45 = vld [vmem:[%s30246_s8 + $0xef4] sm:$0xf0] }
 0x62c   : > { %12097 = vmatpush.bf16.msrb.mxu3 %v17281_v47  ;;  %v17761_v41 = vor.u32 %v19695_v45, %v17760_v7  ;;  %v11766_v47 = vpop.f32.mrf.mxu3  ;;  %v11711_v7 = vadd.f32 %v29377_v46, %v11697_v48  ;;  %v11737_v45 = vadd.f32 %v29288_v44, %v11723_v1  ;;  %v19683_v46 = vld [vmem:[%s30246_s8 + $0xe94] sm:$0xf0]  ;;  %v17840_v44 = vld [vmem:[%s30246_s8 + $0xf88] sm:$0xf] }
 0x62d   : > { %12083 = vmatpush.bf16.msrb.mxu2 %v17153_v24  ;;  %v11752_v24 = vpop.f32.mrf.mxu2  ;;  %v17841_v6 = vor.u32 %v19715_v32, %v17840_v44  ;;  %v19675_v58 = vld [vmem:[%s30246_s8 + $0xe54] sm:$0xf0]  ;;  %v18256_v44 = vld [vmem:[%s30246_s8 + $0x12c8] sm:$0xf] }
 0x62e   : > { %12443 = vmatpush.bf16.msra.mxu0 %v17989_v59  ;;  %v17889_v59 = vor.u32 %v19727_v37, %v17888_v15  ;;  %v11751_v15 = vadd.f32 %v29438_v21, %v11737_v45  ;;  %v17909_v37 = vor.u32 %v19729_v12, %v17906_v16  ;;  %v11725_v10 = vadd.f32 %v29368_v39, %v11711_v7  ;;  %v17824_v39 = vld [vmem:[%s30246_s8 + $0xf68] sm:$0xf]  ;;  %v19707_v60 = vld [vmem:[%s30246_s8 + $0xf54] sm:$0xf0] }
 0x62f   : > { %12457 = vmatpush.bf16.msra.mxu1 %v18117_v4  ;;  %v17744_v4 = vld [vmem:[%s30246_s8 + $0xec8] sm:$0xf]  ;;  %v19699_v53 = vld [vmem:[%s30246_s8 + $0xf14] sm:$0xf0] }
 0x630   : > { %12098 = vmatpush.bf16.msrb.mxu3 %v17265_v35  ;;  %v17745_v34 = vor.u32 %v19691_v61, %v17744_v4  ;;  %v19679_v35 = vld [vmem:[%s30246_s8 + $0xe74] sm:$0xf0]  ;;  %v11780_v61 = vpop.f32.mrf.mxu0  ;;  %v11739_v36 = vadd.f32 %v29370_v5, %v11725_v10  ;;  %v17808_v5 = vld [vmem:[%s30246_s8 + $0xf48] sm:$0xf] }
 0x631   : > { %12084 = vmatpush.bf16.msrb.mxu2 %v17137_v13  ;;  %v11765_v13 = vadd.f32 %v29440_v14, %v11751_v15  ;;  %v17697_v14 = vor.u32 %v19679_v35, %v17696_v49  ;;  %v17809_v1 = vor.u32 %v19707_v60, %v17808_v5  ;;  %v17648_v12 = vld [vmem:[%s30246_s8 + $0xe08] sm:$0xf]  ;;  %v19855_v45 = vld [vmem:[%s30246_s8 + $0x13f4] sm:$0xf0] }
 0x632   : > { %12444 = vmatpush.bf16.msra.mxu0 %v17973_v22  ;;  %v17873_v22 = vor.u32 %v19723_v57, %v17872_v63  ;;  %v11794_v63 = vpop.f32.mrf.mxu1  ;;  %v11753_v29 = vadd.f32 %v11752_v24, %v11739_v36  ;;  %v19667_v24 = vld [vmem:[%s30246_s8 + $0xe14] sm:$0xf0]  ;;  %v17776_v16 = vld [vmem:[%s30246_s8 + $0xf08] sm:$0xf] }
 0x633   : > { %12458 = vmatpush.bf16.msra.mxu1 %v18101_v28  ;;  %v17728_v28 = vld [vmem:[%s30246_s8 + $0xea8] sm:$0xf]  ;;  %12099 = vmatmul.bf16.vlgmr.msrb.gmra.mxu3 %v27382_v23  ;;  %v11779_v57 = vadd.f32 %v11778_v8, %v11765_v13  ;;  %v17777_v15 = vor.u32 %v19699_v53, %v17776_v16  ;;  %v19819_v32 = vld [vmem:[%s30246_s8 + $0x12d4] sm:$0xf0] }
 0x634   : > { %12147 = vmatpush.bf16.msra.mxu3 %v17889_v59  ;;  %12085 = vmatmul.bf16.vlgmr.msrb.gmra.mxu2 %v27379_v11  ;;  %v17729_v17 = vor.u32 %v19687_v51, %v17728_v28  ;;  %v11820_v4 = vpop.f32.mrf.mxu3  ;;  %v19703_v28 = vld [vmem:[%s30246_s8 + $0xf34] sm:$0xf0]  ;;  %v18400_v7 = vld [vmem:[%s30246_s8 + $0x13e8] sm:$0xf] }
 0x635   : > { %12133 = vmatpush.bf16.msra.mxu2 %v17761_v41  ;;  %v19711_v41 = vld [vmem:[%s30246_s8 + $0xf74] sm:$0xf0]  ;;  %v11806_v59 = vpop.f32.mrf.mxu2  ;;  %v11793_v48 = vadd.f32 %v11792_v3, %v11779_v57  ;;  %v18384_v10 = vld [vmem:[%s30246_s8 + $0x13c8] sm:$0xf] }
 0x636   : > { %12445 = vmatpush.bf16.msra.mxu0 %v17957_v0  ;;  %v17857_v0 = vor.u32 %v19719_v30, %v17856_v27  ;;  %v19823_v3 = vld [vmem:[%s30246_s8 + $0x12f4] sm:$0xf0]  ;;  %v18368_v36 = vld [vmem:[%s30246_s8 + $0x13a8] sm:$0xf] }
 0x637   : > { %12459 = vmatpush.bf16.msra.mxu1 %v18085_v52  ;;  %v17712_v52 = vld [vmem:[%s30246_s8 + $0xe88] sm:$0xf]  ;;  %v11807_v8 = vadd.f32 %v11806_v59, %v11793_v48  ;;  %v19811_v60 = vld [vmem:[%s30246_s8 + $0x1294] sm:$0xf0] }
 0x638   : > { %12148 = vmatpush.bf16.msra.mxu3 %v17873_v22  ;;  %v17713_v21 = vor.u32 %v19683_v46, %v17712_v52  ;;  %v17792_v22 = vld [vmem:[%s30246_s8 + $0xf28] sm:$0xf]  ;;  %v11834_v51 = vpop.f32.mrf.mxu0  ;;  %v17649_v52 = vor.u32 %v19667_v24, %v17648_v12  ;;  %v18401_v46 = vor.u32 %v19855_v45, %v18400_v7  ;;  %v19835_v45 = vld [vmem:[%s30246_s8 + $0x1354] sm:$0xf0] }
 0x639   : > { %12134 = vmatpush.bf16.msra.mxu2 %v17745_v34  ;;  %v19671_v34 = vld [vmem:[%s30246_s8 + $0xe34] sm:$0xf0]  ;;  %v17793_v30 = vor.u32 %v19703_v28, %v17792_v22  ;;  %v18208_v28 = vld [vmem:[%s30246_s8 + $0x1268] sm:$0xf] }
 0x63a   : > { %12446 = vmatpush.bf16.msra.mxu0 %v17941_v56  ;;  %v17825_v56 = vor.u32 %v19711_v41, %v17824_v39  ;;  %v18257_v41 = vor.u32 %v19819_v32, %v18256_v44  ;;  %v18192_v53 = vld [vmem:[%s30246_s8 + $0x1248] sm:$0xf] }
 0x63b   : > { %12460 = vmatpush.bf16.msra.mxu1 %v18069_v26  ;;  %v17680_v26 = vld [vmem:[%s30246_s8 + $0xe48] sm:$0xf] }
 0x63c   : > { %12149 = vmatpush.bf16.msra.mxu3 %v17857_v0  ;;  %v17681_v19 = vor.u32 %v19675_v58, %v17680_v26  ;;  %v11848_v0 = vpop.f32.mrf.mxu1  ;;  %v18224_v58 = vld [vmem:[%s30246_s8 + $0x1288] sm:$0xf] }
 0x63d   : > { %12135 = vmatpush.bf16.msra.mxu2 %v17729_v17  ;;  %v11821_v17 = vadd.f32 %v11820_v4, %v11807_v8  ;;  %v18240_v4 = vld [vmem:[%s30246_s8 + $0x12a8] sm:$0xf] }
 0x63e   : > { %12447 = vmatpush.bf16.msra.mxu0 %v17925_v25  ;;  %v11808_v25 = vpop.f32.mrf.mxu2  ;;  %v18320_v7 = vld [vmem:[%s30246_s8 + $0x1348] sm:$0xf] }
 0x63f   : > { %12461 = vmatpush.bf16.msra.mxu1 %v18053_v9  ;;  %v11822_v9 = vpop.f32.mrf.mxu3  ;;  %v18304_v32 = vld [vmem:[%s30246_s8 + $0x1328] sm:$0xf] }
 0x640   : > { %12150 = vmatpush.bf16.msra.mxu3 %v17841_v6  ;;  %v11835_v6 = vadd.f32 %v11834_v51, %v11821_v17  ;;  %v11836_v39 = vpop.f32.mrf.mxu0  ;;  %v19807_v51 = vld [vmem:[%s30246_s8 + $0x1274] sm:$0xf0] }
 0x641   : > { %12136 = vmatpush.bf16.msra.mxu2 %v17713_v21  ;;  %v19851_v21 = vld [vmem:[%s30246_s8 + $0x13d4] sm:$0xf0]  ;;  %v18209_v12 = vor.u32 %v19807_v51, %v18208_v28 }
 0x642   : > { %12448 = vmatpush.bf16.msra.mxu0 %v17909_v37  ;;  %v18385_v59 = vor.u32 %v19851_v21, %v18384_v10  ;;  %v11849_v26 = vadd.f32 %v11848_v0, %v11835_v6  ;;  %v19831_v10 = vld [vmem:[%s30246_s8 + $0x1334] sm:$0xf0] }
 0x643   : > { %12462 = vmatpush.bf16.msra.mxu1 %v18037_v40  ;;  %v18273_v40 = vor.u32 %v19823_v3, %v18272_v43  ;;  %v19803_v43 = vld [vmem:[%s30246_s8 + $0x1254] sm:$0xf0] }
 0x644   : > { %12151 = vmatpush.bf16.msra.mxu3 %v17825_v56  ;;  %v11850_v5 = vpop.f32.mrf.mxu1  ;;  %v18193_v17 = vor.u32 %v19803_v43, %v18192_v53  ;;  %v19297_v53 = vld [vmem:[%s30246_s8 + $0x28c] sm:$0xf]  ;;  %v16178_v43 = vld [vmem:[%s30246_s8 + $0x298] sm:$0xf0] }
 0x645   : > { %12449 = vmatmul.bf16.vlgmr.msra.gmra.mxu0 %v30324_v20  ;;  %12137 = vmatpush.bf16.msra.mxu2 %v17697_v14  ;;  %v17664_v20 = vld [vmem:[%s30246_s8 + $0xe28] sm:$0xf]  ;;  %v19847_v14 = vld [vmem:[%s30246_s8 + $0x13b4] sm:$0xf0] }
 0x646   : > { %12463 = vmatmul.bf16.vlgmr.msra.gmra.mxu1 %v30325_v2  ;;  %v11767_v2 = vadd.f32 %v11766_v47, %v11753_v29  ;;  %v17665_v27 = vor.u32 %v19671_v34, %v17664_v20  ;;  %v11862_v13 = vpop.f32.mrf.mxu2  ;;  %v18369_v29 = vor.u32 %v19847_v14, %v18368_v36  ;;  %v18225_v34 = vor.u32 %v19811_v60, %v18224_v58  ;;  %v19309_v36 = vld [vmem:[%s30246_s8 + $0x2ec] sm:$0xf]  ;;  %v16226_v14 = vld [vmem:[%s30246_s8 + $0x2f8] sm:$0xf0] }
 0x647   : > { %v11876_v35 = vpop.f32.mrf.mxu3 }
 0x648   : > { %12152 = vmatpush.bf16.msra.mxu3 %v17809_v1  ;;  %v11781_v47 = vadd.f32 %v11780_v61, %v11767_v2  ;;  %v19815_v61 = vld [vmem:[%s30246_s8 + $0x12b4] sm:$0xf0]  ;;  %v11890_v2 = vpop.f32.mrf.mxu0 }
 0x649   : > { %12138 = vmatpush.bf16.msra.mxu2 %v17681_v19  ;;  %v18241_v57 = vor.u32 %v19815_v61, %v18240_v4  ;;  %v18352_v19 = vld [vmem:[%s30246_s8 + $0x1388] sm:$0xf]  ;;  %v19843_v1 = vld [vmem:[%s30246_s8 + $0x1394] sm:$0xf0] }
 0x64a   : > { %v11795_v37 = vadd.f32 %v11794_v63, %v11781_v47  ;;  %v11863_v63 = vadd.f32 %v11862_v13, %v11849_v26  ;;  %v18353_v22 = vor.u32 %v19843_v1, %v18352_v19  ;;  %v18288_v4 = vld [vmem:[%s30246_s8 + $0x1308] sm:$0xf]  ;;  %v19827_v61 = vld [vmem:[%s30246_s8 + $0x1314] sm:$0xf0]  ;;  %v19341_v26 = vld [vmem:[%s30246_s8 + $0x3ec] sm:$0xf]  ;;  %v16229_v19 = vor.u32 %v19309_v36, %v16226_v14 }
 0x64b   : > { %v16114_v36 = vld [vmem:[%s30246_s8 + $0x218] sm:$0xf0]  ;;  %v19313_v14 = vld [vmem:[%s30246_s8 + $0x30c] sm:$0xf] }
 0x64c   : > { %12153 = vmatpush.bf16.msra.mxu3 %v17793_v30  ;;  %v11809_v49 = vadd.f32 %v11808_v25, %v11795_v37  ;;  %v11877_v48 = vadd.f32 %v11876_v35, %v11863_v63  ;;  %v11904_v3 = vpop.f32.mrf.mxu1  ;;  %v18176_v37 = vld [vmem:[%s30246_s8 + $0x1228] sm:$0xf]  ;;  %v16354_v63 = vld [vmem:[%s30246_s8 + $0x3f8] sm:$0xf0] }
 0x64d   : > { %12139 = vmatpush.bf16.msra.mxu2 %v17665_v27  ;;  %v19839_v27 = vld [vmem:[%s30246_s8 + $0x1374] sm:$0xf0]  ;;  %v16357_v1 = vor.u32 %v19341_v26, %v16354_v63  ;;  %v19437_v26 = vld [vmem:[%s30246_s8 + $0x6ec] sm:$0xf]  ;;  %v16738_v63 = vld [vmem:[%s30246_s8 + $0x6f8] sm:$0xf0] }
 0x64e   : > { %v11823_v56 = vadd.f32 %v11822_v9, %v11809_v49  ;;  %v11864_v8 = vpop.f32.mrf.mxu2  ;;  %v18336_v9 = vld [vmem:[%s30246_s8 + $0x1368] sm:$0xf]  ;;  %v11891_v24 = vadd.f32 %v11890_v2, %v11877_v48  ;;  %v16210_v48 = vld [vmem:[%s30246_s8 + $0x2d8] sm:$0xf0] }
 0x64f   : > { %v11878_v25 = vpop.f32.mrf.mxu3  ;;  %v18337_v16 = vor.u32 %v19839_v27, %v18336_v9  ;;  %v19301_v9 = vld [vmem:[%s30246_s8 + $0x2ac] sm:$0xf]  ;;  %v16194_v27 = vld [vmem:[%s30246_s8 + $0x2b8] sm:$0xf0] }
 0x650   : > { %12154 = vmatpush.bf16.msra.mxu3 %v17777_v15  ;;  %v11837_v20 = vadd.f32 %v11836_v39, %v11823_v56  ;;  %v18321_v15 = vor.u32 %v19835_v45, %v18320_v7  ;;  %v11892_v6 = vpop.f32.mrf.mxu0  ;;  %v18305_v39 = vor.u32 %v19831_v10, %v18304_v32  ;;  %v16306_v7 = vld [vmem:[%s30246_s8 + $0x398] sm:$0xf0]  ;;  %v16181_v45 = vor.u32 %v19297_v53, %v16178_v43  ;;  %v19321_v10 = vld [vmem:[%s30246_s8 + $0x34c] sm:$0xf] }
 0x651   : > { %12140 = vmatpush.bf16.msra.mxu2 %v17649_v52  ;;  %v11905_v52 = vadd.f32 %v11904_v3, %v11891_v24  ;;  %v16322_v24 = vld [vmem:[%s30246_s8 + $0x3b8] sm:$0xf0]  ;;  %v19329_v3 = vld [vmem:[%s30246_s8 + $0x38c] sm:$0xf] }
 0x652   : > { %v11851_v30 = vadd.f32 %v11850_v5, %v11837_v20  ;;  %v18289_v5 = vor.u32 %v19827_v61, %v18288_v4  ;;  %v19305_v20 = vld [vmem:[%s30246_s8 + $0x2cc] sm:$0xf]  ;;  %v16146_v32 = vld [vmem:[%s30246_s8 + $0x258] sm:$0xf0] }
 0x653   : > { %12155 = vmatmul.bf16.vlgmr.msra.gmra.mxu3 %v27610_v42  ;;  %v19281_v61 = vld [vmem:[%s30246_s8 + $0x20c] sm:$0xf]  ;;  %v16674_v53 = vld [vmem:[%s30246_s8 + $0x678] sm:$0xf0] }
 0x654   : > { %12203 = vmatpush.bf16.msrb.mxu3 %v18401_v46  ;;  %12141 = vmatmul.bf16.vlgmr.msra.gmra.mxu2 %v27598_v31  ;;  %v11865_v47 = vadd.f32 %v11864_v8, %v11851_v30  ;;  %v16213_v8 = vor.u32 %v19305_v20, %v16210_v48  ;;  %v16722_v20 = vld [vmem:[%s30246_s8 + $0x6d8] sm:$0xf0]  ;;  %v19453_v43 = vld [vmem:[%s30246_s8 + $0x76c] sm:$0xf] }
 0x655   : > { %12189 = vmatpush.bf16.msrb.mxu2 %v18273_v40  ;;  %v19799_v40 = vld [vmem:[%s30246_s8 + $0x1234] sm:$0xf0]  ;;  %v16850_v48 = vld [vmem:[%s30246_s8 + $0x7d8] sm:$0xf0] }
 0x656   : > { %v11879_v0 = vadd.f32 %v11878_v25, %v11865_v47  ;;  %v18177_v49 = vor.u32 %v19799_v40, %v18176_v37  ;;  %v16197_v47 = vor.u32 %v19301_v9, %v16194_v27  ;;  %v16290_v37 = vld [vmem:[%s30246_s8 + $0x378] sm:$0xf0] }
 0x657   : > { %v11918_v46 = vpop.f32.mrf.mxu2  ;;  %v11932_v44 = vpop.f32.mrf.mxu3 }
 0x658   : > { %12204 = vmatpush.bf16.msrb.mxu3 %v18385_v59  ;;  %v11919_v21 = vadd.f32 %v11918_v46, %v11905_v52  ;;  %v11893_v13 = vadd.f32 %v11892_v6, %v11879_v0  ;;  %v19795_v59 = vld [vmem:[%s30246_s8 + $0x1214] sm:$0xf0]  ;;  %v19293_v0 = vld [vmem:[%s30246_s8 + $0x26c] sm:$0xf]  ;;  %v16162_v52 = vld [vmem:[%s30246_s8 + $0x278] sm:$0xf0] }
 0x659   : > { %12190 = vmatpush.bf16.msrb.mxu2 %v18257_v41  ;;  %v18160_v41 = vld [vmem:[%s30246_s8 + $0x1208] sm:$0xf]  ;;  %v16165_v40 = vor.u32 %v19293_v0, %v16162_v52  ;;  %v16658_v0 = vld [vmem:[%s30246_s8 + $0x658] sm:$0xf0]  ;;  %v19449_v52 = vld [vmem:[%s30246_s8 + $0x74c] sm:$0xf] }
 0x65a   : > { %v11933_v35 = vadd.f32 %v11932_v44, %v11919_v21  ;;  %v18161_v58 = vor.u32 %v19795_v59, %v18160_v41  ;;  %v19289_v44 = vld [vmem:[%s30246_s8 + $0x24c] sm:$0xf]  ;;  %v16274_v21 = vld [vmem:[%s30246_s8 + $0x358] sm:$0xf0] }
 0x65b   : > { %v16149_v6 = vor.u32 %v19289_v44, %v16146_v32  ;;  %v16258_v41 = vld [vmem:[%s30246_s8 + $0x338] sm:$0xf0]  ;;  %v19445_v32 = vld [vmem:[%s30246_s8 + $0x72c] sm:$0xf] }
 0x65c   : > { %12205 = vmatpush.bf16.msrb.mxu3 %v18369_v29  ;;  %v12498_v56 = vmax.f32 %v11933_v35, 0.0  ;;  %v16130_v35 = vld [vmem:[%s30246_s8 + $0x238] sm:$0xf0] }
 0x65d   : > { %12191 = vmatpush.bf16.msrb.mxu2 %v18241_v57  ;;  %v11906_v57 = vpop.f32.mrf.mxu1  ;;  %v16642_v44 = vld [vmem:[%s30246_s8 + $0x638] sm:$0xf0] }
 0x65e   : > { %12506 = vst [vmem:[%s28840_s22 + $0x8] sm:$0xff] %v12498_v56  ;;  %v11907_v29 = vadd.f32 %v11906_v57, %v11893_v13  ;;  %v19285_v13 = vld [vmem:[%s30246_s8 + $0x22c] sm:$0xf]  ;;  %v16242_v56 = vld [vmem:[%s30246_s8 + $0x318] sm:$0xf0] }
 0x65f   : > { %v11920_v60 = vpop.f32.mrf.mxu2  ;;  %v11934_v28 = vpop.f32.mrf.mxu3  ;;  %v16133_v59 = vor.u32 %v19285_v13, %v16130_v35  ;;  %v19469_v57 = vld [vmem:[%s30246_s8 + $0x7ec] sm:$0xf]  ;;  %v16626_v13 = vld [vmem:[%s30246_s8 + $0x618] sm:$0xf0] }
 0x660   : > { %12206 = vmatpush.bf16.msrb.mxu3 %v18353_v22  ;;  %v11921_v2 = vadd.f32 %v11920_v60, %v11907_v29  ;;  %v16338_v22 = vld [vmem:[%s30246_s8 + $0x3d8] sm:$0xf0]  ;;  %v16741_v60 = vor.u32 %v19437_v26, %v16738_v63  ;;  %v19441_v35 = vld [vmem:[%s30246_s8 + $0x70c] sm:$0xf] }
 0x661   : > { %12192 = vmatpush.bf16.msrb.mxu2 %v18225_v34  ;;  %v19337_v34 = vld [vmem:[%s30246_s8 + $0x3cc] sm:$0xf]  ;;  %v16866_v29 = vld [vmem:[%s30246_s8 + $0x7f8] sm:$0xf0] }
 0x662   : > { %v11935_v51 = vadd.f32 %v11934_v28, %v11921_v2  ;;  %v16341_v25 = vor.u32 %v19337_v34, %v16338_v22  ;;  %v19465_v2 = vld [vmem:[%s30246_s8 + $0x7cc] sm:$0xf] }
 0x663   : > { %v16853_v22 = vor.u32 %v19465_v2, %v16850_v48  ;;  %v19429_v28 = vld [vmem:[%s30246_s8 + $0x6ac] sm:$0xf]  ;;  %v17218_v2 = vld [vmem:[%s30246_s8 + $0xab8] sm:$0xf0] }
 0x664   : > { %12207 = vmatpush.bf16.msrb.mxu3 %v18337_v16  ;;  %v12502_v30 = vmax.f32 %v11935_v51, 0.0  ;;  %v16706_v51 = vld [vmem:[%s30246_s8 + $0x6b8] sm:$0xf0]  ;;  %v19589_v48 = vld [vmem:[%s30246_s8 + $0xbac] sm:$0xf] }
 0x665   : > { %12193 = vmatpush.bf16.msrb.mxu2 %v18209_v12  ;;  %v19333_v12 = vld [vmem:[%s30246_s8 + $0x3ac] sm:$0xf]  ;;  %v16709_v9 = vor.u32 %v19429_v28, %v16706_v51 }
 0x666   : > { %12510 = vst [vmem:[%s28840_s22 + $0x28] sm:$0xff] %v12502_v30  ;;  %v16325_v16 = vor.u32 %v19333_v12, %v16322_v24  ;;  %v19425_v30 = vld [vmem:[%s30246_s8 + $0x68c] sm:$0xf]  ;;  %v16690_v12 = vld [vmem:[%s30246_s8 + $0x698] sm:$0xf0] }
 0x667   : > { %v19457_v24 = vld [vmem:[%s30246_s8 + $0x78c] sm:$0xf] }
 0x668   : > { %12208 = vmatpush.bf16.msrb.mxu3 %v18321_v15  ;;  %v19325_v15 = vld [vmem:[%s30246_s8 + $0x36c] sm:$0xf] }
 0x669   : > { %12194 = vmatpush.bf16.msrb.mxu2 %v18193_v17  ;;  %v16309_v17 = vor.u32 %v19329_v3, %v16306_v7  ;;  %v16293_v46 = vor.u32 %v19325_v15, %v16290_v37  ;;  %v16802_v3 = vld [vmem:[%s30246_s8 + $0x778] sm:$0xf0] }
 0x66a   : > { %v16786_v15 = vld [vmem:[%s30246_s8 + $0x758] sm:$0xf0] }
 0x66c   : > { %12209 = vmatpush.bf16.msrb.mxu3 %v18305_v39  ;;  %v19317_v39 = vld [vmem:[%s30246_s8 + $0x32c] sm:$0xf] }
 0x66d   : > { %12195 = vmatpush.bf16.msrb.mxu2 %v18177_v49  ;;  %v16277_v49 = vor.u32 %v19321_v10, %v16274_v21  ;;  %v16261_v4 = vor.u32 %v19317_v39, %v16258_v41  ;;  %v16770_v10 = vld [vmem:[%s30246_s8 + $0x738] sm:$0xf0]  ;;  %v19565_v41 = vld [vmem:[%s30246_s8 + $0xaec] sm:$0xf] }
 0x66e   : > { %v16754_v39 = vld [vmem:[%s30246_s8 + $0x718] sm:$0xf0] }
 0x670   : > { %12210 = vmatpush.bf16.msrb.mxu3 %v18289_v5  ;;  %v16245_v5 = vor.u32 %v19313_v14, %v16242_v56  ;;  %v16757_v56 = vor.u32 %v19441_v35, %v16754_v39 }
 0x671   : > { %12196 = vmatpush.bf16.msrb.mxu2 %v18161_v58  ;;  %v16117_v58 = vor.u32 %v19281_v61, %v16114_v36  ;;  %v17378_v61 = vld [vmem:[%s30246_s8 + $0xbf8] sm:$0xf0]  ;;  %v11946_v36 = vpop.f32.mrf.mxu0 }
 0x673   : > { %12211 = vmatmul.bf16.vlgmr.msrb.gmra.mxu3 %v27816_v62 }
 0x674   : > { %12259 = vmatpush.bf16.msra.mxu3 %v16357_v1  ;;  %12197 = vmatmul.bf16.vlgmr.msrb.gmra.mxu2 %v27804_v33  ;;  %v19433_v1 = vld [vmem:[%s30246_s8 + $0x6cc] sm:$0xf] }
 0x675   : > { %12245 = vmatpush.bf16.msra.mxu2 %v16229_v19  ;;  %v16869_v19 = vor.u32 %v19469_v57, %v16866_v29  ;;  %v16725_v34 = vor.u32 %v19433_v1, %v16722_v20  ;;  %v19561_v57 = vld [vmem:[%s30246_s8 + $0xacc] sm:$0xf]  ;;  %v17234_v29 = vld [vmem:[%s30246_s8 + $0xad8] sm:$0xf0] }
 0x676   : > { %v19557_v20 = vld [vmem:[%s30246_s8 + $0xaac] sm:$0xf]  ;;  %v11988_v28 = vpop.f32.mrf.mxu3 }
 0x678   : > { %12260 = vmatpush.bf16.msra.mxu3 %v16341_v25  ;;  %v16834_v25 = vld [vmem:[%s30246_s8 + $0x7b8] sm:$0xf0] }
 0x679   : > { %12246 = vmatpush.bf16.msra.mxu2 %v16213_v8  ;;  %v19461_v8 = vld [vmem:[%s30246_s8 + $0x7ac] sm:$0xf]  ;;  %v11948_v51 = vpop.f32.mrf.mxu0 }
 0x67a   : > { %v16837_v27 = vor.u32 %v19461_v8, %v16834_v25  ;;  %v17221_v8 = vor.u32 %v19557_v20, %v17218_v2  ;;  %v19689_v2 = vld [vmem:[%s30246_s8 + $0xecc] sm:$0xf] }
 0x67c   : > { %12261 = vmatpush.bf16.msra.mxu3 %v16325_v16  ;;  %v19421_v16 = vld [vmem:[%s30246_s8 + $0x66c] sm:$0xf] }
 0x67d   : > { %12247 = vmatpush.bf16.msra.mxu2 %v16197_v47  ;;  %v16677_v7 = vor.u32 %v19421_v16, %v16674_v53  ;;  %v17314_v16 = vld [vmem:[%s30246_s8 + $0xb78] sm:$0xf0]  ;;  %v8171_v53 = vperm.slane %v29353_v38, 2 }
 0x67e   : > { %v17298_v38 = vld [vmem:[%s30246_s8 + $0xb58] sm:$0xf0] }
 0x680   : > { %12262 = vmatpush.bf16.msra.mxu3 %v16309_v17  ;;  %v19417_v17 = vld [vmem:[%s30246_s8 + $0x64c] sm:$0xf] }
 0x681   : > { %12248 = vmatpush.bf16.msra.mxu2 %v16181_v45  ;;  %v16805_v45 = vor.u32 %v19453_v43, %v16802_v3  ;;  %v16661_v37 = vor.u32 %v19417_v17, %v16658_v0  ;;  %v12002_v43 = vpop.f32.mrf.mxu0  ;;  %v11990_v0 = vpop.f32.mrf.mxu3 }
 0x684   : > { %12263 = vmatpush.bf16.msra.mxu3 %v16293_v46  ;;  %v19413_v46 = vld [vmem:[%s30246_s8 + $0x62c] sm:$0xf] }
 0x685   : > { %12249 = vmatpush.bf16.msra.mxu2 %v16165_v40  ;;  %v16789_v40 = vor.u32 %v19449_v52, %v16786_v15  ;;  %v16645_v21 = vor.u32 %v19413_v46, %v16642_v44  ;;  %v17170_v52 = vld [vmem:[%s30246_s8 + $0xa58] sm:$0xf0]  ;;  %v19577_v15 = vld [vmem:[%s30246_s8 + $0xb4c] sm:$0xf] }
 0x686   : > { %v17301_v46 = vor.u32 %v19577_v15, %v17298_v38  ;;  %v19541_v44 = vld [vmem:[%s30246_s8 + $0xa2c] sm:$0xf] }
 0x687   : > { %v19677_v38 = vld [vmem:[%s30246_s8 + $0xe6c] sm:$0xf] }
 0x688   : > { %12264 = vmatpush.bf16.msra.mxu3 %v16277_v49  ;;  %v19409_v49 = vld [vmem:[%s30246_s8 + $0x60c] sm:$0xf] }
 0x689   : > { %12250 = vmatpush.bf16.msra.mxu2 %v16149_v6  ;;  %v16773_v6 = vor.u32 %v19445_v32, %v16770_v10  ;;  %v16629_v14 = vor.u32 %v19409_v49, %v16626_v13  ;;  %v17154_v10 = vld [vmem:[%s30246_s8 + $0xa38] sm:$0xf0] }
 0x68a   : > { %v17157_v35 = vor.u32 %v19541_v44, %v17154_v10  ;;  %v17826_v44 = vld [vmem:[%s30246_s8 + $0xf78] sm:$0xf0] }
 0x68c   : > { %12265 = vmatpush.bf16.msra.mxu3 %v16261_v4  ;;  %v19597_v4 = vld [vmem:[%s30246_s8 + $0xbec] sm:$0xf] }
 0x68d   : > { %12251 = vmatpush.bf16.msra.mxu2 %v16133_v59  ;;  %v17250_v59 = vld [vmem:[%s30246_s8 + $0xaf8] sm:$0xf0]  ;;  %v17381_v63 = vor.u32 %v19597_v4, %v17378_v61 }
 0x68e   : > { %v17253_v26 = vor.u32 %v19565_v41, %v17250_v59  ;;  %v19537_v41 = vld [vmem:[%s30246_s8 + $0xa0c] sm:$0xf]  ;;  %v17138_v59 = vld [vmem:[%s30246_s8 + $0xa18] sm:$0xf0] }
 0x690   : > { %12266 = vmatpush.bf16.msra.mxu3 %v16245_v5  ;;  %v17362_v5 = vld [vmem:[%s30246_s8 + $0xbd8] sm:$0xf0] }
 0x691   : > { %12252 = vmatpush.bf16.msra.mxu2 %v16117_v58  ;;  %v19593_v58 = vld [vmem:[%s30246_s8 + $0xbcc] sm:$0xf] }
 0x692   : > { %v17365_v1 = vor.u32 %v19593_v58, %v17362_v5  ;;  %v17890_v58 = vld [vmem:[%s30246_s8 + $0xff8] sm:$0xf0] }
 0x693   : > { %12267 = vmatmul.bf16.vlgmr.msra.gmra.mxu3 %v27115_v55  ;;  %v16693_v55 = vor.u32 %v19425_v30, %v16690_v12 }
 0x694   : > { %12315 = vmatpush.bf16.msrb.mxu3 %v16869_v19  ;;  %12253 = vmatmul.bf16.vlgmr.msra.gmra.mxu2 %v27113_v54  ;;  %v16818_v54 = vld [vmem:[%s30246_s8 + $0x798] sm:$0xf0]  ;;  %v17237_v19 = vor.u32 %v19561_v57, %v17234_v29  ;;  %v19725_v29 = vld [vmem:[%s30246_s8 + $0xfec] sm:$0xf] }
 0x695   : > { %12301 = vmatpush.bf16.msrb.mxu2 %v16741_v60  ;;  %v16821_v47 = vor.u32 %v19457_v24, %v16818_v54  ;;  %v11960_v60 = vpop.f32.mrf.mxu1  ;;  %v19549_v24 = vld [vmem:[%s30246_s8 + $0xa6c] sm:$0xf]  ;;  %v17762_v57 = vld [vmem:[%s30246_s8 + $0xef8] sm:$0xf0]  ;;  %v17893_v20 = vor.u32 %v19725_v29, %v17890_v58 }
 0x696   : > { %v12044_v61 = vpop.f32.mrf.mxu3  ;;  %v17666_v29 = vld [vmem:[%s30246_s8 + $0xe38] sm:$0xf0]  ;;  %v19701_v58 = vld [vmem:[%s30246_s8 + $0xf2c] sm:$0xf] }
 0x698   : > { %12316 = vmatpush.bf16.msrb.mxu3 %v16853_v22  ;;  %v11974_v22 = vpop.f32.mrf.mxu2 }
 0x699   : > { %12302 = vmatpush.bf16.msrb.mxu2 %v16725_v34  ;;  %v17346_v34 = vld [vmem:[%s30246_s8 + $0xbb8] sm:$0xf0] }
 0x69a   : > { %v17349_v25 = vor.u32 %v19589_v48, %v17346_v34  ;;  %v17746_v34 = vld [vmem:[%s30246_s8 + $0xed8] sm:$0xf0] }
 0x69c   : > { %12317 = vmatpush.bf16.msrb.mxu3 %v16837_v27  ;;  %v17202_v27 = vld [vmem:[%s30246_s8 + $0xa98] sm:$0xf0] }
 0x69d   : > { %12303 = vmatpush.bf16.msrb.mxu2 %v16709_v9  ;;  %v19553_v9 = vld [vmem:[%s30246_s8 + $0xa8c] sm:$0xf]  ;;  %v11962_v54 = vpop.f32.mrf.mxu1 }
 0x69e   : > { %v17205_v30 = vor.u32 %v19553_v9, %v17202_v27  ;;  %v17749_v9 = vor.u32 %v19689_v2, %v17746_v34  ;;  %v19665_v34 = vld [vmem:[%s30246_s8 + $0xe0c] sm:$0xf] }
 0x6a0   : > { %12318 = vmatpush.bf16.msrb.mxu3 %v16821_v47  ;;  %v19581_v47 = vld [vmem:[%s30246_s8 + $0xb6c] sm:$0xf]  ;;  %v11976_v17 = vpop.f32.mrf.mxu2 }
 0x6a1   : > { %12304 = vmatpush.bf16.msrb.mxu2 %v16693_v55  ;;  %v17186_v55 = vld [vmem:[%s30246_s8 + $0xa78] sm:$0xf0] }
 0x6a2   : > { %v17189_v3 = vor.u32 %v19549_v24, %v17186_v55  ;;  %v17858_v24 = vld [vmem:[%s30246_s8 + $0xfb8] sm:$0xf0]  ;;  %v12046_v55 = vpop.f32.mrf.mxu3 }
 0x6a4   : > { %12319 = vmatpush.bf16.msrb.mxu3 %v16805_v45  ;;  %v19545_v45 = vld [vmem:[%s30246_s8 + $0xa4c] sm:$0xf] }
 0x6a5   : > { %12305 = vmatpush.bf16.msrb.mxu2 %v16677_v7  ;;  %v17317_v7 = vor.u32 %v19581_v47, %v17314_v16  ;;  %v12016_v32 = vpop.f32.mrf.mxu1 }
 0x6a8   : > { %12320 = vmatpush.bf16.msrb.mxu3 %v16789_v40  ;;  %v17173_v40 = vor.u32 %v19545_v45, %v17170_v52  ;;  %v12030_v4 = vpop.f32.mrf.mxu2  ;;  %v17714_v45 = vld [vmem:[%s30246_s8 + $0xe98] sm:$0xf0] }
 0x6a9   : > { %12306 = vmatpush.bf16.msrb.mxu2 %v16661_v37  ;;  %v11947_v37 = vadd.f32 %v11946_v36, %v8171_v53  ;;  %v19569_v36 = vld [vmem:[%s30246_s8 + $0xb0c] sm:$0xf] }
 0x6ab   : > { %v11961_v49 = vadd.f32 %v11960_v60, %v11947_v37  ;;  %v17141_v60 = vor.u32 %v19537_v41, %v17138_v59  ;;  %v17682_v59 = vld [vmem:[%s30246_s8 + $0xe58] sm:$0xf0] }
 0x6ac   : > { %12321 = vmatpush.bf16.msrb.mxu3 %v16773_v6  ;;  %v17282_v6 = vld [vmem:[%s30246_s8 + $0xb38] sm:$0xf0] }
 0x6ad   : > { %12307 = vmatpush.bf16.msrb.mxu2 %v16645_v21  ;;  %v19573_v21 = vld [vmem:[%s30246_s8 + $0xb2c] sm:$0xf]  ;;  %v11975_v13 = vadd.f32 %v11974_v22, %v11961_v49 }
 0x6ae   : > { %v17285_v39 = vor.u32 %v19573_v21, %v17282_v6  ;;  %v19721_v22 = vld [vmem:[%s30246_s8 + $0xfcc] sm:$0xf] }
 0x6af   : > { %v11989_v5 = vadd.f32 %v11988_v28, %v11975_v13  ;;  %v17874_v28 = vld [vmem:[%s30246_s8 + $0xfd8] sm:$0xf0] }
 0x6b0   : > { %12322 = vmatpush.bf16.msrb.mxu3 %v16757_v56  ;;  %v19693_v56 = vld [vmem:[%s30246_s8 + $0xeec] sm:$0xf]  ;;  %v17877_v27 = vor.u32 %v19721_v22, %v17874_v28  ;;  %v17650_v22 = vld [vmem:[%s30246_s8 + $0xe18] sm:$0xf0] }
 0x6b1   : > { %12308 = vmatpush.bf16.msrb.mxu2 %v16629_v14  ;;  %v17266_v14 = vld [vmem:[%s30246_s8 + $0xb18] sm:$0xf0] }
 0x6b3   : > { %12323 = vmatmul.bf16.vlgmr.msrb.gmra.mxu3 %v27265_v18  ;;  %v17330_v18 = vld [vmem:[%s30246_s8 + $0xb98] sm:$0xf0] }
 0x6b4   : > { %12371 = vmatpush.bf16.msra.mxu3 %v17381_v63  ;;  %12309 = vmatmul.bf16.vlgmr.msrb.gmra.mxu2 %v27262_v50  ;;  %v19585_v50 = vld [vmem:[%s30246_s8 + $0xb8c] sm:$0xf]  ;;  %v12004_v63 = vpop.f32.mrf.mxu0 }
 0x6b5   : > { %12357 = vmatpush.bf16.msra.mxu2 %v17253_v26  ;;  %v17333_v12 = vor.u32 %v19585_v50, %v17330_v18  ;;  %v11949_v26 = vadd.f32 %v11948_v51, %v8171_v53  ;;  %v12018_v51 = vpop.f32.mrf.mxu1  ;;  %v19685_v50 = vld [vmem:[%s30246_s8 + $0xeac] sm:$0xf] }
 0x6b6   : > { %v12100_v10 = vpop.f32.mrf.mxu3 }
 0x6b7   : > { %v11963_v48 = vadd.f32 %v11962_v54, %v11949_v26  ;;  %v12032_v54 = vpop.f32.mrf.mxu2  ;;  %v19669_v26 = vld [vmem:[%s30246_s8 + $0xe2c] sm:$0xf] }
 0x6b8   : > { %12372 = vmatpush.bf16.msra.mxu3 %v17365_v1  ;;  %v17765_v1 = vor.u32 %v19693_v56, %v17762_v57  ;;  %v17669_v2 = vor.u32 %v19669_v26, %v17666_v29  ;;  %v19837_v26 = vld [vmem:[%s30246_s8 + $0x136c] sm:$0xf] }
 0x6b9   : > { %12358 = vmatpush.bf16.msra.mxu2 %v17237_v19  ;;  %v17269_v19 = vor.u32 %v19569_v36, %v17266_v14 }
 0x6bc   : > { %12373 = vmatpush.bf16.msra.mxu3 %v17349_v25  ;;  %v11977_v25 = vadd.f32 %v11976_v17, %v11963_v48  ;;  %v12058_v18 = vpop.f32.mrf.mxu0 }
 0x6bd   : > { %12359 = vmatpush.bf16.msra.mxu2 %v17221_v8  ;;  %v12003_v8 = vadd.f32 %v12002_v43, %v11989_v5  ;;  %v12072_v17 = vpop.f32.mrf.mxu1  ;;  %v17794_v5 = vld [vmem:[%s30246_s8 + $0xf38] sm:$0xf0] }
 0x6be   : > { %v11991_v47 = vadd.f32 %v11990_v0, %v11977_v25  ;;  %v17797_v48 = vor.u32 %v19701_v58, %v17794_v5  ;;  %v19821_v25 = vld [vmem:[%s30246_s8 + $0x12ec] sm:$0xf] }
 0x6bf   : > { %v12017_v16 = vadd.f32 %v12016_v32, %v12003_v8  ;;  %v12086_v32 = vpop.f32.mrf.mxu2  ;;  %v17778_v8 = vld [vmem:[%s30246_s8 + $0xf18] sm:$0xf0] }
 0x6c0   : > { %12374 = vmatpush.bf16.msra.mxu3 %v17333_v12  ;;  %v19717_v12 = vld [vmem:[%s30246_s8 + $0xfac] sm:$0xf]  ;;  %v12005_v0 = vadd.f32 %v12004_v63, %v11991_v47 }
 0x6c1   : > { %12360 = vmatpush.bf16.msra.mxu2 %v17205_v30  ;;  %v17730_v30 = vld [vmem:[%s30246_s8 + $0xeb8] sm:$0xf0]  ;;  %v17861_v43 = vor.u32 %v19717_v12, %v17858_v24  ;;  %v17653_v12 = vor.u32 %v19665_v34, %v17650_v22 }
 0x6c2   : > { %v17733_v53 = vor.u32 %v19685_v50, %v17730_v30  ;;  %v12019_v6 = vadd.f32 %v12018_v51, %v12005_v0  ;;  %v19697_v51 = vld [vmem:[%s30246_s8 + $0xf0c] sm:$0xf]  ;;  %v18402_v50 = vld [vmem:[%s30246_s8 + $0x13f8] sm:$0xf0] }
 0x6c3   : > { %v17781_v24 = vor.u32 %v19697_v51, %v17778_v8  ;;  %v19797_v8 = vld [vmem:[%s30246_s8 + $0x122c] sm:$0xf] }
 0x6c4   : > { %12375 = vmatpush.bf16.msra.mxu3 %v17317_v7  ;;  %v12031_v7 = vadd.f32 %v12030_v4, %v12017_v16  ;;  %v12060_v21 = vpop.f32.mrf.mxu0  ;;  %v12033_v41 = vadd.f32 %v12032_v54, %v12019_v6  ;;  %v19705_v4 = vld [vmem:[%s30246_s8 + $0xf4c] sm:$0xf] }
 0x6c5   : > { %12361 = vmatpush.bf16.msra.mxu2 %v17189_v3  ;;  %v19681_v3 = vld [vmem:[%s30246_s8 + $0xe8c] sm:$0xf]  ;;  %v12074_v36 = vpop.f32.mrf.mxu1 }
 0x6c6   : > { %v17717_v52 = vor.u32 %v19681_v3, %v17714_v45  ;;  %v12045_v37 = vadd.f32 %v12044_v61, %v12031_v7  ;;  %v17810_v61 = vld [vmem:[%s30246_s8 + $0xf58] sm:$0xf0]  ;;  %v12047_v63 = vadd.f32 %v12046_v55, %v12033_v41  ;;  %v19817_v16 = vld [vmem:[%s30246_s8 + $0x12cc] sm:$0xf] }
 0x6c7   : > { %v17813_v56 = vor.u32 %v19705_v4, %v17810_v61  ;;  %v18386_v3 = vld [vmem:[%s30246_s8 + $0x13d8] sm:$0xf0]  ;;  %v19809_v6 = vld [vmem:[%s30246_s8 + $0x128c] sm:$0xf] }
 0x6c8   : > { %12376 = vmatpush.bf16.msra.mxu3 %v17301_v46  ;;  %v19709_v46 = vld [vmem:[%s30246_s8 + $0xf6c] sm:$0xf]  ;;  %v12061_v28 = vadd.f32 %v12060_v21, %v12047_v63  ;;  %v18338_v63 = vld [vmem:[%s30246_s8 + $0x1378] sm:$0xf0] }
 0x6c9   : > { %12362 = vmatpush.bf16.msra.mxu2 %v17173_v40  ;;  %v17698_v40 = vld [vmem:[%s30246_s8 + $0xe78] sm:$0xf0]  ;;  %v17829_v13 = vor.u32 %v19709_v46, %v17826_v44  ;;  %v19805_v61 = vld [vmem:[%s30246_s8 + $0x126c] sm:$0xf] }
 0x6ca   : > { %v17701_v49 = vor.u32 %v19677_v38, %v17698_v40  ;;  %v12075_v54 = vadd.f32 %v12074_v36, %v12061_v28  ;;  %v18242_v38 = vld [vmem:[%s30246_s8 + $0x12b8] sm:$0xf0] }
 0x6cb   : > { %v18370_v40 = vld [vmem:[%s30246_s8 + $0x13b8] sm:$0xf0] }
 0x6cc   : > { %12377 = vmatpush.bf16.msra.mxu3 %v17285_v39  ;;  %v12059_v39 = vadd.f32 %v12058_v18, %v12045_v37  ;;  %v19845_v37 = vld [vmem:[%s30246_s8 + $0x13ac] sm:$0xf]  ;;  %v18210_v36 = vld [vmem:[%s30246_s8 + $0x1278] sm:$0xf0] }
 0x6cd   : > { %12363 = vmatpush.bf16.msra.mxu2 %v17157_v35  ;;  %v19673_v35 = vld [vmem:[%s30246_s8 + $0xe4c] sm:$0xf]  ;;  %v12128_v30 = vpop.f32.mrf.mxu1  ;;  %v18373_v21 = vor.u32 %v19845_v37, %v18370_v40  ;;  %v18213_v29 = vor.u32 %v19805_v61, %v18210_v36 }
 0x6ce   : > { %v17685_v14 = vor.u32 %v19673_v35, %v17682_v59  ;;  %v12073_v57 = vadd.f32 %v12072_v17, %v12059_v39 }
 0x6d0   : > { %12378 = vmatpush.bf16.msra.mxu3 %v17269_v19  ;;  %v12087_v19 = vadd.f32 %v12086_v32, %v12073_v57 }
 0x6d1   : > { %12364 = vmatpush.bf16.msra.mxu2 %v17141_v60  ;;  %v12114_v60 = vpop.f32.mrf.mxu0 }
 0x6d2   : > { %v12101_v18 = vadd.f32 %v12100_v10, %v12087_v19  ;;  %v19801_v19 = vld [vmem:[%s30246_s8 + $0x124c] sm:$0xf] }
 0x6d3   : > { %12379 = vmatmul.bf16.vlgmr.msra.gmra.mxu3 %v27382_v23  ;;  %v17842_v23 = vld [vmem:[%s30246_s8 + $0xf98] sm:$0xf0] }
 0x6d4   : > { %12427 = vmatpush.bf16.msrb.mxu3 %v17893_v20  ;;  %12365 = vmatmul.bf16.vlgmr.msra.gmra.mxu2 %v27379_v11  ;;  %v19713_v11 = vld [vmem:[%s30246_s8 + $0xf8c] sm:$0xf]  ;;  %v12102_v20 = vpop.f32.mrf.mxu3  ;;  %v12115_v7 = vadd.f32 %v12114_v60, %v12101_v18  ;;  %v18341_v60 = vor.u32 %v19837_v26, %v18338_v63  ;;  %v18306_v18 = vld [vmem:[%s30246_s8 + $0x1338] sm:$0xf0] }
 0x6d5   : > { %12413 = vmatpush.bf16.msrb.mxu2 %v17765_v1  ;;  %v17845_v15 = vor.u32 %v19713_v11, %v17842_v23  ;;  %v12088_v1 = vpop.f32.mrf.mxu2 }
 0x6d6   : > { %v12089_v45 = vadd.f32 %v12088_v1, %v12075_v54  ;;  %v12129_v44 = vadd.f32 %v12128_v30, %v12115_v7  ;;  %v18194_v1 = vld [vmem:[%s30246_s8 + $0x1258] sm:$0xf0] }
 0x6d7   : > { %v18197_v34 = vor.u32 %v19801_v19, %v18194_v1 }
 0x6d8   : > { %12428 = vmatpush.bf16.msrb.mxu3 %v17877_v27  ;;  %v19853_v27 = vld [vmem:[%s30246_s8 + $0x13ec] sm:$0xf]  ;;  %v12103_v46 = vadd.f32 %v12102_v20, %v12089_v45 }
 0x6d9   : > { %12414 = vmatpush.bf16.msrb.mxu2 %v17749_v9  ;;  %v18274_v9 = vld [vmem:[%s30246_s8 + $0x12f8] sm:$0xf0]  ;;  %v18405_v47 = vor.u32 %v19853_v27, %v18402_v50  ;;  %v12116_v17 = vpop.f32.mrf.mxu0  ;;  %v19829_v50 = vld [vmem:[%s30246_s8 + $0x132c] sm:$0xf] }
 0x6da   : > { %v18277_v55 = vor.u32 %v19821_v25, %v18274_v9  ;;  %v12117_v35 = vadd.f32 %v12116_v17, %v12103_v46  ;;  %v18178_v25 = vld [vmem:[%s30246_s8 + $0x1238] sm:$0xf0] }
 0x6dc   : > { %12429 = vmatpush.bf16.msrb.mxu3 %v17861_v43  ;;  %v19849_v43 = vld [vmem:[%s30246_s8 + $0x13cc] sm:$0xf]  ;;  %v12156_v23 = vpop.f32.mrf.mxu3 }
 0x6dd   : > { %12415 = vmatpush.bf16.msrb.mxu2 %v17733_v53  ;;  %v18258_v53 = vld [vmem:[%s30246_s8 + $0x12d8] sm:$0xf0]  ;;  %v12142_v11 = vpop.f32.mrf.mxu2 }
 0x6de   : > { %v18261_v0 = vor.u32 %v19817_v16, %v18258_v53  ;;  %v12143_v32 = vadd.f32 %v12142_v11, %v12129_v44  ;;  %v19793_v16 = vld [vmem:[%s30246_s8 + $0x120c] sm:$0xf]  ;;  %v18162_v53 = vld [vmem:[%s30246_s8 + $0x1218] sm:$0xf0] }
 0x6e0   : > { %12430 = vmatpush.bf16.msrb.mxu3 %v17845_v15  ;;  %v19813_v15 = vld [vmem:[%s30246_s8 + $0x12ac] sm:$0xf]  ;;  %v12157_v41 = vadd.f32 %v12156_v23, %v12143_v32  ;;  %v18165_v23 = vor.u32 %v19793_v16, %v18162_v53 }
 0x6e1   : > { %12416 = vmatpush.bf16.msrb.mxu2 %v17717_v52  ;;  %v18389_v52 = vor.u32 %v19849_v43, %v18386_v3  ;;  %v18245_v10 = vor.u32 %v19813_v15, %v18242_v38  ;;  %v12170_v39 = vpop.f32.mrf.mxu0  ;;  %v19825_v43 = vld [vmem:[%s30246_s8 + $0x130c] sm:$0xf]  ;;  %v18290_v3 = vld [vmem:[%s30246_s8 + $0x1318] sm:$0xf0] }
 0x6e2   : > { %v12171_v58 = vadd.f32 %v12170_v39, %v12157_v41  ;;  %v18293_v17 = vor.u32 %v19825_v43, %v18290_v3 }
 0x6e4   : > { %12431 = vmatpush.bf16.msrb.mxu3 %v17829_v13  ;;  %v18226_v13 = vld [vmem:[%s30246_s8 + $0x1298] sm:$0xf0] }
 0x6e5   : > { %12417 = vmatpush.bf16.msrb.mxu2 %v17701_v49  ;;  %v12130_v49 = vpop.f32.mrf.mxu1  ;;  %v18229_v59 = vor.u32 %v19809_v6, %v18226_v13  ;;  %v19934_v6 = vld [vmem:[%s30247_s9] sm:$0xf] }
 0x6e6   : > { %v12131_v57 = vadd.f32 %v12130_v49, %v12117_v35  ;;  %v8172_v49 = vperm.slane %v19934_v6, 3 }
 0x6e8   : > { %12432 = vmatpush.bf16.msrb.mxu3 %v17813_v56  ;;  %v12158_v56 = vpop.f32.mrf.mxu3 }
 0x6e9   : > { %12418 = vmatpush.bf16.msrb.mxu2 %v17685_v14  ;;  %v12144_v14 = vpop.f32.mrf.mxu2 }
 0x6ea   : > { %v12145_v5 = vadd.f32 %v12144_v14, %v12131_v57 }
 0x6ec   : > { %12433 = vmatpush.bf16.msrb.mxu3 %v17797_v48  ;;  %v18322_v48 = vld [vmem:[%s30246_s8 + $0x1358] sm:$0xf0]  ;;  %v12159_v22 = vadd.f32 %v12158_v56, %v12145_v5 }
 0x6ed   : > { %12419 = vmatpush.bf16.msrb.mxu2 %v17669_v2  ;;  %v12184_v20 = vpop.f32.mrf.mxu1  ;;  %v19833_v2 = vld [vmem:[%s30246_s8 + $0x134c] sm:$0xf] }
 0x6ee   : > { %v12185_v28 = vadd.f32 %v12184_v20, %v12171_v58  ;;  %v18325_v51 = vor.u32 %v19833_v2, %v18322_v48 }
 0x6f0   : > { %12434 = vmatpush.bf16.msrb.mxu3 %v17781_v24  ;;  %v18181_v24 = vor.u32 %v19797_v8, %v18178_v25 }
 0x6f1   : > { %12420 = vmatpush.bf16.msrb.mxu2 %v17653_v12  ;;  %v12172_v12 = vpop.f32.mrf.mxu0 }
 0x6f2   : > { %v12173_v54 = vadd.f32 %v12172_v12, %v12159_v22 }
 0x6f3   : > { %12435 = vmatmul.bf16.vlgmr.msrb.gmra.mxu3 %v27610_v42  ;;  %v18354_v42 = vld [vmem:[%s30246_s8 + $0x1398] sm:$0xf0] }
 0x6f4   : > { %12483 = vmatpush.bf16.msra.mxu3 %v18405_v47  ;;  %12421 = vmatmul.bf16.vlgmr.msrb.gmra.mxu2 %v27598_v31  ;;  %v19841_v31 = vld [vmem:[%s30246_s8 + $0x138c] sm:$0xf]  ;;  %v18309_v47 = vor.u32 %v19829_v50, %v18306_v18 }
 0x6f5   : > { %12469 = vmatpush.bf16.msra.mxu2 %v18277_v55  ;;  %v18357_v4 = vor.u32 %v19841_v31, %v18354_v42  ;;  %v12186_v45 = vpop.f32.mrf.mxu1 }
 0x6f6   : > { %v12212_v27 = vpop.f32.mrf.mxu3  ;;  %v12187_v11 = vadd.f32 %v12186_v45, %v12173_v54 }
 0x6f7   : > { %v12198_v9 = vpop.f32.mrf.mxu2 }
 0x6f8   : > { %12484 = vmatpush.bf16.msra.mxu3 %v18389_v52  ;;  %v12199_v30 = vadd.f32 %v12198_v9, %v12185_v28 }
 0x6f9   : > { %12470 = vmatpush.bf16.msra.mxu2 %v18261_v0  ;;  %v12226_v40 = vpop.f32.mrf.mxu0 }
 0x6fa   : > { %v12213_v55 = vadd.f32 %v12212_v27, %v12199_v30  ;;  %v12227_v35 = vadd.f32 %v12226_v40, %v8172_v49 }
 0x6fc   : > { %12485 = vmatpush.bf16.msra.mxu3 %v18373_v21  ;;  %v12499_v7 = vmax.f32 %v12213_v55, 0.0 }
 0x6fd   : > { %12471 = vmatpush.bf16.msra.mxu2 %v18245_v10  ;;  %v12240_v46 = vpop.f32.mrf.mxu1 }
 0x6fe   : > { %12507 = vst [vmem:[%s28840_s22 + $0x10] sm:$0xff] %v12499_v7  ;;  %v12214_v15 = vpop.f32.mrf.mxu3 }
 0x6ff   : > { %v12200_v0 = vpop.f32.mrf.mxu2 }
 0x700   : > { %12486 = vmatpush.bf16.msra.mxu3 %v18357_v4  ;;  %v12201_v52 = vadd.f32 %v12200_v0, %v12187_v11 }
 0x701   : > { %12472 = vmatpush.bf16.msra.mxu2 %v18229_v59  ;;  %v12228_v10 = vpop.f32.mrf.mxu0 }
 0x702   : > { %v12215_v38 = vadd.f32 %v12214_v15, %v12201_v52  ;;  %v12229_v4 = vadd.f32 %v12228_v10, %v8172_v49 }
 0x704   : > { %12487 = vmatpush.bf16.msra.mxu3 %v18341_v60  ;;  %v12503_v37 = vmax.f32 %v12215_v38, 0.0 }
 0x705   : > { %12473 = vmatpush.bf16.msra.mxu2 %v18213_v29  ;;  %v12242_v21 = vpop.f32.mrf.mxu1 }
 0x706   : > { %12511 = vst [vmem:[%s28840_s22 + $0x30] sm:$0xff] %v12503_v37  ;;  %v12243_v14 = vadd.f32 %v12242_v21, %v12229_v4 }
 0x708   : > { %12488 = vmatpush.bf16.msra.mxu3 %v18325_v51 }
 0x709   : > { %12474 = vmatpush.bf16.msra.mxu2 %v18197_v34  ;;  %v12282_v13 = vpop.f32.mrf.mxu0 }
 0x70c   : > { %12489 = vmatpush.bf16.msra.mxu3 %v18309_v47 }
 0x70d   : > { %12475 = vmatpush.bf16.msra.mxu2 %v18181_v24  ;;  %v12296_v39 = vpop.f32.mrf.mxu1 }
 0x710   : > { %12490 = vmatpush.bf16.msra.mxu3 %v18293_v17 }
 0x711   : > { %12476 = vmatpush.bf16.msra.mxu2 %v18165_v23  ;;  %v12284_v61 = vpop.f32.mrf.mxu0 }
 0x713   : > { %12491 = vmatmul.bf16.vlgmr.msra.gmra.mxu3 %v27816_v62 }
 0x714   : > { %12477 = vmatmul.bf16.vlgmr.msra.gmra.mxu2 %v27804_v33  ;;  %v12241_v33 = vadd.f32 %v12240_v46, %v12227_v35 }
 0x715   : > { %v12298_v56 = vpop.f32.mrf.mxu1 }
 0x716   : > { %v12268_v32 = vpop.f32.mrf.mxu3 }
 0x717   : > { %v12254_v44 = vpop.f32.mrf.mxu2 }
 0x718   : > { %v12255_v41 = vadd.f32 %v12254_v44, %v12241_v33 }
 0x719   : > { %v12338_v57 = vpop.f32.mrf.mxu0 }
 0x71a   : > { %v12269_v36 = vadd.f32 %v12268_v32, %v12255_v41 }
 0x71c   : > { %v12283_v26 = vadd.f32 %v12282_v13, %v12269_v36 }
 0x71d   : > { %v12352_v1 = vpop.f32.mrf.mxu1 }
 0x71e   : > { %v12270_v42 = vpop.f32.mrf.mxu3  ;;  %v12297_v60 = vadd.f32 %v12296_v39, %v12283_v26 }
 0x71f   : > { %v12256_v31 = vpop.f32.mrf.mxu2 }
 0x720   : > { %v12257_v63 = vadd.f32 %v12256_v31, %v12243_v14 }
 0x721   : > { %v12340_v22 = vpop.f32.mrf.mxu0 }
 0x722   : > { %v12271_v5 = vadd.f32 %v12270_v42, %v12257_v63 }
 0x724   : > { %v12285_v20 = vadd.f32 %v12284_v61, %v12271_v5 }
 0x725   : > { %v12354_v25 = vpop.f32.mrf.mxu1 }
 0x726   : > { %v12299_v28 = vadd.f32 %v12298_v56, %v12285_v20 }
 0x729   : > { %v12394_v50 = vpop.f32.mrf.mxu0 }
 0x72d   : > { %v12408_v55 = vpop.f32.mrf.mxu1 }
 0x731   : > { %v12396_v7 = vpop.f32.mrf.mxu0 }
 0x735   : > { %v12410_v17 = vpop.f32.mrf.mxu1 }
 0x736   : > { %v12324_v59 = vpop.f32.mrf.mxu3 }
 0x737   : > { %v12310_v62 = vpop.f32.mrf.mxu2 }
 0x738   : > { %v12311_v19 = vadd.f32 %v12310_v62, %v12297_v60 }
 0x739   : > { %v12450_v52 = vpop.f32.mrf.mxu0 }
 0x73a   : > { %v12325_v2 = vadd.f32 %v12324_v59, %v12311_v19 }
 0x73c   : > { %v12339_v51 = vadd.f32 %v12338_v57, %v12325_v2 }
 0x73d   : > { %v12464_v32 = vpop.f32.mrf.mxu1 }
 0x73e   : > { %v12326_v58 = vpop.f32.mrf.mxu3  ;;  %v12353_v27 = vadd.f32 %v12352_v1, %v12339_v51 }
 0x73f   : > { %v12312_v29 = vpop.f32.mrf.mxu2 }
 0x740   : > { %v12313_v8 = vadd.f32 %v12312_v29, %v12299_v28 }
 0x741   : > { %v12452_v31 = vpop.f32.mrf.mxu0 }
 0x742   : > { %v12327_v9 = vadd.f32 %v12326_v58, %v12313_v8 }
 0x744   : > { %v12341_v24 = vadd.f32 %v12340_v22, %v12327_v9 }
 0x745   : > { %v12466_v33 = vpop.f32.mrf.mxu1 }
 0x746   : > { %v12355_v47 = vadd.f32 %v12354_v25, %v12341_v24 }
 0x756   : > { %v12380_v34 = vpop.f32.mrf.mxu3 }
 0x757   : > { %v12366_v48 = vpop.f32.mrf.mxu2 }
 0x758   : > { %v12367_v18 = vadd.f32 %v12366_v48, %v12353_v27 }
 0x75a   : > { %v12381_v54 = vadd.f32 %v12380_v34, %v12367_v18 }
 0x75c   : > { %v12395_v16 = vadd.f32 %v12394_v50, %v12381_v54 }
 0x75e   : > { %v12382_v12 = vpop.f32.mrf.mxu3  ;;  %v12409_v11 = vadd.f32 %v12408_v55, %v12395_v16 }
 0x75f   : > { %v12368_v30 = vpop.f32.mrf.mxu2 }
 0x760   : > { %v12369_v53 = vadd.f32 %v12368_v30, %v12355_v47 }
 0x762   : > { %v12383_v45 = vadd.f32 %v12382_v12, %v12369_v53 }
 0x764   : > { %v12397_v0 = vadd.f32 %v12396_v7, %v12383_v45 }
 0x766   : > { %v12411_v40 = vadd.f32 %v12410_v17, %v12397_v0 }
 0x776   : > { %v12436_v3 = vpop.f32.mrf.mxu3 }
 0x777   : > { %v12422_v43 = vpop.f32.mrf.mxu2 }
 0x778   : > { %v12423_v23 = vadd.f32 %v12422_v43, %v12409_v11 }
 0x77a   : > { %v12437_v15 = vadd.f32 %v12436_v3, %v12423_v23 }
 0x77c   : > { %v12451_v46 = vadd.f32 %v12450_v52, %v12437_v15 }
 0x77e   : > { %v12438_v37 = vpop.f32.mrf.mxu3  ;;  %v12465_v21 = vadd.f32 %v12464_v32, %v12451_v46 }
 0x77f   : > { %v12424_v38 = vpop.f32.mrf.mxu2 }
 0x780   : > { %v12425_v44 = vadd.f32 %v12424_v38, %v12411_v40 }
 0x782   : > { %v12439_v10 = vadd.f32 %v12438_v37, %v12425_v44 }
 0x784   : > { %v12453_v42 = vadd.f32 %v12452_v31, %v12439_v10 }
 0x786   : > { %v12467_v41 = vadd.f32 %v12466_v33, %v12453_v42 }
 0x796   : > { %v12492_v49 = vpop.f32.mrf.mxu3 }
 0x797   : > { %v12478_v6 = vpop.f32.mrf.mxu2 }
 0x798   : > { %v12479_v13 = vadd.f32 %v12478_v6, %v12465_v21 }
 0x79a   : > { %v12493_v35 = vadd.f32 %v12492_v49, %v12479_v13 }
 0x79c   : > { %v12500_v39 = vmax.f32 %v12493_v35, 0.0 }
 0x79e   : > { %12508 = vst [vmem:[%s28840_s22 + $0x18] sm:$0xff] %v12500_v39  ;;  %v12494_v4 = vpop.f32.mrf.mxu3 }
 0x79f   : > { %v12480_v62 = vpop.f32.mrf.mxu2 }
 0x7a0   : > { %v12481_v59 = vadd.f32 %v12480_v62, %v12467_v41 }
 0x7a2   : > { %v12495_v61 = vadd.f32 %v12494_v4, %v12481_v59 }
 0x7a4   : > { %v12504_v36 = vmax.f32 %v12495_v61, 0.0 }
 0x7a6   : > { %12512 = vst [vmem:[%s28840_s22 + $0x38] sm:$0xff] %v12504_v36 }
 0x7a7   : > { %19962 = shalt.err (!%p19959_p9)
}
 0x7a8   : > { %s20031_s15 = smov 512   ;;  %s20032_s22 = smov 32  }
 0x7a9   : > { %19858 = dma.vmem_to_hbm [thread:$0]  (%p20139_p3), %s12530_s30, 1024, %s12532_s23, %s12514_s18, %s20031_s15, %s20031_s15, %s20032_s22  }
 0x7aa PF: > { %s30328_s24 = sld [smem:[#allocation5_spill]]  ;;  %p19864_p10 = scmp.ge.s32.totalorder %s20029_s20, 2 }
 0x7ac   : > { %p19861_p11 = pnand %p19864_p10, %p20148_p8 }
 0x7ae   : > { %p19862_p12 = pneg %p19861_p11 }
 0x7b0   : > { %s12546_s11 = sand.u32 1, %s30328_s24  }
 0x7b1   : > { %s12547_s16 = scalar_lea.sflag [#allocation3], %s12546_s11 }
 0x7b2   : > { %19996 = dma.done.wait (%p19862_p12), %s12547_s16, 1024  }
 0x7b3   : > { %19998 = vsyncadd (%p19862_p12), %s12547_s16, 4294966272  ;;  %s23_s20 = sadd.s32 1, %s20029_s20   ;;  %s30330_s17 = sld [smem:[#allocation6_spill]] }
 0x7b4   : > { %p20_p13 = scmp.ge.s32.totalorder %s23_s20, 6   ;;  %s30331_s15 = sld [smem:[#allocation12_spill]] }
 0x7b5   : > { %s30332_s16 = sld [smem:[#allocation7_spill]]  ;;  %s30336_s13 = smov %s20005_s14 }
 0x7b6   : > { %s30333_s26 = sld [smem:[#allocation8_spill]] }
 0x7b7   : > { %s30334_s18 = sld [smem:[#allocation9_spill]] }
 0x7b8   : > { %s30335_s19 = sld [smem:[#allocation10_spill]]  ;;  %22 = sbr.rel (!%p20_p13) target bundleno = 5 (0x5), region = 98 }
 0x7b9   : > { %s30337_s14 = smov %s30330_s17 }
 0x7bc   : > { %s30338_s17 = smov %s30333_s26 }
 0x7bd   :  { %12553 = vsyncpa [#allocation3], 1 }
 0x7be   :  { %12555 = vsyncpa [#allocation3 + $0x1], 1 }

</bundles_post_ra>
